<compile_context>
chip_gen: v7x
topology: tpu7x:2x2x1
jax: 0.10.0
libtpu: 0.0.40
codegen_flags: <defaults>
</compile_context>

<pallas_src>
import functools

import jax
import jax.numpy as jnp
from jax.experimental import pallas as pl
from jax.experimental.pallas import tpu as pltpu

_EPS = 1e-6


def _vmem_capacity_bytes():
    try:
        info = pltpu.get_tpu_info()
        for name in ("vmem_capacity_bytes", "vmem_bytes", "vmem_size_bytes"):
            cap = getattr(info, name, None)
            if cap:
                return int(cap)
    except Exception:
        pass
    return 64 * 1024 * 1024          # conservative fallback: v7x per-TensorCore VMEM


_VMEM_CAP = _vmem_capacity_bytes()
# ~70% of physical VMEM, keeping headroom for compiler scratch / spills.
_VMEM_LIMIT = max(min(int(_VMEM_CAP * 0.70), _VMEM_CAP - 12 * (1 << 20)), 32 * (1 << 20))
# Per-stream tile budgets.  Each BlockSpec stream is double-buffered, and the conv kernel
# additionally holds the W-expanded slab (~3x the x tile) and an f32 accumulator chunk.
_ROW_BUDGET = _VMEM_CAP // 24        # conv row tiles        (~2.7 MiB v7x, ~5.3 MiB v5e/v6e)
_FLAT_BUDGET = _VMEM_CAP // 20       # elementwise row tiles (~3.2 MiB v7x, ~6.4 MiB v5e/v6e)


def _cparams(sem):
    return pltpu.CompilerParams(dimension_semantics=sem, vmem_limit_bytes=_VMEM_LIMIT)


def _row_tile(H, W, C, itemsize, allow_full):
    """Largest divisor of H whose row tile fits the budget.  Full-H tiles are only used
    when allow_full (N >= 2) so the pipeline / second v7x core still gets >=2 steps."""
    cands = [d for d in range(1, H + 1) if H % d == 0]
    if not allow_full and len(cands) > 1:
        cands = cands[:-1]
    best = cands[0]
    for d in cands:
        if d * W * C * itemsize <= _ROW_BUDGET:
            best = d
    return best


def _flat_tile(M, C, itemsize, allow_full):
    """Row tile for (N, M, C) kernels: multiple of 8 (sublane) dividing M."""
    cands = [d for d in range(8, M + 1, 8) if M % d == 0]
    if not cands:
        return M
    if not allow_full and len(cands) > 1:
        cands = cands[:-1]
    best = cands[0]
    for d in cands:
        if d * C * itemsize <= _FLAT_BUDGET:
            best = d
    return best


# ----------------------------------------------------------------------------
# Kernel 1: GroupNorm1 statistics -> per-(N, C) scale/shift (accumulator pattern)
# ----------------------------------------------------------------------------
def _make_gn_stats_kernel(inv_n, eps):
    def kernel(x_ref, g_ref, b_ref, c2g_ref, g2c_ref, scale_ref, shift_ref):
        r = pl.program_id(1)

        x = x_ref[0].astype(jnp.float32)                  # (TR, C)
        ps = jnp.sum(x, axis=0, keepdims=True)            # (1, C)
        pq = jnp.sum(x * x, axis=0, keepdims=True)        # (1, C)

        @pl.when(r == 0)
        def _():
            scale_ref[0] = ps
            shift_ref[0] = pq

        @pl.when(r > 0)
        def _():
            scale_ref[0] = scale_ref[0] + ps
            shift_ref[0] = shift_ref[0] + pq

        @pl.when(r == pl.num_programs(1) - 1)
        def _():
            hi = jax.lax.Precision.HIGHEST
            s = scale_ref[0]                              # channel sums
            q = shift_ref[0]                              # channel sums of squares
            gs = jnp.dot(s, c2g_ref[...], preferred_element_type=jnp.float32, precision=hi)
            gq = jnp.dot(q, c2g_ref[...], preferred_element_type=jnp.float32, precision=hi)
            mean_g = gs * inv_n
            var_g = jnp.maximum(gq * inv_n - mean_g * mean_g, 0.0)
            rstd_g = jax.lax.rsqrt(var_g + eps)
            mean_c = jnp.dot(mean_g, g2c_ref[...], preferred_element_type=jnp.float32, precision=hi)
            rstd_c = jnp.dot(rstd_g, g2c_ref[...], preferred_element_type=jnp.float32, precision=hi)
            sc = g_ref[...] * rstd_c
            scale_ref[0] = sc
            shift_ref[0] = b_ref[...] - mean_c * sc

    return kernel


def gn_scale_shift(x_flat, gamma, beta, *, num_groups):
    """x_flat: (N, M, C) (any float dtype).  Returns (scale, shift), each (N, 1, C) f32,
    such that the normalized tensor is  x * scale + shift."""
    N, M, C = x_flat.shape
    assert C % num_groups == 0
    cg = C // num_groups
    TR = _flat_tile(M, C, x_flat.dtype.itemsize, allow_full=(N >= 2))
    R = M // TR

    gid = jnp.arange(C) // cg
    c2g = (gid[:, None] == jnp.arange(num_groups)[None, :]).astype(jnp.float32)   # (C, G)
    inv_n = 1.0 / float(M * cg)

    kernel = _make_gn_stats_kernel(inv_n, _EPS)
    return pl.pallas_call(
        kernel,
        out_shape=(jax.ShapeDtypeStruct((N, 1, C), jnp.float32),
                   jax.ShapeDtypeStruct((N, 1, C), jnp.float32)),
        grid_spec=pltpu.PrefetchScalarGridSpec(
            num_scalar_prefetch=0,
            grid=(N, R),
            in_specs=[
                pl.BlockSpec((1, TR, C), lambda n, r: (n, r, 0)),
                pl.BlockSpec((1, C), lambda n, r: (0, 0)),
                pl.BlockSpec((1, C), lambda n, r: (0, 0)),
                pl.BlockSpec((C, num_groups), lambda n, r: (0, 0)),
                pl.BlockSpec((num_groups, C), lambda n, r: (0, 0)),
            ],
            out_specs=(pl.BlockSpec((1, 1, C), lambda n, r: (n, 0, 0)),
                       pl.BlockSpec((1, 1, C), lambda n, r: (n, 0, 0))),
        ),
        compiler_params=_cparams(("parallel", "arbitrary")),
    )(x_flat, gamma.reshape(1, C).astype(jnp.float32),
      beta.reshape(1, C).astype(jnp.float32), c2g, c2g.T)


# ----------------------------------------------------------------------------
# Kernel 2: fused (optional GN1-apply + SiLU) -> 3x3 conv -> + bias (+ temb vector)
#           -> optional GroupNorm2 statistics of silu(output) (fused GN2 stats)
# ----------------------------------------------------------------------------
def _make_conv3x3_kernel(TH, W, Cin, Cout, CO_T, norm_act, with_temb, with_stats,
                         inv_n=None, eps=_EPS):
    n_chunks = Cout // CO_T

    def kernel(*refs):
        it = iter(refs)
        xm_ref = next(it)
        xp_ref = next(it)
        xn_ref = next(it)
        if norm_act:
            sc_ref = next(it)
            sh_ref = next(it)
        w_ref = next(it)
        b_ref = next(it)
        if with_temb:
            t_ref = next(it)
        if with_stats:
            gam_ref = next(it)
            bet_ref = next(it)
            c2g_ref = next(it)
            g2c_ref = next(it)
        o_ref = next(it)
        if with_stats:
            sum_ref = next(it)
            sq_ref = next(it)

        r = pl.program_id(1)
        last = pl.num_programs(1) - 1

        xt = xm_ref[0]                 # (TH, W, Cin)
        prev = xp_ref[0, 0]            # (W, Cin)  row just above the tile
        nxt = xn_ref[0, 0]             # (W, Cin)  row just below the tile

        if norm_act:
            sc = sc_ref[0]             # (1, Cin) f32
            sh = sh_ref[0]

            def act(v):
                vf = v.astype(jnp.float32) * sc + sh
                return (vf * jax.nn.sigmoid(vf)).astype(jnp.bfloat16)

            xt, prev, nxt = act(xt), act(prev), act(nxt)
        else:
            xt = xt.astype(jnp.bfloat16)
            prev = prev.astype(jnp.bfloat16)
            nxt = nxt.astype(jnp.bfloat16)

        # Zero the halo rows at the image boundary (padding acts on the activated input).
        prev = prev * (r > 0).astype(prev.dtype)
        nxt = nxt * (r < last).astype(nxt.dtype)

        rows = jnp.concatenate([prev[None], xt, nxt[None]], axis=0)       # (TH+2, W, Cin)

        # W-expanded slab: slab[h, w, kx*Cin + ci] = rows[h, w + kx - 1, ci] (zero pad).
        zcol = jnp.zeros((TH + 2, 1, Cin), rows.dtype)
        left = jnp.concatenate([zcol, rows[:, :W - 1, :]], axis=1)
        right = jnp.concatenate([rows[:, 1:, :], zcol], axis=1)
        # Reshape ONCE; the per-ky matmul operands are row slices of this 2-D slab.
        slab = jnp.concatenate([left, rows, right], axis=-1).reshape((TH + 2) * W, 3 * Cin)

        bias = b_ref[...]                                                 # (1, Cout) f32
        if with_temb:
            bias = bias + t_ref[0]

        stat_s = stat_q = None
        for ci in range(n_chunks):
            c0 = ci * CO_T
            if n_chunks == 1:
                wks = [w_ref[ky] for ky in range(3)]
                bch = bias
            else:
                wks = [w_ref[ky, :, c0:c0 + CO_T] for ky in range(3)]
                bch = bias[:, c0:c0 + CO_T]
            acc = (jnp.dot(slab[0:TH * W], wks[0], preferred_element_type=jnp.float32)
                   + jnp.dot(slab[W:W + TH * W], wks[1], preferred_element_type=jnp.float32)
                   + jnp.dot(slab[2 * W:2 * W + TH * W], wks[2], preferred_element_type=jnp.float32))
            acc = acc + bch
            if n_chunks == 1:
                o_ref[0] = acc.reshape(TH, W, Cout).astype(o_ref.dtype)
            else:
                o_ref[0, :, :, c0:c0 + CO_T] = acc.reshape(TH, W, CO_T).astype(o_ref.dtype)
            if with_stats:
                a = acc * jax.nn.sigmoid(acc)                            # silu(conv2 out)
                s_c = jnp.sum(a, axis=0, keepdims=True)
                q_c = jnp.sum(a * a, axis=0, keepdims=True)
                stat_s = s_c if stat_s is None else jnp.concatenate([stat_s, s_c], axis=-1)
                stat_q = q_c if stat_q is None else jnp.concatenate([stat_q, q_c], axis=-1)

        if with_stats:
            @pl.when(r == 0)
            def _():
                sum_ref[0] = stat_s
                sq_ref[0] = stat_q

            @pl.when(r > 0)
            def _():
                sum_ref[0] = sum_ref[0] + stat_s
                sq_ref[0] = sq_ref[0] + stat_q

            @pl.when(r == last)
            def _():
                hi = jax.lax.Precision.HIGHEST
                s = sum_ref[0]
                q = sq_ref[0]
                gs = jnp.dot(s, c2g_ref[...], preferred_element_type=jnp.float32, precision=hi)
                gq = jnp.dot(q, c2g_ref[...], preferred_element_type=jnp.float32, precision=hi)
                mean_g = gs * inv_n
                var_g = jnp.maximum(gq * inv_n - mean_g * mean_g, 0.0)
                rstd_g = jax.lax.rsqrt(var_g + eps)
                mean_c = jnp.dot(mean_g, g2c_ref[...], preferred_element_type=jnp.float32, precision=hi)
                rstd_c = jnp.dot(rstd_g, g2c_ref[...], preferred_element_type=jnp.float32, precision=hi)
                scl = gam_ref[...] * rstd_c
                sum_ref[0] = scl
                sq_ref[0] = bet_ref[...] - mean_c * scl

    return kernel


def conv3x3_fused(x, w_hwio, b, t_vec=None, *, scale=None, shift=None,
                  gn_gamma=None, gn_beta=None, num_groups=32, out_dtype=jnp.bfloat16):
    """3x3 SAME conv (stride 1) over an NHWC input.

    scale/shift       : fused GroupNorm1 apply + SiLU on the input: silu(x*scale + shift).
    t_vec             : (N, Cout) per-batch vector added at every spatial position.
    gn_gamma/gn_beta  : if given, GroupNorm statistics of silu(output) are accumulated in
                        the same pass and the call returns (y, scale2, shift2)."""
    N, H, W, Cin = x.shape
    Cout = w_hwio.shape[-1]
    assert H >= 2 and W >= 2
    norm_act = scale is not None
    with_temb = t_vec is not None
    with_stats = gn_gamma is not None

    TH = _row_tile(H, W, max(Cin, Cout), 2, allow_full=(N >= 2))
    R = H // TH

    # Cout chunking bounds the live f32 accumulator (TH*W, CO_T); 128/256-wide chunks
    # keep the MXU N dimension full.  K stays 3*Cin (single-slab formulation).
    if Cout <= 256:
        CO_T = Cout
    elif Cout % 256 == 0:
        CO_T = 256
    elif Cout % 128 == 0:
        CO_T = 128
    else:
        CO_T = Cout

    w_r = w_hwio.reshape(3, 3 * Cin, Cout).astype(jnp.bfloat16)
    b_r = b.reshape(1, Cout).astype(jnp.float32)

    in_specs = [
        pl.BlockSpec((1, TH, W, Cin), lambda n, r: (n, r, 0, 0)),
        pl.BlockSpec((1, 1, W, Cin), lambda n, r: (n, jnp.maximum(r * TH - 1, 0), 0, 0)),
        pl.BlockSpec((1, 1, W, Cin), lambda n, r: (n, jnp.minimum((r + 1) * TH, H - 1), 0, 0)),
    ]
    inputs = [x.astype(jnp.bfloat16), x.astype(jnp.bfloat16), x.astype(jnp.bfloat16)]
    if norm_act:
        in_specs += [pl.BlockSpec((1, 1, Cin), lambda n, r: (n, 0, 0)),
                     pl.BlockSpec((1, 1, Cin), lambda n, r: (n, 0, 0))]
        inputs += [scale, shift]
    in_specs += [pl.BlockSpec((3, 3 * Cin, Cout), lambda n, r: (0, 0, 0)),
                 pl.BlockSpec((1, Cout), lambda n, r: (0, 0))]
    inputs += [w_r, b_r]
    if with_temb:
        in_specs += [pl.BlockSpec((1, 1, Cout), lambda n, r: (n, 0, 0))]
        inputs += [t_vec.reshape(N, 1, Cout).astype(jnp.float32)]

    inv_n = None
    if with_stats:
        assert Cout % num_groups == 0
        cg = Cout // num_groups
        gid = jnp.arange(Cout) // cg
        c2g = (gid[:, None] == jnp.arange(num_groups)[None, :]).astype(jnp.float32)
        in_specs += [pl.BlockSpec((1, Cout), lambda n, r: (0, 0)),
                     pl.BlockSpec((1, Cout), lambda n, r: (0, 0)),
                     pl.BlockSpec((Cout, num_groups), lambda n, r: (0, 0)),
                     pl.BlockSpec((num_groups, Cout), lambda n, r: (0, 0))]
        inputs += [gn_gamma.reshape(1, Cout).astype(jnp.float32),
                   gn_beta.reshape(1, Cout).astype(jnp.float32),
                   c2g, c2g.T]
        inv_n = 1.0 / float(H * W * cg)

    y_sds = jax.ShapeDtypeStruct((N, H, W, Cout), out_dtype)
    y_spec = pl.BlockSpec((1, TH, W, Cout), lambda n, r: (n, r, 0, 0))
    if with_stats:
        s_sds = jax.ShapeDtypeStruct((N, 1, Cout), jnp.float32)
        s_spec = pl.BlockSpec((1, 1, Cout), lambda n, r: (n, 0, 0))
        out_shape = (y_sds, s_sds, s_sds)
        out_specs = (y_spec, s_spec, s_spec)
        sem = ("parallel", "arbitrary")          # stats accumulate over the row axis
    else:
        out_shape = y_sds
        out_specs = y_spec
        sem = ("parallel", "parallel")

    kernel = _make_conv3x3_kernel(TH, W, Cin, Cout, CO_T, norm_act, with_temb,
                                  with_stats, inv_n=inv_n)
    return pl.pallas_call(
        kernel,
        out_shape=out_shape,
        grid_spec=pltpu.PrefetchScalarGridSpec(
            num_scalar_prefetch=0,
            grid=(N, R),
            in_specs=in_specs,
            out_specs=out_specs,
        ),
        compiler_params=_cparams(sem),
    )(*inputs)


# ----------------------------------------------------------------------------
# Kernel 3: fused epilogue:  out = shortcut + (silu(h2) * scale2 + shift2)
# ----------------------------------------------------------------------------
def _make_final_kernel(use_nin):
    def kernel(*refs):
        if use_nin:
            h_ref, sc_ref, sh_ref, x_ref, w_ref, b_ref, o_ref = refs
        else:
            h_ref, sc_ref, sh_ref, x_ref, o_ref = refs
        h = h_ref[0].astype(jnp.float32)         # (TR, Cout)
        h = h * jax.nn.sigmoid(h)
        y = h * sc_ref[0] + sh_ref[0]            # fused GroupNorm2 apply
        if use_nin:
            xs = jnp.dot(x_ref[0], w_ref[...], preferred_element_type=jnp.float32) + b_ref[...]
        else:
            xs = x_ref[0].astype(jnp.float32)
        o_ref[0] = (xs + y).astype(o_ref.dtype)

    return kernel


def final_apply(h2_flat, scale2, shift2, shortcut_flat, nin_w=None, nin_b=None,
                out_dtype=jnp.bfloat16):
    N, M, Cout = h2_flat.shape
    Cs = shortcut_flat.shape[-1]
    use_nin = nin_w is not None
    TR = _flat_tile(M, max(Cout, Cs), 2, allow_full=(N >= 2))
    R = M // TR

    in_specs = [
        pl.BlockSpec((1, TR, Cout), lambda n, r: (n, r, 0)),
        pl.BlockSpec((1, 1, Cout), lambda n, r: (n, 0, 0)),
        pl.BlockSpec((1, 1, Cout), lambda n, r: (n, 0, 0)),
        pl.BlockSpec((1, TR, Cs), lambda n, r: (n, r, 0)),
    ]
    inputs = [h2_flat, scale2, shift2, shortcut_flat.astype(jnp.bfloat16)]
    if use_nin:
        in_specs += [pl.BlockSpec((Cs, Cout), lambda n, r: (0, 0)),
                     pl.BlockSpec((1, Cout), lambda n, r: (0, 0))]
        inputs += [nin_w.astype(jnp.bfloat16), nin_b.reshape(1, Cout).astype(jnp.float32)]

    return pl.pallas_call(
        _make_final_kernel(use_nin),
        out_shape=jax.ShapeDtypeStruct((N, M, Cout), out_dtype),
        grid_spec=pltpu.PrefetchScalarGridSpec(
            num_scalar_prefetch=0,
            grid=(N, R),
            in_specs=in_specs,
            out_specs=pl.BlockSpec((1, TR, Cout), lambda n, r: (n, r, 0)),
        ),
        compiler_params=_cparams(("parallel", "parallel")),
    )(*inputs)


# ----------------------------------------------------------------------------
# ResnetBlock forward (wrapper does layout plumbing only)
# ----------------------------------------------------------------------------
def resnet_block_apply(params, x_nchw, temb, *, num_groups=32, use_conv_shortcut=False,
                       out_dtype=jnp.float32):
    N, Cin, H, W = x_nchw.shape
    Cout = params["conv1_w"].shape[-1]

    # NCHW -> NHWC (channels-last so C is the lane dim); bf16 on the HBM path.
    x = jnp.transpose(x_nchw, (0, 2, 3, 1)).astype(jnp.bfloat16)
    x_flat = x.reshape(N, H * W, Cin)

    # GroupNorm1 statistics -> per-(N, C) scale/shift; the apply is fused into conv1.
    sc1, sh1 = gn_scale_shift(x_flat, params["norm1_g"], params["norm1_b"],
                              num_groups=num_groups)

    # temb projection: far too small for a kernel launch -> plain JAX.
    if temb is not None:
        t32 = temb.astype(jnp.float32)
        t = jnp.dot(t32 * jax.nn.sigmoid(t32),
                    params["temb_w"].astype(jnp.float32)) + params["temb_b"]
    else:
        t = None

    # h = conv1(silu(norm1(x))) + temb_proj(silu(temb))
    h1 = conv3x3_fused(x, params["conv1_w"], params["conv1_b"], t_vec=t,
                       scale=sc1, shift=sh1)

    # h = conv2(h), with GroupNorm2 statistics of silu(h) accumulated in the same pass
    # (dropout == identity, eval mode).
    h2, sc2, sh2 = conv3x3_fused(h1, params["conv2_w"], params["conv2_b"],
                                 gn_gamma=params["norm2_g"], gn_beta=params["norm2_b"],
                                 num_groups=num_groups)
    h2_flat = h2.reshape(N, H * W, Cout)

    # out = shortcut + (silu(h2) * scale2 + shift2)
    if Cin != Cout:
        if use_conv_shortcut:
            xs = conv3x3_fused(x, params["convsc_w"], params["convsc_b"])
            out = final_apply(h2_flat, sc2, sh2, xs.reshape(N, H * W, Cout))
        else:
            out = final_apply(h2_flat, sc2, sh2, x_flat,
                              nin_w=params["nin_w"], nin_b=params["nin_b"])
    else:
        out = final_apply(h2_flat, sc2, sh2, x_flat)

    return jnp.transpose(out.reshape(N, H, W, Cout), (0, 3, 1, 2)).astype(out_dtype)


# ----------------------------------------------------------------------------
# Deterministic synthetic parameter init (shapes match the nn.Module)
# ----------------------------------------------------------------------------
def init_params(key, in_ch, out_ch, temb_ch, *, use_conv_shortcut=False):
    ks = jax.random.split(key, 8)
    p = {
        "norm1_g": jnp.ones((in_ch,), jnp.float32),
        "norm1_b": jnp.zeros((in_ch,), jnp.float32),
        "conv1_w": 0.05 * jax.random.normal(ks[0], (3, 3, in_ch, out_ch), jnp.float32),
        "conv1_b": 0.05 * jax.random.normal(ks[1], (out_ch,), jnp.float32),
        "temb_w": 0.05 * jax.random.normal(ks[2], (temb_ch, out_ch), jnp.float32),
        "temb_b": 0.05 * jax.random.normal(ks[3], (out_ch,), jnp.float32),
        "norm2_g": jnp.ones((out_ch,), jnp.float32),
        "norm2_b": jnp.zeros((out_ch,), jnp.float32),
        "conv2_w": 0.05 * jax.random.normal(ks[4], (3, 3, out_ch, out_ch), jnp.float32),
        "conv2_b": 0.05 * jax.random.normal(ks[5], (out_ch,), jnp.float32),
    }
    if in_ch != out_ch:
        if use_conv_shortcut:
            p["convsc_w"] = 0.05 * jax.random.normal(ks[6], (3, 3, in_ch, out_ch), jnp.float32)
            p["convsc_b"] = 0.05 * jax.random.normal(ks[7], (out_ch,), jnp.float32)
        else:
            p["nin_w"] = 0.05 * jax.random.normal(ks[6], (in_ch, out_ch), jnp.float32)
            p["nin_b"] = 0.05 * jax.random.normal(ks[7], (out_ch,), jnp.float32)
    return p


# ----------------------------------------------------------------------------
# Pure-JAX f32 reference (numerical sanity check)
# ----------------------------------------------------------------------------
def _ref_forward(params, x_nchw, temb, num_groups=32):
    hi = jax.lax.Precision.HIGHEST

    def gn(x, g, b):
        N, H, W, C = x.shape
        xg = x.reshape(N, H, W, num_groups, C // num_groups)
        mean = xg.mean(axis=(1, 2, 4), keepdims=True)
        var = xg.var(axis=(1, 2, 4), keepdims=True)
        xn = ((xg - mean) / jnp.sqrt(var + _EPS)).reshape(N, H, W, C)
        return xn * g + b

    def swish(v):
        return v * jax.nn.sigmoid(v)

    def conv(x, w, b):
        return jax.lax.conv_general_dilated(
            x, w, (1, 1), "SAME", dimension_numbers=("NHWC", "HWIO", "NHWC"),
            precision=hi) + b

    x = jnp.transpose(x_nchw, (0, 2, 3, 1))
    h = conv(swish(gn(x, params["norm1_g"], params["norm1_b"])),
             params["conv1_w"], params["conv1_b"])
    if temb is not None:
        t = jnp.dot(swish(temb), params["temb_w"], precision=hi) + params["temb_b"]
        h = h + t[:, None, None, :]
    h = conv(h, params["conv2_w"], params["conv2_b"])
    h = gn(swish(h), params["norm2_g"], params["norm2_b"])
    if "nin_w" in params:
        xs = jnp.dot(x, params["nin_w"], precision=hi) + params["nin_b"]
    elif "convsc_w" in params:
        xs = conv(x, params["convsc_w"], params["convsc_b"])
    else:
        xs = x
    return jnp.transpose(xs + h, (0, 3, 1, 2))


if __name__ == "__main__":
    # Cin must be a multiple of 32 (GroupNorm groups); Cout=128 keeps output stores
    # lane-dense; Cin != Cout exercises the fused nin (1x1) shortcut path.
    N, Cin, H, W = 2, 64, 16, 16
    Cout, Tc = 128, 128

    key = jax.random.PRNGKey(0)
    kx, kt, kp = jax.random.split(key, 3)
    x = jax.random.normal(kx, (N, Cin, H, W), jnp.float32)
    temb = jax.random.normal(kt, (N, Tc), jnp.float32)
    params = init_params(kp, Cin, Cout, Tc)

    fwd = jax.jit(functools.partial(resnet_block_apply, num_groups=32,
                                    use_conv_shortcut=False))
    out = jax.block_until_ready(fwd(params, x, temb))
    assert out.shape == (N, Cout, H, W), out.shape

    ref = jax.block_until_ready(_ref_forward(params, x, temb))
    err = float(jnp.max(jnp.abs(out - ref)))
    # bf16 HBM path (x, h1, h2, output) + bf16 MXU operands vs a fully-f32 HIGHEST
    # reference -> relaxed (but still structural-bug-catching) tolerance.
    assert jnp.allclose(out, ref, rtol=5e-2, atol=5e-2), err

    print("KERNEL_OK")
</pallas_src>

<mosaic_0001>
module attributes {stable_mosaic.version = 11 : i64} {
  func.func @kernel(%arg0: i32, %arg1: i32, %arg2: memref<1x256x64xbf16, #tpu.memory_space<vmem>>, %arg3: memref<1x64xf32, #tpu.memory_space<vmem>>, %arg4: memref<1x64xf32, #tpu.memory_space<vmem>>, %arg5: memref<64x32xf32, #tpu.memory_space<vmem>>, %arg6: memref<32x64xf32, #tpu.memory_space<vmem>>, %arg7: memref<1x1x64xf32, #tpu.memory_space<vmem>>, %arg8: memref<1x1x64xf32, #tpu.memory_space<vmem>>) attributes {dimension_semantics = [#tpu.dimension_semantics<parallel>, #tpu.dimension_semantics<arbitrary>], iteration_bounds = array<i64: 2, 1>, scalar_prefetch = 0 : i64, scratch_operands = 0 : i64, tpu.core_type = #tpu.core_type<tc>, window_params = [{transform_indices = @transform_0, window_bounds = array<i64: 1, 256, 64>}, {pipeline_mode = #tpu.pipeline_mode<synchronous>, transform_indices = @transform_1, window_bounds = array<i64: 1, 64>}, {pipeline_mode = #tpu.pipeline_mode<synchronous>, transform_indices = @transform_2, window_bounds = array<i64: 1, 64>}, {pipeline_mode = #tpu.pipeline_mode<synchronous>, transform_indices = @transform_3, window_bounds = array<i64: 64, 32>}, {pipeline_mode = #tpu.pipeline_mode<synchronous>, transform_indices = @transform_4, window_bounds = array<i64: 32, 64>}, {transform_indices = @transform_5, window_bounds = array<i64: 1, 1, 64>}, {transform_indices = @transform_6, window_bounds = array<i64: 1, 1, 64>}]} {
    %c0 = arith.constant 0 : index
    %c0_0 = arith.constant 0 : index
    %c0_1 = arith.constant 0 : index
    %0 = vector.load %arg2[%c0, %c0_0, %c0_1] : memref<1x256x64xbf16, #tpu.memory_space<vmem>>, vector<1x256x64xbf16>
    %1 = vector.shape_cast %0 : vector<1x256x64xbf16> to vector<256x64xbf16>
    %2 = arith.extf %1 : vector<256x64xbf16> to vector<256x64xf32>
    %cst = arith.constant dense<0.000000e+00> : vector<64xf32>
    %3 = vector.multi_reduction <add>, %2, %cst [0] : vector<256x64xf32> to vector<64xf32>
    %4 = vector.shape_cast %3 : vector<64xf32> to vector<1x64xf32>
    %5 = arith.mulf %2, %2 : vector<256x64xf32>
    %cst_2 = arith.constant dense<0.000000e+00> : vector<64xf32>
    %6 = vector.multi_reduction <add>, %5, %cst_2 [0] : vector<256x64xf32> to vector<64xf32>
    %7 = vector.shape_cast %6 : vector<64xf32> to vector<1x64xf32>
    %c0_i32 = arith.constant 0 : i32
    %8 = arith.cmpi eq, %arg1, %c0_i32 : i32
    %9 = arith.extui %8 : i1 to i32
    %c0_i32_3 = arith.constant 0 : i32
    %10 = arith.cmpi ne, %9, %c0_i32_3 : i32
    scf.if %10 {
      %c0_8 = arith.constant 0 : index
      %c0_9 = arith.constant 0 : index
      %c0_10 = arith.constant 0 : index
      %17 = vector.load %arg7[%c0_8, %c0_9, %c0_10] : memref<1x1x64xf32, #tpu.memory_space<vmem>>, vector<1x1x64xf32>
      %18 = vector.shape_cast %17 : vector<1x1x64xf32> to vector<1x64xf32>
      %19 = vector.shape_cast %4 : vector<1x64xf32> to vector<1x1x64xf32>
      tpu.vector_store %arg7[%c0_8, %c0_9, %c0_10], %19 {strides = array<i32>} : memref<1x1x64xf32, #tpu.memory_space<vmem>>, vector<1x1x64xf32>,
      %c0_11 = arith.constant 0 : index
      %c0_12 = arith.constant 0 : index
      %c0_13 = arith.constant 0 : index
      %20 = vector.load %arg8[%c0_11, %c0_12, %c0_13] : memref<1x1x64xf32, #tpu.memory_space<vmem>>, vector<1x1x64xf32>
      %21 = vector.shape_cast %20 : vector<1x1x64xf32> to vector<1x64xf32>
      %22 = vector.shape_cast %7 : vector<1x64xf32> to vector<1x1x64xf32>
      tpu.vector_store %arg8[%c0_11, %c0_12, %c0_13], %22 {strides = array<i32>} : memref<1x1x64xf32, #tpu.memory_space<vmem>>, vector<1x1x64xf32>,
    } else {
    }
    %c0_i32_4 = arith.constant 0 : i32
    %11 = arith.cmpi sgt, %arg1, %c0_i32_4 : i32
    %12 = arith.extui %11 : i1 to i32
    %c0_i32_5 = arith.constant 0 : i32
    %13 = arith.cmpi ne, %12, %c0_i32_5 : i32
    scf.if %13 {
      %c0_8 = arith.constant 0 : index
      %c0_9 = arith.constant 0 : index
      %c0_10 = arith.constant 0 : index
      %17 = vector.load %arg7[%c0_8, %c0_9, %c0_10] : memref<1x1x64xf32, #tpu.memory_space<vmem>>, vector<1x1x64xf32>
      %18 = vector.shape_cast %17 : vector<1x1x64xf32> to vector<1x64xf32>
      %19 = arith.addf %18, %4 : vector<1x64xf32>
      %c0_11 = arith.constant 0 : index
      %c0_12 = arith.constant 0 : index
      %c0_13 = arith.constant 0 : index
      %20 = vector.load %arg7[%c0_11, %c0_12, %c0_13] : memref<1x1x64xf32, #tpu.memory_space<vmem>>, vector<1x1x64xf32>
      %21 = vector.shape_cast %20 : vector<1x1x64xf32> to vector<1x64xf32>
      %22 = vector.shape_cast %19 : vector<1x64xf32> to vector<1x1x64xf32>
      tpu.vector_store %arg7[%c0_11, %c0_12, %c0_13], %22 {strides = array<i32>} : memref<1x1x64xf32, #tpu.memory_space<vmem>>, vector<1x1x64xf32>,
      %c0_14 = arith.constant 0 : index
      %c0_15 = arith.constant 0 : index
      %c0_16 = arith.constant 0 : index
      %23 = vector.load %arg8[%c0_14, %c0_15, %c0_16] : memref<1x1x64xf32, #tpu.memory_space<vmem>>, vector<1x1x64xf32>
      %24 = vector.shape_cast %23 : vector<1x1x64xf32> to vector<1x64xf32>
      %25 = arith.addf %24, %7 : vector<1x64xf32>
      %c0_17 = arith.constant 0 : index
      %c0_18 = arith.constant 0 : index
      %c0_19 = arith.constant 0 : index
      %26 = vector.load %arg8[%c0_17, %c0_18, %c0_19] : memref<1x1x64xf32, #tpu.memory_space<vmem>>, vector<1x1x64xf32>
      %27 = vector.shape_cast %26 : vector<1x1x64xf32> to vector<1x64xf32>
      %28 = vector.shape_cast %25 : vector<1x64xf32> to vector<1x1x64xf32>
      tpu.vector_store %arg8[%c0_17, %c0_18, %c0_19], %28 {strides = array<i32>} : memref<1x1x64xf32, #tpu.memory_space<vmem>>, vector<1x1x64xf32>,
    } else {
    }
    %c0_i32_6 = arith.constant 0 : i32
    %14 = arith.cmpi eq, %arg1, %c0_i32_6 : i32
    %15 = arith.extui %14 : i1 to i32
    %c0_i32_7 = arith.constant 0 : i32
    %16 = arith.cmpi ne, %15, %c0_i32_7 : i32
    scf.if %16 {
      %c0_8 = arith.constant 0 : index
      %c0_9 = arith.constant 0 : index
      %c0_10 = arith.constant 0 : index
      %17 = vector.load %arg7[%c0_8, %c0_9, %c0_10] : memref<1x1x64xf32, #tpu.memory_space<vmem>>, vector<1x1x64xf32>
      %18 = vector.shape_cast %17 : vector<1x1x64xf32> to vector<1x64xf32>
      %c0_11 = arith.constant 0 : index
      %c0_12 = arith.constant 0 : index
      %c0_13 = arith.constant 0 : index
      %19 = vector.load %arg8[%c0_11, %c0_12, %c0_13] : memref<1x1x64xf32, #tpu.memory_space<vmem>>, vector<1x1x64xf32>
      %20 = vector.shape_cast %19 : vector<1x1x64xf32> to vector<1x64xf32>
      %c0_14 = arith.constant 0 : index
      %c0_15 = arith.constant 0 : index
      %21 = vector.load %arg5[%c0_14, %c0_15] : memref<64x32xf32, #tpu.memory_space<vmem>>, vector<64x32xf32>
      %cst_16 = arith.constant dense<0.000000e+00> : vector<1x32xf32>
      %22 = tpu.matmul %18, %21, %cst_16 {dimension_numbers = #tpu.dot_dimension_numbers<[1], [0], [0], [1], [0, 0, 1, 1], [], []>, precision = #tpu.contract_precision<fp32>} : vector<1x64xf32>, vector<64x32xf32>, vector<1x32xf32> -> vector<1x32xf32>
      %c0_17 = arith.constant 0 : index
      %c0_18 = arith.constant 0 : index
      %23 = vector.load %arg5[%c0_17, %c0_18] : memref<64x32xf32, #tpu.memory_space<vmem>>, vector<64x32xf32>
      %cst_19 = arith.constant dense<0.000000e+00> : vector<1x32xf32>
      %24 = tpu.matmul %20, %23, %cst_19 {dimension_numbers = #tpu.dot_dimension_numbers<[1], [0], [0], [1], [0, 0, 1, 1], [], []>, precision = #tpu.contract_precision<fp32>} : vector<1x64xf32>, vector<64x32xf32>, vector<1x32xf32> -> vector<1x32xf32>
      %cst_20 = arith.constant 0.001953125 : f32
      %25 = vector.broadcast %cst_20 : f32 to vector<1x32xf32>
      %26 = arith.mulf %22, %25 : vector<1x32xf32>
      %cst_21 = arith.constant 0.001953125 : f32
      %27 = vector.broadcast %cst_21 : f32 to vector<1x32xf32>
      %28 = arith.mulf %24, %27 : vector<1x32xf32>
      %29 = arith.mulf %26, %26 : vector<1x32xf32>
      %30 = arith.subf %28, %29 : vector<1x32xf32>
      %cst_22 = arith.constant 0.000000e+00 : f32
      %31 = vector.broadcast %cst_22 : f32 to vector<1x32xf32>
      %32 = arith.maximumf %30, %31 : vector<1x32xf32>
      %cst_23 = arith.constant 9.99999997E-7 : f32
      %33 = vector.broadcast %cst_23 : f32 to vector<1x32xf32>
      %34 = arith.addf %32, %33 : vector<1x32xf32>
      %35 = math.rsqrt %34 : vector<1x32xf32>
      %c0_24 = arith.constant 0 : index
      %c0_25 = arith.constant 0 : index
      %36 = vector.load %arg6[%c0_24, %c0_25] : memref<32x64xf32, #tpu.memory_space<vmem>>, vector<32x64xf32>
      %cst_26 = arith.constant dense<0.000000e+00> : vector<1x64xf32>
      %37 = tpu.matmul %26, %36, %cst_26 {dimension_numbers = #tpu.dot_dimension_numbers<[1], [0], [0], [1], [0, 0, 1, 1], [], []>, precision = #tpu.contract_precision<fp32>} : vector<1x32xf32>, vector<32x64xf32>, vector<1x64xf32> -> vector<1x64xf32>
      %c0_27 = arith.constant 0 : index
      %c0_28 = arith.constant 0 : index
      %38 = vector.load %arg6[%c0_27, %c0_28] : memref<32x64xf32, #tpu.memory_space<vmem>>, vector<32x64xf32>
      %cst_29 = arith.constant dense<0.000000e+00> : vector<1x64xf32>
      %39 = tpu.matmul %35, %38, %cst_29 {dimension_numbers = #tpu.dot_dimension_numbers<[1], [0], [0], [1], [0, 0, 1, 1], [], []>, precision = #tpu.contract_precision<fp32>} : vector<1x32xf32>, vector<32x64xf32>, vector<1x64xf32> -> vector<1x64xf32>
      %c0_30 = arith.constant 0 : index
      %c0_31 = arith.constant 0 : index
      %40 = vector.load %arg3[%c0_30, %c0_31] : memref<1x64xf32, #tpu.memory_space<vmem>>, vector<1x64xf32>
      %41 = arith.mulf %40, %39 : vector<1x64xf32>
      %c0_32 = arith.constant 0 : index
      %c0_33 = arith.constant 0 : index
      %c0_34 = arith.constant 0 : index
      %42 = vector.load %arg7[%c0_32, %c0_33, %c0_34] : memref<1x1x64xf32, #tpu.memory_space<vmem>>, vector<1x1x64xf32>
      %43 = vector.shape_cast %42 : vector<1x1x64xf32> to vector<1x64xf32>
      %44 = vector.shape_cast %41 : vector<1x64xf32> to vector<1x1x64xf32>
      tpu.vector_store %arg7[%c0_32, %c0_33, %c0_34], %44 {strides = array<i32>} : memref<1x1x64xf32, #tpu.memory_space<vmem>>, vector<1x1x64xf32>,
      %c0_35 = arith.constant 0 : index
      %c0_36 = arith.constant 0 : index
      %45 = vector.load %arg4[%c0_35, %c0_36] : memref<1x64xf32, #tpu.memory_space<vmem>>, vector<1x64xf32>
      %46 = arith.mulf %37, %41 : vector<1x64xf32>
      %47 = arith.subf %45, %46 : vector<1x64xf32>
      %c0_37 = arith.constant 0 : index
      %c0_38 = arith.constant 0 : index
      %c0_39 = arith.constant 0 : index
      %48 = vector.load %arg8[%c0_37, %c0_38, %c0_39] : memref<1x1x64xf32, #tpu.memory_space<vmem>>, vector<1x1x64xf32>
      %49 = vector.shape_cast %48 : vector<1x1x64xf32> to vector<1x64xf32>
      %50 = vector.shape_cast %47 : vector<1x64xf32> to vector<1x1x64xf32>
      tpu.vector_store %arg8[%c0_37, %c0_38, %c0_39], %50 {strides = array<i32>} : memref<1x1x64xf32, #tpu.memory_space<vmem>>, vector<1x1x64xf32>,
    } else {
    }
    return
  }
  func.func @transform_0(%arg0: i32, %arg1: i32) -> (i32, i32, i32) {
    %c0_i32 = arith.constant 0 : i32
    %c0_i32_0 = arith.constant 0 : i32
    return %arg0, %arg1, %c0_i32 : i32, i32, i32
  }
  func.func @transform_1(%arg0: i32, %arg1: i32) -> (i32, i32) {
    %c0_i32 = arith.constant 0 : i32
    %c0_i32_0 = arith.constant 0 : i32
    %c0_i32_1 = arith.constant 0 : i32
    return %c0_i32, %c0_i32_0 : i32, i32
  }
  func.func @transform_2(%arg0: i32, %arg1: i32) -> (i32, i32) {
    %c0_i32 = arith.constant 0 : i32
    %c0_i32_0 = arith.constant 0 : i32
    %c0_i32_1 = arith.constant 0 : i32
    return %c0_i32, %c0_i32_0 : i32, i32
  }
  func.func @transform_3(%arg0: i32, %arg1: i32) -> (i32, i32) {
    %c0_i32 = arith.constant 0 : i32
    %c0_i32_0 = arith.constant 0 : i32
    %c0_i32_1 = arith.constant 0 : i32
    return %c0_i32, %c0_i32_0 : i32, i32
  }
  func.func @transform_4(%arg0: i32, %arg1: i32) -> (i32, i32) {
    %c0_i32 = arith.constant 0 : i32
    %c0_i32_0 = arith.constant 0 : i32
    %c0_i32_1 = arith.constant 0 : i32
    return %c0_i32, %c0_i32_0 : i32, i32
  }
  func.func @transform_5(%arg0: i32, %arg1: i32) -> (i32, i32, i32) {
    %c0_i32 = arith.constant 0 : i32
    %c0_i32_0 = arith.constant 0 : i32
    %c0_i32_1 = arith.constant 0 : i32
    return %arg0, %c0_i32, %c0_i32_0 : i32, i32, i32
  }
  func.func @transform_6(%arg0: i32, %arg1: i32) -> (i32, i32, i32) {
    %c0_i32 = arith.constant 0 : i32
    %c0_i32_0 = arith.constant 0 : i32
    %c0_i32_1 = arith.constant 0 : i32
    return %arg0, %c0_i32, %c0_i32_0 : i32, i32, i32
  }
}

module attributes {stable_mosaic.version = 11 : i64} {
  func.func @kernel(%arg0: i32, %arg1: i32, %arg2: memref<1x16x16x64xbf16, #tpu.memory_space<vmem>>, %arg3: memref<1x1x16x64xbf16, #tpu.memory_space<vmem>>, %arg4: memref<1x1x16x64xbf16, #tpu.memory_space<vmem>>, %arg5: memref<1x1x64xf32, #tpu.memory_space<vmem>>, %arg6: memref<1x1x64xf32, #tpu.memory_space<vmem>>, %arg7: memref<3x192x128xbf16, #tpu.memory_space<vmem>>, %arg8: memref<1x128xf32, #tpu.memory_space<vmem>>, %arg9: memref<1x1x128xf32, #tpu.memory_space<vmem>>, %arg10: memref<1x16x16x128xbf16, #tpu.memory_space<vmem>>) attributes {dimension_semantics = [#tpu.dimension_semantics<parallel>, #tpu.dimension_semantics<parallel>], iteration_bounds = array<i64: 2, 1>, scalar_prefetch = 0 : i64, scratch_operands = 0 : i64, tpu.core_type = #tpu.core_type<tc>, window_params = [{transform_indices = @transform_0, window_bounds = array<i64: 1, 16, 16, 64>}, {transform_indices = @transform_1, window_bounds = array<i64: 1, 1, 16, 64>}, {transform_indices = @transform_2, window_bounds = array<i64: 1, 1, 16, 64>}, {transform_indices = @transform_3, window_bounds = array<i64: 1, 1, 64>}, {transform_indices = @transform_4, window_bounds = array<i64: 1, 1, 64>}, {pipeline_mode = #tpu.pipeline_mode<synchronous>, transform_indices = @transform_5, window_bounds = array<i64: 3, 192, 128>}, {pipeline_mode = #tpu.pipeline_mode<synchronous>, transform_indices = @transform_6, window_bounds = array<i64: 1, 128>}, {transform_indices = @transform_7, window_bounds = array<i64: 1, 1, 128>}, {transform_indices = @transform_8, window_bounds = array<i64: 1, 16, 16, 128>}]} {
    %c0 = arith.constant 0 : index
    %c0_0 = arith.constant 0 : index
    %c0_1 = arith.constant 0 : index
    %c0_2 = arith.constant 0 : index
    %0 = vector.load %arg2[%c0, %c0_0, %c0_1, %c0_2] : memref<1x16x16x64xbf16, #tpu.memory_space<vmem>>, vector<1x16x16x64xbf16>
    %1 = vector.shape_cast %0 : vector<1x16x16x64xbf16> to vector<16x16x64xbf16>
    %c0_3 = arith.constant 0 : index
    %c0_4 = arith.constant 0 : index
    %c0_5 = arith.constant 0 : index
    %c0_6 = arith.constant 0 : index
    %2 = vector.load %arg3[%c0_3, %c0_4, %c0_5, %c0_6] : memref<1x1x16x64xbf16, #tpu.memory_space<vmem>>, vector<1x1x16x64xbf16>
    %3 = vector.shape_cast %2 : vector<1x1x16x64xbf16> to vector<16x64xbf16>
    %c0_7 = arith.constant 0 : index
    %c0_8 = arith.constant 0 : index
    %c0_9 = arith.constant 0 : index
    %c0_10 = arith.constant 0 : index
    %4 = vector.load %arg4[%c0_7, %c0_8, %c0_9, %c0_10] : memref<1x1x16x64xbf16, #tpu.memory_space<vmem>>, vector<1x1x16x64xbf16>
    %5 = vector.shape_cast %4 : vector<1x1x16x64xbf16> to vector<16x64xbf16>
    %c0_11 = arith.constant 0 : index
    %c0_12 = arith.constant 0 : index
    %c0_13 = arith.constant 0 : index
    %6 = vector.load %arg5[%c0_11, %c0_12, %c0_13] : memref<1x1x64xf32, #tpu.memory_space<vmem>>, vector<1x1x64xf32>
    %7 = vector.shape_cast %6 : vector<1x1x64xf32> to vector<1x64xf32>
    %c0_14 = arith.constant 0 : index
    %c0_15 = arith.constant 0 : index
    %c0_16 = arith.constant 0 : index
    %8 = vector.load %arg6[%c0_14, %c0_15, %c0_16] : memref<1x1x64xf32, #tpu.memory_space<vmem>>, vector<1x1x64xf32>
    %9 = vector.shape_cast %8 : vector<1x1x64xf32> to vector<1x64xf32>
    %10 = arith.extf %1 : vector<16x16x64xbf16> to vector<16x16x64xf32>
    %11 = vector.shape_cast %7 : vector<1x64xf32> to vector<1x1x64xf32>
    %12 = vector.broadcast %11 : vector<1x1x64xf32> to vector<16x16x64xf32>
    %13 = arith.mulf %10, %12 : vector<16x16x64xf32>
    %14 = vector.shape_cast %9 : vector<1x64xf32> to vector<1x1x64xf32>
    %15 = vector.broadcast %14 : vector<1x1x64xf32> to vector<16x16x64xf32>
    %16 = arith.addf %13, %15 : vector<16x16x64xf32>
    %17 = arith.negf %16 : vector<16x16x64xf32>
    %18 = math.exp %17 : vector<16x16x64xf32>
    %cst = arith.constant 1.000000e+00 : f32
    %19 = vector.broadcast %cst : f32 to vector<16x16x64xf32>
    %20 = arith.addf %19, %18 : vector<16x16x64xf32>
    %21 = arith.divf %19, %20 : vector<16x16x64xf32>
    %22 = arith.mulf %16, %21 : vector<16x16x64xf32>
    %23 = arith.truncf %22 : vector<16x16x64xf32> to vector<16x16x64xbf16>
    %24 = arith.extf %3 : vector<16x64xbf16> to vector<16x64xf32>
    %25 = vector.broadcast %7 : vector<1x64xf32> to vector<16x64xf32>
    %26 = arith.mulf %24, %25 : vector<16x64xf32>
    %27 = vector.broadcast %9 : vector<1x64xf32> to vector<16x64xf32>
    %28 = arith.addf %26, %27 : vector<16x64xf32>
    %29 = arith.negf %28 : vector<16x64xf32>
    %30 = math.exp %29 : vector<16x64xf32>
    %cst_17 = arith.constant 1.000000e+00 : f32
    %31 = vector.broadcast %cst_17 : f32 to vector<16x64xf32>
    %32 = arith.addf %31, %30 : vector<16x64xf32>
    %33 = arith.divf %31, %32 : vector<16x64xf32>
    %34 = arith.mulf %28, %33 : vector<16x64xf32>
    %35 = arith.truncf %34 : vector<16x64xf32> to vector<16x64xbf16>
    %36 = arith.extf %5 : vector<16x64xbf16> to vector<16x64xf32>
    %37 = vector.broadcast %7 : vector<1x64xf32> to vector<16x64xf32>
    %38 = arith.mulf %36, %37 : vector<16x64xf32>
    %39 = vector.broadcast %9 : vector<1x64xf32> to vector<16x64xf32>
    %40 = arith.addf %38, %39 : vector<16x64xf32>
    %41 = arith.negf %40 : vector<16x64xf32>
    %42 = math.exp %41 : vector<16x64xf32>
    %cst_18 = arith.constant 1.000000e+00 : f32
    %43 = vector.broadcast %cst_18 : f32 to vector<16x64xf32>
    %44 = arith.addf %43, %42 : vector<16x64xf32>
    %45 = arith.divf %43, %44 : vector<16x64xf32>
    %46 = arith.mulf %40, %45 : vector<16x64xf32>
    %47 = arith.truncf %46 : vector<16x64xf32> to vector<16x64xbf16>
    %c0_i32 = arith.constant 0 : i32
    %48 = arith.cmpi sgt, %arg1, %c0_i32 : i32
    %49 = arith.extui %48 : i1 to i32
    %50 = arith.sitofp %49 : i32 to f32
    %51 = arith.truncf %50 : f32 to bf16
    %52 = vector.broadcast %51 : bf16 to vector<16x64xbf16>
    %53 = arith.mulf %35, %52 : vector<16x64xbf16>
    %c0_i32_19 = arith.constant 0 : i32
    %54 = arith.cmpi slt, %arg1, %c0_i32_19 : i32
    %55 = arith.extui %54 : i1 to i32
    %56 = arith.sitofp %55 : i32 to f32
    %57 = arith.truncf %56 : f32 to bf16
    %58 = vector.broadcast %57 : bf16 to vector<16x64xbf16>
    %59 = arith.mulf %47, %58 : vector<16x64xbf16>
    %60 = vector.shape_cast %53 : vector<16x64xbf16> to vector<1x16x64xbf16>
    %61 = vector.shape_cast %59 : vector<16x64xbf16> to vector<1x16x64xbf16>
    %62 = tpu.concatenate %60, %23, %61 in 0 : vector<1x16x64xbf16>, vector<16x16x64xbf16>, vector<1x16x64xbf16> -> vector<18x16x64xbf16>
    %cst_20 = arith.constant 0.000000e+00 : bf16
    %63 = vector.broadcast %cst_20 : bf16 to vector<18x1x64xbf16>
    %64 = vector.extract_strided_slice %62 {offsets = [0, 0, 0], sizes = [18, 15, 64], strides = [1, 1, 1]} : vector<18x16x64xbf16> to vector<18x15x64xbf16>
    %65 = tpu.concatenate %63, %64 in 1 : vector<18x1x64xbf16>, vector<18x15x64xbf16> -> vector<18x16x64xbf16>
    %66 = vector.extract_strided_slice %62 {offsets = [0, 1, 0], sizes = [18, 15, 64], strides = [1, 1, 1]} : vector<18x16x64xbf16> to vector<18x15x64xbf16>
    %67 = tpu.concatenate %66, %63 in 1 : vector<18x15x64xbf16>, vector<18x1x64xbf16> -> vector<18x16x64xbf16>
    %68 = tpu.concatenate %65, %62, %67 in 2 : vector<18x16x64xbf16>, vector<18x16x64xbf16>, vector<18x16x64xbf16> -> vector<18x16x192xbf16>
    %69 = vector.shape_cast %68 : vector<18x16x192xbf16> to vector<288x192xbf16>
    %c0_21 = arith.constant 0 : index
    %c0_22 = arith.constant 0 : index
    %70 = vector.load %arg8[%c0_21, %c0_22] : memref<1x128xf32, #tpu.memory_space<vmem>>, vector<1x128xf32>
    %c0_23 = arith.constant 0 : index
    %c0_24 = arith.constant 0 : index
    %c0_25 = arith.constant 0 : index
    %71 = vector.load %arg9[%c0_23, %c0_24, %c0_25] : memref<1x1x128xf32, #tpu.memory_space<vmem>>, vector<1x1x128xf32>
    %72 = vector.shape_cast %71 : vector<1x1x128xf32> to vector<1x128xf32>
    %73 = arith.addf %70, %72 : vector<1x128xf32>
    %c0_26 = arith.constant 0 : index
    %c0_27 = arith.constant 0 : index
    %c0_28 = arith.constant 0 : index
    %74 = vector.load %arg7[%c0_26, %c0_27, %c0_28] : memref<3x192x128xbf16, #tpu.memory_space<vmem>>, vector<1x192x128xbf16>
    %75 = vector.shape_cast %74 : vector<1x192x128xbf16> to vector<192x128xbf16>
    %c1 = arith.constant 1 : index
    %c0_29 = arith.constant 0 : index
    %c0_30 = arith.constant 0 : index
    %76 = vector.load %arg7[%c1, %c0_29, %c0_30] : memref<3x192x128xbf16, #tpu.memory_space<vmem>>, vector<1x192x128xbf16>
    %77 = vector.shape_cast %76 : vector<1x192x128xbf16> to vector<192x128xbf16>
    %c2 = arith.constant 2 : index
    %c0_31 = arith.constant 0 : index
    %c0_32 = arith.constant 0 : index
    %78 = vector.load %arg7[%c2, %c0_31, %c0_32] : memref<3x192x128xbf16, #tpu.memory_space<vmem>>, vector<1x192x128xbf16>
    %79 = vector.shape_cast %78 : vector<1x192x128xbf16> to vector<192x128xbf16>
    %80 = vector.extract_strided_slice %69 {offsets = [0, 0], sizes = [256, 192], strides = [1, 1]} : vector<288x192xbf16> to vector<256x192xbf16>
    %cst_33 = arith.constant dense<0.000000e+00> : vector<256x128xf32>
    %81 = tpu.matmul %80, %75, %cst_33 {dimension_numbers = #tpu.dot_dimension_numbers<[1], [0], [0], [1], [0, 0, 1, 1], [], []>} : vector<256x192xbf16>, vector<192x128xbf16>, vector<256x128xf32> -> vector<256x128xf32>
    %82 = vector.extract_strided_slice %69 {offsets = [16, 0], sizes = [256, 192], strides = [1, 1]} : vector<288x192xbf16> to vector<256x192xbf16>
    %cst_34 = arith.constant dense<0.000000e+00> : vector<256x128xf32>
    %83 = tpu.matmul %82, %77, %cst_34 {dimension_numbers = #tpu.dot_dimension_numbers<[1], [0], [0], [1], [0, 0, 1, 1], [], []>} : vector<256x192xbf16>, vector<192x128xbf16>, vector<256x128xf32> -> vector<256x128xf32>
    %84 = arith.addf %81, %83 : vector<256x128xf32>
    %85 = vector.extract_strided_slice %69 {offsets = [32, 0], sizes = [256, 192], strides = [1, 1]} : vector<288x192xbf16> to vector<256x192xbf16>
    %cst_35 = arith.constant dense<0.000000e+00> : vector<256x128xf32>
    %86 = tpu.matmul %85, %79, %cst_35 {dimension_numbers = #tpu.dot_dimension_numbers<[1], [0], [0], [1], [0, 0, 1, 1], [], []>} : vector<256x192xbf16>, vector<192x128xbf16>, vector<256x128xf32> -> vector<256x128xf32>
    %87 = arith.addf %84, %86 : vector<256x128xf32>
    %88 = vector.broadcast %73 : vector<1x128xf32> to vector<256x128xf32>
    %89 = arith.addf %87, %88 : vector<256x128xf32>
    %90 = vector.shape_cast %89 : vector<256x128xf32> to vector<16x16x128xf32>
    %91 = arith.truncf %90 : vector<16x16x128xf32> to vector<16x16x128xbf16>
    %c0_36 = arith.constant 0 : index
    %c0_37 = arith.constant 0 : index
    %c0_38 = arith.constant 0 : index
    %c0_39 = arith.constant 0 : index
    %92 = vector.load %arg10[%c0_36, %c0_37, %c0_38, %c0_39] : memref<1x16x16x128xbf16, #tpu.memory_space<vmem>>, vector<1x16x16x128xbf16>
    %93 = vector.shape_cast %92 : vector<1x16x16x128xbf16> to vector<16x16x128xbf16>
    %94 = vector.shape_cast %91 : vector<16x16x128xbf16> to vector<1x16x16x128xbf16>
    tpu.vector_store %arg10[%c0_36, %c0_37, %c0_38, %c0_39], %94 {strides = array<i32>} : memref<1x16x16x128xbf16, #tpu.memory_space<vmem>>, vector<1x16x16x128xbf16>,
    return
  }
  func.func @transform_0(%arg0: i32, %arg1: i32) -> (i32, i32, i32, i32) {
    %c0_i32 = arith.constant 0 : i32
    %c0_i32_0 = arith.constant 0 : i32
    %c0_i32_1 = arith.constant 0 : i32
    return %arg0, %arg1, %c0_i32, %c0_i32_0 : i32, i32, i32, i32
  }
  func.func @transform_1(%arg0: i32, %arg1: i32) -> (i32, i32, i32, i32) {
    %c16_i32 = arith.constant 16 : i32
    %0 = arith.muli %arg1, %c16_i32 : i32
    %c1_i32 = arith.constant 1 : i32
    %1 = arith.subi %0, %c1_i32 : i32
    %c0_i32 = arith.constant 0 : i32
    %2 = arith.maxsi %1, %c0_i32 : i32
    %c0_i32_0 = arith.constant 0 : i32
    %c0_i32_1 = arith.constant 0 : i32
    %c0_i32_2 = arith.constant 0 : i32
    return %arg0, %2, %c0_i32_0, %c0_i32_1 : i32, i32, i32, i32
  }
  func.func @transform_2(%arg0: i32, %arg1: i32) -> (i32, i32, i32, i32) {
    %c1_i32 = arith.constant 1 : i32
    %0 = arith.addi %arg1, %c1_i32 : i32
    %c16_i32 = arith.constant 16 : i32
    %1 = arith.muli %0, %c16_i32 : i32
    %c15_i32 = arith.constant 15 : i32
    %2 = arith.minsi %1, %c15_i32 : i32
    %c0_i32 = arith.constant 0 : i32
    %c0_i32_0 = arith.constant 0 : i32
    %c0_i32_1 = arith.constant 0 : i32
    return %arg0, %2, %c0_i32, %c0_i32_0 : i32, i32, i32, i32
  }
  func.func @transform_3(%arg0: i32, %arg1: i32) -> (i32, i32, i32) {
    %c0_i32 = arith.constant 0 : i32
    %c0_i32_0 = arith.constant 0 : i32
    %c0_i32_1 = arith.constant 0 : i32
    return %arg0, %c0_i32, %c0_i32_0 : i32, i32, i32
  }
  func.func @transform_4(%arg0: i32, %arg1: i32) -> (i32, i32, i32) {
    %c0_i32 = arith.constant 0 : i32
    %c0_i32_0 = arith.constant 0 : i32
    %c0_i32_1 = arith.constant 0 : i32
    return %arg0, %c0_i32, %c0_i32_0 : i32, i32, i32
  }
  func.func @transform_5(%arg0: i32, %arg1: i32) -> (i32, i32, i32) {
    %c0_i32 = arith.constant 0 : i32
    %c0_i32_0 = arith.constant 0 : i32
    %c0_i32_1 = arith.constant 0 : i32
    %c0_i32_2 = arith.constant 0 : i32
    return %c0_i32, %c0_i32_0, %c0_i32_1 : i32, i32, i32
  }
  func.func @transform_6(%arg0: i32, %arg1: i32) -> (i32, i32) {
    %c0_i32 = arith.constant 0 : i32
    %c0_i32_0 = arith.constant 0 : i32
    %c0_i32_1 = arith.constant 0 : i32
    return %c0_i32, %c0_i32_0 : i32, i32
  }
  func.func @transform_7(%arg0: i32, %arg1: i32) -> (i32, i32, i32) {
    %c0_i32 = arith.constant 0 : i32
    %c0_i32_0 = arith.constant 0 : i32
    %c0_i32_1 = arith.constant 0 : i32
    return %arg0, %c0_i32, %c0_i32_0 : i32, i32, i32
  }
  func.func @transform_8(%arg0: i32, %arg1: i32) -> (i32, i32, i32, i32) {
    %c0_i32 = arith.constant 0 : i32
    %c0_i32_0 = arith.constant 0 : i32
    %c0_i32_1 = arith.constant 0 : i32
    return %arg0, %arg1, %c0_i32, %c0_i32_0 : i32, i32, i32, i32
  }
}

module attributes {stable_mosaic.version = 11 : i64} {
  func.func @kernel(%arg0: i32, %arg1: i32, %arg2: memref<1x16x16x128xbf16, #tpu.memory_space<vmem>>, %arg3: memref<1x1x16x128xbf16, #tpu.memory_space<vmem>>, %arg4: memref<1x1x16x128xbf16, #tpu.memory_space<vmem>>, %arg5: memref<3x384x128xbf16, #tpu.memory_space<vmem>>, %arg6: memref<1x128xf32, #tpu.memory_space<vmem>>, %arg7: memref<1x128xf32, #tpu.memory_space<vmem>>, %arg8: memref<1x128xf32, #tpu.memory_space<vmem>>, %arg9: memref<128x32xf32, #tpu.memory_space<vmem>>, %arg10: memref<32x128xf32, #tpu.memory_space<vmem>>, %arg11: memref<1x16x16x128xbf16, #tpu.memory_space<vmem>>, %arg12: memref<1x1x128xf32, #tpu.memory_space<vmem>>, %arg13: memref<1x1x128xf32, #tpu.memory_space<vmem>>) attributes {dimension_semantics = [#tpu.dimension_semantics<parallel>, #tpu.dimension_semantics<arbitrary>], iteration_bounds = array<i64: 2, 1>, scalar_prefetch = 0 : i64, scratch_operands = 0 : i64, tpu.core_type = #tpu.core_type<tc>, window_params = [{transform_indices = @transform_0, window_bounds = array<i64: 1, 16, 16, 128>}, {transform_indices = @transform_1, window_bounds = array<i64: 1, 1, 16, 128>}, {transform_indices = @transform_2, window_bounds = array<i64: 1, 1, 16, 128>}, {pipeline_mode = #tpu.pipeline_mode<synchronous>, transform_indices = @transform_3, window_bounds = array<i64: 3, 384, 128>}, {pipeline_mode = #tpu.pipeline_mode<synchronous>, transform_indices = @transform_4, window_bounds = array<i64: 1, 128>}, {pipeline_mode = #tpu.pipeline_mode<synchronous>, transform_indices = @transform_5, window_bounds = array<i64: 1, 128>}, {pipeline_mode = #tpu.pipeline_mode<synchronous>, transform_indices = @transform_6, window_bounds = array<i64: 1, 128>}, {pipeline_mode = #tpu.pipeline_mode<synchronous>, transform_indices = @transform_7, window_bounds = array<i64: 128, 32>}, {pipeline_mode = #tpu.pipeline_mode<synchronous>, transform_indices = @transform_8, window_bounds = array<i64: 32, 128>}, {transform_indices = @transform_9, window_bounds = array<i64: 1, 16, 16, 128>}, {transform_indices = @transform_10, window_bounds = array<i64: 1, 1, 128>}, {transform_indices = @transform_11, window_bounds = array<i64: 1, 1, 128>}]} {
    %c0 = arith.constant 0 : index
    %c0_0 = arith.constant 0 : index
    %c0_1 = arith.constant 0 : index
    %c0_2 = arith.constant 0 : index
    %0 = vector.load %arg2[%c0, %c0_0, %c0_1, %c0_2] : memref<1x16x16x128xbf16, #tpu.memory_space<vmem>>, vector<1x16x16x128xbf16>
    %1 = vector.shape_cast %0 : vector<1x16x16x128xbf16> to vector<16x16x128xbf16>
    %c0_3 = arith.constant 0 : index
    %c0_4 = arith.constant 0 : index
    %c0_5 = arith.constant 0 : index
    %c0_6 = arith.constant 0 : index
    %2 = vector.load %arg3[%c0_3, %c0_4, %c0_5, %c0_6] : memref<1x1x16x128xbf16, #tpu.memory_space<vmem>>, vector<1x1x16x128xbf16>
    %3 = vector.shape_cast %2 : vector<1x1x16x128xbf16> to vector<16x128xbf16>
    %c0_7 = arith.constant 0 : index
    %c0_8 = arith.constant 0 : index
    %c0_9 = arith.constant 0 : index
    %c0_10 = arith.constant 0 : index
    %4 = vector.load %arg4[%c0_7, %c0_8, %c0_9, %c0_10] : memref<1x1x16x128xbf16, #tpu.memory_space<vmem>>, vector<1x1x16x128xbf16>
    %5 = vector.shape_cast %4 : vector<1x1x16x128xbf16> to vector<16x128xbf16>
    %c0_i32 = arith.constant 0 : i32
    %6 = arith.cmpi sgt, %arg1, %c0_i32 : i32
    %7 = arith.extui %6 : i1 to i32
    %8 = arith.sitofp %7 : i32 to f32
    %9 = arith.truncf %8 : f32 to bf16
    %10 = vector.broadcast %9 : bf16 to vector<16x128xbf16>
    %11 = arith.mulf %3, %10 : vector<16x128xbf16>
    %c0_i32_11 = arith.constant 0 : i32
    %12 = arith.cmpi slt, %arg1, %c0_i32_11 : i32
    %13 = arith.extui %12 : i1 to i32
    %14 = arith.sitofp %13 : i32 to f32
    %15 = arith.truncf %14 : f32 to bf16
    %16 = vector.broadcast %15 : bf16 to vector<16x128xbf16>
    %17 = arith.mulf %5, %16 : vector<16x128xbf16>
    %18 = vector.shape_cast %11 : vector<16x128xbf16> to vector<1x16x128xbf16>
    %19 = vector.shape_cast %17 : vector<16x128xbf16> to vector<1x16x128xbf16>
    %20 = tpu.concatenate %18, %1, %19 in 0 : vector<1x16x128xbf16>, vector<16x16x128xbf16>, vector<1x16x128xbf16> -> vector<18x16x128xbf16>
    %cst = arith.constant 0.000000e+00 : bf16
    %21 = vector.broadcast %cst : bf16 to vector<18x1x128xbf16>
    %22 = vector.extract_strided_slice %20 {offsets = [0, 0, 0], sizes = [18, 15, 128], strides = [1, 1, 1]} : vector<18x16x128xbf16> to vector<18x15x128xbf16>
    %23 = tpu.concatenate %21, %22 in 1 : vector<18x1x128xbf16>, vector<18x15x128xbf16> -> vector<18x16x128xbf16>
    %24 = vector.extract_strided_slice %20 {offsets = [0, 1, 0], sizes = [18, 15, 128], strides = [1, 1, 1]} : vector<18x16x128xbf16> to vector<18x15x128xbf16>
    %25 = tpu.concatenate %24, %21 in 1 : vector<18x15x128xbf16>, vector<18x1x128xbf16> -> vector<18x16x128xbf16>
    %26 = tpu.concatenate %23, %20, %25 in 2 : vector<18x16x128xbf16>, vector<18x16x128xbf16>, vector<18x16x128xbf16> -> vector<18x16x384xbf16>
    %27 = vector.shape_cast %26 : vector<18x16x384xbf16> to vector<288x384xbf16>
    %c0_12 = arith.constant 0 : index
    %c0_13 = arith.constant 0 : index
    %28 = vector.load %arg6[%c0_12, %c0_13] : memref<1x128xf32, #tpu.memory_space<vmem>>, vector<1x128xf32>
    %c0_14 = arith.constant 0 : index
    %c0_15 = arith.constant 0 : index
    %c0_16 = arith.constant 0 : index
    %29 = vector.load %arg5[%c0_14, %c0_15, %c0_16] : memref<3x384x128xbf16, #tpu.memory_space<vmem>>, vector<1x384x128xbf16>
    %30 = vector.shape_cast %29 : vector<1x384x128xbf16> to vector<384x128xbf16>
    %c1 = arith.constant 1 : index
    %c0_17 = arith.constant 0 : index
    %c0_18 = arith.constant 0 : index
    %31 = vector.load %arg5[%c1, %c0_17, %c0_18] : memref<3x384x128xbf16, #tpu.memory_space<vmem>>, vector<1x384x128xbf16>
    %32 = vector.shape_cast %31 : vector<1x384x128xbf16> to vector<384x128xbf16>
    %c2 = arith.constant 2 : index
    %c0_19 = arith.constant 0 : index
    %c0_20 = arith.constant 0 : index
    %33 = vector.load %arg5[%c2, %c0_19, %c0_20] : memref<3x384x128xbf16, #tpu.memory_space<vmem>>, vector<1x384x128xbf16>
    %34 = vector.shape_cast %33 : vector<1x384x128xbf16> to vector<384x128xbf16>
    %35 = vector.extract_strided_slice %27 {offsets = [0, 0], sizes = [256, 384], strides = [1, 1]} : vector<288x384xbf16> to vector<256x384xbf16>
    %cst_21 = arith.constant dense<0.000000e+00> : vector<256x128xf32>
    %36 = tpu.matmul %35, %30, %cst_21 {dimension_numbers = #tpu.dot_dimension_numbers<[1], [0], [0], [1], [0, 0, 1, 1], [], []>} : vector<256x384xbf16>, vector<384x128xbf16>, vector<256x128xf32> -> vector<256x128xf32>
    %37 = vector.extract_strided_slice %27 {offsets = [16, 0], sizes = [256, 384], strides = [1, 1]} : vector<288x384xbf16> to vector<256x384xbf16>
    %cst_22 = arith.constant dense<0.000000e+00> : vector<256x128xf32>
    %38 = tpu.matmul %37, %32, %cst_22 {dimension_numbers = #tpu.dot_dimension_numbers<[1], [0], [0], [1], [0, 0, 1, 1], [], []>} : vector<256x384xbf16>, vector<384x128xbf16>, vector<256x128xf32> -> vector<256x128xf32>
    %39 = arith.addf %36, %38 : vector<256x128xf32>
    %40 = vector.extract_strided_slice %27 {offsets = [32, 0], sizes = [256, 384], strides = [1, 1]} : vector<288x384xbf16> to vector<256x384xbf16>
    %cst_23 = arith.constant dense<0.000000e+00> : vector<256x128xf32>
    %41 = tpu.matmul %40, %34, %cst_23 {dimension_numbers = #tpu.dot_dimension_numbers<[1], [0], [0], [1], [0, 0, 1, 1], [], []>} : vector<256x384xbf16>, vector<384x128xbf16>, vector<256x128xf32> -> vector<256x128xf32>
    %42 = arith.addf %39, %41 : vector<256x128xf32>
    %43 = vector.broadcast %28 : vector<1x128xf32> to vector<256x128xf32>
    %44 = arith.addf %42, %43 : vector<256x128xf32>
    %45 = vector.shape_cast %44 : vector<256x128xf32> to vector<16x16x128xf32>
    %46 = arith.truncf %45 : vector<16x16x128xf32> to vector<16x16x128xbf16>
    %c0_24 = arith.constant 0 : index
    %c0_25 = arith.constant 0 : index
    %c0_26 = arith.constant 0 : index
    %c0_27 = arith.constant 0 : index
    %47 = vector.load %arg11[%c0_24, %c0_25, %c0_26, %c0_27] : memref<1x16x16x128xbf16, #tpu.memory_space<vmem>>, vector<1x16x16x128xbf16>
    %48 = vector.shape_cast %47 : vector<1x16x16x128xbf16> to vector<16x16x128xbf16>
    %49 = vector.shape_cast %46 : vector<16x16x128xbf16> to vector<1x16x16x128xbf16>
    tpu.vector_store %arg11[%c0_24, %c0_25, %c0_26, %c0_27], %49 {strides = array<i32>} : memref<1x16x16x128xbf16, #tpu.memory_space<vmem>>, vector<1x16x16x128xbf16>,
    %50 = arith.negf %44 : vector<256x128xf32>
    %51 = math.exp %50 : vector<256x128xf32>
    %cst_28 = arith.constant 1.000000e+00 : f32
    %52 = vector.broadcast %cst_28 : f32 to vector<256x128xf32>
    %53 = arith.addf %52, %51 : vector<256x128xf32>
    %54 = arith.divf %52, %53 : vector<256x128xf32>
    %55 = arith.mulf %44, %54 : vector<256x128xf32>
    %cst_29 = arith.constant dense<0.000000e+00> : vector<128xf32>
    %56 = vector.multi_reduction <add>, %55, %cst_29 [0] : vector<256x128xf32> to vector<128xf32>
    %57 = vector.shape_cast %56 : vector<128xf32> to vector<1x128xf32>
    %58 = arith.mulf %55, %55 : vector<256x128xf32>
    %cst_30 = arith.constant dense<0.000000e+00> : vector<128xf32>
    %59 = vector.multi_reduction <add>, %58, %cst_30 [0] : vector<256x128xf32> to vector<128xf32>
    %60 = vector.shape_cast %59 : vector<128xf32> to vector<1x128xf32>
    %c0_i32_31 = arith.constant 0 : i32
    %61 = arith.cmpi eq, %arg1, %c0_i32_31 : i32
    %62 = arith.extui %61 : i1 to i32
    %c0_i32_32 = arith.constant 0 : i32
    %63 = arith.cmpi ne, %62, %c0_i32_32 : i32
    scf.if %63 {
      %c0_37 = arith.constant 0 : index
      %c0_38 = arith.constant 0 : index
      %c0_39 = arith.constant 0 : index
      %70 = vector.load %arg12[%c0_37, %c0_38, %c0_39] : memref<1x1x128xf32, #tpu.memory_space<vmem>>, vector<1x1x128xf32>
      %71 = vector.shape_cast %70 : vector<1x1x128xf32> to vector<1x128xf32>
      %72 = vector.shape_cast %57 : vector<1x128xf32> to vector<1x1x128xf32>
      tpu.vector_store %arg12[%c0_37, %c0_38, %c0_39], %72 {strides = array<i32>} : memref<1x1x128xf32, #tpu.memory_space<vmem>>, vector<1x1x128xf32>,
      %c0_40 = arith.constant 0 : index
      %c0_41 = arith.constant 0 : index
      %c0_42 = arith.constant 0 : index
      %73 = vector.load %arg13[%c0_40, %c0_41, %c0_42] : memref<1x1x128xf32, #tpu.memory_space<vmem>>, vector<1x1x128xf32>
      %74 = vector.shape_cast %73 : vector<1x1x128xf32> to vector<1x128xf32>
      %75 = vector.shape_cast %60 : vector<1x128xf32> to vector<1x1x128xf32>
      tpu.vector_store %arg13[%c0_40, %c0_41, %c0_42], %75 {strides = array<i32>} : memref<1x1x128xf32, #tpu.memory_space<vmem>>, vector<1x1x128xf32>,
    } else {
    }
    %c0_i32_33 = arith.constant 0 : i32
    %64 = arith.cmpi sgt, %arg1, %c0_i32_33 : i32
    %65 = arith.extui %64 : i1 to i32
    %c0_i32_34 = arith.constant 0 : i32
    %66 = arith.cmpi ne, %65, %c0_i32_34 : i32
    scf.if %66 {
      %c0_37 = arith.constant 0 : index
      %c0_38 = arith.constant 0 : index
      %c0_39 = arith.constant 0 : index
      %70 = vector.load %arg12[%c0_37, %c0_38, %c0_39] : memref<1x1x128xf32, #tpu.memory_space<vmem>>, vector<1x1x128xf32>
      %71 = vector.shape_cast %70 : vector<1x1x128xf32> to vector<1x128xf32>
      %72 = arith.addf %71, %57 : vector<1x128xf32>
      %c0_40 = arith.constant 0 : index
      %c0_41 = arith.constant 0 : index
      %c0_42 = arith.constant 0 : index
      %73 = vector.load %arg12[%c0_40, %c0_41, %c0_42] : memref<1x1x128xf32, #tpu.memory_space<vmem>>, vector<1x1x128xf32>
      %74 = vector.shape_cast %73 : vector<1x1x128xf32> to vector<1x128xf32>
      %75 = vector.shape_cast %72 : vector<1x128xf32> to vector<1x1x128xf32>
      tpu.vector_store %arg12[%c0_40, %c0_41, %c0_42], %75 {strides = array<i32>} : memref<1x1x128xf32, #tpu.memory_space<vmem>>, vector<1x1x128xf32>,
      %c0_43 = arith.constant 0 : index
      %c0_44 = arith.constant 0 : index
      %c0_45 = arith.constant 0 : index
      %76 = vector.load %arg13[%c0_43, %c0_44, %c0_45] : memref<1x1x128xf32, #tpu.memory_space<vmem>>, vector<1x1x128xf32>
      %77 = vector.shape_cast %76 : vector<1x1x128xf32> to vector<1x128xf32>
      %78 = arith.addf %77, %60 : vector<1x128xf32>
      %c0_46 = arith.constant 0 : index
      %c0_47 = arith.constant 0 : index
      %c0_48 = arith.constant 0 : index
      %79 = vector.load %arg13[%c0_46, %c0_47, %c0_48] : memref<1x1x128xf32, #tpu.memory_space<vmem>>, vector<1x1x128xf32>
      %80 = vector.shape_cast %79 : vector<1x1x128xf32> to vector<1x128xf32>
      %81 = vector.shape_cast %78 : vector<1x128xf32> to vector<1x1x128xf32>
      tpu.vector_store %arg13[%c0_46, %c0_47, %c0_48], %81 {strides = array<i32>} : memref<1x1x128xf32, #tpu.memory_space<vmem>>, vector<1x1x128xf32>,
    } else {
    }
    %c0_i32_35 = arith.constant 0 : i32
    %67 = arith.cmpi eq, %arg1, %c0_i32_35 : i32
    %68 = arith.extui %67 : i1 to i32
    %c0_i32_36 = arith.constant 0 : i32
    %69 = arith.cmpi ne, %68, %c0_i32_36 : i32
    scf.if %69 {
      %c0_37 = arith.constant 0 : index
      %c0_38 = arith.constant 0 : index
      %c0_39 = arith.constant 0 : index
      %70 = vector.load %arg12[%c0_37, %c0_38, %c0_39] : memref<1x1x128xf32, #tpu.memory_space<vmem>>, vector<1x1x128xf32>
      %71 = vector.shape_cast %70 : vector<1x1x128xf32> to vector<1x128xf32>
      %c0_40 = arith.constant 0 : index
      %c0_41 = arith.constant 0 : index
      %c0_42 = arith.constant 0 : index
      %72 = vector.load %arg13[%c0_40, %c0_41, %c0_42] : memref<1x1x128xf32, #tpu.memory_space<vmem>>, vector<1x1x128xf32>
      %73 = vector.shape_cast %72 : vector<1x1x128xf32> to vector<1x128xf32>
      %c0_43 = arith.constant 0 : index
      %c0_44 = arith.constant 0 : index
      %74 = vector.load %arg9[%c0_43, %c0_44] : memref<128x32xf32, #tpu.memory_space<vmem>>, vector<128x32xf32>
      %cst_45 = arith.constant dense<0.000000e+00> : vector<1x32xf32>
      %75 = tpu.matmul %71, %74, %cst_45 {dimension_numbers = #tpu.dot_dimension_numbers<[1], [0], [0], [1], [0, 0, 1, 1], [], []>, precision = #tpu.contract_precision<fp32>} : vector<1x128xf32>, vector<128x32xf32>, vector<1x32xf32> -> vector<1x32xf32>
      %c0_46 = arith.constant 0 : index
      %c0_47 = arith.constant 0 : index
      %76 = vector.load %arg9[%c0_46, %c0_47] : memref<128x32xf32, #tpu.memory_space<vmem>>, vector<128x32xf32>
      %cst_48 = arith.constant dense<0.000000e+00> : vector<1x32xf32>
      %77 = tpu.matmul %73, %76, %cst_48 {dimension_numbers = #tpu.dot_dimension_numbers<[1], [0], [0], [1], [0, 0, 1, 1], [], []>, precision = #tpu.contract_precision<fp32>} : vector<1x128xf32>, vector<128x32xf32>, vector<1x32xf32> -> vector<1x32xf32>
      %cst_49 = arith.constant 9.765625E-4 : f32
      %78 = vector.broadcast %cst_49 : f32 to vector<1x32xf32>
      %79 = arith.mulf %75, %78 : vector<1x32xf32>
      %cst_50 = arith.constant 9.765625E-4 : f32
      %80 = vector.broadcast %cst_50 : f32 to vector<1x32xf32>
      %81 = arith.mulf %77, %80 : vector<1x32xf32>
      %82 = arith.mulf %79, %79 : vector<1x32xf32>
      %83 = arith.subf %81, %82 : vector<1x32xf32>
      %cst_51 = arith.constant 0.000000e+00 : f32
      %84 = vector.broadcast %cst_51 : f32 to vector<1x32xf32>
      %85 = arith.maximumf %83, %84 : vector<1x32xf32>
      %cst_52 = arith.constant 9.99999997E-7 : f32
      %86 = vector.broadcast %cst_52 : f32 to vector<1x32xf32>
      %87 = arith.addf %85, %86 : vector<1x32xf32>
      %88 = math.rsqrt %87 : vector<1x32xf32>
      %c0_53 = arith.constant 0 : index
      %c0_54 = arith.constant 0 : index
      %89 = vector.load %arg10[%c0_53, %c0_54] : memref<32x128xf32, #tpu.memory_space<vmem>>, vector<32x128xf32>
      %cst_55 = arith.constant dense<0.000000e+00> : vector<1x128xf32>
      %90 = tpu.matmul %79, %89, %cst_55 {dimension_numbers = #tpu.dot_dimension_numbers<[1], [0], [0], [1], [0, 0, 1, 1], [], []>, precision = #tpu.contract_precision<fp32>} : vector<1x32xf32>, vector<32x128xf32>, vector<1x128xf32> -> vector<1x128xf32>
      %c0_56 = arith.constant 0 : index
      %c0_57 = arith.constant 0 : index
      %91 = vector.load %arg10[%c0_56, %c0_57] : memref<32x128xf32, #tpu.memory_space<vmem>>, vector<32x128xf32>
      %cst_58 = arith.constant dense<0.000000e+00> : vector<1x128xf32>
      %92 = tpu.matmul %88, %91, %cst_58 {dimension_numbers = #tpu.dot_dimension_numbers<[1], [0], [0], [1], [0, 0, 1, 1], [], []>, precision = #tpu.contract_precision<fp32>} : vector<1x32xf32>, vector<32x128xf32>, vector<1x128xf32> -> vector<1x128xf32>
      %c0_59 = arith.constant 0 : index
      %c0_60 = arith.constant 0 : index
      %93 = vector.load %arg7[%c0_59, %c0_60] : memref<1x128xf32, #tpu.memory_space<vmem>>, vector<1x128xf32>
      %94 = arith.mulf %93, %92 : vector<1x128xf32>
      %c0_61 = arith.constant 0 : index
      %c0_62 = arith.constant 0 : index
      %c0_63 = arith.constant 0 : index
      %95 = vector.load %arg12[%c0_61, %c0_62, %c0_63] : memref<1x1x128xf32, #tpu.memory_space<vmem>>, vector<1x1x128xf32>
      %96 = vector.shape_cast %95 : vector<1x1x128xf32> to vector<1x128xf32>
      %97 = vector.shape_cast %94 : vector<1x128xf32> to vector<1x1x128xf32>
      tpu.vector_store %arg12[%c0_61, %c0_62, %c0_63], %97 {strides = array<i32>} : memref<1x1x128xf32, #tpu.memory_space<vmem>>, vector<1x1x128xf32>,
      %c0_64 = arith.constant 0 : index
      %c0_65 = arith.constant 0 : index
      %98 = vector.load %arg8[%c0_64, %c0_65] : memref<1x128xf32, #tpu.memory_space<vmem>>, vector<1x128xf32>
      %99 = arith.mulf %90, %94 : vector<1x128xf32>
      %100 = arith.subf %98, %99 : vector<1x128xf32>
      %c0_66 = arith.constant 0 : index
      %c0_67 = arith.constant 0 : index
      %c0_68 = arith.constant 0 : index
      %101 = vector.load %arg13[%c0_66, %c0_67, %c0_68] : memref<1x1x128xf32, #tpu.memory_space<vmem>>, vector<1x1x128xf32>
      %102 = vector.shape_cast %101 : vector<1x1x128xf32> to vector<1x128xf32>
      %103 = vector.shape_cast %100 : vector<1x128xf32> to vector<1x1x128xf32>
      tpu.vector_store %arg13[%c0_66, %c0_67, %c0_68], %103 {strides = array<i32>} : memref<1x1x128xf32, #tpu.memory_space<vmem>>, vector<1x1x128xf32>,
    } else {
    }
    return
  }
  func.func @transform_0(%arg0: i32, %arg1: i32) -> (i32, i32, i32, i32) {
    %c0_i32 = arith.constant 0 : i32
    %c0_i32_0 = arith.constant 0 : i32
    %c0_i32_1 = arith.constant 0 : i32
    return %arg0, %arg1, %c0_i32, %c0_i32_0 : i32, i32, i32, i32
  }
  func.func @transform_1(%arg0: i32, %arg1: i32) -> (i32, i32, i32, i32) {
    %c16_i32 = arith.constant 16 : i32
    %0 = arith.muli %arg1, %c16_i32 : i32
    %c1_i32 = arith.constant 1 : i32
    %1 = arith.subi %0, %c1_i32 : i32
    %c0_i32 = arith.constant 0 : i32
    %2 = arith.maxsi %1, %c0_i32 : i32
    %c0_i32_0 = arith.constant 0 : i32
    %c0_i32_1 = arith.constant 0 : i32
    %c0_i32_2 = arith.constant 0 : i32
    return %arg0, %2, %c0_i32_0, %c0_i32_1 : i32, i32, i32, i32
  }
  func.func @transform_2(%arg0: i32, %arg1: i32) -> (i32, i32, i32, i32) {
    %c1_i32 = arith.constant 1 : i32
    %0 = arith.addi %arg1, %c1_i32 : i32
    %c16_i32 = arith.constant 16 : i32
    %1 = arith.muli %0, %c16_i32 : i32
    %c15_i32 = arith.constant 15 : i32
    %2 = arith.minsi %1, %c15_i32 : i32
    %c0_i32 = arith.constant 0 : i32
    %c0_i32_0 = arith.constant 0 : i32
    %c0_i32_1 = arith.constant 0 : i32
    return %arg0, %2, %c0_i32, %c0_i32_0 : i32, i32, i32, i32
  }
  func.func @transform_3(%arg0: i32, %arg1: i32) -> (i32, i32, i32) {
    %c0_i32 = arith.constant 0 : i32
    %c0_i32_0 = arith.constant 0 : i32
    %c0_i32_1 = arith.constant 0 : i32
    %c0_i32_2 = arith.constant 0 : i32
    return %c0_i32, %c0_i32_0, %c0_i32_1 : i32, i32, i32
  }
  func.func @transform_4(%arg0: i32, %arg1: i32) -> (i32, i32) {
    %c0_i32 = arith.constant 0 : i32
    %c0_i32_0 = arith.constant 0 : i32
    %c0_i32_1 = arith.constant 0 : i32
    return %c0_i32, %c0_i32_0 : i32, i32
  }
  func.func @transform_5(%arg0: i32, %arg1: i32) -> (i32, i32) {
    %c0_i32 = arith.constant 0 : i32
    %c0_i32_0 = arith.constant 0 : i32
    %c0_i32_1 = arith.constant 0 : i32
    return %c0_i32, %c0_i32_0 : i32, i32
  }
  func.func @transform_6(%arg0: i32, %arg1: i32) -> (i32, i32) {
    %c0_i32 = arith.constant 0 : i32
    %c0_i32_0 = arith.constant 0 : i32
    %c0_i32_1 = arith.constant 0 : i32
    return %c0_i32, %c0_i32_0 : i32, i32
  }
  func.func @transform_7(%arg0: i32, %arg1: i32) -> (i32, i32) {
    %c0_i32 = arith.constant 0 : i32
    %c0_i32_0 = arith.constant 0 : i32
    %c0_i32_1 = arith.constant 0 : i32
    return %c0_i32, %c0_i32_0 : i32, i32
  }
  func.func @transform_8(%arg0: i32, %arg1: i32) -> (i32, i32) {
    %c0_i32 = arith.constant 0 : i32
    %c0_i32_0 = arith.constant 0 : i32
    %c0_i32_1 = arith.constant 0 : i32
    return %c0_i32, %c0_i32_0 : i32, i32
  }
  func.func @transform_9(%arg0: i32, %arg1: i32) -> (i32, i32, i32, i32) {
    %c0_i32 = arith.constant 0 : i32
    %c0_i32_0 = arith.constant 0 : i32
    %c0_i32_1 = arith.constant 0 : i32
    return %arg0, %arg1, %c0_i32, %c0_i32_0 : i32, i32, i32, i32
  }
  func.func @transform_10(%arg0: i32, %arg1: i32) -> (i32, i32, i32) {
    %c0_i32 = arith.constant 0 : i32
    %c0_i32_0 = arith.constant 0 : i32
    %c0_i32_1 = arith.constant 0 : i32
    return %arg0, %c0_i32, %c0_i32_0 : i32, i32, i32
  }
  func.func @transform_11(%arg0: i32, %arg1: i32) -> (i32, i32, i32) {
    %c0_i32 = arith.constant 0 : i32
    %c0_i32_0 = arith.constant 0 : i32
    %c0_i32_1 = arith.constant 0 : i32
    return %arg0, %c0_i32, %c0_i32_0 : i32, i32, i32
  }
}

module attributes {stable_mosaic.version = 11 : i64} {
  func.func @kernel(%arg0: i32, %arg1: i32, %arg2: memref<1x256x128xbf16, #tpu.memory_space<vmem>>, %arg3: memref<1x1x128xf32, #tpu.memory_space<vmem>>, %arg4: memref<1x1x128xf32, #tpu.memory_space<vmem>>, %arg5: memref<1x256x64xbf16, #tpu.memory_space<vmem>>, %arg6: memref<64x128xbf16, #tpu.memory_space<vmem>>, %arg7: memref<1x128xf32, #tpu.memory_space<vmem>>, %arg8: memref<1x256x128xbf16, #tpu.memory_space<vmem>>) attributes {dimension_semantics = [#tpu.dimension_semantics<parallel>, #tpu.dimension_semantics<parallel>], iteration_bounds = array<i64: 2, 1>, scalar_prefetch = 0 : i64, scratch_operands = 0 : i64, tpu.core_type = #tpu.core_type<tc>, window_params = [{transform_indices = @transform_0, window_bounds = array<i64: 1, 256, 128>}, {transform_indices = @transform_1, window_bounds = array<i64: 1, 1, 128>}, {transform_indices = @transform_2, window_bounds = array<i64: 1, 1, 128>}, {transform_indices = @transform_3, window_bounds = array<i64: 1, 256, 64>}, {pipeline_mode = #tpu.pipeline_mode<synchronous>, transform_indices = @transform_4, window_bounds = array<i64: 64, 128>}, {pipeline_mode = #tpu.pipeline_mode<synchronous>, transform_indices = @transform_5, window_bounds = array<i64: 1, 128>}, {transform_indices = @transform_6, window_bounds = array<i64: 1, 256, 128>}]} {
    %c0 = arith.constant 0 : index
    %c0_0 = arith.constant 0 : index
    %c0_1 = arith.constant 0 : index
    %0 = vector.load %arg2[%c0, %c0_0, %c0_1] : memref<1x256x128xbf16, #tpu.memory_space<vmem>>, vector<1x256x128xbf16>
    %1 = vector.shape_cast %0 : vector<1x256x128xbf16> to vector<256x128xbf16>
    %2 = arith.extf %1 : vector<256x128xbf16> to vector<256x128xf32>
    %3 = arith.negf %2 : vector<256x128xf32>
    %4 = math.exp %3 : vector<256x128xf32>
    %cst = arith.constant 1.000000e+00 : f32
    %5 = vector.broadcast %cst : f32 to vector<256x128xf32>
    %6 = arith.addf %5, %4 : vector<256x128xf32>
    %7 = arith.divf %5, %6 : vector<256x128xf32>
    %8 = arith.mulf %2, %7 : vector<256x128xf32>
    %c0_2 = arith.constant 0 : index
    %c0_3 = arith.constant 0 : index
    %c0_4 = arith.constant 0 : index
    %9 = vector.load %arg3[%c0_2, %c0_3, %c0_4] : memref<1x1x128xf32, #tpu.memory_space<vmem>>, vector<1x1x128xf32>
    %10 = vector.shape_cast %9 : vector<1x1x128xf32> to vector<1x128xf32>
    %11 = vector.broadcast %10 : vector<1x128xf32> to vector<256x128xf32>
    %12 = arith.mulf %8, %11 : vector<256x128xf32>
    %c0_5 = arith.constant 0 : index
    %c0_6 = arith.constant 0 : index
    %c0_7 = arith.constant 0 : index
    %13 = vector.load %arg4[%c0_5, %c0_6, %c0_7] : memref<1x1x128xf32, #tpu.memory_space<vmem>>, vector<1x1x128xf32>
    %14 = vector.shape_cast %13 : vector<1x1x128xf32> to vector<1x128xf32>
    %15 = vector.broadcast %14 : vector<1x128xf32> to vector<256x128xf32>
    %16 = arith.addf %12, %15 : vector<256x128xf32>
    %c0_8 = arith.constant 0 : index
    %c0_9 = arith.constant 0 : index
    %c0_10 = arith.constant 0 : index
    %17 = vector.load %arg5[%c0_8, %c0_9, %c0_10] : memref<1x256x64xbf16, #tpu.memory_space<vmem>>, vector<1x256x64xbf16>
    %18 = vector.shape_cast %17 : vector<1x256x64xbf16> to vector<256x64xbf16>
    %c0_11 = arith.constant 0 : index
    %c0_12 = arith.constant 0 : index
    %19 = vector.load %arg6[%c0_11, %c0_12] : memref<64x128xbf16, #tpu.memory_space<vmem>>, vector<64x128xbf16>
    %cst_13 = arith.constant dense<0.000000e+00> : vector<256x128xf32>
    %20 = tpu.matmul %18, %19, %cst_13 {dimension_numbers = #tpu.dot_dimension_numbers<[1], [0], [0], [1], [0, 0, 1, 1], [], []>} : vector<256x64xbf16>, vector<64x128xbf16>, vector<256x128xf32> -> vector<256x128xf32>
    %c0_14 = arith.constant 0 : index
    %c0_15 = arith.constant 0 : index
    %21 = vector.load %arg7[%c0_14, %c0_15] : memref<1x128xf32, #tpu.memory_space<vmem>>, vector<1x128xf32>
    %22 = vector.broadcast %21 : vector<1x128xf32> to vector<256x128xf32>
    %23 = arith.addf %20, %22 : vector<256x128xf32>
    %24 = arith.addf %23, %16 : vector<256x128xf32>
    %25 = arith.truncf %24 : vector<256x128xf32> to vector<256x128xbf16>
    %c0_16 = arith.constant 0 : index
    %c0_17 = arith.constant 0 : index
    %c0_18 = arith.constant 0 : index
    %26 = vector.load %arg8[%c0_16, %c0_17, %c0_18] : memref<1x256x128xbf16, #tpu.memory_space<vmem>>, vector<1x256x128xbf16>
    %27 = vector.shape_cast %26 : vector<1x256x128xbf16> to vector<256x128xbf16>
    %28 = vector.shape_cast %25 : vector<256x128xbf16> to vector<1x256x128xbf16>
    tpu.vector_store %arg8[%c0_16, %c0_17, %c0_18], %28 {strides = array<i32>} : memref<1x256x128xbf16, #tpu.memory_space<vmem>>, vector<1x256x128xbf16>,
    return
  }
  func.func @transform_0(%arg0: i32, %arg1: i32) -> (i32, i32, i32) {
    %c0_i32 = arith.constant 0 : i32
    %c0_i32_0 = arith.constant 0 : i32
    return %arg0, %arg1, %c0_i32 : i32, i32, i32
  }
  func.func @transform_1(%arg0: i32, %arg1: i32) -> (i32, i32, i32) {
    %c0_i32 = arith.constant 0 : i32
    %c0_i32_0 = arith.constant 0 : i32
    %c0_i32_1 = arith.constant 0 : i32
    return %arg0, %c0_i32, %c0_i32_0 : i32, i32, i32
  }
  func.func @transform_2(%arg0: i32, %arg1: i32) -> (i32, i32, i32) {
    %c0_i32 = arith.constant 0 : i32
    %c0_i32_0 = arith.constant 0 : i32
    %c0_i32_1 = arith.constant 0 : i32
    return %arg0, %c0_i32, %c0_i32_0 : i32, i32, i32
  }
  func.func @transform_3(%arg0: i32, %arg1: i32) -> (i32, i32, i32) {
    %c0_i32 = arith.constant 0 : i32
    %c0_i32_0 = arith.constant 0 : i32
    return %arg0, %arg1, %c0_i32 : i32, i32, i32
  }
  func.func @transform_4(%arg0: i32, %arg1: i32) -> (i32, i32) {
    %c0_i32 = arith.constant 0 : i32
    %c0_i32_0 = arith.constant 0 : i32
    %c0_i32_1 = arith.constant 0 : i32
    return %c0_i32, %c0_i32_0 : i32, i32
  }
  func.func @transform_5(%arg0: i32, %arg1: i32) -> (i32, i32) {
    %c0_i32 = arith.constant 0 : i32
    %c0_i32_0 = arith.constant 0 : i32
    %c0_i32_1 = arith.constant 0 : i32
    return %c0_i32, %c0_i32_0 : i32, i32
  }
  func.func @transform_6(%arg0: i32, %arg1: i32) -> (i32, i32, i32) {
    %c0_i32 = arith.constant 0 : i32
    %c0_i32_0 = arith.constant 0 : i32
    return %arg0, %arg1, %c0_i32 : i32, i32, i32
  }
}

</mosaic_0001>

<bundles_post_ra>
// kernel: resnet_block_apply.4
= control target key start
LH: loop header
LB: loop body
LE: loop exit
PB: predicated region body
PF: predicated region fallthrough
CT: control target
= control target key end

     0   :  { %s3677_s21 = smov 0   ;;  %s3679_s22 = smov 0   ;;  %s4264_s0 = inlined_call_operand.vmem [shape: bf16[2,256,64], index: 0, kind: input, shape index: {}]   ;;  %s4265_s1 = inlined_call_operand.vmem [shape: f32[1,64], index: 1, kind: input, shape index: {}]   ;;  %s4266_s2 = inlined_call_operand.vmem [shape: f32[1,64], index: 2, kind: input, shape index: {}]   ;;  %s4267_s3 = inlined_call_operand.vmem [shape: f32[64,32], index: 3, kind: input, shape index: {}]   ;;  %s4268_s4 = inlined_call_operand.vmem [shape: f32[32,64], index: 4, kind: input, shape index: {}]   ;;  %s4269_s5 = inlined_call_operand.vmem [shape: f32[2,1,64], index: 5, kind: output, shape index: {0}]   ;;  %s4270_s6 = inlined_call_operand.vmem [shape: f32[2,1,64], index: 6, kind: output, shape index: {1}]  }
   0x1   :  { %s3681_s23 = smov 0  }
   0x2 LB: > { %s29_s24 = sadd.s32 1, %s3633_s22  ;;  %p2717_p0 = scmp.ge.s32.totalorder %s3637_s23, 1  ;;  %s3637_s23 = sphi %s3681_s23, %s17_s23   ;;  %s3633_s22 = sphi %s3679_s22, %s4272_s22   ;;  %s3629_s21 = sphi %s3677_s21, %s4271_s21  }
   0x3   : > { %p31_p1 = scmp.ge.s32.totalorder %s29_s24, 2  ;;  %p234_p2 = scmp.lt.s32.totalorder %s3637_s23, 3 }
   0x5   : > { %s4274_s24 = smov (%p31_p1, %s29_s24), 0  ;;  %p235_p3 = pnand %p2717_p0, %p234_p2 }
   0x6   : > { %v543_v0 = vld [vmem:[%s4267_s3] sm:$0xff] (!%p235_p3)  ;;  %v544_v1 = vld [vmem:[%s4267_s3 + $0x8] sm:$0xff] (!%p235_p3)  ;;  %v545_v2 = vld [vmem:[%s4267_s3 + $0x10] sm:$0xff] (!%p235_p3)  ;;  %v3639_v3 = vmov (!%p235_p3), 0.0|0.0   ;;  %vm3640_vm0 = vmmov (!%p235_p3), 0   ;;  %v3641_v13 = vmov (!%p235_p3), 0.0  }
   0x7   : > { %238 = sbr.rel (%p235_p3) target bundleno = 713 (0x2c9), region = 40  ;;  %3330 = vmatprep.subr.bf16.mxu0 (!%p235_p3), %v3639_v3  ;;  %v555_v4 = vand.u32 (!%p235_p3), 4294901760, %v543_v0  ;;  %v558_v5 = vand.u32 (!%p235_p3), 4294901760, %v544_v1  ;;  %3402 = vmatprep.subr.bf16.mxu1 (!%p235_p3), %v3639_v3  ;;  %v546_v6 = vld [vmem:[%s4267_s3 + $0x18] sm:$0xff] (!%p235_p3)  ;;  %v561_v7 = vand.u32 (!%p235_p3), 4294901760, %v545_v2  ;;  %v547_v8 = vld [vmem:[%s4267_s3 + $0x20] sm:$0xff] (!%p235_p3) }
   0x8   : > { %v548_v9 = vld [vmem:[%s4267_s3 + $0x28] sm:$0xff] (!%p235_p3)  ;;  %v564_v10 = vand.u32 (!%p235_p3), 4294901760, %v546_v6  ;;  %v549_v11 = vld [vmem:[%s4267_s3 + $0x30] sm:$0xff] (!%p235_p3)  ;;  %v550_v12 = vld [vmem:[%s4267_s3 + $0x38] sm:$0xff] (!%p235_p3)  ;;  %2986 = vmatprep.mubr.msk.f32.mxu0 (!%p235_p3), %vm3640_vm0, %v3641_v13  ;;  %p270_p4 = scmp.lt.s32.totalorder (!%p235_p3), %s3629_s21, 1  ;;  %3100 = vmatprep.mubr.msk.f32.mxu1 (!%p235_p3), %vm3640_vm0, %v3641_v13  ;;  %v567_v15 = vand.u32 (!%p235_p3), 4294901760, %v547_v8 }
   0x9   : > { %v3728_v14 = vpack.c.bf16 (!%p235_p3), %v558_v5, %v555_v4  ;;  %v570_v16 = vand.u32 (!%p235_p3), 4294901760, %v548_v9  ;;  %v573_v17 = vand.u32 (!%p235_p3), 4294901760, %v549_v11  ;;  %v3733_v18 = vsub.f32 (!%p235_p3), %v543_v0, %v555_v4 }
   0xa   : > { %v3737_v19 = vpack.c.bf16 (!%p235_p3), %v564_v10, %v561_v7  ;;  %v576_v20 = vand.u32 (!%p235_p3), 4294901760, %v550_v12  ;;  %v3739_v21 = vsub.f32 (!%p235_p3), %v544_v1, %v558_v5  ;;  %v3741_v22 = vsub.f32 (!%p235_p3), %v545_v2, %v561_v7 }
   0xb   : > { %3332 = vmatpush3.bf16.msra.mxu0 (!%p235_p3), %v3728_v14  ;;  %3404 = vmatpush3.bf16.msra.mxu1 (!%p235_p3), %v3728_v14  ;;  %v3746_v23 = vsub.f32 (!%p235_p3), %v546_v6, %v564_v10  ;;  %v3748_v24 = vsub.f32 (!%p235_p3), %v547_v8, %v567_v15  ;;  %v3750_v25 = vsub.f32 (!%p235_p3), %v548_v9, %v570_v16  ;;  %vm349_vm1 = vcmask (!%p235_p3), 523264  }
   0xc   : > { %3333 = vmatprep.subr.bf16.mxu0 (!%p235_p3), %v3639_v3  ;;  %3405 = vmatprep.subr.bf16.mxu1 (!%p235_p3), %v3639_v3  ;;  %v3757_v26 = vsub.f32 (!%p235_p3), %v549_v11, %v573_v17  ;;  %v3759_v27 = vsub.f32 (!%p235_p3), %v550_v12, %v576_v20  ;;  %v3763_v28 = vpack.c.bf16 (!%p235_p3), %v570_v16, %v567_v15  ;;  %v640_v43 = vand.u32 (!%p235_p3), 4294901760, %v3733_v18 }
   0xd   : > { %v3771_v31 = vpack.c.bf16 (!%p235_p3), %v576_v20, %v573_v17  ;;  %v647_v52 = vand.u32 (!%p235_p3), 4294901760, %v3739_v21  ;;  %v654_v9 = vand.u32 (!%p235_p3), 4294901760, %v3741_v22  ;;  %v661_v10 = vand.u32 (!%p235_p3), 4294901760, %v3746_v23 }
   0xe   : > { %s4276_s21 = smov (!%p270_p4, %s3629_s21), 1  ;;  %v641_v51 = vsub.f32 %v3733_v18, %v640_v43  ;;  %v668_v16 = vand.u32 4294901760, %v3748_v24  ;;  %v675_v17 = vand.u32 4294901760, %v3750_v25  ;;  %vm524_vm2 = vcmask 516096  }
   0xf   : > { %s2722_s17 = sshll.u32 %s4276_s21, 7  ;;  %3335 = vmatpush3.bf16.msra.mxu0 %v3737_v19  ;;  %3407 = vmatpush3.bf16.msra.mxu1 %v3737_v19  ;;  %v648_v61 = vsub.f32 %v3739_v21, %v647_v52  ;;  %s4004_s27 = scalar_lea.vmem %s4269_s5, %s4276_s21  ;;  %vm1642_vm3 = vcmask 261120  }
  0x10   : > { %s3755_s20 = scalar_lea.vmem %s4264_s0, %s2722_s17  ;;  %3336 = vmatprep.subr.bf16.mxu0 %v3639_v3  ;;  %3408 = vmatprep.subr.bf16.mxu1 %v3639_v3  ;;  %v642_v60 = vand.u32 4294901760, %v641_v51  ;;  %s4026_s30 = scalar_lea.vmem %s4270_s6, %s4276_s21 }
  0x11   : > { %v2724_v29 = vld [vmem:[%s3755_s20] sm:$0xff]   ;;  %v2787_v30 = vld [vmem:[%s3755_s20 + $0x8] sm:$0xff]   ;;  %v2788_v35 = vld [vmem:[%s3755_s20 + $0x10] sm:$0xff]   ;;  %v649_v1 = vand.u32 4294901760, %v648_v61 }
  0x12   : > { %v2725_v32 = vunpack.c.l.bf16 %v2724_v29  ;;  %v2726_v33 = vunpack.c.h.bf16 %v2724_v29  ;;  %v2729_v34 = vunpack.c.l.bf16 %v2787_v30  ;;  %v2730_v36 = vunpack.c.h.bf16 %v2787_v30  ;;  %v2789_v41 = vld [vmem:[%s3755_s20 + $0x18] sm:$0xff]   ;;  %v2790_v49 = vld [vmem:[%s3755_s20 + $0x20] sm:$0xff]   ;;  %v2791_v58 = vld [vmem:[%s3755_s20 + $0x28] sm:$0xff]  }
  0x13   : > { %3338 = vmatpush3.bf16.msra.mxu0 %v3763_v28  ;;  %3410 = vmatpush3.bf16.msra.mxu1 %v3763_v28  ;;  %v3778_v37 = vunpack.c.l.bf16 %v2788_v35  ;;  %v3787_v44 = vunpack.c.h.bf16 %v2788_v35  ;;  %v3790_v47 = vunpack.c.l.bf16 %v2789_v41  ;;  %v3799_v53 = vunpack.c.h.bf16 %v2789_v41  ;;  %v2792_v4 = vld [vmem:[%s3755_s20 + $0x30] sm:$0xff]   ;;  %v2793_v6 = vld [vmem:[%s3755_s20 + $0x38] sm:$0xff]   ;;  %v2794_v12 = vld [vmem:[%s3755_s20 + $0x40] sm:$0xff]  }
  0x14   : > { %3339 = vmatprep.subr.bf16.mxu0 %v3639_v3  ;;  %3411 = vmatprep.subr.bf16.mxu1 %v3639_v3  ;;  %v350_v38 = vsel %vm349_vm1, %v2725_v32, 0.0  ;;  %v351_v39 = vsel %vm349_vm1, %v2726_v33, 0.0  ;;  %v353_v40 = vsel %vm349_vm1, %v2729_v34, 0.0  ;;  %v355_v45 = vsel %vm349_vm1, %v2730_v36, 0.0  ;;  %v2795_v29 = vld [vmem:[%s3755_s20 + $0x48] sm:$0xff]  }
  0x15   : > { %v352_v42 = vadd.f32 %v351_v39, %v350_v38  ;;  %v357_v48 = vsel %vm349_vm1, %v3778_v37, 0.0  ;;  %v359_v54 = vsel %vm349_vm1, %v3787_v44, 0.0  ;;  %v3803_v56 = vunpack.c.l.bf16 %v2790_v49 }
  0x16   : > { %v361_v57 = vsel %vm349_vm1, %v3790_v47, 0.0  ;;  %v2742_v62 = vunpack.c.h.bf16 %v2790_v49  ;;  %v363_v63 = vsel %vm349_vm1, %v3799_v53, 0.0  ;;  %v2745_v2 = vunpack.c.l.bf16 %v2791_v58 }
  0x17   : > { %3341 = vmatpush3.bf16.msra.mxu0 %v3771_v31  ;;  %3413 = vmatpush3.bf16.msra.mxu1 %v3771_v31  ;;  %v354_v46 = vadd.f32 %v353_v40, %v352_v42  ;;  %v365_v5 = vsel %vm349_vm1, %v3803_v56, 0.0  ;;  %v3817_v8 = vpack.c.bf16 %v649_v1, %v642_v60  ;;  %v2746_v11 = vunpack.c.h.bf16 %v2791_v58 }
  0x18   : > { %3342 = vmatprep.subr.bf16.mxu0 %v3639_v3  ;;  %3414 = vmatprep.subr.bf16.mxu1 %v3639_v3  ;;  %v367_v15 = vsel %vm349_vm1, %v2742_v62, 0.0  ;;  %v2749_v20 = vunpack.c.l.bf16 %v2792_v4  ;;  %v419_v35 = vmul.f32 %v2725_v32, %v2725_v32  ;;  %v420_v38 = vmul.f32 %v2726_v33, %v2726_v33  ;;  %v3842_v33 = vld [vmem:[%s3755_s20 + $0x58] sm:$0xff]  }
  0x19   : > { %v356_v50 = vadd.f32 %v355_v45, %v354_v46  ;;  %v2750_v39 = vunpack.c.h.bf16 %v2792_v4  ;;  %v3826_v40 = vunpack.c.l.bf16 %v2793_v6  ;;  %v369_v41 = vsel %vm349_vm1, %v2745_v2, 0.0 }
  0x1a   : > { %v421_v42 = vmul.f32 %v2729_v34, %v2729_v34  ;;  %v3829_v45 = vunpack.c.h.bf16 %v2793_v6  ;;  %v3831_v46 = vunpack.c.l.bf16 %v2794_v12  ;;  %v3834_v51 = vunpack.c.h.bf16 %v2794_v12 }
  0x1b   : > { %v358_v55 = vadd.f32 %v357_v48, %v356_v50  ;;  %v2796_v48 = vld [vmem:[%s3755_s20 + $0x50] sm:$0xff]   ;;  %v422_v50 = vmul.f32 %v2730_v36, %v2730_v36  ;;  %v371_v32 = vsel %vm349_vm1, %v2746_v11, 0.0  ;;  %v423_v34 = vmul.f32 %v3778_v37, %v3778_v37 }
  0x1c   : > { %v451_v58 = vsel %vm349_vm1, %v419_v35, 0.0  ;;  %v3848_v60 = vunpack.c.l.bf16 %v2796_v48  ;;  %v373_v36 = vsel %vm349_vm1, %v2749_v20, 0.0  ;;  %v424_v4 = vmul.f32 %v3787_v44, %v3787_v44 }
  0x1d   : > { %v360_v59 = vadd.f32 %v359_v54, %v358_v55  ;;  %v3836_v54 = vunpack.c.l.bf16 %v2795_v29  ;;  %v3838_v55 = vunpack.c.h.bf16 %v2795_v29  ;;  %v3858_v37 = vunpack.c.l.bf16 %v3842_v33 }
  0x1e   : > { %v375_v6 = vsel %vm349_vm1, %v2750_v39, 0.0  ;;  %v379_v29 = vsel %vm349_vm1, %v3829_v45, 0.0  ;;  %v458_v44 = vsel %vm349_vm1, %v423_v34, 0.0  ;;  %v381_v35 = vsel %vm349_vm1, %v3831_v46, 0.0 }
  0x1f   : > { %v362_v0 = vadd.f32 %v361_v57, %v360_v59  ;;  %v452_v59 = vsel %vm349_vm1, %v420_v38, 0.0  ;;  %v426_v38 = vmul.f32 %v3799_v53, %v3799_v53  ;;  %v387_v34 = vsel %vm349_vm1, %v3838_v55, 0.0 }
  0x20   : > { %v453_v61 = vadd.f32 %v452_v59, %v451_v58  ;;  %v430_v59 = vmul.f32 %v2746_v11, %v2746_v11  ;;  %v662_v11 = vsub.f32 %v3746_v23, %v661_v10 }
  0x21   : > { %v364_v7 = vadd.f32 %v363_v63, %v362_v0  ;;  %v454_v63 = vsel %vm349_vm1, %v421_v42, 0.0  ;;  %v3852_v0 = vunpack.c.h.bf16 %v2796_v48 }
  0x22   : > { %v455_v12 = vadd.f32 %v454_v63, %v453_v61  ;;  %v464_v63 = vsel %vm349_vm1, %v426_v38, 0.0 }
  0x23   : > { %v366_v30 = vadd.f32 %v365_v5, %v364_v7  ;;  %v456_v5 = vsel %vm349_vm1, %v422_v50, 0.0  ;;  %v377_v7 = vsel %vm349_vm1, %v3826_v40, 0.0  ;;  %v429_v50 = vmul.f32 %v2745_v2, %v2745_v2 }
  0x24   : > { %v457_v42 = vadd.f32 %v456_v5, %v455_v12  ;;  %v431_v2 = vmul.f32 %v2749_v20, %v2749_v20  ;;  %v669_v20 = vsub.f32 %v3748_v24, %v668_v16 }
  0x25   : > { %v368_v49 = vadd.f32 %v367_v15, %v366_v30  ;;  %v425_v30 = vmul.f32 %v3790_v47, %v3790_v47  ;;  %v383_v47 = vsel %vm349_vm1, %v3834_v51, 0.0 }
  0x26   : > { %v459_v58 = vadd.f32 %v458_v44, %v457_v42  ;;  %v670_v42 = vand.u32 4294901760, %v669_v20 }
  0x27   : > { %v370_v57 = vadd.f32 %v369_v41, %v368_v49  ;;  %v427_v41 = vmul.f32 %v3803_v56, %v3803_v56  ;;  %v428_v49 = vmul.f32 %v2742_v62, %v2742_v62  ;;  %v389_v56 = vsel %vm349_vm1, %v3848_v60, 0.0 }
  0x28   : > { %v462_v62 = vsel %vm349_vm1, %v425_v30, 0.0  ;;  %v689_v30 = vand.u32 4294901760, %v3759_v27 }
  0x29   : > { %v372_v1 = vadd.f32 %v371_v32, %v370_v57  ;;  %v460_v32 = vsel %vm349_vm1, %v424_v4, 0.0  ;;  %v385_v57 = vsel %vm349_vm1, %v3836_v54, 0.0  ;;  %v466_v4 = vsel %vm349_vm1, %v427_v41, 0.0 }
  0x2a   : > { %v461_v61 = vadd.f32 %v460_v32, %v459_v58  ;;  %v468_v5 = vsel %vm349_vm1, %v428_v49, 0.0  ;;  %v663_v41 = vand.u32 4294901760, %v662_v11  ;;  %v690_v32 = vsub.f32 %v3759_v27, %v689_v30 }
  0x2b   : > { %v374_v15 = vadd.f32 %v373_v36, %v372_v1  ;;  %v432_v36 = vmul.f32 %v2750_v39, %v2750_v39  ;;  %v3928_v11 = vpack.c.bf16 %v647_v52, %v640_v43 }
  0x2c   : > { %v463_v12 = vadd.f32 %v462_v62, %v461_v61  ;;  %v3912_v62 = vpack.c.bf16 %v3746_v23, %v3741_v22  ;;  %v474_v23 = vsel %vm349_vm1, %v431_v2, 0.0  ;;  %v435_v2 = vmul.f32 %v3831_v46, %v3831_v46 }
  0x2d   : > { %v376_v48 = vadd.f32 %v375_v6, %v374_v15  ;;  %v470_v6 = vsel %vm349_vm1, %v429_v50, 0.0  ;;  %v676_v15 = vsub.f32 %v3750_v25, %v675_v17  ;;  %v437_v46 = vmul.f32 %v3836_v54, %v3836_v54 }
  0x2e   : > { %v465_v44 = vadd.f32 %v464_v63, %v463_v12  ;;  %v439_v54 = vmul.f32 %v3848_v60, %v3848_v60  ;;  %v441_v60 = vmul.f32 %v3858_v37, %v3858_v37 }
  0x2f   : > { %v378_v53 = vadd.f32 %v377_v7, %v376_v48  ;;  %v655_v7 = vsub.f32 %v3741_v22, %v654_v9  ;;  %v677_v49 = vand.u32 4294901760, %v676_v15  ;;  %v3938_v15 = vpack.c.bf16 %v661_v10, %v654_v9 }
  0x30   : > { %v433_v22 = vmul.f32 %v3826_v40, %v3826_v40  ;;  %v393_v9 = vsel %vm349_vm1, %v3858_v37, 0.0 }
  0x31   : > { %v380_v1 = vadd.f32 %v379_v29, %v378_v53  ;;  %v682_v29 = vand.u32 4294901760, %v3757_v26  ;;  %v656_v38 = vand.u32 4294901760, %v655_v7  ;;  %v3908_v53 = vpack.c.bf16 %v3739_v21, %v3733_v18 }
  0x32   : > { %v3914_v63 = vpack.c.bf16 %v677_v49, %v670_v42  ;;  %v3918_v7 = vpack.c.bf16 %v3750_v25, %v3748_v24  ;;  %v391_v18 = vsel %vm349_vm1, %v3852_v0, 0.0  ;;  %v434_v24 = vmul.f32 %v3829_v45, %v3829_v45  ;;  %v2800_v45 = vld [vmem:[%s3755_s20 + $0x70] sm:$0xff]  }
  0x33   : > { %v382_v39 = vadd.f32 %v381_v35, %v380_v1  ;;  %v683_v50 = vsub.f32 %v3757_v26, %v682_v29  ;;  %v467_v35 = vadd.f32 %v466_v4, %v465_v44  ;;  %v3904_v58 = vpack.c.bf16 %v663_v41, %v656_v38 }
  0x34   : > { %v691_v1 = vand.u32 4294901760, %v690_v32  ;;  %v3922_v4 = vpack.c.bf16 %v3759_v27, %v3757_v26  ;;  %v2770_v26 = vunpack.c.h.bf16 %v3842_v33  ;;  %v3947_v27 = vpack.c.bf16 %v675_v17, %v668_v16  ;;  %v2799_v33 = vld [vmem:[%s3755_s20 + $0x68] sm:$0xff]  }
  0x35   : > { %v384_v48 = vadd.f32 %v383_v47, %v382_v39  ;;  %v684_v47 = vand.u32 4294901760, %v683_v50  ;;  %v469_v12 = vadd.f32 %v468_v5, %v467_v35  ;;  %v472_v39 = vsel %vm349_vm1, %v430_v59, 0.0 }
  0x36   : > { %v476_v25 = vsel %vm349_vm1, %v432_v36, 0.0  ;;  %v395_v17 = vsel %vm349_vm1, %v2770_v26, 0.0  ;;  %v3959_v40 = vpack.c.bf16 %v689_v30, %v682_v29  ;;  %v2777_v44 = vunpack.c.l.bf16 %v2799_v33 }
  0x37   : > { %v386_v61 = vadd.f32 %v385_v57, %v384_v48  ;;  %v2798_v57 = vld [vmem:[%s3755_s20 + $0x60] sm:$0xff]   ;;  %v3932_v5 = vpack.c.bf16 %v691_v1, %v684_v47  ;;  %v471_v21 = vadd.f32 %v470_v6, %v469_v12  ;;  %v478_v6 = vsel %vm349_vm1, %v433_v22, 0.0  ;;  %v2801_v1 = vld [vmem:[%s3755_s20 + $0x78] sm:$0xff]  }
  0x38   : > { %v2773_v52 = vunpack.c.l.bf16 %v2798_v57  ;;  %v2774_v16 = vunpack.c.h.bf16 %v2798_v57  ;;  %v436_v36 = vmul.f32 %v3834_v51, %v3834_v51  ;;  %v480_v48 = vsel %vm349_vm1, %v434_v24, 0.0 }
  0x39   : > { %v388_v20 = vadd.f32 %v387_v34, %v386_v61  ;;  %v473_v10 = vadd.f32 %v472_v39, %v471_v21  ;;  %v2778_v29 = vunpack.c.h.bf16 %v2799_v33  ;;  %v482_v32 = vsel %vm349_vm1, %v435_v2, 0.0 }
  0x3a   : > { %v397_v38 = vsel %vm349_vm1, %v2773_v52, 0.0  ;;  %v399_v30 = vsel %vm349_vm1, %v2774_v16, 0.0  ;;  %v2781_v35 = vunpack.c.l.bf16 %v2800_v45  ;;  %v401_v61 = vsel %vm349_vm1, %v2777_v44, 0.0 }
  0x3b   : > { %v390_v43 = vadd.f32 %v389_v56, %v388_v20  ;;  %v475_v56 = vadd.f32 %v474_v23, %v473_v10  ;;  %v438_v51 = vmul.f32 %v3838_v55, %v3838_v55  ;;  %v484_v57 = vsel %vm349_vm1, %v436_v36, 0.0 }
  0x3c   : > { %v2782_v20 = vunpack.c.h.bf16 %v2800_v45  ;;  %v403_v39 = vsel %vm349_vm1, %v2778_v29, 0.0  ;;  %v2785_v22 = vunpack.c.l.bf16 %v2801_v1  ;;  %v405_v23 = vsel %vm349_vm1, %v2781_v35, 0.0 }
  0x3d   : > { %v392_v34 = vadd.f32 %v391_v18, %v390_v43  ;;  %v477_v41 = vadd.f32 %v476_v25, %v475_v56  ;;  %v486_v43 = vsel %vm349_vm1, %v437_v46, 0.0  ;;  %v440_v55 = vmul.f32 %v3852_v0, %v3852_v0 }
  0x3e   : > { %v488_v33 = vsel %vm349_vm1, %v438_v51, 0.0  ;;  %v407_v24 = vsel %vm349_vm1, %v2782_v20, 0.0  ;;  %v490_v56 = vsel %vm349_vm1, %v439_v54, 0.0  ;;  %v443_v36 = vmul.f32 %v2773_v52, %v2773_v52 }
  0x3f   : > { %v394_v59 = vadd.f32 %v393_v9, %v392_v34  ;;  %v479_v49 = vadd.f32 %v478_v6, %v477_v41  ;;  %v2786_v34 = vunpack.c.h.bf16 %v2801_v1  ;;  %v492_v41 = vsel %vm349_vm1, %v440_v55, 0.0 }
  0x40   : > { %v448_v54 = vmul.f32 %v2782_v20, %v2782_v20 }
  0x41   : > { %v396_v42 = vadd.f32 %v395_v17, %v394_v59  ;;  %v481_v47 = vadd.f32 %v480_v48, %v479_v49  ;;  %v409_v59 = vsel %vm349_vm1, %v2785_v22, 0.0  ;;  %v411_v0 = vsel %vm349_vm1, %v2786_v34, 0.0 }
  0x42   : > { %v494_v48 = vsel %vm349_vm1, %v441_v60, 0.0  ;;  %v450_v55 = vmul.f32 %v2786_v34, %v2786_v34  ;;  %v508_v20 = vsel %vm349_vm1, %v448_v54, 0.0 }
  0x43   : > { %v398_v50 = vadd.f32 %v397_v38, %v396_v42  ;;  %v483_v18 = vadd.f32 %v482_v32, %v481_v47  ;;  %v442_v38 = vmul.f32 %v2770_v26, %v2770_v26  ;;  %v498_v47 = vsel %vm349_vm1, %v443_v36, 0.0 }
  0x45   : > { %v400_v12 = vadd.f32 %v399_v30, %v398_v50  ;;  %v485_v9 = vadd.f32 %v484_v57, %v483_v18  ;;  %v444_v50 = vmul.f32 %v2774_v16, %v2774_v16  ;;  %v496_v37 = vsel %vm349_vm1, %v442_v38, 0.0 }
  0x47   : > { %v402_v21 = vadd.f32 %v401_v61, %v400_v12  ;;  %v487_v25 = vadd.f32 %v486_v43, %v485_v9  ;;  %v445_v61 = vmul.f32 %v2777_v44, %v2777_v44  ;;  %v446_v12 = vmul.f32 %v2778_v29, %v2778_v29 }
  0x48   : > { %v500_v51 = vsel %vm349_vm1, %v444_v50, 0.0  ;;  %v449_v9 = vmul.f32 %v2785_v22, %v2785_v22 }
  0x49   : > { %v404_v10 = vadd.f32 %v403_v39, %v402_v21  ;;  %v489_v2 = vadd.f32 %v488_v33, %v487_v25  ;;  %v447_v39 = vmul.f32 %v2781_v35, %v2781_v35  ;;  %v502_v18 = vsel %vm349_vm1, %v445_v61, 0.0 }
  0x4a   : > { %v504_v43 = vsel %vm349_vm1, %v446_v12, 0.0  ;;  %v510_v22 = vsel %vm349_vm1, %v449_v9, 0.0  ;;  %v512_v25 = vsel %vm349_vm1, %v450_v55, 0.0 }
  0x4b   : > { %v406_v17 = vadd.f32 %v405_v23, %v404_v10  ;;  %v491_v45 = vadd.f32 %v490_v56, %v489_v2  ;;  %v506_v10 = vsel %vm349_vm1, %v447_v39, 0.0 }
  0x4d   : > { %v408_v6 = vadd.f32 %v407_v24, %v406_v17  ;;  %v493_v30 = vadd.f32 %v492_v41, %v491_v45 }
  0x4f   : > { %v410_v42 = vadd.f32 %v409_v59, %v408_v6  ;;  %v495_v46 = vadd.f32 %v494_v48, %v493_v30 }
  0x51   : > { %v412_v49 = vadd.f32 %v411_v0, %v410_v42  ;;  %v497_v26 = vadd.f32 %v496_v37, %v495_v46 }
  0x53   : > { %v413_v32 = vrot.slane %v412_v49, 4  ;;  %v499_v57 = vadd.f32 %v498_v47, %v497_v26 }
  0x55   : > { %v414_v1 = vadd.f32 %v413_v32, %v412_v49  ;;  %v501_v21 = vadd.f32 %v500_v51, %v499_v57 }
  0x57   : > { %v415_v52 = vrot.slane %v414_v1, 2  ;;  %v503_v23 = vadd.f32 %v502_v18, %v501_v21 }
  0x59   : > { %v416_v16 = vadd.f32 %v415_v52, %v414_v1  ;;  %v505_v29 = vadd.f32 %v504_v43, %v503_v23 }
  0x5b   : > { %v417_v44 = vrot.slane %v416_v16, 1  ;;  %v507_v33 = vadd.f32 %v506_v10, %v505_v29 }
  0x5d   : > { %v418_v35 = vadd.f32 %v417_v44, %v416_v16  ;;  %v509_v24 = vadd.f32 %v508_v20, %v507_v33 }
  0x5f   : > { %525 = vst.msk [vmem:[%s4004_s27] sm:$0x1] %vm524_vm2, %v418_v35  ;;  %v511_v17 = vadd.f32 %v510_v22, %v509_v24 }
  0x61   : > { %v513_v60 = vadd.f32 %v512_v25, %v511_v17 }
  0x63   : > { %v514_v59 = vrot.slane %v513_v60, 4 }
  0x65   : > { %v515_v34 = vadd.f32 %v514_v59, %v513_v60 }
  0x66   : > { %v541_v56 = vld [vmem:[%s4004_s27] sm:$0x1] }
  0x67   : > { %v552_v2 = vsel %vm349_vm1, %v541_v56, 0  ;;  %v516_v41 = vrot.slane %v515_v34, 2 }
  0x68   : > { %v4013_v6 = vand.u32 4294901760, %v552_v2 }
  0x69   : > { %v517_v45 = vadd.f32 %v516_v41, %v515_v34 }
  0x6a   : > { %v4016_v38 = vsub.f32 %v552_v2, %v4013_v6 }
  0x6b   : > { %v518_v36 = vrot.slane %v517_v45, 1 }
  0x6c   : > { %v629_v0 = vand.u32 4294901760, %v4016_v38 }
  0x6d   : > { %v519_v30 = vadd.f32 %v518_v36, %v517_v45 }
  0x6e   : > { %v630_v42 = vsub.f32 %v4016_v38, %v629_v0 }
  0x6f   : > { %526 = vst.msk [vmem:[%s4026_s30] sm:$0x1] %vm524_vm2, %v519_v30 }
  0x70   : > { %v631_v48 = vand.u32 4294901760, %v630_v42 }
  0x72   : > { %2987 = vmatmul.mubr.f32.vlgmr.msra.gmra.mrb[0].mxu0 %v631_v48 }
  0x73   : > { %3344 = vmatpush3.bf16.msra.mxu0 %v3817_v8  ;;  %3005 = vmatprep.mubr.msk.f32.mxu0 %vm3640_vm0, %v3641_v13 }
  0x74   : > { %3345 = vmatprep.subr.bf16.mxu0 %v3639_v3 }
  0x76   : > { %v542_v49 = vld [vmem:[%s4026_s30] sm:$0x1] }
  0x77   : > { %3347 = vmatpush3.bf16.msra.mxu0 %v3904_v58  ;;  %v1092_v50 = vsel %vm349_vm1, %v542_v49, 0 }
  0x78   : > { %3348 = vmatprep.subr.bf16.mxu0 %v3639_v3  ;;  %v4038_v37 = vand.u32 4294901760, %v1092_v50 }
  0x7a   : > { %v4043_v46 = vsub.f32 %v1092_v50, %v4038_v37 }
  0x7b   : > { %3350 = vmatpush3.bf16.msra.mxu0 %v3914_v63 }
  0x7c   : > { %3351 = vmatprep.subr.bf16.mxu0 %v3639_v3  ;;  %v1169_v32 = vand.u32 4294901760, %v4043_v46 }
  0x7e   : > { %v1170_v61 = vsub.f32 %v4043_v46, %v1169_v32 }
  0x7f   : > { %3353 = vmatpush3.bf16.msra.mxu0 %v3932_v5 }
  0x80   : > { %3354 = vmatprep.subr.bf16.mxu0 %v3639_v3  ;;  %v1171_v47 = vand.u32 4294901760, %v1170_v61 }
  0x82   : > { %3006 = vmatmul.mubr.f32.vlgmr.msra.gmra.mrb[0].mxu0 %v4013_v6  ;;  %3101 = vmatmul.mubr.f32.vlgmr.msra.gmra.mrb[0].mxu1 %v1171_v47  ;;  %v2623_v47 = vld [vmem:[%s4266_s2] sm:$0x1] }
  0x83   : > { %3356 = vmatpush3.bf16.msra.mxu0 %v3908_v53  ;;  %3024 = vmatprep.mubr.msk.f32.mxu0 %vm3640_vm0, %v3641_v13 }
  0x84   : > { %3357 = vmatprep.subr.bf16.mxu0 %v3639_v3  ;;  %3416 = vmatpush3.bf16.msra.mxu1 %v3817_v8 }
  0x85   : > { %3119 = vmatprep.mubr.msk.f32.mxu1 %vm3640_vm0, %v3641_v13  ;;  %3417 = vmatprep.subr.bf16.mxu1 %v3639_v3 }
  0x87   : > { %3359 = vmatpush3.bf16.msra.mxu0 %v3912_v62 }
  0x88   : > { %3360 = vmatprep.subr.bf16.mxu0 %v3639_v3  ;;  %3419 = vmatpush3.bf16.msra.mxu1 %v3904_v58 }
  0x89   : > { %3420 = vmatprep.subr.bf16.mxu1 %v3639_v3 }
  0x8b   : > { %3362 = vmatpush3.bf16.msra.mxu0 %v3918_v7 }
  0x8c   : > { %3363 = vmatprep.subr.bf16.mxu0 %v3639_v3  ;;  %3422 = vmatpush3.bf16.msra.mxu1 %v3914_v63  ;;  %v1641_v63 = vld [vmem:[%s4268_s4 + $0x18] sm:$0xff] }
  0x8d   : > { %3423 = vmatprep.subr.bf16.mxu1 %v3639_v3 }
  0x8f   : > { %3365 = vmatpush3.bf16.msra.mxu0 %v3922_v4 }
  0x90   : > { %3366 = vmatprep.subr.bf16.mxu0 %v3639_v3  ;;  %3425 = vmatpush3.bf16.msra.mxu1 %v3932_v5 }
  0x91   : > { %3426 = vmatprep.subr.bf16.mxu1 %v3639_v3 }
  0x92   : > { %3025 = vmatmul.mubr.f32.vlgmr.msra.gmra.mrb[0].mxu0 %v4016_v38 }
  0x93   : > { %3368 = vmatpush3.bf16.msra.mxu0 %v3728_v14  ;;  %3043 = vmatprep.mubr.msk.f32.mxu0 %vm3640_vm0, %v3641_v13 }
  0x94   : > { %3369 = vmatprep.subr.bf16.mxu0 %v3639_v3  ;;  %3120 = vmatmul.mubr.f32.vlgmr.msra.gmra.mrb[0].mxu1 %v4038_v37 }
  0x95   : > { %3428 = vmatpush3.bf16.msra.mxu1 %v3908_v53  ;;  %3138 = vmatprep.mubr.msk.f32.mxu1 %vm3640_vm0, %v3641_v13 }
  0x96   : > { %3429 = vmatprep.subr.bf16.mxu1 %v3639_v3 }
  0x97   : > { %3371 = vmatpush3.bf16.msra.mxu0 %v3737_v19 }
  0x98   : > { %3372 = vmatprep.subr.bf16.mxu0 %v3639_v3 }
  0x99   : > { %3431 = vmatpush3.bf16.msra.mxu1 %v3912_v62  ;;  %v1640_v62 = vld [vmem:[%s4268_s4 + $0x10] sm:$0xff] }
  0x9a   : > { %3432 = vmatprep.subr.bf16.mxu1 %v3639_v3 }
  0x9b   : > { %3374 = vmatpush3.bf16.msra.mxu0 %v3763_v28 }
  0x9c   : > { %3375 = vmatprep.subr.bf16.mxu0 %v3639_v3 }
  0x9d   : > { %3434 = vmatpush3.bf16.msra.mxu1 %v3918_v7  ;;  %v1653_v7 = vand.u32 4294901760, %v1640_v62 }
  0x9e   : > { %3435 = vmatprep.subr.bf16.mxu1 %v3639_v3 }
  0x9f   : > { %3377 = vmatpush3.bf16.msra.mxu0 %v3771_v31  ;;  %v1741_v26 = vsub.f32 %v1640_v62, %v1653_v7 }
  0xa0   : > { %3378 = vmatprep.subr.bf16.mxu0 %v3639_v3 }
  0xa1   : > { %3437 = vmatpush3.bf16.msra.mxu1 %v3922_v4  ;;  %v1656_v4 = vand.u32 4294901760, %v1641_v63  ;;  %v1742_v57 = vand.u32 4294901760, %v1741_v26 }
  0xa2   : > { %3044 = vmatmul.mubr.f32.vlgmr.msra.gmra.mrb[0].mxu0 %v629_v0  ;;  %3438 = vmatprep.subr.bf16.mxu1 %v3639_v3 }
  0xa3   : > { %3380 = vmatpush3.bf16.msra.mxu0 %v3928_v11  ;;  %3062 = vmatprep.mubr.msk.f32.mxu0 %vm3640_vm0, %v3641_v13  ;;  %v1748_v1 = vsub.f32 %v1641_v63, %v1656_v4  ;;  %v1743_v16 = vsub.f32 %v1741_v26, %v1742_v57 }
  0xa4   : > { %3381 = vmatprep.subr.bf16.mxu0 %v3639_v3  ;;  %3139 = vmatmul.mubr.f32.vlgmr.msra.gmra.mrb[0].mxu1 %v4043_v46 }
  0xa5   : > { %3440 = vmatpush3.bf16.msra.mxu1 %v3728_v14  ;;  %3157 = vmatprep.mubr.msk.f32.mxu1 %vm3640_vm0, %v3641_v13  ;;  %v1749_v39 = vand.u32 4294901760, %v1748_v1  ;;  %v4182_v18 = vpack.c.bf16 %v1748_v1, %v1741_v26  ;;  %v1744_v43 = vand.u32 4294901760, %v1743_v16 }
  0xa6   : > { %3441 = vmatprep.subr.bf16.mxu1 %v3639_v3 }
  0xa7   : > { %3383 = vmatpush3.bf16.msra.mxu0 %v3938_v15  ;;  %v1750_v54 = vsub.f32 %v1748_v1, %v1749_v39  ;;  %v4187_v10 = vpack.c.bf16 %v1749_v39, %v1742_v57 }
  0xa8   : > { %3384 = vmatprep.subr.bf16.mxu0 %v3639_v3 }
  0xa9   : > { %3443 = vmatpush3.bf16.msra.mxu1 %v3737_v19  ;;  %v1751_v23 = vand.u32 4294901760, %v1750_v54 }
  0xaa   : > { %3444 = vmatprep.subr.bf16.mxu1 %v3639_v3 }
  0xab   : > { %3386 = vmatpush3.bf16.msra.mxu0 %v3947_v27  ;;  %v3484_v44 = vpack.c.bf16 %v1751_v23, %v1744_v43 }
  0xac   : > { %3387 = vmatprep.subr.bf16.mxu0 %v3639_v3 }
  0xad   : > { %3446 = vmatpush3.bf16.msra.mxu1 %v3763_v28 }
  0xae   : > { %3447 = vmatprep.subr.bf16.mxu1 %v3639_v3 }
  0xaf   : > { %3389 = vmatpush3.bf16.msra.mxu0 %v3959_v40 }
  0xb0   : > { %3390 = vmatprep.subr.bf16.mxu0 %v3639_v3 }
  0xb1   : > { %3449 = vmatpush3.bf16.msra.mxu1 %v3771_v31 }
  0xb2   : > { %3063 = vmatmul.mubr.f32.vlgmr.msra.gmra.mrb[0].mxu0 %v4013_v6  ;;  %3450 = vmatprep.subr.bf16.mxu1 %v3639_v3 }
  0xb3   : > { %3392 = vmatpush3.bf16.msra.mxu0 %v3728_v14  ;;  %3081 = vmatprep.mubr.msk.f32.mxu0 %vm3640_vm0, %v3641_v13 }
  0xb4   : > { %3393 = vmatprep.subr.bf16.mxu0 %v3639_v3  ;;  %3158 = vmatmul.mubr.f32.vlgmr.msra.gmra.mrb[0].mxu1 %v1169_v32 }
  0xb5   : > { %3452 = vmatpush3.bf16.msra.mxu1 %v3928_v11  ;;  %3176 = vmatprep.mubr.msk.f32.mxu1 %vm3640_vm0, %v3641_v13 }
  0xb6   : > { %3453 = vmatprep.subr.bf16.mxu1 %v3639_v3 }
  0xb7   : > { %3395 = vmatpush3.bf16.msra.mxu0 %v3737_v19 }
  0xb8   : > { %3396 = vmatprep.subr.bf16.mxu0 %v3639_v3 }
  0xb9   : > { %3455 = vmatpush3.bf16.msra.mxu1 %v3938_v15  ;;  %v4175_v15 = vpack.c.bf16 %v1656_v4, %v1653_v7 }
  0xba   : > { %3456 = vmatprep.subr.bf16.mxu1 %v3639_v3 }
  0xbb   : > { %3398 = vmatpush3.bf16.msra.mxu0 %v3763_v28 }
  0xbc   : > { %3399 = vmatprep.subr.bf16.mxu0 %v3639_v3 }
  0xbd   : > { %3458 = vmatpush3.bf16.msra.mxu1 %v3947_v27 }
  0xbe   : > { %3459 = vmatprep.subr.bf16.mxu1 %v3639_v3 }
  0xbf   : > { %3401 = vmatpush3.bf16.msra.mxu0 %v3771_v31 }
  0xc0   : > { %3474 = vmatprep.subr.bf16.mxu0 %v3639_v3 }
  0xc1   : > { %3461 = vmatpush3.bf16.msra.mxu1 %v3959_v40 }
  0xc2   : > { %3082 = vmatmul.mubr.f32.vlgmr.msra.gmra.mrb[0].mxu0 %v4013_v6  ;;  %3462 = vmatprep.subr.bf16.mxu1 %v3639_v3 }
  0xc3   : > { %3206 = vmatprep.mubr.msk.f32.mxu0 %vm3640_vm0, %v3641_v13 }
  0xc4   : > { %3177 = vmatmul.mubr.f32.vlgmr.msra.gmra.mrb[0].mxu1 %v4038_v37 }
  0xc5   : > { %3464 = vmatpush3.bf16.msra.mxu1 %v3728_v14  ;;  %3195 = vmatprep.mubr.msk.f32.mxu1 %vm3640_vm0, %v3641_v13  ;;  %v1638_v14 = vld [vmem:[%s4268_s4] sm:$0xff] }
  0xc6   : > { %3465 = vmatprep.subr.bf16.mxu1 %v3639_v3 }
  0xc9   : > { %3467 = vmatpush3.bf16.msra.mxu1 %v3737_v19  ;;  %v1639_v19 = vld [vmem:[%s4268_s4 + $0x8] sm:$0xff] }
  0xca   : > { %3468 = vmatprep.subr.bf16.mxu1 %v3639_v3  ;;  %v1650_v8 = vand.u32 4294901760, %v1639_v19 }
  0xcc   : > { %v1734_v53 = vsub.f32 %v1639_v19, %v1650_v8 }
  0xcd   : > { %3470 = vmatpush3.bf16.msra.mxu1 %v3763_v28  ;;  %v1647_v28 = vand.u32 4294901760, %v1638_v14 }
  0xce   : > { %3471 = vmatprep.subr.bf16.mxu1 %v3639_v3  ;;  %v1735_v5 = vand.u32 4294901760, %v1734_v53 }
  0xcf   : > { %v4163_v58 = vpack.c.bf16 %v1650_v8, %v1647_v28 }
  0xd0   : > { %v1736_v40 = vsub.f32 %v1734_v53, %v1735_v5 }
  0xd1   : > { %3473 = vmatpush3.bf16.msra.mxu1 %v3771_v31  ;;  %v1727_v31 = vsub.f32 %v1638_v14, %v1647_v28  ;;  %3476 = vmatpush3.bf16.msra.mxu0 %v4163_v58 }
  0xd2   : > { %3510 = vmatprep.subr.bf16.mxu1 %v3639_v3  ;;  %3477 = vmatprep.subr.bf16.mxu0 %v3639_v3  ;;  %v1737_v51 = vand.u32 4294901760, %v1736_v40 }
  0xd3   : > { %v1728_v11 = vand.u32 4294901760, %v1727_v31  ;;  %v4178_v52 = vpack.c.bf16 %v1734_v53, %v1727_v31 }
  0xd4   : > { %3196 = vmatmul.mubr.f32.vlgmr.msra.gmra.mrb[0].mxu1 %v4038_v37  ;;  %v2619_v37 = vld [vmem:[%s4265_s1] sm:$0x1] }
  0xd5   : > { %3272 = vmatprep.mubr.msk.f32.mxu1 %vm3640_vm0, %v3641_v13  ;;  %3512 = vmatpush3.bf16.msra.mxu1 %v4163_v58  ;;  %v1729_v27 = vsub.f32 %v1727_v31, %v1728_v11  ;;  %v4185_v9 = vpack.c.bf16 %v1735_v5, %v1728_v11 }
  0xd6   : > { %3513 = vmatprep.subr.bf16.mxu1 %v3639_v3  ;;  %3479 = vmatpush3.bf16.msra.mxu0 %v4175_v15 }
  0xd7   : > { %v1730_v12 = vand.u32 4294901760, %v1729_v27  ;;  %3480 = vmatprep.subr.bf16.mxu0 %v3639_v3 }
  0xd9   : > { %3515 = vmatpush3.bf16.msra.mxu1 %v4175_v15  ;;  %v3481_v21 = vpack.c.bf16 %v1737_v51, %v1730_v12 }
  0xda   : > { %3516 = vmatprep.subr.bf16.mxu1 %v3639_v3 }
 0x195   : > { %v1087_v29 = vpop.f32.mrb[0].mxu0 }
 0x196   : > { %v1631_v35 = vmul.f32 0.001953125, %v1087_v29  ;;  %v3083_v55 = vpop.f32.mrb[1].mxu0 }
 0x198   : > { %v1644_v20 = vsel %vm1642_vm3, %v1631_v35, 0  ;;  %v1633_v60 = vmul.f32 %v1631_v35, %v1631_v35 }
 0x199   : > { %v1715_v33 = vand.u32 4294901760, %v1644_v20 }
 0x19b   : > { %v1716_v22 = vsub.f32 %v1644_v20, %v1715_v33 }
 0x19d   : > { %v1717_v24 = vand.u32 4294901760, %v1716_v22 }
 0x19f   : > { %v1718_v25 = vsub.f32 %v1716_v22, %v1717_v24 }
 0x1a1   : > { %v1719_v17 = vand.u32 4294901760, %v1718_v25 }
 0x1a3   : > { %3207 = vmatmul.mubr.f32.vlgmr.msra.gmra.mrb[2].mxu0 %v1719_v17 }
 0x1a4   : > { %3482 = vmatpush3.bf16.msra.mxu0 %v3481_v21  ;;  %3217 = vmatprep.mubr.msk.f32.mxu0 %vm3640_vm0, %v3641_v13 }
 0x1a5   : > { %3483 = vmatprep.subr.bf16.mxu0 %v3639_v3 }
 0x1a7   : > { %v1627_v56 = vpop.f32.mrb[0].mxu1 }
 0x1a8   : > { %3485 = vmatpush3.bf16.msra.mxu0 %v3484_v44  ;;  %v1632_v59 = vmul.f32 0.001953125, %v1627_v56  ;;  %v3197_v2 = vpop.f32.mrb[1].mxu1 }
 0x1a9   : > { %3486 = vmatprep.subr.bf16.mxu0 %v3639_v3 }
 0x1aa   : > { %v1634_v6 = vsub.f32 %v1632_v59, %v1633_v60 }
 0x1ab   : > { %3218 = vmatmul.mubr.f32.vlgmr.msra.gmra.mrb[2].mxu0 %v1715_v33 }
 0x1ac   : > { %3488 = vmatpush3.bf16.msra.mxu0 %v4178_v52  ;;  %3228 = vmatprep.mubr.msk.f32.mxu0 %vm3640_vm0, %v3641_v13  ;;  %v1635_v34 = vmax.f32 %v1634_v6, 0.0 }
 0x1ad   : > { %3489 = vmatprep.subr.bf16.mxu0 %v3639_v3 }
 0x1ae   : > { %v1636_v38 = vadd.f32 1e-06, %v1635_v34 }
 0x1b0   : > { %3491 = vmatpush3.bf16.msra.mxu0 %v4182_v18  ;;  %3613 = vrsqrt.f32 %v1636_v38 }
 0x1b1   : > { %3492 = vmatprep.subr.bf16.mxu0 %v3639_v3 }
 0x1b3   : > { %3229 = vmatmul.mubr.f32.vlgmr.msra.gmra.mrb[2].mxu0 %v1716_v22 }
 0x1b4   : > { %3494 = vmatpush3.bf16.msra.mxu0 %v4163_v58  ;;  %3239 = vmatprep.mubr.msk.f32.mxu0 %vm3640_vm0, %v3641_v13 }
 0x1b5   : > { %3495 = vmatprep.subr.bf16.mxu0 %v3639_v3 }
 0x1b8   : > { %3497 = vmatpush3.bf16.msra.mxu0 %v4175_v15 }
 0x1b9   : > { %3498 = vmatprep.subr.bf16.mxu0 %v3639_v3 }
 0x1ba   : > { %v3614_v41 = vpop.eup %3613 }
 0x1bb   : > { %3240 = vmatmul.mubr.f32.vlgmr.msra.gmra.mrb[2].mxu0 %v1717_v24  ;;  %v2132_v0 = vsel %vm1642_vm3, %v3614_v41, 0 }
 0x1bc   : > { %3500 = vmatpush3.bf16.msra.mxu0 %v4185_v9  ;;  %3250 = vmatprep.mubr.msk.f32.mxu0 %vm3640_vm0, %v3641_v13  ;;  %v2203_v45 = vand.u32 4294901760, %v2132_v0 }
 0x1bd   : > { %3501 = vmatprep.subr.bf16.mxu0 %v3639_v3 }
 0x1be   : > { %v2204_v42 = vsub.f32 %v2132_v0, %v2203_v45 }
 0x1c0   : > { %3503 = vmatpush3.bf16.msra.mxu0 %v4187_v10  ;;  %v2205_v36 = vand.u32 4294901760, %v2204_v42 }
 0x1c1   : > { %3504 = vmatprep.subr.bf16.mxu0 %v3639_v3 }
 0x1c2   : > { %v2206_v48 = vsub.f32 %v2204_v42, %v2205_v36 }
 0x1c3   : > { %3251 = vmatmul.mubr.f32.vlgmr.msra.gmra.mrb[2].mxu0 %v1715_v33 }
 0x1c4   : > { %3506 = vmatpush3.bf16.msra.mxu0 %v4163_v58  ;;  %3261 = vmatprep.mubr.msk.f32.mxu0 %vm3640_vm0, %v3641_v13  ;;  %v2207_v30 = vand.u32 4294901760, %v2206_v48 }
 0x1c5   : > { %3507 = vmatprep.subr.bf16.mxu0 %v3639_v3 }
 0x1c6   : > { %3273 = vmatmul.mubr.f32.vlgmr.msra.gmra.mrb[2].mxu1 %v2207_v30 }
 0x1c7   : > { %3518 = vmatpush3.bf16.msra.mxu1 %v3481_v21  ;;  %3283 = vmatprep.mubr.msk.f32.mxu1 %vm3640_vm0, %v3641_v13 }
 0x1c8   : > { %3519 = vmatprep.subr.bf16.mxu1 %v3639_v3  ;;  %3509 = vmatpush3.bf16.msra.mxu0 %v4175_v15 }
 0x1cb   : > { %3521 = vmatpush3.bf16.msra.mxu1 %v3484_v44  ;;  %3262 = vmatmul.mubr.f32.vlgmr.msra.gmra.mrb[2].mxu0 %v1715_v33 }
 0x1cc   : > { %3522 = vmatprep.subr.bf16.mxu1 %v3639_v3 }
 0x1ce   : > { %3284 = vmatmul.mubr.f32.vlgmr.msra.gmra.mrb[2].mxu1 %v2203_v45 }
 0x1cf   : > { %3524 = vmatpush3.bf16.msra.mxu1 %v4178_v52  ;;  %3294 = vmatprep.mubr.msk.f32.mxu1 %vm3640_vm0, %v3641_v13 }
 0x1d0   : > { %3525 = vmatprep.subr.bf16.mxu1 %v3639_v3 }
 0x1d3   : > { %3527 = vmatpush3.bf16.msra.mxu1 %v4182_v18 }
 0x1d4   : > { %3528 = vmatprep.subr.bf16.mxu1 %v3639_v3 }
 0x1d6   : > { %3295 = vmatmul.mubr.f32.vlgmr.msra.gmra.mrb[2].mxu1 %v2204_v42 }
 0x1d7   : > { %3530 = vmatpush3.bf16.msra.mxu1 %v4163_v58  ;;  %3305 = vmatprep.mubr.msk.f32.mxu1 %vm3640_vm0, %v3641_v13 }
 0x1d8   : > { %3531 = vmatprep.subr.bf16.mxu1 %v3639_v3 }
 0x1db   : > { %3533 = vmatpush3.bf16.msra.mxu1 %v4175_v15 }
 0x1dc   : > { %3534 = vmatprep.subr.bf16.mxu1 %v3639_v3 }
 0x1de   : > { %3306 = vmatmul.mubr.f32.vlgmr.msra.gmra.mrb[2].mxu1 %v2205_v36 }
 0x1df   : > { %3536 = vmatpush3.bf16.msra.mxu1 %v4185_v9  ;;  %3316 = vmatprep.mubr.msk.f32.mxu1 %vm3640_vm0, %v3641_v13 }
 0x1e0   : > { %3537 = vmatprep.subr.bf16.mxu1 %v3639_v3 }
 0x1e3   : > { %3539 = vmatpush3.bf16.msra.mxu1 %v4187_v10 }
 0x1e4   : > { %3540 = vmatprep.subr.bf16.mxu1 %v3639_v3 }
 0x1e6   : > { %3317 = vmatmul.mubr.f32.vlgmr.msra.gmra.mrb[2].mxu1 %v2203_v45 }
 0x1e7   : > { %3542 = vmatpush3.bf16.msra.mxu1 %v4163_v58  ;;  %3327 = vmatprep.mubr.msk.f32.mxu1 %vm3640_vm0, %v3641_v13 }
 0x1e8   : > { %3543 = vmatprep.subr.bf16.mxu1 %v3639_v3 }
 0x1eb   : > { %3545 = vmatpush3.bf16.msra.mxu1 %v4175_v15 }
 0x1ee   : > { %3328 = vmatmul.mubr.f32.vlgmr.msra.gmra.mrb[2].mxu1 %v2203_v45 }
 0x29e   : > { %v2127_v49 = vpop.f32.mrb[2].mxu0 }
 0x29f   : > { %v3263_v50 = vpop.f32.mrb[3].mxu0 }
 0x2c1   : > { %v2615_v46 = vpop.f32.mrb[2].mxu1 }
 0x2c2   : > { %v2620_v32 = vmul.f32 %v2619_v37, %v2615_v46  ;;  %v3329_v61 = vpop.f32.mrb[3].mxu1 }
 0x2c4   : > { %2622 = vst.msk [vmem:[%s4004_s27] sm:$0x1] %vm524_vm2, %v2620_v32  ;;  %v2624_v13 = vmul.f32 %v2620_v32, %v2127_v49 }
 0x2c6   : > { %v2625_v3 = vsub.f32 %v2623_v47, %v2624_v13 }
 0x2c8   : > { %2626 = vst.msk [vmem:[%s4026_s30] sm:$0x1] %vm524_vm2, %v2625_v3 }
 0x2c9 PF: > { %s17_s23 = sadd.s32 1, %s3637_s23   ;;  %s4271_s21 = smov %s3633_s22 }
 0x2ca   : > { %p14_p5 = scmp.ge.s32.totalorder %s17_s23, 4   ;;  %s4272_s22 = smov %s4274_s24 }
 0x2cc   :  { %16 = sbr.rel (!%p14_p5) target bundleno = 2 (0x2), region = 94 }

// kernel: resnet_block_apply.7
= control target key start
LH: loop header
LB: loop body
LE: loop exit
PB: predicated region body
PF: predicated region fallthrough
CT: control target
= control target key end

     0   :  { %s2022_s21 = smov 0   ;;  %s2024_s22 = smov 0   ;;  %s2549_s0 = inlined_call_operand.vmem [shape: bf16[2,256,128], index: 0, kind: input, shape index: {}]   ;;  %s2550_s1 = inlined_call_operand.vmem [shape: f32[2,1,128], index: 1, kind: input, shape index: {}]   ;;  %s2551_s2 = inlined_call_operand.vmem [shape: f32[2,1,128], index: 2, kind: input, shape index: {}]   ;;  %s2552_s3 = inlined_call_operand.vmem [shape: bf16[2,256,64], index: 3, kind: input, shape index: {}]   ;;  %s2553_s4 = inlined_call_operand.vmem [shape: bf16[64,128], index: 4, kind: input, shape index: {}]   ;;  %s2554_s5 = inlined_call_operand.vmem [shape: f32[1,128], index: 5, kind: input, shape index: {}]   ;;  %s2555_s6 = inlined_call_operand.vmem [shape: bf16[2,256,128], index: 6, kind: output, shape index: {}]  }
   0x1   :  { %s2026_s23 = smov 0  }
   0x2 LB: > { %s28_s24 = sadd.s32 1, %s1981_s22  ;;  %p1402_p0 = scmp.ge.s32.totalorder %s1985_s23, 1  ;;  %s1985_s23 = sphi %s2026_s23, %s16_s23   ;;  %s1981_s22 = sphi %s2024_s22, %s2577_s22   ;;  %s1977_s21 = sphi %s2022_s21, %s2576_s21  }
   0x3   : > { %p30_p1 = scmp.ge.s32.totalorder %s28_s24, 2  ;;  %p266_p2 = scmp.lt.s32.totalorder %s1985_s23, 3 }
   0x5   : > { %s2579_s24 = smov (%p30_p1, %s28_s24), 0  ;;  %p267_p3 = pnand %p1402_p0, %p266_p2 }
   0x6   : > { %v1815_v0 = vld [vmem:[%s2553_s4] sm:$0xff] (!%p267_p3)   ;;  %p320_p4 = scmp.lt.s32.totalorder (!%p267_p3), %s1977_s21, 1  ;;  %v1816_v1 = vld [vmem:[%s2553_s4 + $0x8] sm:$0xff] (!%p267_p3)   ;;  %v1817_v2 = vld [vmem:[%s2553_s4 + $0x10] sm:$0xff] (!%p267_p3)   ;;  %vm873_vm0 = vcmask (!%p267_p3), 523264  }
   0x7   : > { %270 = sbr.rel (%p267_p3) target bundleno = 270 (0x10e), region = 44  ;;  %1743 = vmatprep.subr.bf16.mxu0 (!%p267_p3), %v1815_v0  ;;  %1783 = vmatprep.subr.bf16.mxu1 (!%p267_p3), %v1815_v0  ;;  %v1818_v5 = vld [vmem:[%s2553_s4 + $0x18] sm:$0xff] (!%p267_p3)  }
   0x8   : > { %1744 = vmatpush3.bf16.msra.mxu0 (!%p267_p3), %v1815_v0  ;;  %1787 = vmatpush3.bf16.msra.mxu1 (!%p267_p3), %v1815_v0 }
   0x9   : > { %1745 = vmatprep.subr.bf16.mxu0 (!%p267_p3), %v1816_v1  ;;  %1784 = vmatprep.subr.bf16.mxu1 (!%p267_p3), %v1816_v1 }
   0xc   : > { %1746 = vmatpush3.bf16.msra.mxu0 (!%p267_p3), %v1816_v1  ;;  %1788 = vmatpush3.bf16.msra.mxu1 (!%p267_p3), %v1816_v1 }
   0xd   : > { %1747 = vmatprep.subr.bf16.mxu0 (!%p267_p3), %v1817_v2  ;;  %1785 = vmatprep.subr.bf16.mxu1 (!%p267_p3), %v1817_v2 }
   0xe   : > { %s2581_s21 = smov (!%p320_p4, %s1977_s21), 1 }
   0xf   : > { %s2052_s7 = sshll.u32 %s2581_s21, 7  ;;  %s331_s18 = scalar_lea.vmem %s2550_s1, %s2581_s21 }
  0x10   : > { %s2058_s10 = scalar_lea.vmem %s2552_s3, %s2052_s7  ;;  %1748 = vmatpush3.bf16.msra.mxu0 %v1817_v2  ;;  %1789 = vmatpush3.bf16.msra.mxu1 %v1817_v2  ;;  %s2099_s15 = scalar_lea.vmem %s2549_s0, %s2052_s7 }
  0x11   : > { %v1819_v3 = vld [vmem:[%s2058_s10] sm:$0xff]   ;;  %1749 = vmatprep.subr.bf16.mxu0 %v1818_v5  ;;  %1786 = vmatprep.subr.bf16.mxu1 %v1818_v5  ;;  %v1821_v6 = vld [vmem:[%s2058_s10 + $0x8] sm:$0xff]   ;;  %v1823_v8 = vld [vmem:[%s2058_s10 + $0x10] sm:$0xff]   ;;  %s334_s25 = scalar_lea.vmem %s2551_s2, %s2581_s21  ;;  %s2433_s29 = scalar_lea.vmem %s2555_s6, %s2052_s7 }
  0x12   : > { %v1820_v4 = vld [vmem:[%s2058_s10 + $0x40] sm:$0xff]   ;;  %1751 = vmatprep.mubr.msk.bf16.mxu0 %vm873_vm0, %v1819_v3  ;;  %v1822_v7 = vld [vmem:[%s2058_s10 + $0x48] sm:$0xff]   ;;  %v1824_v9 = vld [vmem:[%s2058_s10 + $0x50] sm:$0xff]  }
  0x13   : > { %1767 = vmatprep.mubr.msk.bf16.mxu1 %vm873_vm0, %v1820_v4  ;;  %v1825_v10 = vld [vmem:[%s2058_s10 + $0x18] sm:$0xff]   ;;  %v1827_v12 = vld [vmem:[%s2058_s10 + $0x20] sm:$0xff]   ;;  %v1829_v14 = vld [vmem:[%s2058_s10 + $0x28] sm:$0xff]  }
  0x14   : > { %1750 = vmatpush3.bf16.msra.mxu0 %v1818_v5  ;;  %1790 = vmatpush3.bf16.msra.mxu1 %v1818_v5  ;;  %v1826_v11 = vld [vmem:[%s2058_s10 + $0x58] sm:$0xff]   ;;  %v1828_v13 = vld [vmem:[%s2058_s10 + $0x60] sm:$0xff]   ;;  %v1830_v15 = vld [vmem:[%s2058_s10 + $0x68] sm:$0xff]  }
  0x15   : > { %v1831_v16 = vld [vmem:[%s2058_s10 + $0x30] sm:$0xff]   ;;  %v1833_v18 = vld [vmem:[%s2058_s10 + $0x38] sm:$0xff]   ;;  %v2102_v20 = vld [vmem:[%s2099_s15 + $0x8] sm:$0xff]  }
  0x16   : > { %v1832_v17 = vld [vmem:[%s2058_s10 + $0x70] sm:$0xff]   ;;  %v1834_v19 = vld [vmem:[%s2058_s10 + $0x78] sm:$0xff]   ;;  %v1555_v21 = vunpack.c.l.bf16 %v2102_v20  ;;  %v2106_v22 = vld [vmem:[%s2099_s15 + $0x48] sm:$0xff]   ;;  %v1556_v30 = vunpack.c.h.bf16 %v2102_v20 }
  0x17   : > { %1752 = vmatmul.mubr.msk.bf16.vlgmr.msra.gmra.mrb[0].mxu0 %vm873_vm0, %v1821_v6  ;;  %1768 = vmatmul.mubr.msk.bf16.vlgmr.msra.gmra.mrb[0].mxu1 %vm873_vm0, %v1822_v7  ;;  %v2109_v23 = vld [vmem:[%s2099_s15] sm:$0xff]   ;;  %v1587_v26 = vunpack.c.l.bf16 %v2106_v22  ;;  %v1588_v32 = vunpack.c.h.bf16 %v2106_v22  ;;  %v2126_v33 = vld [vmem:[%s2099_s15 + $0x18] sm:$0xff]   ;;  %v2145_v43 = vld [vmem:[%s2099_s15 + $0x10] sm:$0xff]  }
  0x18   : > { %1755 = vmatprep.mubr.msk.bf16.mxu0 %vm873_vm0, %v1823_v8  ;;  %1771 = vmatprep.mubr.msk.bf16.mxu1 %vm873_vm0, %v1824_v9  ;;  %v1411_v24 = vmul.f32 -1.442695, %v1555_v21  ;;  %v2114_v25 = vld [vmem:[%s2099_s15 + $0x40] sm:$0xff]   ;;  %v1551_v27 = vunpack.c.l.bf16 %v2109_v23  ;;  %v1552_v35 = vunpack.c.h.bf16 %v2109_v23  ;;  %v1412_v37 = vmul.f32 -1.442695, %v1556_v30  ;;  %v2140_v41 = vld [vmem:[%s2099_s15 + $0x58] sm:$0xff]  }
  0x19   : > { %v1583_v28 = vunpack.c.l.bf16 %v2114_v25  ;;  %v1427_v29 = vmul.f32 -1.442695, %v1587_v26  ;;  %v1584_v36 = vunpack.c.h.bf16 %v2114_v25  ;;  %v1563_v38 = vunpack.c.l.bf16 %v2126_v33  ;;  %v2150_v45 = vld [vmem:[%s2099_s15 + $0x50] sm:$0xff]   ;;  %v2168_v5 = vld [vmem:[%s2099_s15 + $0x28] sm:$0xff]  }
  0x1a   : > { %1835 = vpow2.f32 %v1411_v24  ;;  %v1409_v31 = vmul.f32 -1.442695, %v1551_v27  ;;  %v1428_v39 = vmul.f32 -1.442695, %v1588_v32  ;;  %v1410_v40 = vmul.f32 -1.442695, %v1552_v35 }
  0x1b   : > { %v1425_v34 = vmul.f32 -1.442695, %v1583_v28  ;;  %1837 = vpow2.f32 %v1427_v29  ;;  %v1426_v42 = vmul.f32 -1.442695, %v1584_v36  ;;  %v1415_v44 = vmul.f32 -1.442695, %v1563_v38 }
  0x1c   : > { %1839 = vpow2.f32 %v1409_v31  ;;  %v1595_v47 = vunpack.c.l.bf16 %v2140_v41  ;;  %v1559_v48 = vunpack.c.l.bf16 %v2145_v43  ;;  %v1591_v49 = vunpack.c.l.bf16 %v2150_v45  ;;  %v2172_v9 = vld [vmem:[%s2099_s15 + $0x68] sm:$0xff]  }
  0x1d   : > { %1841 = vpow2.f32 %v1425_v34  ;;  %v1564_v51 = vunpack.c.h.bf16 %v2126_v33  ;;  %v1596_v59 = vunpack.c.h.bf16 %v2140_v41  ;;  %v1560_v8 = vunpack.c.h.bf16 %v2145_v43 }
  0x1e   : > { %1843 = vpow2.f32 %v1412_v37  ;;  %v1431_v52 = vmul.f32 -1.442695, %v1595_v47  ;;  %v1413_v54 = vmul.f32 -1.442695, %v1559_v48  ;;  %v1429_v56 = vmul.f32 -1.442695, %v1591_v49 }
  0x1f   : > { %1756 = vmatmul.mubr.msk.bf16.gmra.mrb[4].mxu0 %vm873_vm0, %v1825_v10  ;;  %1772 = vmatmul.mubr.msk.bf16.gmra.mrb[4].mxu1 %vm873_vm0, %v1826_v11  ;;  %1845 = vpow2.f32 %v1428_v39  ;;  %v1416_v58 = vmul.f32 -1.442695, %v1564_v51  ;;  %v1432_v2 = vmul.f32 -1.442695, %v1596_v59  ;;  %v1592_v11 = vunpack.c.h.bf16 %v2150_v45 }
  0x20   : > { %1759 = vmatprep.mubr.msk.bf16.mxu0 %vm873_vm0, %v1827_v12  ;;  %1775 = vmatprep.mubr.msk.bf16.mxu1 %vm873_vm0, %v1828_v13  ;;  %1847 = vpow2.f32 %v1410_v40  ;;  %v2176_v12 = vld [vmem:[%s2099_s15 + $0x20] sm:$0xff]  }
  0x21   : > { %1849 = vpow2.f32 %v1426_v42  ;;  %v1567_v24 = vunpack.c.l.bf16 %v2176_v12  ;;  %v1430_v31 = vmul.f32 -1.442695, %v1592_v11 }
  0x22   : > { %1851 = vpow2.f32 %v1415_v44  ;;  %v2562_v44 = vunpack.c.h.bf16 %v2168_v5 }
  0x24   : > { %v1836_v46 = vpop.eup %1835 }
  0x25   : > { %v518_v50 = vadd.f32 1.0, %v1836_v46  ;;  %v1838_v53 = vpop.eup %1837 }
  0x26   : > { %v1840_v55 = vpop.eup %1839  ;;  %v534_v60 = vadd.f32 1.0, %v1838_v53 }
  0x27   : > { %1760 = vmatmul.mubr.msk.bf16.gmra.mrb[8].mxu0 %vm873_vm0, %v1829_v14  ;;  %1776 = vmatmul.mubr.msk.bf16.gmra.mrb[8].mxu1 %vm873_vm0, %v1830_v15  ;;  %v1842_v57 = vpop.eup %1841  ;;  %1853 = vrcp.f32 %v518_v50  ;;  %v516_v62 = vadd.f32 1.0, %v1840_v55  ;;  %v1571_v14 = vunpack.c.l.bf16 %v2168_v5  ;;  %v2180_v15 = vld [vmem:[%s2099_s15 + $0x60] sm:$0xff]   ;;  %v1417_v50 = vmul.f32 -1.442695, %v1567_v24 }
  0x28   : > { %1763 = vmatprep.mubr.msk.bf16.mxu0 %vm873_vm0, %v1831_v16  ;;  %1779 = vmatprep.mubr.msk.bf16.mxu1 %vm873_vm0, %v1832_v17  ;;  %1855 = vpow2.f32 %v1431_v52  ;;  %v1844_v61 = vpop.eup %1843  ;;  %v532_v0 = vadd.f32 1.0, %v1842_v57  ;;  %v1603_v17 = vunpack.c.l.bf16 %v2172_v9  ;;  %v1599_v34 = vunpack.c.l.bf16 %v2180_v15 }
  0x29   : > { %1857 = vpow2.f32 %v1413_v54  ;;  %v1846_v63 = vpop.eup %1845  ;;  %v519_v4 = vadd.f32 1.0, %v1844_v61  ;;  %v1419_v39 = vmul.f32 -1.442695, %v1571_v14  ;;  %v1420_v57 = vmul.f32 -1.442695, %v2562_v44 }
  0x2a   : > { %1859 = vpow2.f32 %v1429_v56  ;;  %v1848_v1 = vpop.eup %1847  ;;  %v535_v7 = vadd.f32 1.0, %v1846_v63  ;;  %v1435_v42 = vmul.f32 -1.442695, %v1603_v17  ;;  %v1433_v53 = vmul.f32 -1.442695, %v1599_v34 }
  0x2b   : > { %1861 = vpow2.f32 %v1416_v58  ;;  %v1850_v3 = vpop.eup %1849  ;;  %v517_v10 = vadd.f32 1.0, %v1848_v1  ;;  %v2560_v61 = vunpack.c.h.bf16 %v2172_v9  ;;  %v2558_v1 = vunpack.c.h.bf16 %v2176_v12 }
  0x2c   : > { %1863 = vrcp.f32 %v534_v60  ;;  %v1852_v6 = vpop.eup %1851  ;;  %v533_v13 = vadd.f32 1.0, %v1850_v3 }
  0x2d   : > { %1865 = vrcp.f32 %v516_v62  ;;  %v522_v16 = vadd.f32 1.0, %v1852_v6  ;;  %v2210_v62 = vld [vmem:[%s2099_s15 + $0x38] sm:$0xff]   ;;  %v2556_v6 = vunpack.c.h.bf16 %v2180_v15 }
  0x2e   : > { %1867 = vrcp.f32 %v532_v0 }
  0x2f   : > { %1764 = vmatmul.mubr.msk.bf16.gmra.mrb[12].mxu0 %vm873_vm0, %v1833_v18  ;;  %1780 = vmatmul.mubr.msk.bf16.gmra.mrb[12].mxu1 %vm873_vm0, %v1834_v19  ;;  %1869 = vpow2.f32 %v1432_v2  ;;  %v1414_v19 = vmul.f32 -1.442695, %v1560_v8  ;;  %v2216_v2 = vld [vmem:[%s2099_s15 + $0x78] sm:$0xff]  }
  0x30   : > { %1871 = vrcp.f32 %v519_v4 }
  0x31   : > { %v2183_v18 = vpop.eup %1853  ;;  %1873 = vrcp.f32 %v535_v7 }
  0x32   : > { %v1856_v29 = vpop.eup %1855  ;;  %1875 = vrcp.f32 %v517_v10 }
  0x33   : > { %v1858_v37 = vpop.eup %1857  ;;  %1877 = vrcp.f32 %v533_v13  ;;  %v538_v55 = vadd.f32 1.0, %v1856_v29  ;;  %v2557_v13 = vunpack.c.l.bf16 %v2210_v62  ;;  %v2559_v29 = vunpack.c.l.bf16 %v2216_v2 }
  0x34   : > { %v1860_v40 = vpop.eup %1859  ;;  %1879 = vrcp.f32 %v522_v16  ;;  %v520_v60 = vadd.f32 1.0, %v1858_v37  ;;  %v1418_v37 = vmul.f32 -1.442695, %v2558_v1 }
  0x35   : > { %v1862_v46 = vpop.eup %1861  ;;  %1881 = vpow2.f32 %v1414_v19  ;;  %v536_v0 = vadd.f32 1.0, %v1860_v40  ;;  %v1436_v19 = vmul.f32 -1.442695, %v2560_v61  ;;  %v1434_v40 = vmul.f32 -1.442695, %v2556_v6 }
  0x36   : > { %v2198_v52 = vpop.eup %1863  ;;  %1883 = vpow2.f32 %v1430_v31  ;;  %v523_v4 = vadd.f32 1.0, %v1862_v46  ;;  %v1423_v46 = vmul.f32 -1.442695, %v2557_v13 }
  0x37   : > { %v2202_v54 = vpop.eup %1865  ;;  %1885 = vpow2.f32 %v1419_v39 }
  0x38   : > { %v2204_v56 = vpop.eup %1867  ;;  %1887 = vpow2.f32 %v1435_v42 }
  0x39   : > { %v1870_v58 = vpop.eup %1869  ;;  %1889 = vpow2.f32 %v1417_v50 }
  0x3a   : > { %v2212_v63 = vpop.eup %1871  ;;  %1891 = vpow2.f32 %v1433_v53  ;;  %v539_v10 = vadd.f32 1.0, %v1870_v58  ;;  %v1439_v53 = vmul.f32 -1.442695, %v2559_v29 }
  0x3b   : > { %v2218_v3 = vpop.eup %1873  ;;  %1893 = vrcp.f32 %v538_v55  ;;  %v2240_v55 = vld [vmem:[%s2099_s15 + $0x30] sm:$0xff]  }
  0x3c   : > { %v2221_v7 = vpop.eup %1875  ;;  %1895 = vpow2.f32 %v1420_v57  ;;  %v2561_v13 = vunpack.c.l.bf16 %v2240_v55 }
  0x3d   : > { %v2224_v16 = vpop.eup %1877  ;;  %1897 = vrcp.f32 %v520_v60 }
  0x3e   : > { %v2229_v31 = vpop.eup %1879  ;;  %1899 = vrcp.f32 %v536_v0 }
  0x3f   : > { %v1882_v39 = vpop.eup %1881  ;;  %1901 = vrcp.f32 %v523_v4  ;;  %v2243_v4 = vld [vmem:[%s2099_s15 + $0x70] sm:$0xff]  }
  0x40   : > { %v1884_v42 = vpop.eup %1883  ;;  %1903 = vrcp.f32 %v539_v10  ;;  %v521_v58 = vadd.f32 1.0, %v1882_v39  ;;  %v1607_v39 = vunpack.c.l.bf16 %v2243_v4 }
  0x41   : > { %v1886_v50 = vpop.eup %1885  ;;  %1905 = vpow2.f32 %v1436_v19  ;;  %v537_v0 = vadd.f32 1.0, %v1884_v42  ;;  %v614_v42 = vmul.f32 %v2183_v18, %v1555_v21  ;;  %v2265_v21 = vld [vmem:[%s331_s18] ss:$0 sm:$0xff]  ;;  %v612_v18 = vmul.f32 %v2202_v54, %v1551_v27 }
  0x42   : > { %v1888_v57 = vpop.eup %1887  ;;  %1907 = vpow2.f32 %v1418_v37  ;;  %v526_v6 = vadd.f32 1.0, %v1886_v50  ;;  %v2564_v50 = vunpack.c.h.bf16 %v2210_v62 }
  0x43   : > { %v1890_v60 = vpop.eup %1889  ;;  %1909 = vpow2.f32 %v1434_v40  ;;  %v542_v1 = vadd.f32 1.0, %v1888_v57 }
  0x44   : > { %v1892_v10 = vpop.eup %1891  ;;  %1911 = vpow2.f32 %v1423_v46  ;;  %v524_v37 = vadd.f32 1.0, %v1890_v60  ;;  %v2563_v60 = vunpack.c.h.bf16 %v2216_v2  ;;  %v1424_v27 = vmul.f32 -1.442695, %v2564_v50 }
  0x45   : > { %v1894_v19 = vpop.eup %1893  ;;  %1913 = vpow2.f32 %v1439_v53  ;;  %v540_v46 = vadd.f32 1.0, %v1892_v10  ;;  %v630_v53 = vmul.f32 %v2198_v52, %v1587_v26  ;;  %v2565_v10 = vunpack.c.h.bf16 %v2240_v55 }
  0x46   : > { %v1896_v29 = vpop.eup %1895  ;;  %1915 = vrcp.f32 %v521_v58  ;;  %v1421_v58 = vmul.f32 -1.442695, %v2561_v13  ;;  %v628_v52 = vmul.f32 %v2204_v56, %v1583_v28  ;;  %v1437_v13 = vmul.f32 -1.442695, %v1607_v39 }
  0x47   : > { %v1898_v40 = vpop.eup %1897  ;;  %1917 = vrcp.f32 %v537_v0  ;;  %v527_v0 = vadd.f32 1.0, %v1896_v29  ;;  %v653_v28 = vmul.f32 %v2265_v21, %v614_v42  ;;  %v1440_v20 = vmul.f32 -1.442695, %v2563_v60 }
  0x48   : > { %v2255_v57 = vpop.eup %1899  ;;  %1919 = vrcp.f32 %v526_v6  ;;  %v615_v6 = vmul.f32 %v2212_v63, %v1556_v30  ;;  %v1608_v30 = vunpack.c.h.bf16 %v2243_v4  ;;  %v669_v63 = vmul.f32 %v2265_v21, %v630_v53 }
  0x49   : > { %v2263_v61 = vpop.eup %1901  ;;  %1921 = vrcp.f32 %v542_v1  ;;  %v651_v1 = vmul.f32 %v2265_v21, %v612_v18  ;;  %v1422_v29 = vmul.f32 -1.442695, %v2565_v10  ;;  %v667_v42 = vmul.f32 %v2265_v21, %v628_v52 }
  0x4a   : > { %v1904_v26 = vpop.eup %1903  ;;  %1923 = vrcp.f32 %v524_v37  ;;  %v631_v60 = vmul.f32 %v2218_v3, %v1588_v32  ;;  %v613_v53 = vmul.f32 %v2221_v7, %v1552_v35  ;;  %v629_v18 = vmul.f32 %v2224_v16, %v1584_v36 }
  0x4b   : > { %v1906_v44 = vpop.eup %1905  ;;  %1925 = vrcp.f32 %v540_v46  ;;  %v2293_v46 = vld [vmem:[%s334_s25] ss:$0 sm:$0xff]  ;;  %v618_v52 = vmul.f32 %v2229_v31, %v1563_v38  ;;  %v634_v22 = vmul.f32 %v1894_v19, %v1595_v47  ;;  %v1438_v23 = vmul.f32 -1.442695, %v1608_v30 }
  0x4c   : > { %v1908_v54 = vpop.eup %1907  ;;  %1927 = vpow2.f32 %v1421_v58  ;;  %v654_v58 = vmul.f32 %v2265_v21, %v615_v6  ;;  %v2314_v35 = vadd.f32 %v2293_v46, %v653_v28  ;;  %v616_v25 = vmul.f32 %v1898_v40, %v1559_v48 }
  0x4d   : > { %v1910_v56 = vpop.eup %1909  ;;  %1929 = vrcp.f32 %v527_v0  ;;  %v543_v0 = vadd.f32 1.0, %v1906_v44  ;;  %v525_v36 = vadd.f32 1.0, %v1908_v54  ;;  %v2319_v3 = vadd.f32 %v2293_v46, %v669_v63 }
  0x4e   : > { %v1912_v37 = vpop.eup %1911  ;;  %1931 = vpow2.f32 %v1437_v13  ;;  %v2322_v38 = vadd.f32 %v2293_v46, %v651_v1  ;;  %v2325_v47 = vadd.f32 %v2293_v46, %v667_v42  ;;  %v670_v7 = vmul.f32 %v2265_v21, %v631_v60 }
  0x4f   : > { %v1914_v50 = vpop.eup %1913  ;;  %1933 = vpow2.f32 %v1424_v27  ;;  %v2329_v16 = vadd.f32 %v2293_v46, %v654_v58  ;;  %v652_v48 = vmul.f32 %v2265_v21, %v613_v53  ;;  %v668_v31 = vmul.f32 %v2265_v21, %v629_v18 }
  0x50   : > { %v1916_v10 = vpop.eup %1915  ;;  %1935 = vpow2.f32 %v1440_v20  ;;  %v657_v40 = vmul.f32 %v2265_v21, %v618_v52  ;;  %v673_v6 = vmul.f32 %v2265_v21, %v634_v22  ;;  %v541_v27 = vadd.f32 1.0, %v1910_v56 }
  0x51   : > { %v1918_v32 = vpop.eup %1917  ;;  %1937 = vpow2.f32 %v1422_v29  ;;  %v655_v28 = vmul.f32 %v2265_v21, %v616_v25  ;;  %v632_v60 = vmul.f32 %v2255_v57, %v1591_v49  ;;  %v619_v20 = vmul.f32 %v2263_v61, %v1564_v51 }
  0x52   : > { %v1920_v44 = vpop.eup %1919  ;;  %1939 = vrcp.f32 %v543_v0  ;;  %v635_v1 = vmul.f32 %v1904_v26, %v1596_v59  ;;  %v617_v56 = vmul.f32 %v1916_v10, %v1560_v8  ;;  %v633_v29 = vmul.f32 %v1918_v32, %v1592_v11 }
  0x53   : > { %v1922_v13 = vpop.eup %1921  ;;  %1941 = vpow2.f32 %v1438_v23  ;;  %v530_v42 = vadd.f32 1.0, %v1912_v37  ;;  %v2349_v53 = vadd.f32 %v2293_v46, %v670_v7  ;;  %v2352_v33 = vadd.f32 %v2293_v46, %v652_v48 }
  0x54   : > { %v1924_v19 = vpop.eup %1923  ;;  %1943 = vrcp.f32 %v525_v36  ;;  %v2355_v49 = vadd.f32 %v2293_v46, %v668_v31  ;;  %v622_v41 = vmul.f32 %v1920_v44, %v1571_v14  ;;  %v2360_v43 = vadd.f32 %v2293_v46, %v657_v40 }
  0x55   : > { %v1926_v54 = vpop.eup %1925  ;;  %v2363_v45 = vadd.f32 %v2293_v46, %v673_v6  ;;  %1945 = vrcp.f32 %v541_v27  ;;  %v546_v59 = vadd.f32 1.0, %v1914_v50  ;;  %v2366_v11 = vadd.f32 %v2293_v46, %v655_v28 }
  0x56   : > { %v1928_v63 = vpop.eup %1927  ;;  %v671_v61 = vmul.f32 %v2265_v21, %v632_v60  ;;  %v658_v57 = vmul.f32 %v2265_v21, %v619_v20  ;;  %v674_v14 = vmul.f32 %v2265_v21, %v635_v1  ;;  %v656_v37 = vmul.f32 %v2265_v21, %v617_v56 }
  0x57   : > { %v1930_v58 = vpop.eup %1929  ;;  %v528_v10 = vadd.f32 1.0, %v1928_v63  ;;  %v672_v18 = vmul.f32 %v2265_v21, %v633_v29  ;;  %1947 = vrcp.f32 %v530_v42  ;;  %v661_v50 = vmul.f32 %v2265_v21, %v622_v41 }
  0x58   : > { %v1932_v51 = vpop.eup %1931  ;;  %v638_v52 = vmul.f32 %v1922_v13, %v1603_v17  ;;  %v620_v22 = vmul.f32 %v1924_v19, %v1567_v24  ;;  %v636_v32 = vmul.f32 %v1926_v54, %v1599_v34  ;;  %v2566_v25 = vunpack.c.h.bf16 %v2168_v5  ;;  %v2391_v24 = vld [vmem:[%s2554_s5] ss:$0 sm:$0xff] }
  0x59   : > { %v1934_v8 = vpop.eup %1933  ;;  %v544_v23 = vadd.f32 1.0, %v1932_v51  ;;  %1949 = vrcp.f32 %v546_v59  ;;  %v2383_v48 = vadd.f32 %v2293_v46, %v671_v61  ;;  %v2386_v31 = vadd.f32 %v2293_v46, %v658_v57 }
  0x5a   : > { %v1936_v26 = vpop.eup %1935  ;;  %v623_v36 = vmul.f32 %v1930_v58, %v2566_v25  ;;  %v531_v44 = vadd.f32 1.0, %v1934_v8  ;;  %1951 = vrcp.f32 %v528_v10  ;;  %v2394_v5 = vadd.f32 %v2293_v46, %v674_v14 }
  0x5b   : > { %v1938_v0 = vpop.eup %1937  ;;  %v547_v17 = vadd.f32 1.0, %v1936_v26  ;;  %v2397_v34 = vadd.f32 %v2293_v46, %v656_v37  ;;  %v2400_v19 = vadd.f32 %v2293_v46, %v672_v18  ;;  %v2403_v27 = vadd.f32 %v2293_v46, %v661_v50 }
  0x5c   : > { %v1940_v7 = vpop.eup %1939  ;;  %v529_v40 = vadd.f32 1.0, %v1938_v0  ;;  %v677_v54 = vmul.f32 %v2265_v21, %v638_v52  ;;  %v659_v28 = vmul.f32 %v2265_v21, %v620_v22  ;;  %1953 = vrcp.f32 %v544_v23 }
  0x5d   : > { %v1942_v13 = vpop.eup %1941  ;;  %v675_v63 = vmul.f32 %v2265_v21, %v636_v32  ;;  %v662_v1 = vmul.f32 %v2265_v21, %v623_v36  ;;  %v2567_v56 = vunpack.c.h.bf16 %v2172_v9  ;;  %1955 = vrcp.f32 %v531_v44 }
  0x5e   : > { %v1944_v6 = vpop.eup %1943  ;;  %1957 = vrcp.f32 %v547_v17  ;;  %v545_v59 = vadd.f32 1.0, %v1942_v13  ;;  %v2568_v14 = vunpack.c.h.bf16 %v2176_v12 }
  0x5f   : > { %v639_v29 = vmul.f32 %v1940_v7, %v2567_v56  ;;  %v1946_v8 = vpop.eup %1945  ;;  %1959 = vrcp.f32 %v529_v40 }
  0x60   : > { %v621_v9 = vmul.f32 %v1944_v6, %v2568_v14  ;;  %1961 = vrcp.f32 %v545_v59  ;;  %v2444_v6 = vadd.f32 %v2293_v46, %v675_v63  ;;  %v2570_v59 = vunpack.c.l.bf16 %v2210_v62 }
  0x61   : > { %v1948_v23 = vpop.eup %1947  ;;  %v2571_v14 = vunpack.c.l.bf16 %v2216_v2 }
  0x63   : > { %v1950_v17 = vpop.eup %1949 }
  0xea   : > { %v1753_v60 = vpop.f32.mrb[0].mxu0  ;;  %v1769_v20 = vpop.f32.mrb[0].mxu1 }
  0xeb   : > { %v965_v42 = vadd.f32 %v1753_v60, %v2391_v24  ;;  %v1029_v58 = vadd.f32 %v1769_v20, %v2391_v24  ;;  %v956_v41 = vpop.f32.mrb[1].mxu0  ;;  %v1020_v51 = vpop.f32.mrb[1].mxu1  ;;  %v2447_v60 = vadd.f32 %v2293_v46, %v662_v1 }
  0xec   : > { %v957_v61 = vadd.f32 %v2391_v24, %v956_v41  ;;  %v1021_v57 = vadd.f32 %v2391_v24, %v1020_v51  ;;  %v1754_v10 = vpop.f32.mrb[2].mxu0  ;;  %v1770_v26 = vpop.f32.mrb[2].mxu1 }
  0xed   : > { %v1085_v37 = vadd.f32 %v965_v42, %v2314_v35  ;;  %v1101_v18 = vadd.f32 %v1029_v58, %v2319_v3  ;;  %v968_v0 = vadd.f32 %v1754_v10, %v2391_v24  ;;  %v1032_v50 = vadd.f32 %v1770_v26, %v2391_v24  ;;  %v959_v52 = vpop.f32.mrb[3].mxu0  ;;  %v1023_v22 = vpop.f32.mrb[3].mxu1 }
  0xee   : > { %v1083_v32 = vadd.f32 %v957_v61, %v2322_v38  ;;  %v1099_v25 = vadd.f32 %v1021_v57, %v2325_v47  ;;  %v960_v12 = vadd.f32 %v2391_v24, %v959_v52  ;;  %v1024_v36 = vadd.f32 %v2391_v24, %v1023_v22 }
  0xef   : > { %v1086_v35 = vadd.f32 %v968_v0, %v2329_v16  ;;  %v1102_v44 = vadd.f32 %v1032_v50, %v2349_v53  ;;  %v2569_v3 = vunpack.c.h.bf16 %v2180_v15  ;;  %v2438_v16 = vadd.f32 %v2293_v46, %v677_v54  ;;  %v1952_v15 = vpop.eup %1951 }
  0xf0   : > { %v1084_v38 = vadd.f32 %v960_v12, %v2352_v33  ;;  %v1100_v47 = vadd.f32 %v1024_v36, %v2355_v49  ;;  %v2441_v53 = vadd.f32 %v2293_v46, %v659_v28  ;;  %v678_v54 = vmul.f32 %v2265_v21, %v639_v29  ;;  %v1954_v42 = vpop.eup %1953 }
  0xf1   : > { %v637_v7 = vmul.f32 %v1946_v8, %v2569_v3  ;;  %v1621_v13 = vpack.c.bf16 %v1086_v35, %v1085_v37  ;;  %v1661_v40 = vpack.c.bf16 %v1102_v44, %v1101_v18  ;;  %v660_v28 = vmul.f32 %v2265_v21, %v621_v9  ;;  %v1956_v61 = vpop.eup %1955 }
  0xf2   : > { %v1616_v33 = vpack.c.bf16 %v1084_v38, %v1083_v32  ;;  %v1656_v20 = vpack.c.bf16 %v1100_v47, %v1099_v25  ;;  %v1757_v49 = vpop.f32.mrb[4].mxu0  ;;  %v1773_v56 = vpop.f32.mrb[4].mxu1  ;;  %v626_v8 = vmul.f32 %v1948_v23, %v2570_v59  ;;  %v642_v9 = vmul.f32 %v1950_v17, %v2571_v14 }
  0xf3   : > { %1708 = vst [vmem:[%s2433_s29 + $0x8] sm:$0xff] %v1621_v13   ;;  %1716 = vst [vmem:[%s2433_s29 + $0x48] sm:$0xff] %v1661_v40   ;;  %v981_v58 = vadd.f32 %v1757_v49, %v2391_v24  ;;  %v1045_v63 = vadd.f32 %v1773_v56, %v2391_v24  ;;  %v972_v41 = vpop.f32.mrb[5].mxu0  ;;  %v1036_v1 = vpop.f32.mrb[5].mxu1  ;;  %v676_v51 = vmul.f32 %v2265_v21, %v637_v7  ;;  %v2572_v37 = vunpack.c.l.bf16 %v2240_v55 }
  0xf4   : > { %1617 = vst [vmem:[%s2433_s29] sm:$0xff] %v1616_v33   ;;  %1715 = vst [vmem:[%s2433_s29 + $0x40] sm:$0xff] %v1656_v20   ;;  %v973_v29 = vadd.f32 %v2391_v24, %v972_v41  ;;  %v1037_v57 = vadd.f32 %v2391_v24, %v1036_v1  ;;  %v1758_v10 = vpop.f32.mrb[6].mxu0  ;;  %v1774_v26 = vpop.f32.mrb[6].mxu1  ;;  %v640_v17 = vmul.f32 %v1954_v42, %v1607_v39  ;;  %v2574_v41 = vunpack.c.h.bf16 %v2216_v2 }
  0xf5   : > { %v624_v18 = vmul.f32 %v1952_v15, %v2572_v37  ;;  %v1958_v0 = vpop.eup %1957  ;;  %v1089_v50 = vadd.f32 %v981_v58, %v2360_v43  ;;  %v1105_v52 = vadd.f32 %v1045_v63, %v2363_v45  ;;  %v984_v22 = vadd.f32 %v1758_v10, %v2391_v24  ;;  %v975_v32 = vpop.f32.mrb[7].mxu0 }
  0xf6   : > { %v1048_v23 = vadd.f32 %v1774_v26, %v2391_v24  ;;  %v1039_v25 = vpop.f32.mrb[7].mxu1  ;;  %v1960_v12 = vpop.eup %1959  ;;  %v1087_v36 = vadd.f32 %v973_v29, %v2366_v11  ;;  %v1103_v35 = vadd.f32 %v1037_v57, %v2383_v48  ;;  %v976_v44 = vadd.f32 %v2391_v24, %v975_v32 }
  0xf7   : > { %v1040_v3 = vadd.f32 %v2391_v24, %v1039_v25  ;;  %v1090_v7 = vadd.f32 %v984_v22, %v2386_v31  ;;  %v717_v45 = vadd.f32 %v2293_v46, %v678_v54  ;;  %v699_v48 = vadd.f32 %v2293_v46, %v660_v28  ;;  %v1962_v15 = vpop.eup %1961 }
  0xf8   : > { %v1106_v43 = vadd.f32 %v1048_v23, %v2394_v5  ;;  %v1088_v38 = vadd.f32 %v976_v44, %v2397_v34  ;;  %v665_v47 = vmul.f32 %v2265_v21, %v626_v8  ;;  %v715_v5 = vadd.f32 %v2293_v46, %v676_v51 }
  0xf9   : > { %v1104_v11 = vadd.f32 %v1040_v3, %v2400_v19  ;;  %v1631_v13 = vpack.c.bf16 %v1090_v7, %v1089_v50  ;;  %v681_v40 = vmul.f32 %v2265_v21, %v642_v9  ;;  %v663_v49 = vmul.f32 %v2265_v21, %v624_v18 }
  0xfa   : > { %v1671_v31 = vpack.c.bf16 %v1106_v43, %v1105_v52  ;;  %v1626_v39 = vpack.c.bf16 %v1088_v38, %v1087_v36  ;;  %v1761_v20 = vpop.f32.mrb[8].mxu0  ;;  %v1777_v34 = vpop.f32.mrb[8].mxu1  ;;  %v2573_v19 = vunpack.c.h.bf16 %v2210_v62  ;;  %v679_v63 = vmul.f32 %v2265_v21, %v640_v17 }
  0xfb   : > { %v1666_v33 = vpack.c.bf16 %v1104_v11, %v1103_v35  ;;  %1710 = vst [vmem:[%s2433_s29 + $0x18] sm:$0xff] %v1631_v13   ;;  %v997_v54 = vadd.f32 %v1761_v20, %v2391_v24  ;;  %v1061_v28 = vadd.f32 %v1777_v34, %v2391_v24  ;;  %v988_v42 = vpop.f32.mrb[9].mxu0  ;;  %v1052_v58 = vpop.f32.mrb[9].mxu1  ;;  %v643_v1 = vmul.f32 %v1958_v0, %v2574_v41 }
  0xfc   : > { %v627_v56 = vmul.f32 %v1956_v61, %v2573_v19  ;;  %1718 = vst [vmem:[%s2433_s29 + $0x58] sm:$0xff] %v1671_v31   ;;  %1709 = vst [vmem:[%s2433_s29 + $0x10] sm:$0xff] %v1626_v39   ;;  %v989_v51 = vadd.f32 %v2391_v24, %v988_v42  ;;  %v1053_v62 = vadd.f32 %v2391_v24, %v1052_v58  ;;  %v1762_v59 = vpop.f32.mrb[10].mxu0  ;;  %v1778_v8 = vpop.f32.mrb[10].mxu1  ;;  %v2575_v61 = vunpack.c.h.bf16 %v2240_v55 }
  0xfd   : > { %1717 = vst [vmem:[%s2433_s29 + $0x50] sm:$0xff] %v1666_v33   ;;  %v641_v57 = vmul.f32 %v1962_v15, %v1608_v30  ;;  %v1093_v10 = vadd.f32 %v997_v54, %v2403_v27  ;;  %v1109_v26 = vadd.f32 %v1061_v28, %v2438_v16  ;;  %v1000_v2 = vadd.f32 %v1762_v59, %v2391_v24  ;;  %v991_v9 = vpop.f32.mrb[11].mxu0  ;;  %v1055_v37 = vpop.f32.mrb[11].mxu1 }
  0xfe   : > { %v625_v29 = vmul.f32 %v1960_v12, %v2575_v61  ;;  %v1064_v14 = vadd.f32 %v1778_v8, %v2391_v24  ;;  %v1091_v18 = vadd.f32 %v989_v51, %v2441_v53  ;;  %v1107_v0 = vadd.f32 %v1053_v62, %v2444_v6 }
  0xff   : > { %v992_v55 = vadd.f32 %v2391_v24, %v991_v9  ;;  %v1056_v50 = vadd.f32 %v2391_v24, %v1055_v37  ;;  %v1094_v4 = vadd.f32 %v1000_v2, %v2447_v60  ;;  %v666_v27 = vmul.f32 %v2265_v21, %v627_v56 }
 0x100   : > { %v1110_v30 = vadd.f32 %v1064_v14, %v717_v45  ;;  %v682_v16 = vmul.f32 %v2265_v21, %v643_v1  ;;  %v664_v23 = vmul.f32 %v2265_v21, %v625_v29  ;;  %v680_v53 = vmul.f32 %v2265_v21, %v641_v57 }
 0x101   : > { %v1092_v52 = vadd.f32 %v992_v55, %v699_v48  ;;  %v1108_v22 = vadd.f32 %v1056_v50, %v715_v5  ;;  %v1641_v6 = vpack.c.bf16 %v1094_v4, %v1093_v10  ;;  %v704_v25 = vadd.f32 %v2293_v46, %v665_v47 }
 0x102   : > { %v1681_v32 = vpack.c.bf16 %v1110_v30, %v1109_v26  ;;  %v720_v60 = vadd.f32 %v2293_v46, %v681_v40  ;;  %v1765_v35 = vpop.f32.mrb[12].mxu0  ;;  %v1781_v44 = vpop.f32.mrb[12].mxu1  ;;  %v702_v3 = vadd.f32 %v2293_v46, %v663_v49  ;;  %v718_v7 = vadd.f32 %v2293_v46, %v679_v63 }
 0x103   : > { %v1636_v12 = vpack.c.bf16 %v1092_v52, %v1091_v18  ;;  %v1676_v36 = vpack.c.bf16 %v1108_v22, %v1107_v0  ;;  %1712 = vst [vmem:[%s2433_s29 + $0x28] sm:$0xff] %v1641_v6   ;;  %v1013_v21 = vadd.f32 %v1765_v35, %v2391_v24  ;;  %v1077_v43 = vadd.f32 %v1781_v44, %v2391_v24  ;;  %v1004_v45 = vpop.f32.mrb[13].mxu0  ;;  %v1068_v17 = vpop.f32.mrb[13].mxu1 }
 0x104   : > { %1720 = vst [vmem:[%s2433_s29 + $0x68] sm:$0xff] %v1681_v32   ;;  %v705_v38 = vadd.f32 %v2293_v46, %v666_v27  ;;  %v721_v11 = vadd.f32 %v2293_v46, %v682_v16  ;;  %v1005_v48 = vadd.f32 %v2391_v24, %v1004_v45  ;;  %v1069_v47 = vadd.f32 %v2391_v24, %v1068_v17  ;;  %v1766_v15 = vpop.f32.mrb[14].mxu0  ;;  %v1782_v13 = vpop.f32.mrb[14].mxu1 }
 0x105   : > { %1711 = vst [vmem:[%s2433_s29 + $0x20] sm:$0xff] %v1636_v12   ;;  %1719 = vst [vmem:[%s2433_s29 + $0x60] sm:$0xff] %v1676_v36   ;;  %v703_v31 = vadd.f32 %v2293_v46, %v664_v23  ;;  %v719_v5 = vadd.f32 %v2293_v46, %v680_v53  ;;  %v1097_v40 = vadd.f32 %v1013_v21, %v704_v25  ;;  %v1007_v34 = vpop.f32.mrb[15].mxu0  ;;  %v1071_v49 = vpop.f32.mrb[15].mxu1 }
 0x106   : > { %v1113_v39 = vadd.f32 %v1077_v43, %v720_v60  ;;  %v1016_v33 = vadd.f32 %v1766_v15, %v2391_v24  ;;  %v1080_v20 = vadd.f32 %v1782_v13, %v2391_v24  ;;  %v1095_v19 = vadd.f32 %v1005_v48, %v702_v3 }
 0x107   : > { %v1111_v56 = vadd.f32 %v1069_v47, %v718_v7  ;;  %v1008_v54 = vadd.f32 %v2391_v24, %v1007_v34  ;;  %v1072_v28 = vadd.f32 %v2391_v24, %v1071_v49 }
 0x108   : > { %v1098_v42 = vadd.f32 %v1016_v33, %v705_v38  ;;  %v1114_v46 = vadd.f32 %v1080_v20, %v721_v11 }
 0x109   : > { %v1096_v58 = vadd.f32 %v1008_v54, %v703_v31  ;;  %v1112_v63 = vadd.f32 %v1072_v28, %v719_v5 }
 0x10a   : > { %v1651_v41 = vpack.c.bf16 %v1098_v42, %v1097_v40  ;;  %v1691_v1 = vpack.c.bf16 %v1114_v46, %v1113_v39 }
 0x10b   : > { %v1646_v51 = vpack.c.bf16 %v1096_v58, %v1095_v19  ;;  %v1686_v62 = vpack.c.bf16 %v1112_v63, %v1111_v56 }
 0x10c   : > { %1714 = vst [vmem:[%s2433_s29 + $0x38] sm:$0xff] %v1651_v41   ;;  %1722 = vst [vmem:[%s2433_s29 + $0x78] sm:$0xff] %v1691_v1  }
 0x10d   : > { %1713 = vst [vmem:[%s2433_s29 + $0x30] sm:$0xff] %v1646_v51   ;;  %1721 = vst [vmem:[%s2433_s29 + $0x70] sm:$0xff] %v1686_v62  }
 0x10e PF: > { %s16_s23 = sadd.s32 1, %s1985_s23   ;;  %s2576_s21 = smov %s1981_s22 }
 0x10f   : > { %p13_p5 = scmp.ge.s32.totalorder %s16_s23, 4   ;;  %s2577_s22 = smov %s2579_s24 }
 0x111   :  { %15 = sbr.rel (!%p13_p5) target bundleno = 2 (0x2), region = 83 }

// kernel: resnet_block_apply.5
= control target key start
LH: loop header
LB: loop body
LE: loop exit
PB: predicated region body
PF: predicated region fallthrough
CT: control target
= control target key end

     0   :  { %s3313_s27 = smov 0   ;;  %s3315_s28 = smov 0   ;;  %s4352_s0 = inlined_call_operand.vmem [shape: bf16[2,16,16,64], index: 0, kind: input, shape index: {}, may-alias: {0,1,2}]   ;;  %s4353_s1 = inlined_call_operand.vmem [shape: bf16[2,16,16,64], index: 1, kind: input, shape index: {}, may-alias: {0,1,2}]   ;;  %s4354_s2 = inlined_call_operand.vmem [shape: bf16[2,16,16,64], index: 2, kind: input, shape index: {}, may-alias: {0,1,2}]   ;;  %s4355_s3 = inlined_call_operand.vmem [shape: f32[2,1,64], index: 3, kind: input, shape index: {}]   ;;  %s4356_s4 = inlined_call_operand.vmem [shape: f32[2,1,64], index: 4, kind: input, shape index: {}]   ;;  %s4357_s5 = inlined_call_operand.vmem [shape: bf16[3,192,128], index: 5, kind: input, shape index: {}]   ;;  %s4358_s6 = inlined_call_operand.vmem [shape: f32[1,128], index: 6, kind: input, shape index: {}]   ;;  %s4359_s7 = inlined_call_operand.vmem [shape: f32[2,1,128], index: 7, kind: input, shape index: {}]   ;;  %s4360_s8 = inlined_call_operand.vmem [shape: bf16[2,16,16,128], index: 8, kind: output, shape index: {}]  }
   0x1   :  { %s3317_s29 = smov 0  }
   0x2 LB: > { %s30_s30 = sadd.s32 1, %s3260_s28  ;;  %p2577_p0 = scmp.ge.s32.totalorder %s3264_s29, 1  ;;  %s3264_s29 = sphi %s3317_s29, %s18_s29   ;;  %s3260_s28 = sphi %s3315_s28, %s4366_s28   ;;  %s3256_s27 = sphi %s3313_s27, %s4365_s27  }
   0x3   : > { %p32_p1 = scmp.ge.s32.totalorder %s30_s30, 2  ;;  %p372_p2 = scmp.lt.s32.totalorder %s3264_s29, 3 }
   0x5   : > { %s4368_s30 = smov (%p32_p1, %s30_s30), 0  ;;  %p373_p3 = pnand %p2577_p0, %p372_p2 }
   0x6   : > { %p452_p4 = scmp.lt.s32.totalorder (!%p373_p3), %s3256_s27, 1  ;;  %v3060_v0 = vld [vmem:[%s4357_s5 + $0x60] sm:$0xff] (!%p373_p3)   ;;  %v3266_v1 = vmov (!%p373_p3), 0   ;;  %v3061_v2 = vld [vmem:[%s4357_s5 + $0x68] sm:$0xff] (!%p373_p3)   ;;  %v3062_v3 = vld [vmem:[%s4357_s5 + $0x70] sm:$0xff] (!%p373_p3)   ;;  %s3267_s11 = smov (!%p373_p3), 64  }
   0x7   : > { %376 = sbr.rel (%p373_p3) target bundleno = 580 (0x244), region = 52  ;;  %3010 = vmatprep.subr.bf16.mxu1 (!%p373_p3), %v3266_v1  ;;  %1545 = vmatprep.subr.bf16.mxu0 (!%p373_p3), %v3266_v1  ;;  %v3063_v27 = vld [vmem:[%s4357_s5 + $0x78] sm:$0xff] (!%p373_p3)   ;;  %v3064_v38 = vld [vmem:[%s4357_s5 + $0x80] sm:$0xff] (!%p373_p3)   ;;  %v3065_v60 = vld [vmem:[%s4357_s5 + $0x88] sm:$0xff] (!%p373_p3)   ;;  %vm1200_vm0 = vcmask (!%p373_p3), 1047552   ;;  %vm1275_vm2 = vcmask (!%p373_p3), 523264  }
   0x8   : > { %3022 = vmatpush1.bf16.msra.mxu1 (!%p373_p3), %v3060_v0  ;;  %1546 = vmatpush1.bf16.msra.mxu0 (!%p373_p3), %v3060_v0  ;;  %vm1201_vm1 = vsmask.f32 (!%p373_p3), 7424  ;;  %vm1125_vm4 = vcmask (!%p373_p3), 1040384   ;;  %vm1126_vm5 = vsmask.f32 (!%p373_p3), 256 }
   0x9   : > { %3011 = vmatprep.subr.bf16.mxu1 (!%p373_p3), %v3266_v1  ;;  %1547 = vmatprep.subr.bf16.mxu0 (!%p373_p3), %v3266_v1  ;;  %vm3699_vm3 = vmand (!%p373_p3), %vm1200_vm0, %vm1201_vm1 }
   0xa   : > { %vm3776_vm6 = vmand (!%p373_p3), %vm1125_vm4, %vm1126_vm5 }
   0xc   : > { %3023 = vmatpush1.bf16.msra.mxu1 (!%p373_p3), %v3061_v2  ;;  %1548 = vmatpush1.bf16.msra.mxu0 (!%p373_p3), %v3061_v2 }
   0xd   : > { %3012 = vmatprep.subr.bf16.mxu1 (!%p373_p3), %v3266_v1  ;;  %1549 = vmatprep.subr.bf16.mxu0 (!%p373_p3), %v3266_v1 }
   0xe   : > { %s4370_s27 = smov (!%p452_p4, %s3256_s27), 1 }
   0xf   : > { %s3344_s13 = sshll.u32 %s4370_s27, 7  ;;  %s3350_s16 = scalar_lea.vmem %s4355_s3, %s4370_s27 }
  0x10   : > { %s3356_s19 = scalar_lea.vmem %s4352_s0, %s3344_s13  ;;  %s3362_s22 = scalar_lea.vmem %s4356_s4, %s4370_s27  ;;  %v3369_v5 = vld [vmem:[%s3350_s16] ss:$0 sm:$0xff]  ;;  %3024 = vmatpush1.bf16.msra.mxu1 %v3062_v3  ;;  %1550 = vmatpush1.bf16.msra.mxu0 %v3062_v3 }
  0x11   : > { %v2987_v4 = vld [vmem:[%s3356_s19 + $0x40] sm:$0xff]   ;;  %v2988_v11 = vld [vmem:[%s3356_s19 + $0x48] sm:$0xff]   ;;  %v2989_v26 = vld [vmem:[%s3356_s19 + $0x50] sm:$0xff]   ;;  %3013 = vmatprep.subr.bf16.mxu1 %v3266_v1  ;;  %1551 = vmatprep.subr.bf16.mxu0 %v3266_v1  ;;  %s474_s14 = scalar_lea.vmem %s4353_s1, %s3344_s13  ;;  %s2793_s15 = sadd.s32 120, %s3344_s13 }
  0x12   : > { %v2828_v6 = vld [vmem:[%s3356_s19] sm:$0xff]   ;;  %v2861_v7 = vunpack.c.l.bf16 %v2987_v4  ;;  %v2862_v8 = vunpack.c.h.bf16 %v2987_v4  ;;  %v2980_v12 = vld [vmem:[%s3356_s19 + $0x8] sm:$0xff]   ;;  %v2865_v14 = vunpack.c.l.bf16 %v2988_v11  ;;  %v2866_v15 = vunpack.c.h.bf16 %v2988_v11  ;;  %v2981_v32 = vld [vmem:[%s3356_s19 + $0x10] sm:$0xff]   ;;  %s491_s20 = scalar_lea.vmem %s4354_s2, %s2793_s15  ;;  %s4266_s23 = scalar_lea.vmem %s4360_s8, %s3344_s13 }
  0x13   : > { %v2829_v9 = vunpack.c.l.bf16 %v2828_v6  ;;  %v2830_v10 = vunpack.c.h.bf16 %v2828_v6  ;;  %v3377_v13 = vld [vmem:[%s3362_s22] ss:$0 sm:$0xff]  ;;  %v2833_v16 = vunpack.c.l.bf16 %v2980_v12  ;;  %v2834_v17 = vunpack.c.h.bf16 %v2980_v12  ;;  %v2990_v37 = vld [vmem:[%s3356_s19 + $0x58] sm:$0xff]  }
  0x14   : > { %v609_v18 = vmul.f32 %v2861_v7, %v3369_v5  ;;  %v610_v19 = vmul.f32 %v2862_v8, %v3369_v5  ;;  %v611_v22 = vmul.f32 %v2865_v14, %v3369_v5  ;;  %v612_v23 = vmul.f32 %v2866_v15, %v3369_v5  ;;  %3025 = vmatpush1.bf16.msra.mxu1 %v3063_v27  ;;  %v2982_v56 = vld [vmem:[%s3356_s19 + $0x18] sm:$0xff]   ;;  %v2991_v0 = vld [vmem:[%s3356_s19 + $0x60] sm:$0xff]  }
  0x15   : > { %v593_v20 = vmul.f32 %v2829_v9, %v3369_v5  ;;  %v594_v21 = vmul.f32 %v2830_v10, %v3369_v5  ;;  %v595_v24 = vmul.f32 %v2833_v16, %v3369_v5  ;;  %v596_v25 = vmul.f32 %v2834_v17, %v3369_v5  ;;  %1552 = vmatpush1.bf16.msra.mxu0 %v3063_v27  ;;  %v2983_v6 = vld [vmem:[%s3356_s19 + $0x20] sm:$0xff]   ;;  %v3066_v10 = vld [vmem:[%s4357_s5 + $0x90] sm:$0xff]  }
  0x16   : > { %v3392_v28 = vadd.f32 %v3377_v13, %v609_v18  ;;  %v3395_v29 = vadd.f32 %v3377_v13, %v610_v19  ;;  %v3405_v33 = vadd.f32 %v3377_v13, %v611_v22  ;;  %v3408_v34 = vadd.f32 %v3377_v13, %v612_v23  ;;  %3014 = vmatprep.subr.bf16.mxu1 %v3266_v1 }
  0x17   : > { %v3398_v30 = vadd.f32 %v3377_v13, %v593_v20  ;;  %v3401_v31 = vadd.f32 %v3377_v13, %v594_v21  ;;  %v3411_v35 = vadd.f32 %v3377_v13, %v595_v24  ;;  %v3414_v36 = vadd.f32 %v3377_v13, %v596_v25  ;;  %1553 = vmatprep.subr.bf16.mxu0 %v3266_v1 }
  0x18   : > { %v2604_v39 = vmul.f32 -1.442695, %v3392_v28  ;;  %v2605_v40 = vmul.f32 -1.442695, %v3395_v29  ;;  %v2869_v42 = vunpack.c.l.bf16 %v2989_v26  ;;  %v2606_v44 = vmul.f32 -1.442695, %v3405_v33  ;;  %3026 = vmatpush1.bf16.msra.mxu1 %v3064_v38 }
  0x19   : > { %v2588_v41 = vmul.f32 -1.442695, %v3398_v30  ;;  %v2589_v43 = vmul.f32 -1.442695, %v3401_v31  ;;  %v2607_v45 = vmul.f32 -1.442695, %v3408_v34  ;;  %v2870_v46 = vunpack.c.h.bf16 %v2989_v26  ;;  %1554 = vmatpush1.bf16.msra.mxu0 %v3064_v38  ;;  %3015 = vmatprep.subr.bf16.mxu1 %v3266_v1 }
  0x1a   : > { %3096 = vpow2.f32 %v2604_v39  ;;  %v2590_v47 = vmul.f32 -1.442695, %v3411_v35  ;;  %v2591_v48 = vmul.f32 -1.442695, %v3414_v36  ;;  %v613_v49 = vmul.f32 %v2869_v42, %v3369_v5  ;;  %1555 = vmatprep.subr.bf16.mxu0 %v3266_v1 }
  0x1b   : > { %3098 = vpow2.f32 %v2605_v40  ;;  %v614_v50 = vmul.f32 %v2870_v46, %v3369_v5  ;;  %v2837_v51 = vunpack.c.l.bf16 %v2981_v32  ;;  %v2838_v52 = vunpack.c.h.bf16 %v2981_v32 }
  0x1c   : > { %3100 = vpow2.f32 %v2588_v41  ;;  %v3435_v53 = vadd.f32 %v3377_v13, %v613_v49  ;;  %v2873_v54 = vunpack.c.l.bf16 %v2990_v37  ;;  %v2874_v55 = vunpack.c.h.bf16 %v2990_v37  ;;  %3027 = vmatpush1.bf16.msra.mxu1 %v3065_v60  ;;  %v3067_v37 = vld [vmem:[%s4357_s5 + $0x98] sm:$0xff]  }
  0x1d   : > { %3102 = vpow2.f32 %v2589_v43  ;;  %v3439_v57 = vadd.f32 %v3377_v13, %v614_v50  ;;  %v597_v58 = vmul.f32 %v2837_v51, %v3369_v5  ;;  %v598_v59 = vmul.f32 %v2838_v52, %v3369_v5  ;;  %1556 = vmatpush1.bf16.msra.mxu0 %v3065_v60  ;;  %3016 = vmatprep.subr.bf16.mxu1 %v3266_v1  ;;  %v2992_v50 = vld [vmem:[%s3356_s19 + $0x68] sm:$0xff]  }
  0x1e   : > { %3104 = vpow2.f32 %v2606_v44  ;;  %v2608_v61 = vmul.f32 -1.442695, %v3435_v53  ;;  %v615_v62 = vmul.f32 %v2873_v54, %v3369_v5  ;;  %v616_v63 = vmul.f32 %v2874_v55, %v3369_v5  ;;  %1557 = vmatprep.subr.bf16.mxu0 %v3266_v1 }
  0x1f   : > { %3106 = vpow2.f32 %v2607_v45  ;;  %v2609_v2 = vmul.f32 -1.442695, %v3439_v57  ;;  %v3453_v3 = vadd.f32 %v3377_v13, %v597_v58  ;;  %v3456_v4 = vadd.f32 %v3377_v13, %v598_v59 }
  0x20   : > { %3108 = vpow2.f32 %v2590_v47  ;;  %v3461_v7 = vadd.f32 %v3377_v13, %v615_v62  ;;  %v3464_v8 = vadd.f32 %v3377_v13, %v616_v63  ;;  %v2841_v9 = vunpack.c.l.bf16 %v2982_v56  ;;  %3028 = vmatpush1.bf16.msra.mxu1 %v3066_v10 }
  0x21   : > { %3110 = vpow2.f32 %v2591_v48  ;;  %v2592_v11 = vmul.f32 -1.442695, %v3453_v3  ;;  %v2593_v12 = vmul.f32 -1.442695, %v3456_v4  ;;  %v2842_v14 = vunpack.c.h.bf16 %v2982_v56  ;;  %1558 = vmatpush1.bf16.msra.mxu0 %v3066_v10  ;;  %3017 = vmatprep.subr.bf16.mxu1 %v3266_v1  ;;  %v3068_v56 = vld [vmem:[%s4357_s5 + $0xa0] sm:$0xff]  }
  0x22   : > { %3112 = vpow2.f32 %v2608_v61  ;;  %v2610_v15 = vmul.f32 -1.442695, %v3461_v7  ;;  %v3473_v16 = vmul.f32 -1.442695, %v3464_v8  ;;  %v599_v17 = vmul.f32 %v2841_v9, %v3369_v5  ;;  %1559 = vmatprep.subr.bf16.mxu0 %v3266_v1 }
  0x23   : > { %3114 = vpow2.f32 %v2609_v2  ;;  %v600_v18 = vmul.f32 %v2842_v14, %v3369_v5  ;;  %v2877_v19 = vunpack.c.l.bf16 %v2991_v0  ;;  %v2878_v20 = vunpack.c.h.bf16 %v2991_v0  ;;  %v2984_v2 = vld [vmem:[%s3356_s19 + $0x28] sm:$0xff]  }
  0x24   : > { %v3097_v21 = vpop.eup %3096  ;;  %3116 = vpow2.f32 %v2592_v11  ;;  %v3480_v22 = vadd.f32 %v3377_v13, %v599_v17  ;;  %v2845_v23 = vunpack.c.l.bf16 %v2983_v6  ;;  %v2846_v24 = vunpack.c.h.bf16 %v2983_v6  ;;  %3029 = vmatpush1.bf16.msra.mxu1 %v3067_v37 }
  0x25   : > { %v3099_v25 = vpop.eup %3098  ;;  %v775_v26 = vadd.f32 1.0, %v3097_v21  ;;  %3118 = vpow2.f32 %v2593_v12  ;;  %v3483_v27 = vadd.f32 %v3377_v13, %v600_v18  ;;  %v617_v32 = vmul.f32 %v2877_v19, %v3369_v5  ;;  %1560 = vmatpush1.bf16.msra.mxu0 %v3067_v37  ;;  %3018 = vmatprep.subr.bf16.mxu1 %v3266_v1  ;;  %v3069_v18 = vld [vmem:[%s4357_s5 + $0xa8] sm:$0xff]  }
  0x26   : > { %v3101_v38 = vpop.eup %3100  ;;  %v776_v39 = vadd.f32 1.0, %v3099_v25  ;;  %3120 = vpow2.f32 %v2610_v15  ;;  %v3490_v40 = vmul.f32 -1.442695, %v3480_v22  ;;  %v618_v41 = vmul.f32 %v2878_v20, %v3369_v5  ;;  %1561 = vmatprep.subr.bf16.mxu0 %v3266_v1 }
  0x27   : > { %v3103_v42 = vpop.eup %3102  ;;  %3122 = vrcp.f32 %v775_v26  ;;  %v759_v43 = vadd.f32 1.0, %v3101_v38  ;;  %v3495_v44 = vmul.f32 -1.442695, %v3483_v27  ;;  %v3498_v45 = vadd.f32 %v3377_v13, %v617_v32 }
  0x28   : > { %v3105_v46 = vpop.eup %3104  ;;  %3124 = vrcp.f32 %v776_v39  ;;  %v760_v47 = vadd.f32 1.0, %v3103_v42  ;;  %v3502_v48 = vadd.f32 %v3377_v13, %v618_v41  ;;  %v601_v49 = vmul.f32 %v2845_v23, %v3369_v5  ;;  %3030 = vmatpush1.bf16.msra.mxu1 %v3068_v56  ;;  %v2993_v42 = vld [vmem:[%s3356_s19 + $0x70] sm:$0xff]  }
  0x29   : > { %v3107_v51 = vpop.eup %3106  ;;  %3126 = vrcp.f32 %v759_v43  ;;  %v777_v52 = vadd.f32 1.0, %v3105_v46  ;;  %v3507_v54 = vmul.f32 -1.442695, %v3498_v45  ;;  %v602_v55 = vmul.f32 %v2846_v24, %v3369_v5  ;;  %1562 = vmatpush1.bf16.msra.mxu0 %v3068_v56  ;;  %3019 = vmatprep.subr.bf16.mxu1 %v3266_v1 }
  0x2a   : > { %v3109_v58 = vpop.eup %3108  ;;  %3128 = vrcp.f32 %v760_v47  ;;  %v778_v59 = vadd.f32 1.0, %v3107_v51  ;;  %v3514_v60 = vmul.f32 -1.442695, %v3502_v48  ;;  %v3517_v61 = vadd.f32 %v3377_v13, %v601_v49  ;;  %1563 = vmatprep.subr.bf16.mxu0 %v3266_v1 }
  0x2b   : > { %v3111_v62 = vpop.eup %3110  ;;  %3130 = vrcp.f32 %v777_v52  ;;  %v761_v63 = vadd.f32 1.0, %v3109_v58  ;;  %v2881_v0 = vunpack.c.l.bf16 %v2992_v50  ;;  %v3523_v10 = vadd.f32 %v3377_v13, %v602_v55 }
  0x2c   : > { %v3113_v6 = vpop.eup %3112  ;;  %3132 = vrcp.f32 %v778_v59  ;;  %v762_v9 = vadd.f32 1.0, %v3111_v62  ;;  %v2882_v11 = vunpack.c.h.bf16 %v2992_v50  ;;  %v3526_v15 = vmul.f32 -1.442695, %v3517_v61  ;;  %3031 = vmatpush1.bf16.msra.mxu1 %v3069_v18  ;;  %v3070_v50 = vld [vmem:[%s4357_s5 + $0xb0] sm:$0xff]  }
  0x2d   : > { %v3115_v12 = vpop.eup %3114  ;;  %3134 = vrcp.f32 %v761_v63  ;;  %v779_v14 = vadd.f32 1.0, %v3113_v6  ;;  %v619_v17 = vmul.f32 %v2881_v0, %v3369_v5  ;;  %v2849_v23 = vunpack.c.l.bf16 %v2984_v2  ;;  %1564 = vmatpush1.bf16.msra.mxu0 %v3069_v18  ;;  %3020 = vmatprep.subr.bf16.mxu1 %v3266_v1  ;;  %v2985_v0 = vld [vmem:[%s3356_s19 + $0x30] sm:$0xff]  }
  0x2e   : > { %v3117_v19 = vpop.eup %3116  ;;  %3136 = vrcp.f32 %v762_v9  ;;  %v780_v20 = vadd.f32 1.0, %v3115_v12  ;;  %v620_v21 = vmul.f32 %v2882_v11, %v3369_v5  ;;  %v2850_v32 = vunpack.c.h.bf16 %v2984_v2  ;;  %1565 = vmatprep.subr.bf16.mxu0 %v3266_v1 }
  0x2f   : > { %v3119_v24 = vpop.eup %3118  ;;  %3138 = vrcp.f32 %v779_v14  ;;  %v763_v25 = vadd.f32 1.0, %v3117_v19  ;;  %v3535_v26 = vadd.f32 %v3377_v13, %v619_v17  ;;  %v603_v41 = vmul.f32 %v2849_v23, %v3369_v5 }
  0x30   : > { %v3121_v37 = vpop.eup %3120  ;;  %3140 = vrcp.f32 %v780_v20  ;;  %v764_v38 = vadd.f32 1.0, %v3119_v24  ;;  %v3539_v39 = vadd.f32 %v3377_v13, %v620_v21  ;;  %v2597_v47 = vmul.f32 -1.442695, %v3523_v10  ;;  %3032 = vmatpush1.bf16.msra.mxu1 %v3070_v50 }
  0x31   : > { %v3123_v43 = vpop.eup %3122  ;;  %3142 = vrcp.f32 %v763_v25  ;;  %v781_v46 = vadd.f32 1.0, %v3121_v37  ;;  %v604_v49 = vmul.f32 %v2850_v32, %v3369_v5  ;;  %v2614_v55 = vmul.f32 -1.442695, %v3535_v26  ;;  %1566 = vmatpush1.bf16.msra.mxu0 %v3070_v50  ;;  %3021 = vmatprep.subr.bf16.mxu1 %v3266_v1 }
  0x32   : > { %v3125_v51 = vpop.eup %3124  ;;  %v871_v52 = vmul.f32 %v3123_v43, %v3392_v28  ;;  %3144 = vrcp.f32 %v764_v38  ;;  %v3551_v56 = vadd.f32 %v3377_v13, %v603_v41  ;;  %v2615_v62 = vmul.f32 -1.442695, %v3539_v39  ;;  %1567 = vmatprep.subr.bf16.mxu0 %v3266_v1 }
  0x33   : > { %v3127_v58 = vpop.eup %3126  ;;  %v872_v59 = vmul.f32 %v3125_v51, %v3395_v29  ;;  %3146 = vpow2.f32 %v3473_v16  ;;  %v2885_v63 = vunpack.c.l.bf16 %v2993_v42  ;;  %v3561_v6 = vadd.f32 %v3377_v13, %v604_v49  ;;  %v3071_v29 = vld [vmem:[%s4357_s5 + $0xb8] sm:$0xff]  }
  0x34   : > { %v3129_v28 = vpop.eup %3128  ;;  %v855_v2 = vmul.f32 %v3127_v58, %v3398_v30  ;;  %3148 = vrcp.f32 %v781_v46  ;;  %v2886_v9 = vunpack.c.h.bf16 %v2993_v42  ;;  %v2598_v14 = vmul.f32 -1.442695, %v3551_v56  ;;  %3033 = vmatpush1.bf16.msra.mxu1 %v3071_v29 }
  0x35   : > { %v3131_v11 = vpop.eup %3130  ;;  %v3566_v16 = vpack.c.bf16 %v872_v59, %v871_v52  ;;  %v856_v12 = vmul.f32 %v3129_v28, %v3401_v31  ;;  %3150 = vpow2.f32 %v3490_v40  ;;  %v621_v18 = vmul.f32 %v2885_v63, %v3369_v5  ;;  %1568 = vmatpush1.bf16.msra.mxu0 %v3071_v29  ;;  %1781 = vmatprep.subr.bf16.mxu1 %v3266_v1 }
  0x36   : > { %v3133_v30 = vpop.eup %3132  ;;  %v873_v17 = vmul.f32 %v3131_v11, %v3405_v33  ;;  %3152 = vpow2.f32 %v3495_v44  ;;  %v622_v19 = vmul.f32 %v2886_v9, %v3369_v5  ;;  %v2853_v33 = vunpack.c.l.bf16 %v2985_v0  ;;  %2017 = vmatprep.subr.bf16.mxu0 %v3266_v1 }
  0x37   : > { %v3135_v20 = vpop.eup %3134  ;;  %1257 = vrot.lane.b32.xlu0 %v3566_v16, %s3267_s11  ;;  %v3578_v31 = vpack.c.bf16 %v856_v12, %v855_v2  ;;  %v874_v40 = vmul.f32 %v3133_v30, %v3408_v34  ;;  %3154 = vpow2.f32 %v3507_v54  ;;  %v3586_v23 = vadd.f32 %v3377_v13, %v621_v18 }
  0x38   : > { %v3137_v44 = vpop.eup %3136  ;;  %v857_v21 = vmul.f32 %v3135_v20, %v3411_v35  ;;  %3156 = vpow2.f32 %v3514_v60  ;;  %v3589_v24 = vadd.f32 %v3377_v13, %v622_v19  ;;  %v2854_v54 = vunpack.c.h.bf16 %v2985_v0 }
  0x39   : > { %v3139_v25 = vpop.eup %3138  ;;  %v3591_v32 = vpack.c.bf16 %v874_v40, %v873_v17  ;;  %v858_v34 = vmul.f32 %v3137_v44, %v3414_v36  ;;  %3158 = vpow2.f32 %v3526_v15  ;;  %v2599_v60 = vmul.f32 -1.442695, %v3561_v6 }
  0x3a   : > { %v3141_v37 = vpop.eup %3140  ;;  %v875_v35 = vmul.f32 %v3139_v25, %v3435_v53  ;;  %3160 = vpow2.f32 %v2597_v47  ;;  %v2616_v53 = vmul.f32 -1.442695, %v3586_v23  ;;  %v605_v43 = vmul.f32 %v2853_v33, %v3369_v5 }
  0x3b   : > { %v3143_v38 = vpop.eup %3142  ;;  %1241 = vrot.lane.b32.xlu0 %v3578_v31, %s3267_s11  ;;  %1259 = vrot.lane.b32.xlu1 %v3591_v32, %s3267_s11  ;;  %v3602_v36 = vpack.c.bf16 %v858_v34, %v857_v21  ;;  %v876_v15 = vmul.f32 %v3141_v37, %v3439_v57  ;;  %3162 = vpow2.f32 %v2614_v55  ;;  %v606_v46 = vmul.f32 %v2854_v54, %v3369_v5  ;;  %v2994_v55 = vld [vmem:[%s3356_s19 + $0x78] sm:$0xff]  }
  0x3c   : > { %v3145_v41 = vpop.eup %3144  ;;  %v859_v42 = vmul.f32 %v3143_v38, %v3453_v3  ;;  %3164 = vpow2.f32 %v2615_v62  ;;  %v2617_v50 = vmul.f32 -1.442695, %v3589_v24  ;;  %v3615_v3 = vadd.f32 %v3377_v13, %v605_v43 }
  0x3d   : > { %v3147_v47 = vpop.eup %3146  ;;  %v3610_v49 = vpack.c.bf16 %v876_v15, %v875_v35  ;;  %v860_v57 = vmul.f32 %v3145_v41, %v3456_v4  ;;  %3166 = vpow2.f32 %v2598_v14  ;;  %v2986_v4 = vld [vmem:[%s3356_s19 + $0x38] sm:$0xff]   ;;  %v3629_v28 = vadd.f32 %v3377_v13, %v606_v46 }
  0x3e   : > { %v3149_v51 = vpop.eup %3148  ;;  %v782_v52 = vadd.f32 1.0, %v3147_v47  ;;  %3168 = vpow2.f32 %v2599_v60  ;;  %v3632_v29 = vmul.f32 -1.442695, %v3615_v3  ;;  %v2889_v11 = vunpack.c.l.bf16 %v2994_v55 }
  0x3f   : > { %v3151_v58 = vpop.eup %3150  ;;  %1243 = vrot.lane.b32.xlu1 %v3602_v36, %s3267_s11  ;;  %1261 = vrot.lane.b32.xlu0 %v3610_v49, %s3267_s11  ;;  %v3622_v59 = vpack.c.bf16 %v860_v57, %v859_v42  ;;  %3170 = vpow2.f32 %v2616_v53  ;;  %v3626_v63 = vmul.f32 %v3149_v51, %v3461_v7  ;;  %v2890_v30 = vunpack.c.h.bf16 %v2994_v55  ;;  %v2892_v53 = vld [vmem:[%s474_s14] sm:$0xff]  }
  0x40   : > { %v3153_v62 = vpop.eup %3152  ;;  %3172 = vrcp.f32 %v782_v52  ;;  %v765_v0 = vadd.f32 1.0, %v3151_v58  ;;  %v2857_v17 = vunpack.c.l.bf16 %v2986_v4  ;;  %v623_v19 = vmul.f32 %v2889_v11, %v3369_v5 }
  0x41   : > { %v3155_v2 = vpop.eup %3154  ;;  %v766_v9 = vadd.f32 1.0, %v3153_v62  ;;  %3174 = vpow2.f32 %v2617_v50  ;;  %v2858_v20 = vunpack.c.h.bf16 %v2986_v4  ;;  %v624_v44 = vmul.f32 %v2890_v30, %v3369_v5 }
  0x42   : > { %v3157_v12 = vpop.eup %3156  ;;  %3176 = vrcp.f32 %v765_v0  ;;  %v783_v14 = vadd.f32 1.0, %v3155_v2  ;;  %v607_v21 = vmul.f32 %v2857_v17, %v3369_v5  ;;  %v3644_v54 = vadd.f32 %v3377_v13, %v623_v19 }
  0x43   : > { %v3159_v18 = vpop.eup %3158  ;;  %1245 = vrot.lane.b32.xlu1 %v3622_v59, %s3267_s11  ;;  %3178 = vrcp.f32 %v766_v9  ;;  %v784_v7 = vadd.f32 1.0, %v3157_v12  ;;  %v608_v37 = vmul.f32 %v2858_v20, %v3369_v5  ;;  %v3648_v38 = vadd.f32 %v3377_v13, %v624_v44 }
  0x44   : > { %v3161_v40 = vpop.eup %3160  ;;  %3180 = vrcp.f32 %v783_v14  ;;  %v767_v33 = vadd.f32 1.0, %v3159_v18  ;;  %v3651_v15 = vadd.f32 %v3377_v13, %v607_v21  ;;  %v2601_v43 = vmul.f32 -1.442695, %v3629_v28 }
  0x45   : > { %v3163_v25 = vpop.eup %3162  ;;  %3182 = vrcp.f32 %v784_v7  ;;  %v768_v34 = vadd.f32 1.0, %v3161_v40  ;;  %v2618_v46 = vmul.f32 -1.442695, %v3644_v54  ;;  %v2619_v50 = vmul.f32 -1.442695, %v3648_v38 }
  0x46   : > { %v3165_v35 = vpop.eup %3164  ;;  %3184 = vrcp.f32 %v767_v33  ;;  %v785_v60 = vadd.f32 1.0, %v3163_v25  ;;  %v3657_v51 = vadd.f32 %v3377_v13, %v608_v37  ;;  %v2602_v58 = vmul.f32 -1.442695, %v3651_v15 }
  0x47   : > { %v3167_v41 = vpop.eup %3166  ;;  %3186 = vrcp.f32 %v768_v34  ;;  %v786_v42 = vadd.f32 1.0, %v3165_v35  ;;  %v2893_v4 = vunpack.c.l.bf16 %v2892_v53  ;;  %v2894_v2 = vunpack.c.h.bf16 %v2892_v53 }
  0x48   : > { %v3169_v47 = vpop.eup %3168  ;;  %3188 = vrcp.f32 %v785_v60  ;;  %v769_v57 = vadd.f32 1.0, %v3167_v41  ;;  %v1045_v9 = vshrl.u32 %v3566_v16, 16  ;;  %v1048_v30 = vshll.u32 %v3566_v16, 16 }
  0x49   : > { %v3171_v52 = vpop.eup %3170  ;;  %3190 = vrcp.f32 %v786_v42  ;;  %v770_v55 = vadd.f32 1.0, %v3169_v47  ;;  %v905_v14 = vmul.f32 %v2893_v4, %v3369_v5  ;;  %v2603_v7 = vmul.f32 -1.442695, %v3657_v51 }
  0x4a   : > { %v3173_v62 = vpop.eup %3172  ;;  %3192 = vrcp.f32 %v769_v57  ;;  %v787_v0 = vadd.f32 1.0, %v3171_v52  ;;  %v906_v19 = vmul.f32 %v2894_v2, %v3369_v5  ;;  %v1164_v25 = vrot.slane %v1048_v30, 1 }
  0x4b   : > { %v3175_v11 = vpop.eup %3174  ;;  %v878_v12 = vmul.f32 %v3173_v62, %v3464_v8  ;;  %3194 = vrcp.f32 %v770_v55  ;;  %v3672_v8 = vadd.f32 %v3377_v13, %v905_v14  ;;  %v989_v62 = vshrl.u32 %v3578_v31, 16 }
  0x4c   : > { %v3177_v17 = vpop.eup %3176  ;;  %v788_v18 = vadd.f32 1.0, %v3175_v11  ;;  %3196 = vrcp.f32 %v787_v0  ;;  %v3676_v21 = vadd.f32 %v3377_v13, %v906_v19  ;;  %v1165_v53 = vor.u32 %v1164_v25, %v1045_v9 }
  0x4d   : > { %v3179_v20 = vpop.eup %3178  ;;  %v3667_v40 = vpack.c.bf16 %v878_v12, %v3626_v63  ;;  %v861_v33 = vmul.f32 %v3177_v17, %v3480_v22  ;;  %3198 = vpow2.f32 %v3632_v29  ;;  %v2620_v22 = vmul.f32 -1.442695, %v3672_v8 }
  0x4e   : > { %v3181_v44 = vpop.eup %3180  ;;  %v862_v16 = vmul.f32 %v3179_v20, %v3483_v27  ;;  %3200 = vrcp.f32 %v788_v18  ;;  %v1047_v29 = vrot.slane %v1045_v9, 7  ;;  %v2621_v13 = vmul.f32 -1.442695, %v3676_v21 }
  0x4f   : > { %v3183_v5 = vpop.eup %3182  ;;  %1263 = vrot.lane.b32.xlu0 %v3667_v40, %s3267_s11  ;;  %v879_v63 = vmul.f32 %v3181_v44, %v3498_v45  ;;  %3202 = vpow2.f32 %v2601_v43  ;;  %v992_v0 = vshll.u32 %v3578_v31, 16  ;;  %v991_v14 = vrot.slane %v989_v62, 7 }
  0x50   : > { %v3185_v34 = vpop.eup %3184  ;;  %v3682_v37 = vpack.c.bf16 %v862_v16, %v861_v33  ;;  %v880_v27 = vmul.f32 %v3183_v5, %v3502_v48  ;;  %3204 = vpow2.f32 %v2618_v46  ;;  %v3708_v52 = vor.u32 %v1048_v30, %v1047_v29 }
  0x51   : > { %v3187_v35 = vpop.eup %3186  ;;  %v863_v60 = vmul.f32 %v3185_v34, %v3517_v61  ;;  %3206 = vpow2.f32 %v2619_v50  ;;  %v3706_v50 = vsel %vm3699_vm3, %v1165_v53, 0  ;;  %v1148_v30 = vrot.slane %v992_v0, 1 }
  0x52   : > { %v3189_v41 = vpop.eup %3188  ;;  %1247 = vrot.lane.b32.xlu1 %v3682_v37, %s3267_s11  ;;  %v3689_v45 = vpack.c.bf16 %v880_v27, %v879_v63  ;;  %v864_v42 = vmul.f32 %v3187_v35, %v3523_v10  ;;  %3208 = vpow2.f32 %v2602_v58  ;;  %2692 = vmatprep.mubr.msk.bf16.mxu1 %vm1275_vm2, %v3706_v50  ;;  %v3729_v20 = vor.u32 %v992_v0, %v991_v14 }
  0x53   : > { %v3191_v43 = vpop.eup %3190  ;;  %v881_v48 = vmul.f32 %v3189_v41, %v3535_v26  ;;  %3210 = vpow2.f32 %v2603_v7  ;;  %v1149_v19 = vor.u32 %v1148_v30, %v989_v62  ;;  %v3240_v62 = vld [vmem:[%s3350_s16] ss:$0 sm:$0xff] }
  0x54   : > { %v3193_v46 = vpop.eup %3192  ;;  %1265 = vrot.lane.b32.xlu0 %v3689_v45, %s3267_s11  ;;  %v3695_v61 = vpack.c.bf16 %v864_v42, %v863_v60  ;;  %v882_v47 = vmul.f32 %v3191_v43, %v3539_v39  ;;  %3212 = vpow2.f32 %v2620_v22 }
  0x55   : > { %v3195_v10 = vpop.eup %3194  ;;  %v865_v26 = vmul.f32 %v3193_v46, %v3551_v56  ;;  %3214 = vpow2.f32 %v2621_v13  ;;  %v3735_v25 = vsel %vm3699_vm3, %v1149_v19, 0 }
  0x56   : > { %v3197_v55 = vpop.eup %3196  ;;  %1249 = vrot.lane.b32.xlu1 %v3695_v61, %s3267_s11  ;;  %v3712_v39 = vpack.c.bf16 %v882_v47, %v881_v48  ;;  %v866_v58 = vmul.f32 %v3195_v10, %v3561_v6  ;;  %2684 = vmatprep.mubr.msk.bf16.mxu0 %vm1275_vm2, %v3735_v25 }
  0x57   : > { %v3199_v4 = vpop.eup %3198  ;;  %v883_v56 = vmul.f32 %v3197_v55, %v3586_v23 }
  0x58   : > { %v3201_v2 = vpop.eup %3200  ;;  %1267 = vrot.lane.b32.xlu0 %v3712_v39, %s3267_s11  ;;  %v3722_v9 = vpack.c.bf16 %v866_v58, %v865_v26  ;;  %v771_v11 = vadd.f32 1.0, %v3199_v4 }
  0x59   : > { %v3203_v12 = vpop.eup %3202  ;;  %v884_v6 = vmul.f32 %v3201_v2, %v3589_v24  ;;  %v3241_v2 = vld [vmem:[%s3362_s22] ss:$0 sm:$0xff] }
  0x5a   : > { %v3205_v17 = vpop.eup %3204  ;;  %1251 = vrot.lane.b32.xlu1 %v3722_v9, %s3267_s11  ;;  %v772_v23 = vadd.f32 1.0, %v3203_v12  ;;  %3216 = vrcp.f32 %v771_v11 }
  0x5b   : > { %v3207_v18 = vpop.eup %3206  ;;  %v3727_v31 = vpack.c.bf16 %v884_v6, %v883_v56  ;;  %v789_v7 = vadd.f32 1.0, %v3205_v17 }
  0x5c   : > { %v3209_v33 = vpop.eup %3208  ;;  %3218 = vrcp.f32 %v772_v23  ;;  %v790_v44 = vadd.f32 1.0, %v3207_v18 }
  0x5d   : > { %v3211_v16 = vpop.eup %3210  ;;  %1269 = vrot.lane.b32.xlu0 %v3727_v31, %s3267_s11  ;;  %3220 = vrcp.f32 %v789_v7  ;;  %v773_v24 = vadd.f32 1.0, %v3209_v33 }
  0x5e   : > { %v3213_v5 = vpop.eup %3212  ;;  %3222 = vrcp.f32 %v790_v44  ;;  %v774_v63 = vadd.f32 1.0, %v3211_v16  ;;  %v1055_v44 = vshll.u32 %v3591_v32, 16 }
  0x5f   : > { %v3215_v22 = vpop.eup %3214  ;;  %3224 = vrcp.f32 %v773_v24  ;;  %v915_v29 = vadd.f32 1.0, %v3213_v5  ;;  %v1052_v5 = vshrl.u32 %v3591_v32, 16  ;;  %v1137_v32 = vsel %vm3776_vm6, 0, %v3708_v52 }
  0x60   : > { %3226 = vrcp.f32 %v774_v63  ;;  %v916_v34 = vadd.f32 1.0, %v3215_v22  ;;  %v1166_v63 = vrot.slane %v1055_v44, 1 }
  0x61   : > { %3228 = vrcp.f32 %v915_v29  ;;  %v999_v29 = vshll.u32 %v3602_v36, 16 }
  0x62   : > { %3230 = vrcp.f32 %v916_v34 }
  0x64   : > { %v3217_v27 = vpop.eup %3216 }
  0x65   : > { %v867_v13 = vmul.f32 %v3217_v27, %v3615_v3  ;;  %v1167_v27 = vor.u32 %v1166_v63, %v1052_v5  ;;  %v3078_v63 = vld [vmem:[%s4357_s5 + $0x18] sm:$0xff]  }
  0x66   : > { %v3219_v35 = vpop.eup %3218 }
  0x67   : > { %v3221_v60 = vpop.eup %3220  ;;  %v868_v53 = vmul.f32 %v3219_v35, %v3629_v28  ;;  %v996_v35 = vshrl.u32 %v3602_v36, 16  ;;  %v1059_v36 = vshrl.u32 %v3610_v49, 16 }
  0x68   : > { %v3223_v41 = vpop.eup %3222  ;;  %v885_v42 = vmul.f32 %v3221_v60, %v3644_v54  ;;  %v1062_v60 = vshll.u32 %v3610_v49, 16  ;;  %v3073_v49 = vld [vmem:[%s4357_s5 + $0xc0] sm:$0xff]  }
  0x69   : > { %v3225_v43 = vpop.eup %3224  ;;  %v3742_v48 = vpack.c.bf16 %v868_v53, %v867_v13  ;;  %v886_v46 = vmul.f32 %v3223_v41, %v3648_v38  ;;  %v1054_v13 = vrot.slane %v1052_v5, 7  ;;  %v1150_v53 = vrot.slane %v999_v29, 1  ;;  %v3072_v41 = vld [vmem:[%s4357_s5] sm:$0xff]   ;;  %v3077_v5 = vld [vmem:[%s4357_s5 + $0xd0] sm:$0xff]  }
  0x6a   : > { %v3227_v47 = vpop.eup %3226  ;;  %v869_v10 = vmul.f32 %v3225_v43, %v3651_v15  ;;  %v3790_v43 = vsel %vm3699_vm3, %v1167_v27, 0  ;;  %v1168_v52 = vrot.slane %v1062_v60, 1 }
  0x6b   : > { %v3229_v26 = vpop.eup %3228  ;;  %1253 = vrot.lane.b32.xlu1 %v3742_v48, %s3267_s11  ;;  %v3748_v3 = vpack.c.bf16 %v886_v46, %v885_v42  ;;  %v870_v28 = vmul.f32 %v3227_v47, %v3657_v51  ;;  %v2896_v51 = vld [vmem:[%s491_s20] sm:$0xff]   ;;  %v1057_v46 = vor.u32 %v1055_v44, %v1054_v13  ;;  %v998_v47 = vrot.slane %v996_v35, 7  ;;  %s504_s20 = scalar_lea.vmem %s4359_s7, %s4370_s27 }
  0x6c   : > { %v3231_v55 = vpop.eup %3230  ;;  %v921_v54 = vmul.f32 %v3229_v26, %v3672_v8  ;;  %v2897_v8 = vunpack.c.l.bf16 %v2896_v51  ;;  %v2898_v56 = vunpack.c.h.bf16 %v2896_v51  ;;  %v1066_v44 = vshrl.u32 %v3667_v40, 16 }
  0x6d   : > { %1271 = vrot.lane.b32.xlu0 %v3748_v3, %s3267_s11  ;;  %v3754_v38 = vpack.c.bf16 %v870_v28, %v869_v10  ;;  %v922_v15 = vmul.f32 %v3231_v55, %v3676_v21  ;;  %v1006_v10 = vshll.u32 %v3622_v59, 16  ;;  %v1151_v28 = vor.u32 %v1150_v53, %v996_v35 }
  0x6e   : > { %v926_v0 = vmul.f32 %v3240_v62, %v2897_v8  ;;  %v927_v21 = vmul.f32 %v3240_v62, %v2898_v56  ;;  %v1129_v55 = vsel %vm3776_vm6, 0, %v3729_v20  ;;  %v1138_v20 = vsel %vm3776_vm6, 0, %v1057_v46 }
  0x6f   : > { %1255 = vrot.lane.b32.xlu1 %v3754_v38, %s3267_s11  ;;  %v923_v58 = vpack.c.bf16 %v922_v15, %v921_v54  ;;  %v1069_v54 = vshll.u32 %v3667_v40, 16  ;;  %v3074_v15 = vld [vmem:[%s4357_s5 + $0x8] sm:$0xff]   ;;  %v1001_v8 = vor.u32 %v999_v29, %v998_v47  ;;  %v1061_v56 = vrot.slane %v1059_v36, 7  ;;  %v3079_v47 = vld [vmem:[%s4357_s5 + $0xd8] sm:$0xff]  }
  0x70   : > { %v928_v11 = vadd.f32 %v3241_v2, %v926_v0  ;;  %v929_v12 = vadd.f32 %v3241_v2, %v927_v21  ;;  %v1003_v62 = vshrl.u32 %v3622_v59, 16  ;;  %v3819_v21 = vsel %vm3699_vm3, %v1151_v28, 0  ;;  %v3075_v59 = vld [vmem:[%s4357_s5 + $0xc8] sm:$0xff]  }
  0x71   : > { %v3759_v4 = vmul.bf16 0.0, %v923_v58  ;;  %v1169_v2 = vor.u32 %v1168_v52, %v1059_v36  ;;  %v1073_v36 = vshrl.u32 %v3689_v45, 16 }
  0x72   : > { %v2622_v6 = vmul.f32 -1.442695, %v928_v11  ;;  %v2623_v14 = vmul.f32 -1.442695, %v929_v12 }
  0x73   : > { %1239 = vrot.lane.b32.xlu0 %v3759_v4, %s3267_s11 }
  0x74   : > { %3232 = vpow2.f32 %v2622_v6 }
  0x75   : > { %3234 = vpow2.f32 %v2623_v14  ;;  %v3076_v14 = vld [vmem:[%s4357_s5 + $0x10] sm:$0xff]  }
  0x7e   : > { %v3233_v30 = vpop.eup %3232 }
  0x7f   : > { %v936_v17 = vadd.f32 1.0, %v3233_v30  ;;  %v3235_v23 = vpop.eup %3234 }
  0x80   : > { %v937_v18 = vadd.f32 1.0, %v3235_v23  ;;  %v1064_v23 = vor.u32 %v1062_v60, %v1061_v56  ;;  %v1017_v56 = vshrl.u32 %v3695_v61, 16 }
  0x81   : > { %3236 = vrcp.f32 %v936_v17  ;;  %v1130_v17 = vsel %vm3776_vm6, 0, %v1001_v8  ;;  %v1075_v8 = vrot.slane %v1073_v36, 7 }
  0x82   : > { %3238 = vrcp.f32 %v937_v18  ;;  %v1005_v18 = vrot.slane %v1003_v62, 7  ;;  %v1139_v27 = vsel %vm3776_vm6, 0, %v1064_v23 }
  0x84   : > { %v1008_v13 = vor.u32 %v1006_v10, %v1005_v18 }
  0x86   : > { %v1131_v28 = vsel %vm3776_vm6, 0, %v1008_v13  ;;  %v3085_v13 = vld [vmem:[%s4357_s5 + $0xf0] sm:$0xff]  }
  0x8b   : > { %v3237_v7 = vpop.eup %3236 }
  0x8c   : > { %v942_v19 = vmul.f32 %v3237_v7, %v928_v11  ;;  %v3239_v33 = vpop.eup %3238  ;;  %v1152_v11 = vrot.slane %v1006_v10, 1  ;;  %v1170_v7 = vrot.slane %v1069_v54, 1 }
  0x8d   : > { %v943_v16 = vmul.f32 %v3239_v33, %v929_v12  ;;  %v1013_v12 = vshll.u32 %v3682_v37, 16 }
  0x8e   : > { %v1153_v33 = vor.u32 %v1152_v11, %v1003_v62  ;;  %v1171_v35 = vor.u32 %v1170_v7, %v1066_v44  ;;  %v1083_v62 = vshll.u32 %v3712_v39, 16  ;;  %v3084_v7 = vld [vmem:[%s4357_s5 + $0x30] sm:$0xff]  }
  0x8f   : > { %v944_v24 = vpack.c.bf16 %v943_v16, %v942_v19  ;;  %v3842_v19 = vsel %vm3699_vm3, %v1169_v2, 0  ;;  %v1076_v16 = vshll.u32 %v3689_v45, 16  ;;  %v1154_v60 = vrot.slane %v1013_v12, 1 }
  0x90   : > { %v3866_v53 = vsel %vm3699_vm3, %v1153_v33, 0  ;;  %v3885_v52 = vsel %vm3699_vm3, %v1171_v35, 0 }
  0x91   : > { %v3771_v22 = vmul.bf16 0.0, %v944_v24 }
  0x93   : > { %1273 = vrot.lane.b32.xlu1 %v3771_v22, %s3267_s11 }
  0xa9   : > { %v1258_v42 = vpop.permute.xlu0 %1257 }
  0xaa   : > { %v3795_v26 = vsel %vm1275_vm2, %v1137_v32, %v1258_v42  ;;  %v1010_v32 = vshrl.u32 %v3682_v37, 16  ;;  %v1020_v42 = vshll.u32 %v3695_v61, 16  ;;  %v1080_v37 = vshrl.u32 %v3712_v39, 16 }
  0xab   : > { %1642 = vmatmul.mubr.bf16.vlgmr.msra.gmra.mrb[0].mxu1 %v3795_v26 }
  0xac   : > { %1782 = vmatpush1.bf16.msra.mxu1 %v3072_v41  ;;  %2693 = vmatprep.mubr.msk.bf16.mxu1 %vm1275_vm2, %v3790_v43  ;;  %v1068_v41 = vrot.slane %v1066_v44, 7  ;;  %v1012_v45 = vrot.slane %v1010_v32, 7  ;;  %v1156_v11 = vrot.slane %v1020_v42, 1  ;;  %v1174_v44 = vrot.slane %v1083_v62, 1 }
  0xad   : > { %v1242_v58 = vpop.permute.xlu0 %1241  ;;  %v1260_v51 = vpop.permute.xlu1 %1259  ;;  %1783 = vmatprep.subr.bf16.mxu1 %v3266_v1  ;;  %v1082_v35 = vrot.slane %v1080_v37, 7 }
  0xae   : > { %v3815_v0 = vsel %vm1275_vm2, %v1129_v55, %v1242_v58  ;;  %v3824_v6 = vsel %vm1275_vm2, %v1138_v20, %v1260_v51  ;;  %v3080_v55 = vld [vmem:[%s4357_s5 + $0x20] sm:$0xff]   ;;  %v1071_v58 = vor.u32 %v1069_v54, %v1068_v41  ;;  %v3082_v54 = vld [vmem:[%s4357_s5 + $0x28] sm:$0xff]   ;;  %v1157_v33 = vor.u32 %v1156_v11, %v1017_v56 }
  0xaf   : > { %1578 = vmatmul.mubr.bf16.vlgmr.msra.gmra.mrb[0].mxu0 %v3815_v0  ;;  %v3081_v20 = vld [vmem:[%s4357_s5 + $0xe0] sm:$0xff]  }
  0xb0   : > { %2018 = vmatpush1.bf16.msra.mxu0 %v3073_v49  ;;  %1784 = vmatpush1.bf16.msra.mxu1 %v3074_v15  ;;  %v1155_v49 = vor.u32 %v1154_v60, %v1010_v32  ;;  %v1172_v15 = vrot.slane %v1076_v16, 1  ;;  %v1140_v61 = vsel %vm3776_vm6, 0, %v1071_v58  ;;  %v1024_v60 = vshrl.u32 %v3722_v9, 16 }
  0xb1   : > { %2019 = vmatprep.subr.bf16.mxu0 %v3266_v1  ;;  %v1244_v30 = vpop.permute.xlu1 %1243  ;;  %2685 = vmatprep.mubr.msk.bf16.mxu0 %vm1275_vm2, %v3819_v21  ;;  %v1262_v29 = vpop.permute.xlu0 %1261  ;;  %v3954_v41 = vsel %vm3699_vm3, %v1157_v33, 0  ;;  %v1041_v33 = vshll.u32 %v3754_v38, 16 }
  0xb2   : > { %1785 = vmatprep.subr.bf16.mxu1 %v3266_v1  ;;  %v3848_v24 = vsel %vm1275_vm2, %v1130_v17, %v1244_v30  ;;  %v3872_v46 = vsel %vm1275_vm2, %v1139_v27, %v1262_v29  ;;  %v3907_v40 = vsel %vm3699_vm3, %v1155_v49, 0  ;;  %v1173_v2 = vor.u32 %v1172_v15, %v1073_v36  ;;  %v3087_v49 = vld [vmem:[%s4357_s5 + $0xf8] sm:$0xff]  }
  0xb3   : > { %1650 = vmatmul.mubr.bf16.gmra.mrb[4].mxu1 %v3824_v6  ;;  %v1078_v30 = vor.u32 %v1076_v16, %v1075_v8  ;;  %v1019_v17 = vrot.slane %v1017_v56, 7  ;;  %v1026_v15 = vrot.slane %v1024_v60, 7  ;;  %v1085_v8 = vor.u32 %v1083_v62, %v1082_v35 }
  0xb4   : > { %2020 = vmatpush1.bf16.msra.mxu0 %v3075_v59  ;;  %1786 = vmatpush1.bf16.msra.mxu1 %v3076_v14  ;;  %v1015_v59 = vor.u32 %v1013_v12, %v1012_v45  ;;  %v3083_v14 = vld [vmem:[%s4357_s5 + $0xe8] sm:$0xff]   ;;  %v1027_v12 = vshll.u32 %v3722_v9, 16  ;;  %v3928_v18 = vsel %vm3699_vm3, %v1173_v2, 0  ;;  %v1034_v9 = vshll.u32 %v3742_v48, 16 }
  0xb5   : > { %2021 = vmatprep.subr.bf16.mxu0 %v3266_v1  ;;  %2694 = vmatprep.mubr.msk.bf16.mxu1 %vm1275_vm2, %v3842_v19  ;;  %v1246_v10 = vpop.permute.xlu1 %1245  ;;  %v1141_v29 = vsel %vm3776_vm6, 0, %v1078_v30  ;;  %v1022_v27 = vor.u32 %v1020_v42, %v1019_v17  ;;  %v3086_v42 = vld [vmem:[%s4357_s5 + $0x38] sm:$0xff]   ;;  %v1087_v45 = vshrl.u32 %v3727_v31, 16  ;;  %v1142_v30 = vsel %vm3776_vm6, 0, %v1085_v8 }
  0xb6   : > { %1787 = vmatprep.subr.bf16.mxu1 %v3266_v1  ;;  %v3895_v51 = vsel %vm1275_vm2, %v1131_v28, %v1246_v10  ;;  %v1132_v39 = vsel %vm3776_vm6, 0, %v1015_v59  ;;  %v1158_v36 = vrot.slane %v1027_v12, 1  ;;  %v1029_v62 = vor.u32 %v1027_v12, %v1026_v15  ;;  %v3089_v59 = vld [vmem:[%s4357_s5 + $0x100] sm:$0xff]   ;;  %v3090_v12 = vld [vmem:[%s4357_s5 + $0x48] sm:$0xff]  }
  0xb7   : > { %1586 = vmatmul.mubr.bf16.gmra.mrb[4].mxu0 %v3848_v24  ;;  %v1162_v8 = vrot.slane %v1041_v33, 1 }
  0xb8   : > { %2022 = vmatpush1.bf16.msra.mxu0 %v3077_v5  ;;  %1788 = vmatpush1.bf16.msra.mxu1 %v3078_v63  ;;  %v1090_v5 = vshll.u32 %v3727_v31, 16  ;;  %v1159_v56 = vor.u32 %v1158_v36, %v1024_v60  ;;  %v1097_v31 = vshll.u32 %v3748_v3, 16 }
  0xb9   : > { %2686 = vmatprep.mubr.msk.bf16.mxu0 %vm1275_vm2, %v3866_v53  ;;  %2023 = vmatprep.subr.bf16.mxu0 %v3266_v1 }
  0xba   : > { %1789 = vmatprep.subr.bf16.mxu1 %v3266_v1  ;;  %v1176_v2 = vrot.slane %v1090_v5, 1  ;;  %v3997_v17 = vsel %vm3699_vm3, %v1159_v56, 0  ;;  %v3094_v56 = vld [vmem:[%s4357_s5 + $0x58] sm:$0xff]  }
  0xbb   : > { %1658 = vmatmul.mubr.bf16.gmra.mrb[8].mxu1 %v3872_v46 }
  0xbc   : > { %2024 = vmatpush1.bf16.msra.mxu0 %v3079_v47  ;;  %2695 = vmatprep.mubr.msk.bf16.mxu1 %vm1275_vm2, %v3885_v52  ;;  %v1175_v47 = vor.u32 %v1174_v44, %v1080_v37  ;;  %v1177_v37 = vor.u32 %v1176_v2, %v1087_v45  ;;  %v982_v2 = vshrl.u32 %v3759_v4, 16 }
  0xbd   : > { %1790 = vmatpush1.bf16.msra.mxu1 %v3080_v55  ;;  %2025 = vmatprep.subr.bf16.mxu0 %v3266_v1  ;;  %v1133_v55 = vsel %vm3776_vm6, 0, %v1022_v27 }
  0xbe   : > { %1791 = vmatprep.subr.bf16.mxu1 %v3266_v1  ;;  %v4022_v35 = vsel %vm3699_vm3, %v1177_v37, 0  ;;  %v984_v37 = vrot.slane %v982_v2, 7 }
  0xbf   : > { %1594 = vmatmul.mubr.bf16.gmra.mrb[8].mxu0 %v3895_v51 }
  0xc0   : > { %2026 = vmatpush1.bf16.msra.mxu0 %v3081_v20  ;;  %2687 = vmatprep.mubr.msk.bf16.mxu0 %vm1275_vm2, %v3907_v40  ;;  %v3976_v20 = vsel %vm3699_vm3, %v1175_v47, 0  ;;  %v1178_v47 = vrot.slane %v1097_v31, 1 }
  0xc1   : > { %v1264_v23 = vpop.permute.xlu0 %1263  ;;  %1792 = vmatpush1.bf16.msra.mxu1 %v3082_v54  ;;  %2027 = vmatprep.subr.bf16.mxu0 %v3266_v1  ;;  %v3088_v54 = vld [vmem:[%s4357_s5 + $0x40] sm:$0xff]  }
  0xc2   : > { %v3934_v16 = vsel %vm1275_vm2, %v1140_v61, %v1264_v23  ;;  %1793 = vmatprep.subr.bf16.mxu1 %v3266_v1  ;;  %v1089_v61 = vrot.slane %v1087_v45, 7  ;;  %v1160_v23 = vrot.slane %v1034_v9, 1 }
  0xc3   : > { %1666 = vmatmul.mubr.bf16.gmra.mrb[12].mxu1 %v3934_v16 }
  0xc4   : > { %v1248_v63 = vpop.permute.xlu1 %1247  ;;  %2696 = vmatprep.mubr.msk.bf16.mxu1 %vm1275_vm2, %v3928_v18  ;;  %2028 = vmatpush1.bf16.msra.mxu0 %v3083_v14 }
  0xc5   : > { %v3950_v32 = vsel %vm1275_vm2, %v1132_v39, %v1248_v63  ;;  %1794 = vmatpush1.bf16.msra.mxu1 %v3084_v7  ;;  %2029 = vmatprep.subr.bf16.mxu0 %v3266_v1  ;;  %v1031_v7 = vshrl.u32 %v3742_v48, 16  ;;  %v1092_v39 = vor.u32 %v1090_v5, %v1089_v61  ;;  %v3091_v63 = vld [vmem:[%s4357_s5 + $0x108] sm:$0xff]   ;;  %v3092_v5 = vld [vmem:[%s4357_s5 + $0x50] sm:$0xff]   ;;  %v3095_v61 = vld [vmem:[%s4357_s5 + $0x118] sm:$0xff]  }
  0xc6   : > { %v1266_v10 = vpop.permute.xlu0 %1265  ;;  %1795 = vmatprep.subr.bf16.mxu1 %v3266_v1 }
  0xc7   : > { %1602 = vmatmul.mubr.bf16.gmra.mrb[12].mxu0 %v3950_v32  ;;  %v3964_v28 = vsel %vm1275_vm2, %v1141_v29, %v1266_v10  ;;  %v1094_v29 = vshrl.u32 %v3748_v3, 16  ;;  %v1161_v60 = vor.u32 %v1160_v23, %v1031_v7  ;;  %v1033_v3 = vrot.slane %v1031_v7, 7 }
  0xc8   : > { %2688 = vmatprep.mubr.msk.bf16.mxu0 %vm1275_vm2, %v3954_v41  ;;  %2030 = vmatpush1.bf16.msra.mxu0 %v3085_v13  ;;  %v1250_v58 = vpop.permute.xlu1 %1249  ;;  %v1134_v13 = vsel %vm3776_vm6, 0, %v1029_v62  ;;  %v1143_v36 = vsel %vm3776_vm6, 0, %v1092_v39 }
  0xc9   : > { %1796 = vmatpush1.bf16.msra.mxu1 %v3086_v42  ;;  %2031 = vmatprep.subr.bf16.mxu0 %v3266_v1  ;;  %v3986_v11 = vsel %vm1275_vm2, %v1133_v55, %v1250_v58  ;;  %v1096_v10 = vrot.slane %v1094_v29, 7  ;;  %v3093_v55 = vld [vmem:[%s4357_s5 + $0x110] sm:$0xff]   ;;  %v4043_v45 = vsel %vm3699_vm3, %v1161_v60, 0  ;;  %v1179_v58 = vor.u32 %v1178_v47, %v1094_v29 }
  0xca   : > { %1797 = vmatprep.subr.bf16.mxu1 %v3266_v1  ;;  %v1268_v14 = vpop.permute.xlu0 %1267 }
  0xcb   : > { %1674 = vmatmul.mubr.bf16.gmra.mrb[16].mxu1 %v3964_v28  ;;  %v4010_v44 = vsel %vm1275_vm2, %v1142_v30, %v1268_v14  ;;  %v4065_v14 = vsel %vm3699_vm3, %v1179_v58, 0  ;;  %v1099_v48 = vor.u32 %v1097_v31, %v1096_v10 }
  0xcc   : > { %2697 = vmatprep.mubr.msk.bf16.mxu1 %vm1275_vm2, %v3976_v20  ;;  %2032 = vmatpush1.bf16.msra.mxu0 %v3087_v49  ;;  %v1252_v27 = vpop.permute.xlu1 %1251  ;;  %v1038_v49 = vshrl.u32 %v3754_v38, 16  ;;  %v1036_v38 = vor.u32 %v1034_v9, %v1033_v3 }
  0xcd   : > { %1798 = vmatpush1.bf16.msra.mxu1 %v3088_v54  ;;  %2033 = vmatprep.subr.bf16.mxu0 %v3266_v1  ;;  %v4031_v42 = vsel %vm1275_vm2, %v1134_v13, %v1252_v27  ;;  %v985_v54 = vshll.u32 %v3759_v4, 16  ;;  %v1144_v23 = vsel %vm3776_vm6, 0, %v1099_v48 }
  0xce   : > { %1799 = vmatprep.subr.bf16.mxu1 %v3266_v1  ;;  %v1163_v9 = vor.u32 %v1162_v8, %v1038_v49  ;;  %v1135_v30 = vsel %vm3776_vm6, 0, %v1036_v38 }
  0xcf   : > { %1610 = vmatmul.mubr.bf16.gmra.mrb[16].mxu0 %v3986_v11  ;;  %v1270_v15 = vpop.permute.xlu0 %1269  ;;  %v1146_v4 = vrot.slane %v985_v54, 1  ;;  %v987_v60 = vor.u32 %v985_v54, %v984_v37 }
  0xd0   : > { %2689 = vmatprep.mubr.msk.bf16.mxu0 %vm1275_vm2, %v3997_v17  ;;  %2034 = vmatpush1.bf16.msra.mxu0 %v3089_v59  ;;  %v4056_v62 = vsel %vm1275_vm2, %v1143_v36, %v1270_v15  ;;  %v1040_v59 = vrot.slane %v1038_v49, 7  ;;  %v1211_v31 = vsel %vm3699_vm3, %v1163_v9, 0 }
  0xd1   : > { %1800 = vmatpush1.bf16.msra.mxu1 %v3090_v12  ;;  %2035 = vmatprep.subr.bf16.mxu0 %v3266_v1 }
  0xd2   : > { %1801 = vmatprep.subr.bf16.mxu1 %v3266_v1  ;;  %v1043_v7 = vor.u32 %v1041_v33, %v1040_v59 }
  0xd3   : > { %1682 = vmatmul.mubr.bf16.gmra.mrb[20].mxu1 %v4010_v44 }
  0xd4   : > { %2698 = vmatprep.mubr.msk.bf16.mxu1 %vm1275_vm2, %v4022_v35  ;;  %2036 = vmatpush1.bf16.msra.mxu0 %v3091_v63  ;;  %v1136_v13 = vsel %vm3776_vm6, 0, %v1043_v7 }
  0xd5   : > { %1802 = vmatpush1.bf16.msra.mxu1 %v3092_v5  ;;  %2037 = vmatprep.subr.bf16.mxu0 %v3266_v1  ;;  %v1128_v5 = vsel %vm3776_vm6, 0, %v987_v60 }
  0xd6   : > { %1803 = vmatprep.subr.bf16.mxu1 %v3266_v1 }
  0xd7   : > { %1618 = vmatmul.mubr.bf16.gmra.mrb[20].mxu0 %v4031_v42 }
  0xd8   : > { %2690 = vmatprep.mubr.msk.bf16.mxu0 %vm1275_vm2, %v4043_v45  ;;  %2038 = vmatpush1.bf16.msra.mxu0 %v3093_v55 }
  0xd9   : > { %1804 = vmatpush1.bf16.msra.mxu1 %v3094_v56  ;;  %2039 = vmatprep.subr.bf16.mxu0 %v3266_v1  ;;  %v1147_v1 = vor.u32 %v1146_v4, %v982_v2 }
  0xdb   : > { %1690 = vmatmul.mubr.bf16.gmra.mrb[24].mxu1 %v4056_v62  ;;  %v1203_v47 = vsel %vm3699_vm3, %v1147_v1, 0 }
  0xdc   : > { %2699 = vmatprep.mubr.msk.bf16.mxu1 %vm1275_vm2, %v4065_v14  ;;  %2040 = vmatpush1.bf16.msra.mxu0 %v3095_v61 }
  0xdd   : > { %v1254_v12 = vpop.permute.xlu1 %1253 }
  0xde   : > { %v1306_v39 = vsel %vm1275_vm2, %v1135_v30, %v1254_v12 }
  0xdf   : > { %1626 = vmatmul.mubr.bf16.gmra.mrb[24].mxu0 %v1306_v39  ;;  %v1272_v63 = vpop.permute.xlu0 %1271 }
  0xe0   : > { %v4079_v29 = vsel %vm1275_vm2, %v1144_v23, %v1272_v63  ;;  %2691 = vmatprep.mubr.msk.bf16.mxu0 %vm1275_vm2, %v1211_v31 }
  0xe1   : > { %v1256_v27 = vpop.permute.xlu1 %1255 }
  0xe2   : > { %v1310_v33 = vsel %vm1275_vm2, %v1136_v13, %v1256_v27 }
  0xe3   : > { %1698 = vmatmul.mubr.bf16.gmra.mrb[28].mxu1 %v4079_v29 }
  0xe4   : > { %2712 = vmatprep.mubr.msk.bf16.mxu1 %vm1275_vm2, %v1203_v47 }
  0xe5   : > { %v1240_v3 = vpop.permute.xlu0 %1239 }
  0xe6   : > { %v1278_v36 = vsel %vm1275_vm2, %v1128_v5, %v1240_v3 }
  0xe7   : > { %1634 = vmatmul.mubr.bf16.gmra.mrb[28].mxu0 %v1310_v33 }
  0xe8   : > { %2740 = vmatprep.mubr.msk.bf16.mxu0 %vm1275_vm2, %v3819_v21 }
  0xeb   : > { %1814 = vmatmul.mubr.bf16.vlgmr.msra.gmra.mrb[32].mxu1 %v1278_v36 }
  0xec   : > { %2713 = vmatprep.mubr.msk.bf16.mxu1 %vm1275_vm2, %v3735_v25  ;;  %v1101_v25 = vshrl.u32 %v3771_v22, 16 }
  0xef   : > { %2050 = vmatmul.mubr.bf16.vlgmr.msra.gmra.mrb[32].mxu0 %v3848_v24 }
  0xf0   : > { %2741 = vmatprep.mubr.msk.bf16.mxu0 %vm1275_vm2, %v3866_v53 }
  0xf3   : > { %1822 = vmatmul.mubr.bf16.gmra.mrb[36].mxu1 %v3815_v0  ;;  %v1103_v0 = vrot.slane %v1101_v25, 7 }
  0xf4   : > { %2714 = vmatprep.mubr.msk.bf16.mxu1 %vm1275_vm2, %v3819_v21 }
  0xf7   : > { %2058 = vmatmul.mubr.bf16.gmra.mrb[36].mxu0 %v3895_v51 }
  0xf8   : > { %2742 = vmatprep.mubr.msk.bf16.mxu0 %vm1275_vm2, %v3907_v40 }
  0xfb   : > { %1830 = vmatmul.mubr.bf16.gmra.mrb[40].mxu1 %v3848_v24 }
  0xfc   : > { %2715 = vmatprep.mubr.msk.bf16.mxu1 %vm1275_vm2, %v3866_v53 }
  0xff   : > { %2066 = vmatmul.mubr.bf16.gmra.mrb[40].mxu0 %v3950_v32 }
 0x100   : > { %2743 = vmatprep.mubr.msk.bf16.mxu0 %vm1275_vm2, %v3954_v41 }
 0x103   : > { %1838 = vmatmul.mubr.bf16.gmra.mrb[44].mxu1 %v3895_v51 }
 0x104   : > { %2716 = vmatprep.mubr.msk.bf16.mxu1 %vm1275_vm2, %v3907_v40 }
 0x107   : > { %2074 = vmatmul.mubr.bf16.gmra.mrb[44].mxu0 %v3986_v11 }
 0x108   : > { %2744 = vmatprep.mubr.msk.bf16.mxu0 %vm1275_vm2, %v3997_v17 }
 0x10b   : > { %1846 = vmatmul.mubr.bf16.gmra.mrb[48].mxu1 %v3950_v32 }
 0x10c   : > { %2717 = vmatprep.mubr.msk.bf16.mxu1 %vm1275_vm2, %v3954_v41 }
 0x10f   : > { %2082 = vmatmul.mubr.bf16.gmra.mrb[48].mxu0 %v4031_v42 }
 0x110   : > { %2745 = vmatprep.mubr.msk.bf16.mxu0 %vm1275_vm2, %v4043_v45 }
 0x113   : > { %1854 = vmatmul.mubr.bf16.gmra.mrb[52].mxu1 %v3986_v11 }
 0x114   : > { %2718 = vmatprep.mubr.msk.bf16.mxu1 %vm1275_vm2, %v3997_v17 }
 0x117   : > { %2090 = vmatmul.mubr.bf16.gmra.mrb[52].mxu0 %v1306_v39 }
 0x118   : > { %2746 = vmatprep.mubr.msk.bf16.mxu0 %vm1275_vm2, %v1211_v31 }
 0x11b   : > { %1862 = vmatmul.mubr.bf16.gmra.mrb[56].mxu1 %v4031_v42 }
 0x11c   : > { %2719 = vmatprep.mubr.msk.bf16.mxu1 %vm1275_vm2, %v4043_v45 }
 0x11f   : > { %2098 = vmatmul.mubr.bf16.gmra.mrb[56].mxu0 %v1310_v33 }
 0x120   : > { %2747 = vmatprep.mubr.msk.bf16.mxu0 %vm1275_vm2, %v3706_v50 }
 0x123   : > { %1870 = vmatmul.mubr.bf16.gmra.mrb[60].mxu1 %v1306_v39 }
 0x124   : > { %2720 = vmatprep.mubr.msk.bf16.mxu1 %vm1275_vm2, %v1211_v31 }
 0x127   : > { %2106 = vmatmul.mubr.bf16.gmra.mrb[60].mxu0 %v3795_v26 }
 0x128   : > { %2748 = vmatprep.mubr.msk.bf16.mxu0 %vm1275_vm2, %v3790_v43 }
 0x12b   : > { %1878 = vmatmul.mubr.bf16.gmra.mrb[64].mxu1 %v1310_v33 }
 0x12c   : > { %2721 = vmatprep.mubr.msk.bf16.mxu1 %vm1275_vm2, %v3706_v50  ;;  %v1104_v50 = vshll.u32 %v3771_v22, 16  ;;  %v1274_v22 = vpop.permute.xlu1 %1273 }
 0x12f   : > { %2114 = vmatmul.mubr.bf16.gmra.mrb[64].mxu0 %v3824_v6 }
 0x130   : > { %2749 = vmatprep.mubr.msk.bf16.mxu0 %vm1275_vm2, %v3842_v19 }
 0x133   : > { %1886 = vmatmul.mubr.bf16.gmra.mrb[68].mxu1 %v3795_v26 }
 0x134   : > { %2722 = vmatprep.mubr.msk.bf16.mxu1 %vm1275_vm2, %v3790_v43  ;;  %v1180_v43 = vrot.slane %v1104_v50, 1 }
 0x136   : > { %v1181_v26 = vor.u32 %v1180_v43, %v1101_v25 }
 0x137   : > { %2122 = vmatmul.mubr.bf16.gmra.mrb[68].mxu0 %v3872_v46 }
 0x138   : > { %2750 = vmatprep.mubr.msk.bf16.mxu0 %vm1275_vm2, %v3885_v52  ;;  %v1220_v21 = vsel %vm3699_vm3, %v1181_v26, 0 }
 0x13b   : > { %1894 = vmatmul.mubr.bf16.gmra.mrb[72].mxu1 %v3824_v6  ;;  %v1106_v6 = vor.u32 %v1104_v50, %v1103_v0  ;;  %v2211_v0 = vlaneseq }
 0x13c   : > { %2723 = vmatprep.mubr.msk.bf16.mxu1 %vm1275_vm2, %v3842_v19 }
 0x13d   : > { %v1145_v19 = vsel %vm3776_vm6, 0, %v1106_v6 }
 0x13e   : > { %v1346_v24 = vsel %vm1275_vm2, %v1145_v19, %v1274_v22 }
 0x13f   : > { %2130 = vmatmul.mubr.bf16.gmra.mrb[72].mxu0 %v3934_v16 }
 0x140   : > { %2751 = vmatprep.mubr.msk.bf16.mxu0 %vm1275_vm2, %v3928_v18 }
 0x143   : > { %1902 = vmatmul.mubr.bf16.gmra.mrb[76].mxu1 %v3872_v46 }
 0x144   : > { %2724 = vmatprep.mubr.msk.bf16.mxu1 %vm1275_vm2, %v3885_v52 }
 0x147   : > { %2138 = vmatmul.mubr.bf16.gmra.mrb[76].mxu0 %v3964_v28 }
 0x148   : > { %2752 = vmatprep.mubr.msk.bf16.mxu0 %vm1275_vm2, %v3976_v20 }
 0x14b   : > { %1910 = vmatmul.mubr.bf16.gmra.mrb[80].mxu1 %v3934_v16 }
 0x14c   : > { %2725 = vmatprep.mubr.msk.bf16.mxu1 %vm1275_vm2, %v3928_v18 }
 0x14f   : > { %2146 = vmatmul.mubr.bf16.gmra.mrb[80].mxu0 %v4010_v44 }
 0x150   : > { %2753 = vmatprep.mubr.msk.bf16.mxu0 %vm1275_vm2, %v4022_v35 }
 0x153   : > { %1918 = vmatmul.mubr.bf16.gmra.mrb[84].mxu1 %v3964_v28 }
 0x154   : > { %2726 = vmatprep.mubr.msk.bf16.mxu1 %vm1275_vm2, %v3976_v20 }
 0x157   : > { %2154 = vmatmul.mubr.bf16.gmra.mrb[84].mxu0 %v4056_v62 }
 0x158   : > { %2754 = vmatprep.mubr.msk.bf16.mxu0 %vm1275_vm2, %v4065_v14 }
 0x15b   : > { %1926 = vmatmul.mubr.bf16.gmra.mrb[88].mxu1 %v4010_v44 }
 0x15c   : > { %2727 = vmatprep.mubr.msk.bf16.mxu1 %vm1275_vm2, %v4022_v35 }
 0x15f   : > { %2162 = vmatmul.mubr.bf16.gmra.mrb[88].mxu0 %v4079_v29 }
 0x160   : > { %2755 = vmatprep.mubr.msk.bf16.mxu0 %vm1275_vm2, %v1220_v21 }
 0x163   : > { %1934 = vmatmul.mubr.bf16.gmra.mrb[92].mxu1 %v4056_v62 }
 0x167   : > { %2170 = vmatmul.mubr.bf16.gmra.mrb[92].mxu0 %v1346_v24  ;;  %v2212_v24 = vshrl.u32 %v2211_v0, 7 }
 0x17e   : > { %v4184_v53 = vpop.f32.mrb[0].mxu1 }
 0x17f   : > { %v1645_v46 = vpop.f32.mrb[1].mxu1 }
 0x180   : > { %v4186_v52 = vpop.f32.mrb[2].mxu1 }
 0x181   : > { %v1648_v57 = vpop.f32.mrb[3].mxu1 }
 0x182   : > { %v4188_v51 = vpop.f32.mrb[0].mxu0  ;;  %v1348_v57 = vld [vmem:[%s4358_s6] sm:$0x1] }
 0x183   : > { %v1581_v40 = vpop.f32.mrb[1].mxu0 }
 0x184   : > { %v4190_v18 = vpop.f32.mrb[2].mxu0  ;;  %v1349_v40 = vld [vmem:[%s504_s20] sm:$0x1] }
 0x185   : > { %v1584_v16 = vpop.f32.mrb[3].mxu0 }
 0x186   : > { %v4192_v32 = vpop.f32.mrb[4].mxu1 }
 0x187   : > { %v1653_v34 = vpop.f32.mrb[5].mxu1 }
 0x188   : > { %v4194_v41 = vpop.f32.mrb[6].mxu1 }
 0x189   : > { %v1656_v28 = vpop.f32.mrb[7].mxu1 }
 0x18a   : > { %v4196_v20 = vpop.f32.mrb[4].mxu0 }
 0x18b   : > { %v1589_v11 = vpop.f32.mrb[5].mxu0 }
 0x18c   : > { %v4198_v17 = vpop.f32.mrb[6].mxu0 }
 0x18d   : > { %v1592_v44 = vpop.f32.mrb[7].mxu0 }
 0x18e   : > { %v4200_v35 = vpop.f32.mrb[8].mxu1  ;;  %v1350_v44 = vadd.f32 %v1349_v40, %v1348_v57 }
 0x18f   : > { %v1661_v42 = vpop.f32.mrb[9].mxu1 }
 0x190   : > { %v4202_v10 = vpop.f32.mrb[10].mxu1  ;;  %v2213_v42 = vsub.s32 0, %v2212_v24 }
 0x191   : > { %v1664_v55 = vpop.f32.mrb[11].mxu1 }
 0x192   : > { %v4204_v49 = vpop.f32.mrb[8].mxu0 }
 0x193   : > { %v1597_v15 = vpop.f32.mrb[9].mxu0 }
 0x194   : > { %v4206_v45 = vpop.f32.mrb[10].mxu0 }
 0x195   : > { %v1600_v58 = vpop.f32.mrb[11].mxu0 }
 0x196   : > { %v4208_v8 = vpop.f32.mrb[12].mxu1 }
 0x197   : > { %v1669_v56 = vpop.f32.mrb[13].mxu1 }
 0x198   : > { %v4210_v54 = vpop.f32.mrb[14].mxu1 }
 0x199   : > { %v1672_v38 = vpop.f32.mrb[15].mxu1 }
 0x19a   : > { %v4212_v2 = vpop.f32.mrb[12].mxu0 }
 0x19b   : > { %v1605_v62 = vpop.f32.mrb[13].mxu0 }
 0x19c   : > { %v4214_v59 = vpop.f32.mrb[14].mxu0  ;;  %v4257_v62 = vrot.slane %v1350_v44, %v2213_v42 }
 0x19d   : > { %v1608_v61 = vpop.f32.mrb[15].mxu0 }
 0x19e   : > { %v4216_v14 = vpop.f32.mrb[16].mxu1 }
 0x19f   : > { %v1677_v48 = vpop.f32.mrb[17].mxu1 }
 0x1a0   : > { %v4218_v9 = vpop.f32.mrb[18].mxu1 }
 0x1a1   : > { %v1680_v4 = vpop.f32.mrb[19].mxu1 }
 0x1a2   : > { %v4220_v30 = vpop.f32.mrb[16].mxu0 }
 0x1a3   : > { %v1613_v37 = vpop.f32.mrb[17].mxu0 }
 0x1a4   : > { %v4222_v12 = vpop.f32.mrb[18].mxu0 }
 0x1a5   : > { %v1616_v23 = vpop.f32.mrb[19].mxu0 }
 0x1a6   : > { %v4224_v31 = vpop.f32.mrb[20].mxu1 }
 0x1a7   : > { %v1685_v7 = vpop.f32.mrb[21].mxu1 }
 0x1a8   : > { %v4226_v1 = vpop.f32.mrb[22].mxu1 }
 0x1a9   : > { %v1688_v39 = vpop.f32.mrb[23].mxu1 }
 0x1aa   : > { %v4228_v63 = vpop.f32.mrb[20].mxu0 }
 0x1ab   : > { %v1621_v29 = vpop.f32.mrb[21].mxu0 }
 0x1ac   : > { %v4230_v27 = vpop.f32.mrb[22].mxu0 }
 0x1ad   : > { %v1624_v13 = vpop.f32.mrb[23].mxu0 }
 0x1ae   : > { %v4232_v60 = vpop.f32.mrb[24].mxu1 }
 0x1af   : > { %v1693_v47 = vpop.f32.mrb[25].mxu1 }
 0x1b0   : > { %v4234_v33 = vpop.f32.mrb[26].mxu1 }
 0x1b1   : > { %v1696_v5 = vpop.f32.mrb[27].mxu1 }
 0x1b2   : > { %v4236_v3 = vpop.f32.mrb[24].mxu0 }
 0x1b3   : > { %v1629_v36 = vpop.f32.mrb[25].mxu0 }
 0x1b4   : > { %v4238_v50 = vpop.f32.mrb[26].mxu0 }
 0x1b5   : > { %v1632_v25 = vpop.f32.mrb[27].mxu0 }
 0x1b6   : > { %v4240_v43 = vpop.f32.mrb[28].mxu1 }
 0x1b7   : > { %v1701_v26 = vpop.f32.mrb[29].mxu1 }
 0x1b8   : > { %v4242_v21 = vpop.f32.mrb[30].mxu1 }
 0x1b9   : > { %v1704_v6 = vpop.f32.mrb[31].mxu1 }
 0x1ba   : > { %v4248_v22 = vpop.f32.mrb[28].mxu0 }
 0x1bb   : > { %v1637_v19 = vpop.f32.mrb[29].mxu0 }
 0x1bc   : > { %v4250_v46 = vpop.f32.mrb[30].mxu0 }
 0x1bd   : > { %v1640_v16 = vpop.f32.mrb[31].mxu0 }
 0x1be   : > { %v1815_v34 = vpop.f32.mrb[32].mxu1 }
 0x1bf   : > { %v1816_v28 = vadd.f32 %v1815_v34, %v4188_v51  ;;  %v1817_v11 = vpop.f32.mrb[33].mxu1 }
 0x1c0   : > { %v1818_v55 = vpop.f32.mrb[34].mxu1 }
 0x1c1   : > { %v1819_v15 = vadd.f32 %v1818_v55, %v4190_v18  ;;  %v1820_v58 = vpop.f32.mrb[35].mxu1 }
 0x1c2   : > { %v2051_v56 = vpop.f32.mrb[32].mxu0 }
 0x1c3   : > { %v2178_v38 = vadd.f32 %v2051_v56, %v1816_v28  ;;  %v2053_v61 = vpop.f32.mrb[33].mxu0 }
 0x1c4   : > { %v2054_v48 = vpop.f32.mrb[34].mxu0 }
 0x1c5   : > { %v2179_v4 = vadd.f32 %v2054_v48, %v1819_v15  ;;  %v2056_v37 = vpop.f32.mrb[35].mxu0  ;;  %v2216_v7 = vadd.f32 %v4257_v62, %v2178_v38 }
 0x1c6   : > { %v1823_v23 = vpop.f32.mrb[36].mxu1 }
 0x1c7   : > { %v2217_v51 = vadd.f32 %v4257_v62, %v2179_v4  ;;  %v1824_v39 = vadd.f32 %v1823_v23, %v4196_v20  ;;  %v1825_v29 = vpop.f32.mrb[37].mxu1 }
 0x1c8   : > { %v1826_v18 = vpop.f32.mrb[38].mxu1 }
 0x1c9   : > { %v2902_v13 = vpack.c.bf16 %v2217_v51, %v2216_v7  ;;  %v1827_v47 = vadd.f32 %v1826_v18, %v4198_v17  ;;  %v1828_v5 = vpop.f32.mrb[39].mxu1 }
 0x1ca   : > { %v2059_v36 = vpop.f32.mrb[36].mxu0 }
 0x1cb   : > { %2903 = vst [vmem:[%s4266_s23] sm:$0xff] %v2902_v13   ;;  %v2180_v25 = vadd.f32 %v2059_v36, %v1824_v39  ;;  %v2061_v26 = vpop.f32.mrb[37].mxu0 }
 0x1cc   : > { %v2062_v0 = vpop.f32.mrb[38].mxu0 }
 0x1cd   : > { %v2181_v6 = vadd.f32 %v2062_v0, %v1827_v47  ;;  %v2064_v20 = vpop.f32.mrb[39].mxu0  ;;  %v2218_v24 = vadd.f32 %v4257_v62, %v2180_v25 }
 0x1ce   : > { %v1831_v19 = vpop.f32.mrb[40].mxu1 }
 0x1cf   : > { %v2219_v57 = vadd.f32 %v4257_v62, %v2181_v6  ;;  %v1832_v40 = vadd.f32 %v1831_v19, %v4204_v49  ;;  %v1833_v16 = vpop.f32.mrb[41].mxu1 }
 0x1d0   : > { %v1834_v34 = vpop.f32.mrb[42].mxu1 }
 0x1d1   : > { %v2907_v28 = vpack.c.bf16 %v2219_v57, %v2218_v24  ;;  %v1835_v17 = vadd.f32 %v1834_v34, %v4206_v45  ;;  %v1836_v11 = vpop.f32.mrb[43].mxu1 }
 0x1d2   : > { %v2067_v44 = vpop.f32.mrb[40].mxu0 }
 0x1d3   : > { %2995 = vst [vmem:[%s4266_s23 + $0x8] sm:$0xff] %v2907_v28   ;;  %v2182_v42 = vadd.f32 %v2067_v44, %v1832_v40  ;;  %v2069_v55 = vpop.f32.mrb[41].mxu0 }
 0x1d4   : > { %v2070_v15 = vpop.f32.mrb[42].mxu0 }
 0x1d5   : > { %v2183_v58 = vadd.f32 %v2070_v15, %v1835_v17  ;;  %v2072_v56 = vpop.f32.mrb[43].mxu0  ;;  %v2220_v61 = vadd.f32 %v4257_v62, %v2182_v42 }
 0x1d6   : > { %v1839_v38 = vpop.f32.mrb[44].mxu1 }
 0x1d7   : > { %v2221_v48 = vadd.f32 %v4257_v62, %v2183_v58  ;;  %v1840_v49 = vadd.f32 %v1839_v38, %v4212_v2  ;;  %v1841_v4 = vpop.f32.mrb[45].mxu1 }
 0x1d8   : > { %v1842_v37 = vpop.f32.mrb[46].mxu1 }
 0x1d9   : > { %v2912_v23 = vpack.c.bf16 %v2221_v48, %v2220_v61  ;;  %v1843_v45 = vadd.f32 %v1842_v37, %v4214_v59  ;;  %v1844_v7 = vpop.f32.mrb[47].mxu1 }
 0x1da   : > { %v2075_v51 = vpop.f32.mrb[44].mxu0 }
 0x1db   : > { %2996 = vst [vmem:[%s4266_s23 + $0x10] sm:$0xff] %v2912_v23   ;;  %v2184_v39 = vadd.f32 %v2075_v51, %v1840_v49  ;;  %v2077_v29 = vpop.f32.mrb[45].mxu0 }
 0x1dc   : > { %v2078_v18 = vpop.f32.mrb[46].mxu0 }
 0x1dd   : > { %v2185_v13 = vadd.f32 %v2078_v18, %v1843_v45  ;;  %v2080_v47 = vpop.f32.mrb[47].mxu0  ;;  %v2222_v36 = vadd.f32 %v4257_v62, %v2184_v39 }
 0x1de   : > { %v1847_v5 = vpop.f32.mrb[48].mxu1 }
 0x1df   : > { %v2223_v25 = vadd.f32 %v4257_v62, %v2185_v13  ;;  %v1848_v2 = vadd.f32 %v1847_v5, %v4220_v30  ;;  %v1849_v26 = vpop.f32.mrb[49].mxu1 }
 0x1e0   : > { %v1850_v0 = vpop.f32.mrb[50].mxu1 }
 0x1e1   : > { %v2917_v6 = vpack.c.bf16 %v2223_v25, %v2222_v36  ;;  %v1851_v59 = vadd.f32 %v1850_v0, %v4222_v12  ;;  %v1852_v20 = vpop.f32.mrb[51].mxu1 }
 0x1e2   : > { %v2083_v19 = vpop.f32.mrb[48].mxu0 }
 0x1e3   : > { %2997 = vst [vmem:[%s4266_s23 + $0x18] sm:$0xff] %v2917_v6   ;;  %v2186_v24 = vadd.f32 %v2083_v19, %v1848_v2  ;;  %v2085_v57 = vpop.f32.mrb[49].mxu0 }
 0x1e4   : > { %v2086_v40 = vpop.f32.mrb[50].mxu0 }
 0x1e5   : > { %v2187_v16 = vadd.f32 %v2086_v40, %v1851_v59  ;;  %v2088_v34 = vpop.f32.mrb[51].mxu0  ;;  %v2224_v17 = vadd.f32 %v4257_v62, %v2186_v24 }
 0x1e6   : > { %v1855_v28 = vpop.f32.mrb[52].mxu1 }
 0x1e7   : > { %v2225_v11 = vadd.f32 %v4257_v62, %v2187_v16  ;;  %v1856_v30 = vadd.f32 %v1855_v28, %v4228_v63  ;;  %v1857_v44 = vpop.f32.mrb[53].mxu1 }
 0x1e8   : > { %v1858_v42 = vpop.f32.mrb[54].mxu1 }
 0x1e9   : > { %v2922_v55 = vpack.c.bf16 %v2225_v11, %v2224_v17  ;;  %v1859_v12 = vadd.f32 %v1858_v42, %v4230_v27  ;;  %v1860_v15 = vpop.f32.mrb[55].mxu1 }
 0x1ea   : > { %v2091_v58 = vpop.f32.mrb[52].mxu0 }
 0x1eb   : > { %2998 = vst [vmem:[%s4266_s23 + $0x20] sm:$0xff] %v2922_v55   ;;  %v2188_v56 = vadd.f32 %v2091_v58, %v1856_v30  ;;  %v2093_v38 = vpop.f32.mrb[53].mxu0 }
 0x1ec   : > { %v2094_v61 = vpop.f32.mrb[54].mxu0 }
 0x1ed   : > { %v2189_v48 = vadd.f32 %v2094_v61, %v1859_v12  ;;  %v2096_v49 = vpop.f32.mrb[55].mxu0  ;;  %v2226_v37 = vadd.f32 %v4257_v62, %v2188_v56 }
 0x1ee   : > { %v1863_v4 = vpop.f32.mrb[56].mxu1 }
 0x1ef   : > { %v2227_v23 = vadd.f32 %v4257_v62, %v2189_v48  ;;  %v1864_v63 = vadd.f32 %v1863_v4, %v4236_v3  ;;  %v1865_v45 = vpop.f32.mrb[57].mxu1 }
 0x1f0   : > { %v1866_v7 = vpop.f32.mrb[58].mxu1 }
 0x1f1   : > { %v2927_v51 = vpack.c.bf16 %v2227_v23, %v2226_v37  ;;  %v1867_v27 = vadd.f32 %v1866_v7, %v4238_v50  ;;  %v1868_v39 = vpop.f32.mrb[59].mxu1 }
 0x1f2   : > { %v2099_v29 = vpop.f32.mrb[56].mxu0 }
 0x1f3   : > { %2999 = vst [vmem:[%s4266_s23 + $0x28] sm:$0xff] %v2927_v51   ;;  %v2190_v18 = vadd.f32 %v2099_v29, %v1864_v63  ;;  %v2101_v13 = vpop.f32.mrb[57].mxu0 }
 0x1f4   : > { %v2102_v47 = vpop.f32.mrb[58].mxu0 }
 0x1f5   : > { %v2191_v5 = vadd.f32 %v2102_v47, %v1867_v27  ;;  %v2104_v36 = vpop.f32.mrb[59].mxu0  ;;  %v2228_v2 = vadd.f32 %v4257_v62, %v2190_v18 }
 0x1f6   : > { %v1871_v25 = vpop.f32.mrb[60].mxu1 }
 0x1f7   : > { %v2229_v26 = vadd.f32 %v4257_v62, %v2191_v5  ;;  %v1872_v3 = vadd.f32 %v1871_v25, %v4248_v22  ;;  %v1873_v0 = vpop.f32.mrb[61].mxu1 }
 0x1f8   : > { %v1874_v6 = vpop.f32.mrb[62].mxu1 }
 0x1f9   : > { %v2932_v59 = vpack.c.bf16 %v2229_v26, %v2228_v2  ;;  %v1875_v50 = vadd.f32 %v1874_v6, %v4250_v46  ;;  %v1876_v20 = vpop.f32.mrb[63].mxu1 }
 0x1fa   : > { %v2107_v19 = vpop.f32.mrb[60].mxu0 }
 0x1fb   : > { %3000 = vst [vmem:[%s4266_s23 + $0x30] sm:$0xff] %v2932_v59   ;;  %v2192_v24 = vadd.f32 %v2107_v19, %v1872_v3  ;;  %v2109_v57 = vpop.f32.mrb[61].mxu0 }
 0x1fc   : > { %v2110_v40 = vpop.f32.mrb[62].mxu0 }
 0x1fd   : > { %v2193_v16 = vadd.f32 %v2110_v40, %v1875_v50  ;;  %v2112_v34 = vpop.f32.mrb[63].mxu0  ;;  %v2230_v17 = vadd.f32 %v4257_v62, %v2192_v24 }
 0x1fe   : > { %v1879_v28 = vpop.f32.mrb[64].mxu1 }
 0x1ff   : > { %v2231_v11 = vadd.f32 %v4257_v62, %v2193_v16  ;;  %v1880_v22 = vadd.f32 %v1879_v28, %v4184_v53  ;;  %v1881_v30 = vpop.f32.mrb[65].mxu1 }
 0x200   : > { %v1882_v44 = vpop.f32.mrb[66].mxu1 }
 0x201   : > { %v2937_v42 = vpack.c.bf16 %v2231_v11, %v2230_v17  ;;  %v1883_v46 = vadd.f32 %v1882_v44, %v4186_v52  ;;  %v1884_v55 = vpop.f32.mrb[67].mxu1 }
 0x202   : > { %v2115_v12 = vpop.f32.mrb[64].mxu0 }
 0x203   : > { %3001 = vst [vmem:[%s4266_s23 + $0x38] sm:$0xff] %v2937_v42   ;;  %v2194_v15 = vadd.f32 %v2115_v12, %v1880_v22  ;;  %v2117_v58 = vpop.f32.mrb[65].mxu0 }
 0x204   : > { %v2118_v56 = vpop.f32.mrb[66].mxu0 }
 0x205   : > { %v2195_v38 = vadd.f32 %v2118_v56, %v1883_v46  ;;  %v2120_v61 = vpop.f32.mrb[67].mxu0  ;;  %v2232_v49 = vadd.f32 %v4257_v62, %v2194_v15 }
 0x206   : > { %v1887_v48 = vpop.f32.mrb[68].mxu1 }
 0x207   : > { %v2233_v4 = vadd.f32 %v4257_v62, %v2195_v38  ;;  %v1888_v53 = vadd.f32 %v1887_v48, %v4192_v32  ;;  %v1889_v37 = vpop.f32.mrb[69].mxu1 }
 0x208   : > { %v1890_v23 = vpop.f32.mrb[70].mxu1 }
 0x209   : > { %v2942_v63 = vpack.c.bf16 %v2233_v4, %v2232_v49  ;;  %v1891_v52 = vadd.f32 %v1890_v23, %v4194_v41  ;;  %v1892_v45 = vpop.f32.mrb[71].mxu1 }
 0x20a   : > { %v2123_v7 = vpop.f32.mrb[68].mxu0 }
 0x20b   : > { %3002 = vst [vmem:[%s4266_s23 + $0x40] sm:$0xff] %v2942_v63   ;;  %v2196_v51 = vadd.f32 %v2123_v7, %v1888_v53  ;;  %v2125_v27 = vpop.f32.mrb[69].mxu0 }
 0x20c   : > { %v2126_v39 = vpop.f32.mrb[70].mxu0 }
 0x20d   : > { %v2197_v29 = vadd.f32 %v2126_v39, %v1891_v52  ;;  %v2128_v18 = vpop.f32.mrb[71].mxu0  ;;  %v2234_v47 = vadd.f32 %v4257_v62, %v2196_v51 }
 0x20e   : > { %v1895_v13 = vpop.f32.mrb[72].mxu1 }
 0x20f   : > { %v2235_v5 = vadd.f32 %v4257_v62, %v2197_v29  ;;  %v1896_v32 = vadd.f32 %v1895_v13, %v4200_v35  ;;  %v1897_v36 = vpop.f32.mrb[73].mxu1 }
 0x210   : > { %v1898_v25 = vpop.f32.mrb[74].mxu1 }
 0x211   : > { %v2947_v2 = vpack.c.bf16 %v2235_v5, %v2234_v47  ;;  %v1899_v41 = vadd.f32 %v1898_v25, %v4202_v10  ;;  %v1900_v26 = vpop.f32.mrb[75].mxu1 }
 0x212   : > { %v2131_v3 = vpop.f32.mrb[72].mxu0 }
 0x213   : > { %3003 = vst [vmem:[%s4266_s23 + $0x48] sm:$0xff] %v2947_v2   ;;  %v2198_v0 = vadd.f32 %v2131_v3, %v1896_v32  ;;  %v2133_v6 = vpop.f32.mrb[73].mxu0 }
 0x214   : > { %v2134_v59 = vpop.f32.mrb[74].mxu0 }
 0x215   : > { %v2199_v50 = vadd.f32 %v2134_v59, %v1899_v41  ;;  %v2136_v20 = vpop.f32.mrb[75].mxu0  ;;  %v2236_v24 = vadd.f32 %v4257_v62, %v2198_v0 }
 0x216   : > { %v1903_v19 = vpop.f32.mrb[76].mxu1 }
 0x217   : > { %v2237_v57 = vadd.f32 %v4257_v62, %v2199_v50  ;;  %v1904_v35 = vadd.f32 %v1903_v19, %v4208_v8  ;;  %v1905_v40 = vpop.f32.mrb[77].mxu1 }
 0x218   : > { %v1906_v16 = vpop.f32.mrb[78].mxu1 }
 0x219   : > { %v2952_v34 = vpack.c.bf16 %v2237_v57, %v2236_v24  ;;  %v1907_v10 = vadd.f32 %v1906_v16, %v4210_v54  ;;  %v1908_v28 = vpop.f32.mrb[79].mxu1 }
 0x21a   : > { %v2139_v17 = vpop.f32.mrb[76].mxu0 }
 0x21b   : > { %3004 = vst [vmem:[%s4266_s23 + $0x50] sm:$0xff] %v2952_v34   ;;  %v2200_v11 = vadd.f32 %v2139_v17, %v1904_v35  ;;  %v2141_v22 = vpop.f32.mrb[77].mxu0 }
 0x21c   : > { %v2142_v30 = vpop.f32.mrb[78].mxu0 }
 0x21d   : > { %v2201_v44 = vadd.f32 %v2142_v30, %v1907_v10  ;;  %v2144_v42 = vpop.f32.mrb[79].mxu0  ;;  %v2238_v55 = vadd.f32 %v4257_v62, %v2200_v11 }
 0x21e   : > { %v1911_v46 = vpop.f32.mrb[80].mxu1 }
 0x21f   : > { %v2239_v12 = vadd.f32 %v4257_v62, %v2201_v44  ;;  %v1912_v8 = vadd.f32 %v1911_v46, %v4216_v14  ;;  %v1913_v15 = vpop.f32.mrb[81].mxu1 }
 0x220   : > { %v1914_v58 = vpop.f32.mrb[82].mxu1 }
 0x221   : > { %v2957_v56 = vpack.c.bf16 %v2239_v12, %v2238_v55  ;;  %v1915_v54 = vadd.f32 %v1914_v58, %v4218_v9  ;;  %v1916_v38 = vpop.f32.mrb[83].mxu1 }
 0x222   : > { %v2147_v61 = vpop.f32.mrb[80].mxu0 }
 0x223   : > { %3005 = vst [vmem:[%s4266_s23 + $0x58] sm:$0xff] %v2957_v56   ;;  %v2202_v48 = vadd.f32 %v2147_v61, %v1912_v8  ;;  %v2149_v49 = vpop.f32.mrb[81].mxu0 }
 0x224   : > { %v2150_v4 = vpop.f32.mrb[82].mxu0 }
 0x225   : > { %v2203_v53 = vadd.f32 %v2150_v4, %v1915_v54  ;;  %v2152_v37 = vpop.f32.mrb[83].mxu0  ;;  %v2240_v63 = vadd.f32 %v4257_v62, %v2202_v48 }
 0x226   : > { %v1919_v23 = vpop.f32.mrb[84].mxu1 }
 0x227   : > { %v2241_v52 = vadd.f32 %v4257_v62, %v2203_v53  ;;  %v1920_v14 = vadd.f32 %v1919_v23, %v4224_v31  ;;  %v1921_v45 = vpop.f32.mrb[85].mxu1 }
 0x228   : > { %v1922_v7 = vpop.f32.mrb[86].mxu1 }
 0x229   : > { %v2962_v51 = vpack.c.bf16 %v2241_v52, %v2240_v63  ;;  %v1923_v9 = vadd.f32 %v1922_v7, %v4226_v1  ;;  %v1924_v27 = vpop.f32.mrb[87].mxu1 }
 0x22a   : > { %v2155_v39 = vpop.f32.mrb[84].mxu0 }
 0x22b   : > { %3006 = vst [vmem:[%s4266_s23 + $0x60] sm:$0xff] %v2962_v51   ;;  %v2204_v29 = vadd.f32 %v2155_v39, %v1920_v14  ;;  %v2157_v18 = vpop.f32.mrb[85].mxu0 }
 0x22c   : > { %v2158_v13 = vpop.f32.mrb[86].mxu0 }
 0x22d   : > { %v2205_v47 = vadd.f32 %v2158_v13, %v1923_v9  ;;  %v2160_v5 = vpop.f32.mrb[87].mxu0  ;;  %v2242_v36 = vadd.f32 %v4257_v62, %v2204_v29 }
 0x22e   : > { %v1927_v32 = vpop.f32.mrb[88].mxu1 }
 0x22f   : > { %v2243_v25 = vadd.f32 %v4257_v62, %v2205_v47  ;;  %v1928_v31 = vadd.f32 %v1927_v32, %v4232_v60  ;;  %v1929_v2 = vpop.f32.mrb[89].mxu1 }
 0x230   : > { %v1930_v41 = vpop.f32.mrb[90].mxu1 }
 0x231   : > { %v2967_v26 = vpack.c.bf16 %v2243_v25, %v2242_v36  ;;  %v1931_v1 = vadd.f32 %v1930_v41, %v4234_v33  ;;  %v1932_v3 = vpop.f32.mrb[91].mxu1 }
 0x232   : > { %v2163_v0 = vpop.f32.mrb[88].mxu0 }
 0x233   : > { %3007 = vst [vmem:[%s4266_s23 + $0x68] sm:$0xff] %v2967_v26   ;;  %v2206_v6 = vadd.f32 %v2163_v0, %v1928_v31  ;;  %v2165_v59 = vpop.f32.mrb[89].mxu0 }
 0x234   : > { %v2166_v50 = vpop.f32.mrb[90].mxu0 }
 0x235   : > { %v2207_v20 = vadd.f32 %v2166_v50, %v1931_v1  ;;  %v2168_v19 = vpop.f32.mrb[91].mxu0  ;;  %v2244_v57 = vadd.f32 %v4257_v62, %v2206_v6 }
 0x236   : > { %v1935_v24 = vpop.f32.mrb[92].mxu1 }
 0x237   : > { %v2245_v35 = vadd.f32 %v4257_v62, %v2207_v20  ;;  %v1936_v60 = vadd.f32 %v1935_v24, %v4240_v43  ;;  %v1937_v40 = vpop.f32.mrb[93].mxu1 }
 0x238   : > { %v1938_v16 = vpop.f32.mrb[94].mxu1 }
 0x239   : > { %v2972_v33 = vpack.c.bf16 %v2245_v35, %v2244_v57  ;;  %v1939_v34 = vadd.f32 %v1938_v16, %v4242_v21  ;;  %v1940_v10 = vpop.f32.mrb[95].mxu1 }
 0x23a   : > { %v2171_v28 = vpop.f32.mrb[92].mxu0 }
 0x23b   : > { %3008 = vst [vmem:[%s4266_s23 + $0x70] sm:$0xff] %v2972_v33   ;;  %v2208_v17 = vadd.f32 %v2171_v28, %v1936_v60  ;;  %v2173_v11 = vpop.f32.mrb[93].mxu0 }
 0x23c   : > { %v2174_v22 = vpop.f32.mrb[94].mxu0 }
 0x23d   : > { %v2209_v30 = vadd.f32 %v2174_v22, %v1939_v34  ;;  %v2176_v44 = vpop.f32.mrb[95].mxu0  ;;  %v2246_v42 = vadd.f32 %v4257_v62, %v2208_v17 }
 0x23f   : > { %v2247_v46 = vadd.f32 %v4257_v62, %v2209_v30 }
 0x241   : > { %v2977_v55 = vpack.c.bf16 %v2247_v46, %v2246_v42 }
 0x243   : > { %3009 = vst [vmem:[%s4266_s23 + $0x78] sm:$0xff] %v2977_v55  }
 0x244 PF: > { %s18_s29 = sadd.s32 1, %s3264_s29   ;;  %s4365_s27 = smov %s3260_s28 }
 0x245   : > { %p15_p5 = scmp.ge.s32.totalorder %s18_s29, 4   ;;  %s4366_s28 = smov %s4368_s30 }
 0x247   :  { %17 = sbr.rel (!%p15_p5) target bundleno = 2 (0x2), region = 99 }

// kernel: resnet_block_apply.6
= control target key start
LH: loop header
LB: loop body
LE: loop exit
PB: predicated region body
PF: predicated region fallthrough
CT: control target
= control target key end

     0   :  { %s8270_s17 = smov 0   ;;  %s8272_s18 = smov 0   ;;  %s10222_s0 = inlined_call_operand.vmem [shape: bf16[2,16,16,128], index: 0, kind: input, shape index: {}, may-alias: {0,1,2}]   ;;  %s10223_s1 = inlined_call_operand.vmem [shape: bf16[2,16,16,128], index: 1, kind: input, shape index: {}, may-alias: {0,1,2}]   ;;  %s10224_s2 = inlined_call_operand.vmem [shape: bf16[2,16,16,128], index: 2, kind: input, shape index: {}, may-alias: {0,1,2}]   ;;  %s10225_s3 = inlined_call_operand.vmem [shape: bf16[3,384,128], index: 3, kind: input, shape index: {}]   ;;  %s10226_s4 = inlined_call_operand.vmem [shape: f32[1,128], index: 4, kind: input, shape index: {}]   ;;  %s10227_s5 = inlined_call_operand.vmem [shape: f32[1,128], index: 5, kind: input, shape index: {}]   ;;  %s10228_s6 = inlined_call_operand.vmem [shape: f32[1,128], index: 6, kind: input, shape index: {}]   ;;  %s10229_s7 = inlined_call_operand.vmem [shape: f32[128,32], index: 7, kind: input, shape index: {}]   ;;  %s10230_s8 = inlined_call_operand.vmem [shape: f32[32,128], index: 8, kind: input, shape index: {}]   ;;  %s10231_s9 = inlined_call_operand.vmem [shape: bf16[2,16,16,128], index: 9, kind: output, shape index: {0}]   ;;  %s10232_s10 = inlined_call_operand.vmem [shape: f32[2,1,128], index: 10, kind: output, shape index: {1}]   ;;  %s10233_s11 = inlined_call_operand.vmem [shape: f32[2,1,128], index: 11, kind: output, shape index: {2}]  }
   0x1   :  { %s8274_s19 = smov 0  }
   0x2 LB: > { %s34_s20 = sadd.s32 1, %s8201_s18  ;;  %p5605_p0 = scmp.ge.s32.totalorder %s8205_s19, 1  ;;  %s8205_s19 = sphi %s8274_s19, %s22_s19   ;;  %s8201_s18 = sphi %s8272_s18, %s10349_s18   ;;  %s8197_s17 = sphi %s8270_s17, %s10348_s17  }
   0x3   : > { %p36_p1 = scmp.ge.s32.totalorder %s34_s20, 2  ;;  %p428_p2 = scmp.lt.s32.totalorder %s8205_s19, 3 }
   0x5   : > { %s10351_s20 = smov (%p36_p1, %s34_s20), 0  ;;  %p429_p3 = pnand %p5605_p0, %p428_p2 }
   0x7   : > { %432 = sbr.rel (%p429_p3) target bundleno = 1327 (0x52f), region = 56 }
   0xe   : > { %v7954_v0 = vld [vmem:[%s10225_s3 + $0x100] sm:$0xff]   ;;  %v7957_v3 = vld [vmem:[%s10225_s3 + $0x108] sm:$0xff]   ;;  %v7960_v6 = vld [vmem:[%s10225_s3 + $0x110] sm:$0xff]   ;;  %p511_p4 = scmp.lt.s32.totalorder %s8197_s17, 1  ;;  %vm956_vm0 = vcmask 1047552   ;;  %vm881_vm1 = vcmask 1040384  }
   0xf   : > { %v7955_v1 = vld [vmem:[%s10225_s3 + $0x140] sm:$0xff]   ;;  %6000 = vmatprep.subr.bf16.mxu0 %v7954_v0  ;;  %v7958_v4 = vld [vmem:[%s10225_s3 + $0x148] sm:$0xff]   ;;  %v7961_v7 = vld [vmem:[%s10225_s3 + $0x150] sm:$0xff]   ;;  %vm957_vm2 = vsmask.f32 7424  ;;  %vm8208_vm6 = vmmov 0  }
  0x10   : > { %v7956_v2 = vld [vmem:[%s10225_s3 + $0xc0] sm:$0xff]   ;;  %6672 = vmatprep.subr.bf16.mxu1 %v7955_v1  ;;  %v7959_v5 = vld [vmem:[%s10225_s3 + $0xc8] sm:$0xff]   ;;  %v7962_v8 = vld [vmem:[%s10225_s3 + $0xd0] sm:$0xff]   ;;  %s10353_s17 = smov (!%p511_p4, %s8197_s17), 1  ;;  %vm882_vm3 = vsmask.f32 256 }
  0x11   : > { %6001 = vmatpush3.bf16.msra.mxu0 %v7956_v2  ;;  %6673 = vmatpush3.bf16.msra.mxu1 %v7955_v1  ;;  %v7963_v9 = vld [vmem:[%s10225_s3 + $0x118] sm:$0xff]   ;;  %v7966_v12 = vld [vmem:[%s10225_s3 + $0x120] sm:$0xff]   ;;  %v7969_v15 = vld [vmem:[%s10225_s3 + $0x128] sm:$0xff]   ;;  %s8346_s25 = sshll.u32 %s10353_s17, 7  ;;  %vm4429_vm7 = vcmask 261120  }
  0x12   : > { %6002 = vmatprep.subr.bf16.mxu0 %v7957_v3  ;;  %6674 = vmatprep.subr.bf16.mxu1 %v7958_v4  ;;  %v7964_v10 = vld [vmem:[%s10225_s3 + $0x158] sm:$0xff]   ;;  %v7967_v13 = vld [vmem:[%s10225_s3 + $0x160] sm:$0xff]   ;;  %v7970_v16 = vld [vmem:[%s10225_s3 + $0x168] sm:$0xff]   ;;  %s8361_s15 = scalar_lea.vmem %s10222_s0, %s8346_s25  ;;  %s533_s28 = scalar_lea.vmem %s10223_s1, %s8346_s25 }
  0x13   : > { %v7965_v11 = vld [vmem:[%s10225_s3 + $0xd8] sm:$0xff]   ;;  %v7968_v14 = vld [vmem:[%s10225_s3 + $0xe0] sm:$0xff]   ;;  %v7971_v17 = vld [vmem:[%s10225_s3 + $0xe8] sm:$0xff]   ;;  %s5870_s14 = sadd.s32 120, %s8346_s25  ;;  %s9458_s12 = scalar_lea.vmem %s10231_s9, %s8346_s25 }
  0x14   : > { %v7972_v18 = vld [vmem:[%s10225_s3 + $0x130] sm:$0xff]   ;;  %v7975_v21 = vld [vmem:[%s10225_s3 + $0x138] sm:$0xff]   ;;  %v8373_v23 = vld [vmem:[%s8361_s15] sm:$0xff]   ;;  %s550_s21 = scalar_lea.vmem %s10224_s2, %s5870_s14 }
  0x15   : > { %6003 = vmatpush3.bf16.msra.mxu0 %v7959_v5  ;;  %6675 = vmatpush3.bf16.msra.mxu1 %v7958_v4  ;;  %v7973_v19 = vld [vmem:[%s10225_s3 + $0x170] sm:$0xff]   ;;  %v7976_v22 = vld [vmem:[%s10225_s3 + $0x178] sm:$0xff]   ;;  %v745_v24 = vshrl.u32 %v8373_v23, 16  ;;  %v748_v25 = vshll.u32 %v8373_v23, 16  ;;  %v8379_v26 = vld [vmem:[%s8361_s15 + $0x8] sm:$0xff]  }
  0x16   : > { %6004 = vmatprep.subr.bf16.mxu0 %v7960_v6  ;;  %6676 = vmatprep.subr.bf16.mxu1 %v7961_v7  ;;  %v7974_v20 = vld [vmem:[%s10225_s3 + $0xf0] sm:$0xff]   ;;  %vm8381_vm4 = vmand %vm956_vm0, %vm957_vm2  ;;  %v7977_v28 = vld [vmem:[%s10225_s3 + $0xf8] sm:$0xff]   ;;  %v752_v32 = vshrl.u32 %v8379_v26, 16  ;;  %v755_v33 = vshll.u32 %v8379_v26, 16 }
  0x17   : > { %1318 = vmatprep.mubr.bf16.mxu0 %v8373_v23  ;;  %v904_v29 = vrot.slane %v748_v25, 1  ;;  %v747_v30 = vrot.slane %v745_v24, 7  ;;  %vm8389_vm5 = vmand %vm881_vm1, %vm882_vm3  ;;  %v7980_v34 = vld [vmem:[%s10225_s3 + $0x40] sm:$0xff]   ;;  %v8399_v38 = vld [vmem:[%s8361_s15 + $0x10] sm:$0xff]  }
  0x18   : > { %v906_v37 = vrot.slane %v755_v33, 1  ;;  %v754_v39 = vrot.slane %v752_v32, 7  ;;  %v8402_v40 = vld [vmem:[%s8361_s15 + $0x18] sm:$0xff]   ;;  %v7981_v44 = vld [vmem:[%s10225_s3] sm:$0xff]   ;;  %v759_v45 = vshrl.u32 %v8399_v38, 16  ;;  %v762_v46 = vshll.u32 %v8399_v38, 16 }
  0x19   : > { %6005 = vmatpush3.bf16.msra.mxu0 %v7962_v8  ;;  %6677 = vmatpush3.bf16.msra.mxu1 %v7961_v7  ;;  %v905_v35 = vor.u32 %v904_v29, %v745_v24  ;;  %v750_v36 = vor.u32 %v748_v25, %v747_v30  ;;  %v766_v47 = vshrl.u32 %v8402_v40, 16  ;;  %v769_v48 = vshll.u32 %v8402_v40, 16  ;;  %v7984_v49 = vld [vmem:[%s10225_s3 + $0x48] sm:$0xff]   ;;  %v8428_v51 = vld [vmem:[%s8361_s15 + $0x20] sm:$0xff]   ;;  %v7988_v63 = vld [vmem:[%s10225_s3 + $0x50] sm:$0xff]  }
  0x1a   : > { %6006 = vmatprep.subr.bf16.mxu0 %v7963_v9  ;;  %6678 = vmatprep.subr.bf16.mxu1 %v7964_v10  ;;  %v907_v43 = vor.u32 %v906_v37, %v752_v32  ;;  %v908_v52 = vrot.slane %v762_v46, 1  ;;  %v757_v53 = vor.u32 %v755_v33, %v754_v39  ;;  %v7985_v55 = vld [vmem:[%s10225_s3 + $0x8] sm:$0xff]   ;;  %v773_v56 = vshrl.u32 %v8428_v51, 16  ;;  %v7989_v4 = vld [vmem:[%s10225_s3 + $0x10] sm:$0xff]   ;;  %v8470_v8 = vld [vmem:[%s8361_s15 + $0x38] sm:$0xff]  }
  0x1b   : > { %v8406_v41 = vsel %vm8381_vm4, %v905_v35, 0  ;;  %v8410_v42 = vsel %vm8389_vm5, 0, %v750_v36  ;;  %v910_v54 = vrot.slane %v769_v48, 1  ;;  %v776_v57 = vshll.u32 %v8428_v51, 16  ;;  %v8439_v61 = vld [vmem:[%s8361_s15 + $0x28] sm:$0xff]   ;;  %v8463_v5 = vld [vmem:[%s8361_s15 + $0x30] sm:$0xff]  }
  0x1c   : > { %6688 = vmatprep.mubr.bf16.mxu1 %v8406_v41  ;;  %v8425_v50 = vsel %vm8381_vm4, %v907_v43, 0  ;;  %v909_v58 = vor.u32 %v908_v52, %v759_v45  ;;  %v761_v60 = vrot.slane %v759_v45, 7  ;;  %v8452_v1 = vsel %vm8389_vm5, 0, %v757_v53  ;;  %v7996_v25 = vld [vmem:[%s10225_s3 + $0x60] sm:$0xff]   ;;  %v8516_v32 = vld [vmem:[%s8361_s15 + $0x48] sm:$0xff]   ;;  %v8529_v39 = vld [vmem:[%s8361_s15 + $0x50] sm:$0xff]  }
  0x1d   : > { %6007 = vmatpush3.bf16.msra.mxu0 %v7965_v11  ;;  %6679 = vmatpush3.bf16.msra.mxu1 %v7964_v10  ;;  %v911_v59 = vor.u32 %v910_v54, %v766_v47  ;;  %v912_v62 = vrot.slane %v776_v57, 1  ;;  %v780_v3 = vshrl.u32 %v8439_v61, 16  ;;  %v783_v7 = vshll.u32 %v8439_v61, 16  ;;  %v7997_v37 = vld [vmem:[%s10225_s3 + $0x20] sm:$0xff]   ;;  %v8552_v53 = vld [vmem:[%s8361_s15 + $0x58] sm:$0xff]   ;;  %v8001_v54 = vld [vmem:[%s10225_s3 + $0x28] sm:$0xff]  }
  0x1e   : > { %6008 = vmatprep.subr.bf16.mxu0 %v7966_v12  ;;  %6680 = vmatprep.subr.bf16.mxu1 %v7967_v13  ;;  %v8448_v0 = vsel %vm8381_vm4, %v909_v58, 0  ;;  %v764_v9 = vor.u32 %v762_v46, %v761_v60  ;;  %v787_v10 = vshrl.u32 %v8463_v5, 16  ;;  %v790_v11 = vshll.u32 %v8463_v5, 16  ;;  %v8562_v58 = vld [vmem:[%s8361_s15 + $0x60] sm:$0xff]  }
  0x1f   : > { %v8456_v2 = vsel %vm8381_vm4, %v911_v59, 0  ;;  %v913_v6 = vor.u32 %v912_v62, %v773_v56  ;;  %v794_v24 = vshrl.u32 %v8470_v8, 16  ;;  %v808_v52 = vshrl.u32 %v8516_v32, 16 }
  0x21   : > { %6009 = vmatpush3.bf16.msra.mxu0 %v7968_v14  ;;  %6681 = vmatpush3.bf16.msra.mxu1 %v7967_v13  ;;  %v8476_v12 = vsel %vm8381_vm4, %v913_v6, 0  ;;  %v914_v13 = vrot.slane %v783_v7, 1  ;;  %v916_v14 = vrot.slane %v790_v11, 1  ;;  %v782_v6 = vrot.slane %v780_v3, 7 }
  0x22   : > { %6010 = vmatprep.subr.bf16.mxu0 %v7969_v15  ;;  %6682 = vmatprep.subr.bf16.mxu1 %v7970_v16  ;;  %v797_v15 = vshll.u32 %v8470_v8, 16 }
  0x24   : > { %v918_v29 = vrot.slane %v797_v15, 1 }
  0x25   : > { %6011 = vmatpush3.bf16.msra.mxu0 %v7971_v17  ;;  %6683 = vmatpush3.bf16.msra.mxu1 %v7970_v16  ;;  %v7992_v16 = vld [vmem:[%s10225_s3 + $0x58] sm:$0xff]   ;;  %v915_v17 = vor.u32 %v914_v13, %v780_v3  ;;  %v8005_v13 = vld [vmem:[%s10225_s3 + $0x30] sm:$0xff]  }
  0x26   : > { %6012 = vmatprep.subr.bf16.mxu0 %v7972_v18  ;;  %6684 = vmatprep.subr.bf16.mxu1 %v7973_v19  ;;  %v8494_v18 = vsel %vm8389_vm5, 0, %v764_v9  ;;  %v919_v43 = vor.u32 %v918_v29, %v794_v24  ;;  %v10236_v9 = vshll.u32 %v8562_v58, 16  ;;  %v8008_v29 = vld [vmem:[%s10225_s3 + $0x78] sm:$0xff]  }
  0x29   : > { %6013 = vmatpush3.bf16.msra.mxu0 %v7974_v20  ;;  %6685 = vmatpush3.bf16.msra.mxu1 %v7973_v19  ;;  %v917_v19 = vor.u32 %v916_v14, %v787_v10  ;;  %v768_v20 = vrot.slane %v766_v47, 7  ;;  %v818_v47 = vshll.u32 %v8529_v39, 16 }
  0x2a   : > { %6014 = vmatprep.subr.bf16.mxu0 %v7975_v21  ;;  %6686 = vmatprep.subr.bf16.mxu1 %v7976_v22  ;;  %v7993_v21 = vld [vmem:[%s10225_s3 + $0x18] sm:$0xff]  }
  0x2b   : > { %v8520_v33 = vsel %vm8381_vm4, %v917_v19, 0  ;;  %v771_v35 = vor.u32 %v769_v48, %v768_v20  ;;  %v8000_v48 = vld [vmem:[%s10225_s3 + $0x68] sm:$0xff]   ;;  %v924_v62 = vrot.slane %v818_v47, 1 }
  0x2c   : > { %v8597_v20 = vld [vmem:[%s8361_s15 + $0x68] sm:$0xff]  }
  0x2d   : > { %6015 = vmatpush3.bf16.msra.mxu0 %v7977_v28  ;;  %6687 = vmatpush3.bf16.msra.mxu1 %v7976_v22  ;;  %v8502_v22 = vld [vmem:[%s8361_s15 + $0x40] sm:$0xff]   ;;  %v8510_v28 = vsel %vm8381_vm4, %v915_v17, 0  ;;  %v8540_v45 = vsel %vm8389_vm5, 0, %v771_v35  ;;  %v822_v17 = vshrl.u32 %v8552_v53, 16  ;;  %v8009_v35 = vld [vmem:[%s10225_s3 + $0x38] sm:$0xff]  }
  0x2e   : > { %6136 = vmatprep.subr.bf16.mxu1 %v7980_v34  ;;  %v804_v30 = vshll.u32 %v8502_v22, 16  ;;  %v801_v34 = vshrl.u32 %v8502_v22, 16 }
  0x30   : > { %1319 = vmatmul.mubr.bf16.vlgmr.msra.gmra.mrb[0].mxu0 %v8410_v42  ;;  %6689 = vmatmul.mubr.bf16.vlgmr.msra.gmra.mrb[0].mxu1 %v8425_v50  ;;  %v920_v36 = vrot.slane %v804_v30, 1 }
  0x31   : > { %6137 = vmatpush3.bf16.msra.mxu1 %v7981_v44  ;;  %1326 = vmatprep.mubr.bf16.mxu0 %v8379_v26  ;;  %v811_v44 = vshll.u32 %v8516_v32, 16 }
  0x32   : > { %6138 = vmatprep.subr.bf16.mxu1 %v7984_v49  ;;  %6692 = vmatprep.mubr.bf16.mxu1 %v8448_v0  ;;  %v921_v46 = vor.u32 %v920_v36, %v801_v34  ;;  %v775_v49 = vrot.slane %v773_v56, 7  ;;  %v815_v56 = vshrl.u32 %v8529_v39, 16 }
  0x33   : > { %v922_v59 = vrot.slane %v811_v44, 1 }
  0x34   : > { %v8569_v60 = vsel %vm8381_vm4, %v921_v46, 0  ;;  %v778_v14 = vor.u32 %v776_v57, %v775_v49  ;;  %v925_v3 = vor.u32 %v924_v62, %v815_v56  ;;  %v10237_v57 = vshrl.u32 %v8562_v58, 16  ;;  %v8631_v49 = vld [vmem:[%s10225_s3 + $0x80] sm:$0xff]  }
  0x35   : > { %6139 = vmatpush3.bf16.msra.mxu1 %v7985_v55  ;;  %v8559_v55 = vsel %vm8381_vm4, %v919_v43, 0  ;;  %v8623_v43 = vld [vmem:[%s8361_s15 + $0x70] sm:$0xff]   ;;  %v789_v62 = vrot.slane %v787_v10, 7  ;;  %v8012_v10 = vld [vmem:[%s10225_s3 + $0x180] sm:$0xff]  }
  0x36   : > { %6140 = vmatprep.subr.bf16.mxu1 %v7988_v63  ;;  %v825_v63 = vshll.u32 %v8552_v53, 16  ;;  %v8612_v36 = vsel %vm8389_vm5, 0, %v778_v14 }
  0x38   : > { %1327 = vmatmul.mubr.bf16.gmra.mrb[4].mxu0 %v8452_v1  ;;  %6693 = vmatmul.mubr.bf16.gmra.mrb[4].mxu1 %v8456_v2  ;;  %v926_v19 = vrot.slane %v825_v63, 1 }
  0x39   : > { %1334 = vmatprep.mubr.bf16.mxu0 %v8399_v38  ;;  %6696 = vmatprep.mubr.bf16.mxu1 %v8476_v12 }
  0x3a   : > { %6141 = vmatpush3.bf16.msra.mxu1 %v7989_v4  ;;  %v8004_v4 = vld [vmem:[%s10225_s3 + $0x70] sm:$0xff]   ;;  %v927_v46 = vor.u32 %v926_v19, %v822_v17  ;;  %v8666_v19 = vld [vmem:[%s8361_s15 + $0x78] sm:$0xff]   ;;  %s9733_s15 = scalar_lea.vmem %s10232_s10, %s10353_s17 }
  0x3b   : > { %6142 = vmatprep.subr.bf16.mxu1 %v7992_v16  ;;  %v923_v16 = vor.u32 %v922_v59, %v808_v52 }
  0x3c   : > { %v8660_v14 = vsel %vm8381_vm4, %v927_v46, 0 }
  0x3e   : > { %6143 = vmatpush3.bf16.msra.mxu1 %v7993_v21  ;;  %v785_v21 = vor.u32 %v783_v7, %v782_v6  ;;  %v8616_v7 = vsel %vm8381_vm4, %v923_v16, 0  ;;  %v8011_v6 = vld [vmem:[%s10225_s3 + $0x1c0] sm:$0xff]  }
  0x3f   : > { %6144 = vmatprep.subr.bf16.mxu1 %v7996_v25  ;;  %v928_v25 = vrot.slane %v10236_v9, 1  ;;  %6272 = vmatprep.subr.bf16.mxu0 %v8011_v6  ;;  %v792_v6 = vor.u32 %v790_v11, %v789_v62  ;;  %v10239_v9 = vshll.u32 %v8666_v19, 16  ;;  %v8018_v62 = vld [vmem:[%s10225_s3 + $0x190] sm:$0xff]  }
  0x40   : > { %1335 = vmatmul.mubr.bf16.gmra.mrb[8].mxu0 %v8494_v18  ;;  %6697 = vmatmul.mubr.bf16.gmra.mrb[8].mxu1 %v8510_v28 }
  0x41   : > { %1342 = vmatprep.mubr.bf16.mxu0 %v8402_v40  ;;  %6700 = vmatprep.mubr.bf16.mxu1 %v8520_v33  ;;  %v929_v59 = vor.u32 %v928_v25, %v10237_v57  ;;  %v8014_v25 = vld [vmem:[%s10225_s3 + $0x1c8] sm:$0xff]   ;;  %v8699_v57 = vsel %vm8389_vm5, 0, %v792_v6 }
  0x42   : > { %6145 = vmatpush3.bf16.msra.mxu1 %v7997_v37  ;;  %v8620_v37 = vsel %vm8381_vm4, %v925_v3, 0  ;;  %v10238_v3 = vshrl.u32 %v8623_v43, 16  ;;  %6273 = vmatpush3.bf16.msra.mxu0 %v8012_v10 }
  0x43   : > { %6146 = vmatprep.subr.bf16.mxu1 %v8000_v48  ;;  %v10234_v48 = vshll.u32 %v8597_v20, 16  ;;  %6274 = vmatprep.subr.bf16.mxu0 %v8014_v25 }
  0x45   : > { %v930_v16 = vrot.slane %v10234_v48, 1  ;;  %v8015_v48 = vld [vmem:[%s10225_s3 + $0x188] sm:$0xff]  }
  0x46   : > { %6147 = vmatpush3.bf16.msra.mxu1 %v8001_v54  ;;  %v8637_v54 = vsel %vm8389_vm5, 0, %v785_v21  ;;  %v8670_v21 = vsel %vm8381_vm4, %v929_v59, 0  ;;  %v8017_v59 = vld [vmem:[%s10225_s3 + $0x1d0] sm:$0xff]   ;;  %6275 = vmatpush3.bf16.msra.mxu0 %v8015_v48  ;;  %v796_v48 = vrot.slane %v794_v24, 7  ;;  %v8022_v24 = vld [vmem:[%s10225_s3 + $0x1e0] sm:$0xff]  }
  0x47   : > { %6148 = vmatprep.subr.bf16.mxu1 %v8004_v4  ;;  %v10240_v4 = vshrl.u32 %v8597_v20, 16  ;;  %6276 = vmatprep.subr.bf16.mxu0 %v8017_v59  ;;  %v8020_v59 = vld [vmem:[%s10225_s3 + $0x198] sm:$0xff]  }
  0x48   : > { %1343 = vmatmul.mubr.bf16.gmra.mrb[12].mxu0 %v8540_v45  ;;  %6701 = vmatmul.mubr.bf16.gmra.mrb[12].mxu1 %v8559_v55 }
  0x49   : > { %1350 = vmatprep.mubr.bf16.mxu0 %v8428_v51  ;;  %6704 = vmatprep.mubr.bf16.mxu1 %v8569_v60  ;;  %v931_v10 = vor.u32 %v930_v16, %v10240_v4  ;;  %v8019_v16 = vld [vmem:[%s10225_s3 + $0x1d8] sm:$0xff]  }
  0x4a   : > { %6149 = vmatpush3.bf16.msra.mxu1 %v8005_v13  ;;  %v10235_v13 = vshll.u32 %v8623_v43, 16  ;;  %6277 = vmatpush3.bf16.msra.mxu0 %v8018_v62 }
  0x4b   : > { %6150 = vmatprep.subr.bf16.mxu1 %v8008_v29  ;;  %v605_v29 = vld [vmem:[%s533_s28] sm:$0xf]  ;;  %6278 = vmatprep.subr.bf16.mxu0 %v8019_v16  ;;  %v8024_v16 = vld [vmem:[%s10225_s3 + $0x1e8] sm:$0xff]  }
  0x4c   : > { %v932_v46 = vrot.slane %v10235_v13, 1  ;;  %v626_v13 = vmul.bf16 0.0, %v605_v29  ;;  %v8706_v29 = vsel %vm8381_vm4, %v931_v10, 0  ;;  %v803_v10 = vrot.slane %v801_v34, 7 }
  0x4e   : > { %6151 = vmatpush3.bf16.msra.mxu1 %v8009_v35  ;;  %v606_v35 = vld [vmem:[%s533_s28 + $0x4] sm:$0xf]  ;;  %v933_v11 = vor.u32 %v932_v46, %v10238_v3  ;;  %v850_v46 = vshrl.u32 %v8666_v19, 16  ;;  %v934_v3 = vrot.slane %v10239_v9, 1  ;;  %6279 = vmatpush3.bf16.msra.mxu0 %v8020_v59  ;;  %v806_v62 = vor.u32 %v804_v30, %v803_v10  ;;  %v8025_v30 = vld [vmem:[%s10225_s3 + $0x1a8] sm:$0xff]   ;;  %v8026_v59 = vld [vmem:[%s10225_s3 + $0x1f0] sm:$0xff]   ;;  %s9759_s28 = scalar_lea.vmem %s10233_s11, %s10353_s17 }
  0x4f   : > { %6720 = vmatprep.subr.bf16.mxu1 %v8631_v49  ;;  %v627_v25 = vmul.bf16 0.0, %v606_v35  ;;  %6280 = vmatprep.subr.bf16.mxu0 %v8022_v24  ;;  %v8027_v24 = vld [vmem:[%s10225_s3 + $0x1b0] sm:$0xff]  }
  0x50   : > { %1351 = vmatmul.mubr.bf16.gmra.mrb[16].mxu0 %v8612_v36  ;;  %6705 = vmatmul.mubr.bf16.gmra.mrb[16].mxu1 %v8616_v7  ;;  %v8715_v6 = vsel %vm8381_vm4, %v933_v11, 0  ;;  %v935_v34 = vor.u32 %v934_v3, %v850_v46  ;;  %v8023_v11 = vld [vmem:[%s10225_s3 + $0x1a0] sm:$0xff]  }
  0x51   : > { %1358 = vmatprep.mubr.bf16.mxu0 %v8439_v61  ;;  %6708 = vmatprep.mubr.bf16.mxu1 %v8620_v37  ;;  %v5614_v35 = vcombine.low %v626_v13, %v627_v25  ;;  %v799_v25 = vor.u32 %v797_v15, %v796_v48  ;;  %v8754_v48 = vsel %vm8389_vm5, 0, %v806_v62 }
  0x52   : > { %v8747_v3 = vsel %vm8381_vm4, %v935_v34, 0  ;;  %6281 = vmatpush3.bf16.msra.mxu0 %v8023_v11  ;;  %v8028_v34 = vld [vmem:[%s10225_s3 + $0x1f8] sm:$0xff]  }
  0x53   : > { %v738_v13 = vshrl.u32 %v5614_v35, 16  ;;  %v741_v9 = vshll.u32 %v5614_v35, 16  ;;  %v8743_v15 = vsel %vm8389_vm5, 0, %v799_v25  ;;  %6282 = vmatprep.subr.bf16.mxu0 %v8024_v16 }
  0x55   : > { %v740_v4 = vrot.slane %v738_v13, 7  ;;  %v902_v25 = vrot.slane %v741_v9, 1 }
  0x56   : > { %6283 = vmatpush3.bf16.msra.mxu0 %v8025_v30 }
  0x57   : > { %v743_v10 = vor.u32 %v741_v9, %v740_v4  ;;  %v8768_v11 = vor.u32 %v902_v25, %v738_v13  ;;  %6284 = vmatprep.subr.bf16.mxu0 %v8026_v59  ;;  %v810_v4 = vrot.slane %v808_v52, 7  ;;  %v8013_v9 = vld [vmem:[%s10225_s3 + $0x88] sm:$0xff]   ;;  %v8016_v13 = vld [vmem:[%s10225_s3 + $0x90] sm:$0xff]  }
  0x58   : > { %1359 = vmatmul.mubr.bf16.gmra.mrb[20].mxu0 %v8637_v54  ;;  %6709 = vmatmul.mubr.bf16.gmra.mrb[20].mxu1 %v8660_v14  ;;  %v8031_v59 = vld [vmem:[%s10225_s3 + $0xa8] sm:$0xff]  }
  0x59   : > { %1366 = vmatprep.mubr.bf16.mxu0 %v8463_v5  ;;  %6712 = vmatprep.mubr.bf16.mxu1 %v8670_v21  ;;  %v884_v62 = vsel %vm8389_vm5, 0, %v743_v10  ;;  %v813_v52 = vor.u32 %v811_v44, %v810_v4  ;;  %v8021_v44 = vld [vmem:[%s10225_s3 + $0x98] sm:$0xff]   ;;  %v8843_v4 = vld [vmem:[%s10225_s3 + $0x200] sm:$0xff]  }
  0x5a   : > { %6285 = vmatpush3.bf16.msra.mxu0 %v8027_v24  ;;  %v10288_v24 = vshrl.u32 %v8562_v58, 16 }
  0x5b   : > { %6286 = vmatprep.subr.bf16.mxu0 %v8028_v34  ;;  %v8791_v16 = vsel %vm8389_vm5, 0, %v813_v52  ;;  %v8033_v34 = vld [vmem:[%s10225_s3 + $0xb8] sm:$0xff]  }
  0x5c   : > { %v831_v25 = vrot.slane %v10288_v24, 7  ;;  %v10294_v24 = vshll.u32 %v8666_v19, 16 }
  0x60   : > { %1367 = vmatmul.mubr.bf16.gmra.mrb[24].mxu0 %v8699_v57  ;;  %6713 = vmatmul.mubr.bf16.gmra.mrb[24].mxu1 %v8706_v29 }
  0x61   : > { %1374 = vmatprep.mubr.bf16.mxu0 %v8470_v8  ;;  %6716 = vmatprep.mubr.bf16.mxu1 %v8715_v6 }
  0x68   : > { %1375 = vmatmul.mubr.bf16.gmra.mrb[28].mxu0 %v8743_v15  ;;  %6717 = vmatmul.mubr.bf16.gmra.mrb[28].mxu1 %v8747_v3 }
  0x69   : > { %1382 = vmatprep.mubr.bf16.mxu0 %v8502_v22  ;;  %1784 = vmatprep.mubr.bf16.mxu1 %v5614_v35  ;;  %v8029_v35 = vld [vmem:[%s10225_s3 + $0x1b8] sm:$0xff]  }
  0x6a   : > { %6287 = vmatpush3.bf16.msra.mxu0 %v8029_v35  ;;  %v10290_v35 = vshrl.u32 %v8597_v20, 16 }
  0x6c   : > { %v838_v52 = vrot.slane %v10290_v35, 7 }
  0x70   : > { %1383 = vmatmul.mubr.bf16.gmra.mrb[32].mxu0 %v8754_v48  ;;  %1785 = vmatmul.mubr.bf16.vlgmr.msra.gmra.mrb[32].mxu1 %v884_v62 }
  0x71   : > { %6721 = vmatpush3.bf16.msra.mxu1 %v8631_v49  ;;  %1390 = vmatprep.mubr.bf16.mxu0 %v8516_v32  ;;  %v817_v49 = vrot.slane %v815_v56, 7  ;;  %v8030_v56 = vld [vmem:[%s10225_s3 + $0xa0] sm:$0xff]  }
  0x72   : > { %1792 = vmatprep.mubr.bf16.mxu1 %v8373_v23  ;;  %6722 = vmatprep.subr.bf16.mxu1 %v8013_v9 }
  0x73   : > { %v820_v23 = vor.u32 %v818_v47, %v817_v49 }
  0x75   : > { %6723 = vmatpush3.bf16.msra.mxu1 %v8013_v9  ;;  %v8809_v30 = vsel %vm8389_vm5, 0, %v820_v23  ;;  %v10292_v23 = vshrl.u32 %v8623_v43, 16 }
  0x76   : > { %6724 = vmatprep.subr.bf16.mxu1 %v8016_v13 }
  0x78   : > { %1391 = vmatmul.mubr.bf16.gmra.mrb[36].mxu0 %v8791_v16  ;;  %1793 = vmatmul.mubr.bf16.gmra.mrb[36].mxu1 %v8410_v42  ;;  %v824_v42 = vrot.slane %v822_v17, 7  ;;  %v8032_v17 = vld [vmem:[%s10225_s3 + $0xb0] sm:$0xff]  }
  0x79   : > { %1398 = vmatprep.mubr.bf16.mxu0 %v8529_v39  ;;  %1800 = vmatprep.mubr.bf16.mxu1 %v8379_v26 }
  0x7a   : > { %6725 = vmatpush3.bf16.msra.mxu1 %v8016_v13  ;;  %v827_v47 = vor.u32 %v825_v63, %v824_v42  ;;  %v10289_v63 = vshll.u32 %v8562_v58, 16  ;;  %v10291_v13 = vshll.u32 %v8597_v20, 16  ;;  %v10293_v42 = vshll.u32 %v8623_v43, 16 }
  0x7b   : > { %6726 = vmatprep.subr.bf16.mxu1 %v8021_v44 }
  0x7c   : > { %v8827_v10 = vsel %vm8389_vm5, 0, %v827_v47  ;;  %v834_v62 = vor.u32 %v10289_v63, %v831_v25  ;;  %v841_v49 = vor.u32 %v10291_v13, %v838_v52 }
  0x7e   : > { %6727 = vmatpush3.bf16.msra.mxu1 %v8021_v44  ;;  %v8847_v9 = vsel %vm8389_vm5, 0, %v834_v62  ;;  %v8860_v44 = vsel %vm8389_vm5, 0, %v841_v49 }
  0x7f   : > { %6728 = vmatprep.subr.bf16.mxu1 %v8030_v56 }
  0x80   : > { %1399 = vmatmul.mubr.bf16.gmra.mrb[40].mxu0 %v8809_v30  ;;  %1801 = vmatmul.mubr.bf16.gmra.mrb[40].mxu1 %v8452_v1 }
  0x81   : > { %1406 = vmatprep.mubr.bf16.mxu0 %v8552_v53  ;;  %1808 = vmatprep.mubr.bf16.mxu1 %v8399_v38 }
  0x82   : > { %6729 = vmatpush3.bf16.msra.mxu1 %v8030_v56  ;;  %v845_v56 = vrot.slane %v10292_v23, 7 }
  0x83   : > { %6730 = vmatprep.subr.bf16.mxu1 %v8031_v59 }
  0x86   : > { %6731 = vmatpush3.bf16.msra.mxu1 %v8031_v59  ;;  %v848_v59 = vor.u32 %v10293_v42, %v845_v56 }
  0x87   : > { %6732 = vmatprep.subr.bf16.mxu1 %v8032_v17 }
  0x88   : > { %1407 = vmatmul.mubr.bf16.gmra.mrb[44].mxu0 %v8827_v10  ;;  %1809 = vmatmul.mubr.bf16.gmra.mrb[44].mxu1 %v8494_v18  ;;  %v8872_v47 = vsel %vm8389_vm5, 0, %v848_v59 }
  0x89   : > { %1414 = vmatprep.mubr.bf16.mxu0 %v8562_v58  ;;  %1816 = vmatprep.mubr.bf16.mxu1 %v8402_v40 }
  0x8a   : > { %6733 = vmatpush3.bf16.msra.mxu1 %v8032_v17  ;;  %v852_v17 = vrot.slane %v850_v46, 7  ;;  %v608_v46 = vld [vmem:[%s550_s21 + $0x4] sm:$0xf] }
  0x8b   : > { %6734 = vmatprep.subr.bf16.mxu1 %v8033_v34 }
  0x8c   : > { %v855_v25 = vor.u32 %v10294_v24, %v852_v17 }
  0x8e   : > { %6735 = vmatpush3.bf16.msra.mxu1 %v8033_v34  ;;  %v8884_v34 = vsel %vm8389_vm5, 0, %v855_v25 }
  0x8f   : > { %6768 = vmatprep.subr.bf16.mxu1 %v8843_v4 }
  0x90   : > { %1415 = vmatmul.mubr.bf16.gmra.mrb[48].mxu0 %v8847_v9  ;;  %1817 = vmatmul.mubr.bf16.gmra.mrb[48].mxu1 %v8540_v45 }
  0x91   : > { %1422 = vmatprep.mubr.bf16.mxu0 %v8597_v20  ;;  %1824 = vmatprep.mubr.bf16.mxu1 %v8428_v51 }
  0x98   : > { %1423 = vmatmul.mubr.bf16.gmra.mrb[52].mxu0 %v8860_v44  ;;  %1825 = vmatmul.mubr.bf16.gmra.mrb[52].mxu1 %v8612_v36 }
  0x99   : > { %1430 = vmatprep.mubr.bf16.mxu0 %v8623_v43  ;;  %1832 = vmatprep.mubr.bf16.mxu1 %v8439_v61 }
  0xa0   : > { %1431 = vmatmul.mubr.bf16.gmra.mrb[56].mxu0 %v8872_v47  ;;  %1833 = vmatmul.mubr.bf16.gmra.mrb[56].mxu1 %v8637_v54 }
  0xa1   : > { %1438 = vmatprep.mubr.bf16.mxu0 %v8666_v19  ;;  %1840 = vmatprep.mubr.bf16.mxu1 %v8463_v5 }
  0xa8   : > { %1439 = vmatmul.mubr.bf16.gmra.mrb[60].mxu0 %v8884_v34  ;;  %1841 = vmatmul.mubr.bf16.gmra.mrb[60].mxu1 %v8699_v57 }
  0xa9   : > { %1848 = vmatprep.mubr.bf16.mxu1 %v8470_v8  ;;  %2250 = vmatprep.mubr.bf16.mxu0 %v8379_v26  ;;  %v959_v26 = vsel %vm8381_vm4, %v8768_v11, 0  ;;  %v646_v11 = vmul.bf16 0.0, %v608_v46 }
  0xb0   : > { %1849 = vmatmul.mubr.bf16.gmra.mrb[64].mxu1 %v8743_v15  ;;  %2251 = vmatmul.mubr.bf16.vlgmr.msra.gmra.mrb[64].mxu0 %v8452_v1  ;;  %v8040_v1 = vld [vmem:[%s10225_s3 + $0x230] sm:$0xff]  }
  0xb1   : > { %1856 = vmatprep.mubr.bf16.mxu1 %v8502_v22  ;;  %2258 = vmatprep.mubr.bf16.mxu0 %v8399_v38  ;;  %v8035_v38 = vld [vmem:[%s10225_s3 + $0x208] sm:$0xff]  }
  0xb8   : > { %1857 = vmatmul.mubr.bf16.gmra.mrb[68].mxu1 %v8754_v48  ;;  %2259 = vmatmul.mubr.bf16.gmra.mrb[68].mxu0 %v8494_v18 }
  0xb9   : > { %1864 = vmatprep.mubr.bf16.mxu1 %v8516_v32  ;;  %2266 = vmatprep.mubr.bf16.mxu0 %v8402_v40  ;;  %v8036_v40 = vld [vmem:[%s10225_s3 + $0x210] sm:$0xff]  }
  0xc0   : > { %1865 = vmatmul.mubr.bf16.gmra.mrb[72].mxu1 %v8791_v16  ;;  %2267 = vmatmul.mubr.bf16.gmra.mrb[72].mxu0 %v8540_v45 }
  0xc1   : > { %1872 = vmatprep.mubr.bf16.mxu1 %v8529_v39  ;;  %2274 = vmatprep.mubr.bf16.mxu0 %v8428_v51  ;;  %v8037_v51 = vld [vmem:[%s10225_s3 + $0x218] sm:$0xff]  }
  0xc8   : > { %1873 = vmatmul.mubr.bf16.gmra.mrb[76].mxu1 %v8809_v30  ;;  %2275 = vmatmul.mubr.bf16.gmra.mrb[76].mxu0 %v8612_v36 }
  0xc9   : > { %1880 = vmatprep.mubr.bf16.mxu1 %v8552_v53  ;;  %2282 = vmatprep.mubr.bf16.mxu0 %v8439_v61  ;;  %v8039_v61 = vld [vmem:[%s10225_s3 + $0x228] sm:$0xff]  }
  0xd0   : > { %1881 = vmatmul.mubr.bf16.gmra.mrb[80].mxu1 %v8827_v10  ;;  %2283 = vmatmul.mubr.bf16.gmra.mrb[80].mxu0 %v8637_v54  ;;  %v607_v54 = vld [vmem:[%s550_s21] sm:$0xf] }
  0xd1   : > { %1888 = vmatprep.mubr.bf16.mxu1 %v8562_v58  ;;  %2290 = vmatprep.mubr.bf16.mxu0 %v8463_v5 }
  0xd8   : > { %1889 = vmatmul.mubr.bf16.gmra.mrb[84].mxu1 %v8847_v9  ;;  %2291 = vmatmul.mubr.bf16.gmra.mrb[84].mxu0 %v8699_v57 }
  0xd9   : > { %1896 = vmatprep.mubr.bf16.mxu1 %v8597_v20  ;;  %2298 = vmatprep.mubr.bf16.mxu0 %v8470_v8 }
  0xe0   : > { %1897 = vmatmul.mubr.bf16.gmra.mrb[88].mxu1 %v8860_v44  ;;  %2299 = vmatmul.mubr.bf16.gmra.mrb[88].mxu0 %v8743_v15 }
  0xe1   : > { %1904 = vmatprep.mubr.bf16.mxu1 %v8623_v43  ;;  %2306 = vmatprep.mubr.bf16.mxu0 %v8502_v22 }
  0xe8   : > { %1905 = vmatmul.mubr.bf16.gmra.mrb[92].mxu1 %v8872_v47  ;;  %2307 = vmatmul.mubr.bf16.gmra.mrb[92].mxu0 %v8754_v48 }
  0xe9   : > { %6736 = vmatprep.mubr.bf16.mxu1 %v959_v26  ;;  %2314 = vmatprep.mubr.bf16.mxu0 %v8516_v32 }
  0xf0   : > { %6737 = vmatmul.mubr.bf16.vlgmr.msra.gmra.mrb[0].mxu1 %v8406_v41  ;;  %2315 = vmatmul.mubr.bf16.gmra.mrb[96].mxu0 %v8791_v16  ;;  %v8038_v41 = vld [vmem:[%s10225_s3 + $0x220] sm:$0xff]  }
  0xf1   : > { %6769 = vmatpush3.bf16.msra.mxu1 %v8843_v4  ;;  %6740 = vmatprep.mubr.bf16.mxu1 %v8425_v50 }
  0xf2   : > { %2322 = vmatprep.mubr.bf16.mxu0 %v8529_v39  ;;  %6770 = vmatprep.subr.bf16.mxu1 %v8035_v38  ;;  %v8041_v39 = vld [vmem:[%s10225_s3 + $0x238] sm:$0xff]  }
  0xf5   : > { %6771 = vmatpush3.bf16.msra.mxu1 %v8035_v38 }
  0xf6   : > { %6772 = vmatprep.subr.bf16.mxu1 %v8036_v40 }
  0xf8   : > { %6741 = vmatmul.mubr.bf16.gmra.mrb[4].mxu1 %v8448_v0  ;;  %2323 = vmatmul.mubr.bf16.gmra.mrb[100].mxu0 %v8809_v30 }
  0xf9   : > { %6744 = vmatprep.mubr.bf16.mxu1 %v8456_v2  ;;  %2330 = vmatprep.mubr.bf16.mxu0 %v8552_v53 }
  0xfa   : > { %6773 = vmatpush3.bf16.msra.mxu1 %v8036_v40 }
  0xfb   : > { %6774 = vmatprep.subr.bf16.mxu1 %v8037_v51 }
  0xfe   : > { %6775 = vmatpush3.bf16.msra.mxu1 %v8037_v51 }
  0xff   : > { %6776 = vmatprep.subr.bf16.mxu1 %v8038_v41 }
 0x100   : > { %6745 = vmatmul.mubr.bf16.gmra.mrb[8].mxu1 %v8476_v12  ;;  %2331 = vmatmul.mubr.bf16.gmra.mrb[104].mxu0 %v8827_v10 }
 0x101   : > { %6748 = vmatprep.mubr.bf16.mxu1 %v8510_v28  ;;  %2338 = vmatprep.mubr.bf16.mxu0 %v8562_v58 }
 0x102   : > { %6777 = vmatpush3.bf16.msra.mxu1 %v8038_v41 }
 0x103   : > { %6778 = vmatprep.subr.bf16.mxu1 %v8039_v61  ;;  %v6016_v5 = vpop.f32.mrb[0].mxu0 }
 0x104   : > { %v6017_v8 = vpop.f32.mrb[1].mxu0 }
 0x105   : > { %v8955_v18 = vadd.f32 %v6017_v8, %v6016_v5  ;;  %v6019_v22 = vpop.f32.mrb[2].mxu0 }
 0x106   : > { %6779 = vmatpush3.bf16.msra.mxu1 %v8039_v61  ;;  %v6020_v32 = vpop.f32.mrb[3].mxu0 }
 0x107   : > { %6780 = vmatprep.subr.bf16.mxu1 %v8040_v1  ;;  %v8960_v45 = vadd.f32 %v6020_v32, %v6019_v22 }
 0x108   : > { %6749 = vmatmul.mubr.bf16.gmra.mrb[12].mxu1 %v8520_v33  ;;  %2339 = vmatmul.mubr.bf16.gmra.mrb[108].mxu0 %v8847_v9 }
 0x109   : > { %6752 = vmatprep.mubr.bf16.mxu1 %v8559_v55  ;;  %2346 = vmatprep.mubr.bf16.mxu0 %v8597_v20  ;;  %v645_v20 = vmul.bf16 0.0, %v607_v54 }
 0x10a   : > { %6781 = vmatpush3.bf16.msra.mxu1 %v8040_v1 }
 0x10b   : > { %6782 = vmatprep.subr.bf16.mxu1 %v8041_v39  ;;  %v6022_v53 = vpop.f32.mrb[4].mxu0  ;;  %v8978_v10 = vcombine.low %v645_v20, %v646_v11 }
 0x10c   : > { %v6023_v58 = vpop.f32.mrb[5].mxu0 }
 0x10d   : > { %v8970_v57 = vadd.f32 %v6023_v58, %v6022_v53  ;;  %v6025_v36 = vpop.f32.mrb[6].mxu0  ;;  %v860_v49 = vshll.u32 %v8978_v10, 16 }
 0x10e   : > { %6783 = vmatpush3.bf16.msra.mxu1 %v8041_v39  ;;  %v6026_v15 = vpop.f32.mrb[7].mxu0 }
 0x10f   : > { %v8972_v48 = vadd.f32 %v6026_v15, %v6025_v36 }
 0x110   : > { %6753 = vmatmul.mubr.bf16.gmra.mrb[16].mxu1 %v8569_v60  ;;  %2347 = vmatmul.mubr.bf16.gmra.mrb[112].mxu0 %v8860_v44 }
 0x111   : > { %6756 = vmatprep.mubr.bf16.mxu1 %v8616_v7  ;;  %2354 = vmatprep.mubr.bf16.mxu0 %v8623_v43  ;;  %v857_v43 = vshrl.u32 %v8978_v10, 16 }
 0x113   : > { %v6028_v16 = vpop.f32.mrb[8].mxu0  ;;  %v859_v13 = vrot.slane %v857_v43, 7 }
 0x114   : > { %v6029_v30 = vpop.f32.mrb[9].mxu0 }
 0x115   : > { %v8980_v63 = vadd.f32 %v6029_v30, %v6028_v16  ;;  %v6031_v62 = vpop.f32.mrb[10].mxu0 }
 0x116   : > { %v6032_v4 = vpop.f32.mrb[11].mxu0 }
 0x117   : > { %v8982_v9 = vadd.f32 %v6032_v4, %v6031_v62 }
 0x118   : > { %6757 = vmatmul.mubr.bf16.gmra.mrb[20].mxu1 %v8620_v37  ;;  %2355 = vmatmul.mubr.bf16.gmra.mrb[116].mxu0 %v8872_v47 }
 0x119   : > { %6760 = vmatprep.mubr.bf16.mxu1 %v8660_v14  ;;  %2362 = vmatprep.mubr.bf16.mxu0 %v8666_v19  ;;  %v862_v19 = vor.u32 %v860_v49, %v859_v13 }
 0x11b   : > { %v6034_v35 = vpop.f32.mrb[12].mxu0  ;;  %v901_v17 = vsel %vm8389_vm5, 0, %v862_v19 }
 0x11c   : > { %v6035_v52 = vpop.f32.mrb[13].mxu0 }
 0x11d   : > { %v8992_v44 = vadd.f32 %v6035_v52, %v6034_v35  ;;  %v6037_v23 = vpop.f32.mrb[14].mxu0 }
 0x11e   : > { %v6038_v56 = vpop.f32.mrb[15].mxu0 }
 0x11f   : > { %v8994_v42 = vadd.f32 %v6038_v56, %v6037_v23 }
 0x120   : > { %6761 = vmatmul.mubr.bf16.gmra.mrb[24].mxu1 %v8670_v21  ;;  %2363 = vmatmul.mubr.bf16.gmra.mrb[120].mxu0 %v8884_v34 }
 0x121   : > { %6764 = vmatprep.mubr.bf16.mxu1 %v8706_v29  ;;  %2370 = vmatprep.mubr.bf16.mxu0 %v8978_v10 }
 0x123   : > { %v6040_v59 = vpop.f32.mrb[16].mxu0 }
 0x124   : > { %v6041_v47 = vpop.f32.mrb[17].mxu0 }
 0x125   : > { %v9004_v24 = vadd.f32 %v6041_v47, %v6040_v59  ;;  %v6043_v25 = vpop.f32.mrb[18].mxu0 }
 0x126   : > { %v6044_v26 = vpop.f32.mrb[19].mxu0 }
 0x127   : > { %v9006_v38 = vadd.f32 %v6044_v26, %v6043_v25 }
 0x128   : > { %6765 = vmatmul.mubr.bf16.gmra.mrb[28].mxu1 %v8715_v6  ;;  %2371 = vmatmul.mubr.bf16.gmra.mrb[124].mxu0 %v901_v17 }
 0x129   : > { %6784 = vmatprep.mubr.bf16.mxu1 %v8425_v50 }
 0x12b   : > { %v6046_v34 = vpop.f32.mrb[20].mxu0 }
 0x12c   : > { %v6047_v40 = vpop.f32.mrb[21].mxu0 }
 0x12d   : > { %v9010_v51 = vadd.f32 %v6047_v40, %v6046_v34  ;;  %v6049_v41 = vpop.f32.mrb[22].mxu0 }
 0x12e   : > { %v6050_v61 = vpop.f32.mrb[23].mxu0 }
 0x12f   : > { %v9012_v1 = vadd.f32 %v6050_v61, %v6049_v41 }
 0x130   : > { %6785 = vmatmul.mubr.bf16.vlgmr.msra.gmra.mrb[0].mxu1 %v8448_v0 }
 0x131   : > { %6788 = vmatprep.mubr.bf16.mxu1 %v8456_v2 }
 0x133   : > { %v6052_v31 = vpop.f32.mrb[24].mxu0 }
 0x134   : > { %v6053_v5 = vpop.f32.mrb[25].mxu0 }
 0x135   : > { %v9016_v8 = vadd.f32 %v6053_v5, %v6052_v31  ;;  %v6055_v22 = vpop.f32.mrb[26].mxu0 }
 0x136   : > { %v6056_v32 = vpop.f32.mrb[27].mxu0 }
 0x137   : > { %v9018_v39 = vadd.f32 %v6056_v32, %v6055_v22 }
 0x138   : > { %6789 = vmatmul.mubr.bf16.gmra.mrb[4].mxu1 %v8476_v12 }
 0x139   : > { %6792 = vmatprep.mubr.bf16.mxu1 %v8510_v28 }
 0x13b   : > { %v6058_v50 = vpop.f32.mrb[28].mxu0 }
 0x13c   : > { %v6059_v53 = vpop.f32.mrb[29].mxu0 }
 0x13d   : > { %v9022_v58 = vadd.f32 %v6059_v53, %v6058_v50  ;;  %v6061_v36 = vpop.f32.mrb[30].mxu0 }
 0x13e   : > { %v6062_v0 = vpop.f32.mrb[31].mxu0 }
 0x13f   : > { %v9024_v54 = vadd.f32 %v6062_v0, %v6061_v36 }
 0x140   : > { %6793 = vmatmul.mubr.bf16.gmra.mrb[8].mxu1 %v8520_v33 }
 0x141   : > { %6796 = vmatprep.mubr.bf16.mxu1 %v8559_v55 }
 0x143   : > { %v6152_v2 = vpop.f32.mrb[32].mxu1  ;;  %v6064_v46 = vpop.f32.mrb[32].mxu0 }
 0x144   : > { %v6153_v15 = vpop.f32.mrb[33].mxu1  ;;  %v6065_v20 = vpop.f32.mrb[33].mxu0 }
 0x145   : > { %v6154_v11 = vadd.f32 %v6153_v15, %v6152_v2  ;;  %v6155_v12 = vpop.f32.mrb[34].mxu1  ;;  %v9028_v16 = vadd.f32 %v6065_v20, %v6064_v46  ;;  %v6067_v28 = vpop.f32.mrb[34].mxu0 }
 0x146   : > { %v6156_v30 = vpop.f32.mrb[35].mxu1  ;;  %v6068_v62 = vpop.f32.mrb[35].mxu0 }
 0x147   : > { %v9031_v4 = vadd.f32 %v6154_v11, %v8955_v18  ;;  %v6157_v35 = vadd.f32 %v6156_v30, %v6155_v12  ;;  %v9033_v52 = vadd.f32 %v6068_v62, %v6067_v28 }
 0x148   : > { %6797 = vmatmul.mubr.bf16.gmra.mrb[12].mxu1 %v8569_v60 }
 0x149   : > { %v9037_v33 = vadd.f32 %v6157_v35, %v8960_v45  ;;  %6800 = vmatprep.mubr.bf16.mxu1 %v8616_v7 }
 0x14b   : > { %v6158_v55 = vpop.f32.mrb[36].mxu1  ;;  %v6070_v13 = vpop.f32.mrb[36].mxu0 }
 0x14c   : > { %v6159_v23 = vpop.f32.mrb[37].mxu1  ;;  %v6071_v56 = vpop.f32.mrb[37].mxu0 }
 0x14d   : > { %v6160_v19 = vadd.f32 %v6159_v23, %v6158_v55  ;;  %v6161_v59 = vpop.f32.mrb[38].mxu1  ;;  %v9040_v47 = vadd.f32 %v6071_v56, %v6070_v13  ;;  %v6073_v18 = vpop.f32.mrb[38].mxu0 }
 0x14e   : > { %v6162_v17 = vpop.f32.mrb[39].mxu1  ;;  %v6074_v25 = vpop.f32.mrb[39].mxu0 }
 0x14f   : > { %v9043_v26 = vadd.f32 %v6160_v19, %v8970_v57  ;;  %v6163_v60 = vadd.f32 %v6162_v17, %v6161_v59  ;;  %v9045_v34 = vadd.f32 %v6074_v25, %v6073_v18 }
 0x150   : > { %6801 = vmatmul.mubr.bf16.gmra.mrb[16].mxu1 %v8620_v37 }
 0x151   : > { %v9049_v7 = vadd.f32 %v6163_v60, %v8972_v48  ;;  %6804 = vmatprep.mubr.bf16.mxu1 %v8660_v14 }
 0x153   : > { %v6164_v45 = vpop.f32.mrb[40].mxu1  ;;  %v6076_v40 = vpop.f32.mrb[40].mxu0 }
 0x154   : > { %v6165_v41 = vpop.f32.mrb[41].mxu1  ;;  %v6077_v61 = vpop.f32.mrb[41].mxu0 }
 0x155   : > { %v6166_v31 = vadd.f32 %v6165_v41, %v6164_v45  ;;  %v6167_v5 = vpop.f32.mrb[42].mxu1  ;;  %v9052_v22 = vadd.f32 %v6077_v61, %v6076_v40  ;;  %v6079_v57 = vpop.f32.mrb[42].mxu0 }
 0x156   : > { %v6168_v32 = vpop.f32.mrb[43].mxu1  ;;  %v6080_v50 = vpop.f32.mrb[43].mxu0 }
 0x157   : > { %v9055_v53 = vadd.f32 %v6166_v31, %v8980_v63  ;;  %v6169_v37 = vadd.f32 %v6168_v32, %v6167_v5  ;;  %v9057_v36 = vadd.f32 %v6080_v50, %v6079_v57  ;;  %v936_v63 = vrot.slane %v860_v49, 1 }
 0x158   : > { %6805 = vmatmul.mubr.bf16.gmra.mrb[20].mxu1 %v8670_v21 }
 0x159   : > { %v9061_v14 = vadd.f32 %v6169_v37, %v8982_v9  ;;  %6808 = vmatprep.mubr.bf16.mxu1 %v8706_v29  ;;  %v937_v49 = vor.u32 %v936_v63, %v857_v43 }
 0x15b   : > { %v6170_v48 = vpop.f32.mrb[44].mxu1  ;;  %v6082_v0 = vpop.f32.mrb[44].mxu0  ;;  %v976_v19 = vsel %vm8381_vm4, %v937_v49, 0 }
 0x15c   : > { %v6171_v2 = vpop.f32.mrb[45].mxu1  ;;  %v6083_v46 = vpop.f32.mrb[45].mxu0 }
 0x15d   : > { %v6172_v15 = vadd.f32 %v6171_v2, %v6170_v48  ;;  %v6173_v20 = vpop.f32.mrb[46].mxu1  ;;  %v9066_v11 = vadd.f32 %v6083_v46, %v6082_v0  ;;  %v6085_v12 = vpop.f32.mrb[46].mxu0 }
 0x15e   : > { %v6174_v28 = vpop.f32.mrb[47].mxu1  ;;  %v6086_v30 = vpop.f32.mrb[47].mxu0 }
 0x15f   : > { %v9069_v21 = vadd.f32 %v6172_v15, %v8992_v44  ;;  %v6175_v9 = vadd.f32 %v6174_v28, %v6173_v20  ;;  %v9071_v62 = vadd.f32 %v6086_v30, %v6085_v12 }
 0x160   : > { %6809 = vmatmul.mubr.bf16.gmra.mrb[24].mxu1 %v8715_v6 }
 0x161   : > { %v9075_v29 = vadd.f32 %v6175_v9, %v8994_v42  ;;  %6812 = vmatprep.mubr.bf16.mxu1 %v8747_v3 }
 0x163   : > { %v6176_v35 = vpop.f32.mrb[48].mxu1  ;;  %v6088_v55 = vpop.f32.mrb[48].mxu0 }
 0x164   : > { %v6177_v13 = vpop.f32.mrb[49].mxu1  ;;  %v6089_v23 = vpop.f32.mrb[49].mxu0 }
 0x165   : > { %v6178_v56 = vadd.f32 %v6177_v13, %v6176_v35  ;;  %v6179_v44 = vpop.f32.mrb[50].mxu1  ;;  %v9082_v59 = vadd.f32 %v6089_v23, %v6088_v55  ;;  %v6091_v6 = vpop.f32.mrb[50].mxu0 }
 0x166   : > { %v6180_v18 = vpop.f32.mrb[51].mxu1  ;;  %v6092_v42 = vpop.f32.mrb[51].mxu0 }
 0x167   : > { %v9085_v17 = vadd.f32 %v6178_v56, %v9004_v24  ;;  %v6181_v3 = vadd.f32 %v6180_v18, %v6179_v44  ;;  %v9087_v10 = vadd.f32 %v6092_v42, %v6091_v6 }
 0x168   : > { %6813 = vmatmul.mubr.bf16.gmra.mrb[28].mxu1 %v976_v19 }
 0x169   : > { %v9090_v43 = vadd.f32 %v6181_v3, %v9006_v38 }
 0x16b   : > { %v6182_v25 = vpop.f32.mrb[52].mxu1  ;;  %v6094_v60 = vpop.f32.mrb[52].mxu0 }
 0x16c   : > { %v6183_v45 = vpop.f32.mrb[53].mxu1  ;;  %v6095_v27 = vpop.f32.mrb[53].mxu0 }
 0x16d   : > { %v6184_v40 = vadd.f32 %v6183_v45, %v6182_v25  ;;  %v6185_v41 = vpop.f32.mrb[54].mxu1  ;;  %v9092_v61 = vadd.f32 %v6095_v27, %v6094_v60  ;;  %v6097_v31 = vpop.f32.mrb[54].mxu0 }
 0x16e   : > { %v6186_v5 = vpop.f32.mrb[55].mxu1  ;;  %v6098_v57 = vpop.f32.mrb[55].mxu0 }
 0x16f   : > { %v9095_v24 = vadd.f32 %v6184_v40, %v9010_v51  ;;  %v6187_v32 = vadd.f32 %v6186_v5, %v6185_v41  ;;  %v9097_v50 = vadd.f32 %v6098_v57, %v6097_v31 }
 0x171   : > { %v9100_v38 = vadd.f32 %v6187_v32, %v9012_v1 }
 0x173   : > { %v6188_v37 = vpop.f32.mrb[56].mxu1  ;;  %v6100_v48 = vpop.f32.mrb[56].mxu0 }
 0x174   : > { %v6189_v0 = vpop.f32.mrb[57].mxu1  ;;  %v6101_v2 = vpop.f32.mrb[57].mxu0 }
 0x175   : > { %v6190_v46 = vadd.f32 %v6189_v0, %v6188_v37  ;;  %v6191_v15 = vpop.f32.mrb[58].mxu1  ;;  %v9102_v20 = vadd.f32 %v6101_v2, %v6100_v48  ;;  %v6103_v63 = vpop.f32.mrb[58].mxu0 }
 0x176   : > { %v6192_v12 = vpop.f32.mrb[59].mxu1  ;;  %v6104_v28 = vpop.f32.mrb[59].mxu0 }
 0x177   : > { %v9105_v51 = vadd.f32 %v6190_v46, %v9016_v8  ;;  %v6193_v30 = vadd.f32 %v6192_v12, %v6191_v15  ;;  %v9107_v9 = vadd.f32 %v6104_v28, %v6103_v63 }
 0x179   : > { %v9110_v1 = vadd.f32 %v6193_v30, %v9018_v39 }
 0x17b   : > { %v6194_v49 = vpop.f32.mrb[60].mxu1  ;;  %v6106_v35 = vpop.f32.mrb[60].mxu0 }
 0x17c   : > { %v6195_v55 = vpop.f32.mrb[61].mxu1  ;;  %v6107_v13 = vpop.f32.mrb[61].mxu0 }
 0x17d   : > { %v6196_v23 = vadd.f32 %v6195_v55, %v6194_v49  ;;  %v6197_v56 = vpop.f32.mrb[62].mxu1  ;;  %v9112_v44 = vadd.f32 %v6107_v13, %v6106_v35  ;;  %v6109_v19 = vpop.f32.mrb[62].mxu0 }
 0x17e   : > { %v6198_v6 = vpop.f32.mrb[63].mxu1  ;;  %v6110_v18 = vpop.f32.mrb[63].mxu0 }
 0x17f   : > { %v9115_v8 = vadd.f32 %v6196_v23, %v9022_v58  ;;  %v6199_v42 = vadd.f32 %v6198_v6, %v6197_v56  ;;  %v9117_v3 = vadd.f32 %v6110_v18, %v6109_v19 }
 0x181   : > { %v9120_v39 = vadd.f32 %v6199_v42, %v9024_v54 }
 0x183   : > { %v6200_v25 = vpop.f32.mrb[64].mxu1  ;;  %v6288_v60 = vpop.f32.mrb[64].mxu0 }
 0x184   : > { %v6201_v45 = vpop.f32.mrb[65].mxu1  ;;  %v6289_v27 = vpop.f32.mrb[65].mxu0 }
 0x185   : > { %v6202_v40 = vadd.f32 %v6201_v45, %v6200_v25  ;;  %v6290_v41 = vadd.f32 %v6289_v27, %v6288_v60  ;;  %v6203_v31 = vpop.f32.mrb[66].mxu1  ;;  %v6291_v5 = vpop.f32.mrb[66].mxu0 }
 0x186   : > { %v6204_v57 = vpop.f32.mrb[67].mxu1  ;;  %v6292_v32 = vpop.f32.mrb[67].mxu0 }
 0x187   : > { %v9123_v37 = vadd.f32 %v6202_v40, %v9028_v16  ;;  %v6205_v58 = vadd.f32 %v6204_v57, %v6203_v31  ;;  %v6293_v48 = vadd.f32 %v6292_v32, %v6291_v5  ;;  %v9126_v0 = vadd.f32 %v9031_v4, %v6290_v41 }
 0x189   : > { %v9129_v54 = vadd.f32 %v6205_v58, %v9033_v52  ;;  %v9132_v2 = vadd.f32 %v9037_v33, %v6293_v48 }
 0x18b   : > { %v6206_v46 = vpop.f32.mrb[68].mxu1  ;;  %v6294_v15 = vpop.f32.mrb[68].mxu0 }
 0x18c   : > { %v6207_v63 = vpop.f32.mrb[69].mxu1  ;;  %v6295_v12 = vpop.f32.mrb[69].mxu0 }
 0x18d   : > { %v6208_v28 = vadd.f32 %v6207_v63, %v6206_v46  ;;  %v6296_v30 = vadd.f32 %v6295_v12, %v6294_v15  ;;  %v6209_v49 = vpop.f32.mrb[70].mxu1  ;;  %v6297_v16 = vpop.f32.mrb[70].mxu0 }
 0x18e   : > { %v6210_v35 = vpop.f32.mrb[71].mxu1  ;;  %v6298_v55 = vpop.f32.mrb[71].mxu0 }
 0x18f   : > { %v9135_v13 = vadd.f32 %v6208_v28, %v9040_v47  ;;  %v6211_v4 = vadd.f32 %v6210_v35, %v6209_v49  ;;  %v6299_v23 = vadd.f32 %v6298_v55, %v6297_v16  ;;  %v9138_v52 = vadd.f32 %v9043_v26, %v6296_v30 }
 0x191   : > { %v9141_v33 = vadd.f32 %v6211_v4, %v9045_v34  ;;  %v9144_v56 = vadd.f32 %v9049_v7, %v6299_v23 }
 0x193   : > { %v6212_v19 = vpop.f32.mrb[72].mxu1  ;;  %v6300_v6 = vpop.f32.mrb[72].mxu0 }
 0x194   : > { %v6213_v18 = vpop.f32.mrb[73].mxu1  ;;  %v6301_v42 = vpop.f32.mrb[73].mxu0 }
 0x195   : > { %v6214_v25 = vadd.f32 %v6213_v18, %v6212_v19  ;;  %v6302_v60 = vadd.f32 %v6301_v42, %v6300_v6  ;;  %v6215_v45 = vpop.f32.mrb[74].mxu1  ;;  %v6303_v47 = vpop.f32.mrb[74].mxu0  ;;  %v10257_v42 = vmov 0.0|0.0  }
 0x196   : > { %v6216_v27 = vpop.f32.mrb[75].mxu1  ;;  %v6304_v40 = vpop.f32.mrb[75].mxu0  ;;  %7368 = vmatprep.subr.bf16.mxu0 %v10257_v42  ;;  %7512 = vmatprep.subr.bf16.mxu1 %v10257_v42 }
 0x197   : > { %v9147_v41 = vadd.f32 %v6214_v25, %v9052_v22  ;;  %v6217_v26 = vadd.f32 %v6216_v27, %v6215_v45  ;;  %v6305_v31 = vadd.f32 %v6304_v40, %v6303_v47  ;;  %v9150_v34 = vadd.f32 %v9055_v53, %v6302_v60 }
 0x199   : > { %v9153_v7 = vadd.f32 %v6217_v26, %v9057_v36  ;;  %v9156_v5 = vadd.f32 %v9061_v14, %v6305_v31 }
 0x19b   : > { %v6218_v57 = vpop.f32.mrb[76].mxu1  ;;  %v6306_v32 = vpop.f32.mrb[76].mxu0 }
 0x19c   : > { %v6219_v58 = vpop.f32.mrb[77].mxu1  ;;  %v6307_v48 = vpop.f32.mrb[77].mxu0 }
 0x19d   : > { %v6220_v46 = vadd.f32 %v6219_v58, %v6218_v57  ;;  %v6308_v15 = vadd.f32 %v6307_v48, %v6306_v32  ;;  %v6221_v63 = vpop.f32.mrb[78].mxu1  ;;  %v6309_v22 = vpop.f32.mrb[78].mxu0 }
 0x19e   : > { %v6222_v12 = vpop.f32.mrb[79].mxu1  ;;  %v6310_v28 = vpop.f32.mrb[79].mxu0 }
 0x19f   : > { %v9159_v30 = vadd.f32 %v6220_v46, %v9066_v11  ;;  %v6223_v53 = vadd.f32 %v6222_v12, %v6221_v63  ;;  %v6311_v49 = vadd.f32 %v6310_v28, %v6309_v22  ;;  %v9162_v36 = vadd.f32 %v9069_v21, %v6308_v15  ;;  %v9174_v21 = vld [vmem:[%s10229_s7] sm:$0xff] }
 0x1a0   : > { %v10246_v60 = vand.u32 4294901760, %v9174_v21 }
 0x1a1   : > { %v9165_v14 = vadd.f32 %v6223_v53, %v9071_v62  ;;  %v9168_v16 = vadd.f32 %v9075_v29, %v6311_v49  ;;  %v9179_v62 = vld [vmem:[%s10229_s7 + $0x8] sm:$0xff] }
 0x1a2   : > { %v10245_v45 = vand.u32 4294901760, %v9179_v62 }
 0x1a3   : > { %v6224_v35 = vpop.f32.mrb[80].mxu1  ;;  %v6312_v55 = vpop.f32.mrb[80].mxu0 }
 0x1a4   : > { %v6225_v4 = vpop.f32.mrb[81].mxu1  ;;  %v6313_v23 = vpop.f32.mrb[81].mxu0  ;;  %v9194_v31 = vpack.c.bf16 %v10245_v45, %v10246_v60  ;;  %v9412_v45 = vld [vmem:[%s10226_s4] ss:$0 sm:$0xff] }
 0x1a5   : > { %v6226_v19 = vadd.f32 %v6225_v4, %v6224_v35  ;;  %v6314_v6 = vadd.f32 %v6313_v23, %v6312_v55  ;;  %v6227_v18 = vpop.f32.mrb[82].mxu1  ;;  %v6315_v11 = vpop.f32.mrb[82].mxu0 }
 0x1a6   : > { %v6228_v29 = vpop.f32.mrb[83].mxu1  ;;  %v6316_v25 = vpop.f32.mrb[83].mxu0  ;;  %10295 = vst [vmem:[#allocation2_spill] sm:$0xff] %v9194_v31  ;;  %7370 = vmatpush3.bf16.msra.mxu0 %v9194_v31  ;;  %7514 = vmatpush3.bf16.msra.mxu1 %v9194_v31 }
 0x1a7   : > { %v9185_v47 = vadd.f32 %v6226_v19, %v9082_v59  ;;  %v6229_v27 = vadd.f32 %v6228_v29, %v6227_v18  ;;  %v6317_v40 = vadd.f32 %v6316_v25, %v6315_v11  ;;  %v9188_v26 = vadd.f32 %v9085_v17, %v6314_v6  ;;  %7371 = vmatprep.subr.bf16.mxu0 %v10257_v42 }
 0x1a8   : > { %7515 = vmatprep.subr.bf16.mxu1 %v10257_v42 }
 0x1a9   : > { %v9197_v57 = vadd.f32 %v6229_v27, %v9087_v10  ;;  %v9200_v32 = vadd.f32 %v9090_v43, %v6317_v40 }
 0x1ab   : > { %v6230_v59 = vpop.f32.mrb[84].mxu1  ;;  %v6318_v58 = vpop.f32.mrb[84].mxu0 }
 0x1ac   : > { %v6231_v17 = vpop.f32.mrb[85].mxu1  ;;  %v6319_v48 = vpop.f32.mrb[85].mxu0 }
 0x1ad   : > { %v6232_v46 = vadd.f32 %v6231_v17, %v6230_v59  ;;  %v6320_v15 = vadd.f32 %v6319_v48, %v6318_v58  ;;  %v6233_v63 = vpop.f32.mrb[86].mxu1  ;;  %v6321_v10 = vpop.f32.mrb[86].mxu0  ;;  %v9232_v58 = vld [vmem:[%s10229_s7 + $0x18] sm:$0xff] }
 0x1ae   : > { %v6234_v22 = vpop.f32.mrb[87].mxu1  ;;  %v6322_v12 = vpop.f32.mrb[87].mxu0  ;;  %10297 = vst [vmem:[#allocation4_spill] sm:$0xff] %v9232_v58  ;;  %v10243_v48 = vand.u32 4294901760, %v9232_v58 }
 0x1af   : > { %v9207_v43 = vadd.f32 %v6232_v46, %v9092_v61  ;;  %v6235_v28 = vadd.f32 %v6234_v22, %v6233_v63  ;;  %v6323_v53 = vadd.f32 %v6322_v12, %v6321_v10  ;;  %v9210_v49 = vadd.f32 %v9095_v24, %v6320_v15 }
 0x1b1   : > { %v9213_v35 = vadd.f32 %v6235_v28, %v9097_v50  ;;  %v9216_v55 = vadd.f32 %v9100_v38, %v6323_v53  ;;  %v9227_v38 = vld [vmem:[%s10229_s7 + $0x10] sm:$0xff] }
 0x1b2   : > { %10296 = vst [vmem:[#allocation3_spill] sm:$0xff] %v9227_v38 }
 0x1b3   : > { %v6236_v4 = vpop.f32.mrb[88].mxu1  ;;  %v6324_v23 = vpop.f32.mrb[88].mxu0 }
 0x1b4   : > { %v6237_v19 = vpop.f32.mrb[89].mxu1  ;;  %v6325_v6 = vpop.f32.mrb[89].mxu0 }
 0x1b5   : > { %v6238_v18 = vadd.f32 %v6237_v19, %v6236_v4  ;;  %v6326_v11 = vadd.f32 %v6325_v6, %v6324_v23  ;;  %v6239_v29 = vpop.f32.mrb[90].mxu1  ;;  %v6327_v61 = vpop.f32.mrb[90].mxu0 }
 0x1b6   : > { %v6240_v25 = vpop.f32.mrb[91].mxu1  ;;  %v6328_v27 = vpop.f32.mrb[91].mxu0 }
 0x1b7   : > { %v9219_v40 = vadd.f32 %v6238_v18, %v9102_v20  ;;  %v6241_v24 = vadd.f32 %v6240_v25, %v6239_v29  ;;  %v6329_v59 = vadd.f32 %v6328_v27, %v6327_v61  ;;  %v9222_v50 = vadd.f32 %v9105_v51, %v6326_v11 }
 0x1b8   : > { %v10244_v20 = vand.u32 4294901760, %v9227_v38 }
 0x1b9   : > { %v9235_v17 = vadd.f32 %v6241_v24, %v9107_v9  ;;  %v9240_v51 = vadd.f32 %v9110_v1, %v6329_v59 }
 0x1ba   : > { %v9246_v63 = vpack.c.bf16 %v10243_v48, %v10244_v20 }
 0x1bb   : > { %v6242_v46 = vpop.f32.mrb[92].mxu1  ;;  %v6330_v15 = vpop.f32.mrb[92].mxu0 }
 0x1bc   : > { %10298 = vst [vmem:[#allocation5_spill] sm:$0xff] %v9246_v63  ;;  %v6243_v10 = vpop.f32.mrb[93].mxu1  ;;  %v6331_v22 = vpop.f32.mrb[93].mxu0  ;;  %7373 = vmatpush3.bf16.msra.mxu0 %v9246_v63  ;;  %7517 = vmatpush3.bf16.msra.mxu1 %v9246_v63 }
 0x1bd   : > { %v6244_v12 = vadd.f32 %v6243_v10, %v6242_v46  ;;  %v6332_v9 = vadd.f32 %v6331_v22, %v6330_v15  ;;  %v6245_v28 = vpop.f32.mrb[94].mxu1  ;;  %v6333_v53 = vpop.f32.mrb[94].mxu0  ;;  %7374 = vmatprep.subr.bf16.mxu0 %v10257_v42  ;;  %7518 = vmatprep.subr.bf16.mxu1 %v10257_v42 }
 0x1be   : > { %v6246_v1 = vpop.f32.mrb[95].mxu1  ;;  %v6334_v4 = vpop.f32.mrb[95].mxu0 }
 0x1bf   : > { %v9253_v23 = vadd.f32 %v6244_v12, %v9112_v44  ;;  %v6247_v19 = vadd.f32 %v6246_v1, %v6245_v28  ;;  %v6335_v6 = vadd.f32 %v6334_v4, %v6333_v53  ;;  %v9256_v18 = vadd.f32 %v9115_v8, %v6332_v9  ;;  %v9273_v8 = vld [vmem:[%s10229_s7 + $0x20] sm:$0xff] }
 0x1c0   : > { %10299 = vst [vmem:[#allocation6_spill] sm:$0xff] %v9273_v8  ;;  %v10242_v10 = vand.u32 4294901760, %v9273_v8 }
 0x1c1   : > { %v9259_v11 = vadd.f32 %v6247_v19, %v9117_v3  ;;  %v9262_v29 = vadd.f32 %v9120_v39, %v6335_v6  ;;  %v9278_v3 = vld [vmem:[%s10229_s7 + $0x28] sm:$0xff] }
 0x1c2   : > { %10300 = vst [vmem:[#allocation7_spill] sm:$0xff] %v9278_v3  ;;  %v10241_v22 = vand.u32 4294901760, %v9278_v3 }
 0x1c3   : > { %v6336_v61 = vpop.f32.mrb[96].mxu0 }
 0x1c4   : > { %v6337_v25 = vpop.f32.mrb[97].mxu0 }
 0x1c5   : > { %v6338_v27 = vadd.f32 %v6337_v25, %v6336_v61  ;;  %v6339_v24 = vpop.f32.mrb[98].mxu0 }
 0x1c6   : > { %v6340_v59 = vpop.f32.mrb[99].mxu0 }
 0x1c7   : > { %v6341_v46 = vadd.f32 %v6340_v59, %v6339_v24  ;;  %v9265_v44 = vadd.f32 %v9123_v37, %v6338_v27 }
 0x1c9   : > { %v9268_v15 = vadd.f32 %v9129_v54, %v6341_v46  ;;  %v9286_v54 = vpack.c.bf16 %v10241_v22, %v10242_v10 }
 0x1cb   : > { %v6342_v39 = vpop.f32.mrb[100].mxu0  ;;  %10301 = vst [vmem:[#allocation8_spill] sm:$0xff] %v9286_v54  ;;  %7376 = vmatpush3.bf16.msra.mxu0 %v9286_v54  ;;  %7520 = vmatpush3.bf16.msra.mxu1 %v9286_v54 }
 0x1cc   : > { %v6343_v37 = vpop.f32.mrb[101].mxu0  ;;  %7377 = vmatprep.subr.bf16.mxu0 %v10257_v42  ;;  %7521 = vmatprep.subr.bf16.mxu1 %v10257_v42 }
 0x1cd   : > { %v6344_v12 = vadd.f32 %v6343_v37, %v6342_v39  ;;  %v6345_v9 = vpop.f32.mrb[102].mxu0 }
 0x1ce   : > { %v6346_v28 = vpop.f32.mrb[103].mxu0 }
 0x1cf   : > { %v6347_v53 = vadd.f32 %v6346_v28, %v6345_v9  ;;  %v9289_v1 = vadd.f32 %v9135_v13, %v6344_v12 }
 0x1d1   : > { %v9296_v4 = vadd.f32 %v9141_v33, %v6347_v53 }
 0x1d3   : > { %v6348_v19 = vpop.f32.mrb[104].mxu0 }
 0x1d4   : > { %v6349_v6 = vpop.f32.mrb[105].mxu0 }
 0x1d5   : > { %v6350_v61 = vadd.f32 %v6349_v6, %v6348_v19  ;;  %v6351_v25 = vpop.f32.mrb[106].mxu0 }
 0x1d6   : > { %v6352_v27 = vpop.f32.mrb[107].mxu0 }
 0x1d7   : > { %v6353_v24 = vadd.f32 %v6352_v27, %v6351_v25  ;;  %v9299_v13 = vadd.f32 %v9147_v41, %v6350_v61  ;;  %v9313_v41 = vld [vmem:[%s10229_s7 + $0x30] sm:$0xff] }
 0x1d9   : > { %v9302_v59 = vadd.f32 %v9153_v7, %v6353_v24  ;;  %v9318_v7 = vld [vmem:[%s10229_s7 + $0x38] sm:$0xff] }
 0x1da   : > { %v10251_v27 = vand.u32 4294901760, %v9318_v7 }
 0x1db   : > { %v6354_v46 = vpop.f32.mrb[108].mxu0 }
 0x1dc   : > { %v6355_v39 = vpop.f32.mrb[109].mxu0 }
 0x1dd   : > { %v6356_v37 = vadd.f32 %v6355_v39, %v6354_v46  ;;  %v6357_v12 = vpop.f32.mrb[110].mxu0 }
 0x1de   : > { %v6358_v9 = vpop.f32.mrb[111].mxu0 }
 0x1df   : > { %v6359_v28 = vadd.f32 %v6358_v9, %v6357_v12  ;;  %v9305_v33 = vadd.f32 %v9159_v30, %v6356_v37  ;;  %v10252_v30 = vand.u32 4294901760, %v9313_v41 }
 0x1e1   : > { %v9308_v53 = vadd.f32 %v9165_v14, %v6359_v28  ;;  %v9329_v39 = vpack.c.bf16 %v10251_v27, %v10252_v30 }
 0x1e3   : > { %v6360_v19 = vpop.f32.mrb[112].mxu0  ;;  %10302 = vst [vmem:[#allocation9_spill] sm:$0xff] %v9329_v39  ;;  %7379 = vmatpush3.bf16.msra.mxu0 %v9329_v39  ;;  %7523 = vmatpush3.bf16.msra.mxu1 %v9329_v39 }
 0x1e4   : > { %v6361_v6 = vpop.f32.mrb[113].mxu0  ;;  %7380 = vmatprep.subr.bf16.mxu0 %v10257_v42  ;;  %7524 = vmatprep.subr.bf16.mxu1 %v10257_v42 }
 0x1e5   : > { %v6362_v61 = vadd.f32 %v6361_v6, %v6360_v19  ;;  %v6363_v25 = vpop.f32.mrb[114].mxu0 }
 0x1e6   : > { %v6364_v14 = vpop.f32.mrb[115].mxu0 }
 0x1e7   : > { %v6365_v24 = vadd.f32 %v6364_v14, %v6363_v25  ;;  %v9323_v46 = vadd.f32 %v9185_v47, %v6362_v61 }
 0x1e9   : > { %v9333_v37 = vadd.f32 %v9197_v57, %v6365_v24 }
 0x1eb   : > { %v6366_v12 = vpop.f32.mrb[116].mxu0 }
 0x1ec   : > { %v6367_v47 = vpop.f32.mrb[117].mxu0 }
 0x1ed   : > { %v6368_v9 = vadd.f32 %v6367_v47, %v6366_v12  ;;  %v6369_v28 = vpop.f32.mrb[118].mxu0 }
 0x1ee   : > { %v6370_v19 = vpop.f32.mrb[119].mxu0 }
 0x1ef   : > { %v6371_v6 = vadd.f32 %v6370_v19, %v6369_v28  ;;  %v9339_v61 = vadd.f32 %v9207_v43, %v6368_v9  ;;  %v9358_v9 = vld [vmem:[%s10229_s7 + $0x48] sm:$0xff] }
 0x1f1   : > { %v9342_v25 = vadd.f32 %v9213_v35, %v6371_v6  ;;  %v9353_v35 = vld [vmem:[%s10229_s7 + $0x40] sm:$0xff] }
 0x1f3   : > { %v6372_v57 = vpop.f32.mrb[120].mxu0 }
 0x1f4   : > { %v6373_v14 = vpop.f32.mrb[121].mxu0 }
 0x1f5   : > { %v6374_v24 = vadd.f32 %v6373_v14, %v6372_v57  ;;  %v6375_v22 = vpop.f32.mrb[122].mxu0  ;;  %v9374_v57 = vld [vmem:[%s10229_s7 + $0x50] sm:$0xff]  ;;  %v9379_v14 = vld [vmem:[%s10229_s7 + $0x58] sm:$0xff] }
 0x1f6   : > { %v6376_v10 = vpop.f32.mrb[123].mxu0 }
 0x1f7   : > { %v6377_v48 = vadd.f32 %v6376_v10, %v6375_v22  ;;  %v9345_v20 = vadd.f32 %v9219_v40, %v6374_v24  ;;  %v10250_v40 = vand.u32 4294901760, %v9353_v35 }
 0x1f9   : > { %v9348_v12 = vadd.f32 %v9235_v17, %v6377_v48  ;;  %v10249_v17 = vand.u32 4294901760, %v9358_v9 }
 0x1fb   : > { %v6378_v47 = vpop.f32.mrb[124].mxu0  ;;  %v9369_v6 = vpack.c.bf16 %v10249_v17, %v10250_v40  ;;  %v9425_v17 = vld [vmem:[%s10229_s7 + $0x78] sm:$0xff] }
 0x1fc   : > { %v6379_v28 = vpop.f32.mrb[125].mxu0  ;;  %10308 = vst [vmem:[#allocation15_spill] sm:$0xff] %v9425_v17 }
 0x1fd   : > { %v6380_v19 = vadd.f32 %v6379_v28, %v6378_v47  ;;  %v6381_v43 = vpop.f32.mrb[126].mxu0  ;;  %10303 = vst [vmem:[#allocation10_spill] sm:$0xff] %v9369_v6  ;;  %v10256_v47 = vand.u32 4294901760, %v9374_v57  ;;  %v10255_v28 = vand.u32 4294901760, %v9379_v14  ;;  %7382 = vmatpush3.bf16.msra.mxu0 %v9369_v6  ;;  %7526 = vmatpush3.bf16.msra.mxu1 %v9369_v6 }
 0x1fe   : > { %v6382_v10 = vpop.f32.mrb[127].mxu0  ;;  %7383 = vmatprep.subr.bf16.mxu0 %v10257_v42  ;;  %7527 = vmatprep.subr.bf16.mxu1 %v10257_v42 }
 0x1ff   : > { %v6383_v48 = vadd.f32 %v6382_v10, %v6381_v43  ;;  %v9363_v22 = vadd.f32 %v9253_v23, %v6380_v19  ;;  %v9384_v23 = vld [vmem:[%s10229_s7 + $0x60] sm:$0xff]  ;;  %v9394_v19 = vld [vmem:[%s10229_s7 + $0x68] sm:$0xff]  ;;  %v10247_v43 = vmov 0.0  }
 0x200   : > { %10304 = vst [vmem:[#allocation11_spill] sm:$0xff] %v9384_v23  ;;  %10305 = vst [vmem:[#allocation12_spill] sm:$0xff] %v9394_v19  ;;  %6848 = vmatprep.mubr.msk.f32.mxu0 %vm8208_vm6, %v10247_v43  ;;  %7058 = vmatprep.mubr.msk.f32.mxu1 %vm8208_vm6, %v10247_v43  ;;  %v9419_v43 = vpack.c.bf16 %v10255_v28, %v10256_v47  ;;  %v10309_v42 = vand.u32 4294901760, %v9384_v23  ;;  %v10310_v39 = vand.u32 4294901760, %v9394_v19 }
 0x201   : > { %v9387_v24 = vadd.f32 %v9259_v11, %v6383_v48  ;;  %v9407_v48 = vld [vmem:[%s10229_s7 + $0x70] sm:$0xff] }
 0x202   : > { %10306 = vst [vmem:[#allocation13_spill] sm:$0xff] %v9407_v48  ;;  %10307 = vst [vmem:[#allocation14_spill] sm:$0xff] %v9419_v43  ;;  %v10266_v11 = vand.u32 4294901760, %v9407_v48  ;;  %7385 = vmatpush3.bf16.msra.mxu0 %v9419_v43  ;;  %7529 = vmatpush3.bf16.msra.mxu1 %v9419_v43 }
 0x203   : > { %v6786_v60 = vpop.f32.mrb[0].mxu1 }
 0x204   : > { %v7730_v40 = vadd.f32 %v9138_v52, %v6786_v60  ;;  %v2413_v27 = vpop.f32.mrb[1].mxu1  ;;  %v9439_v52 = vpack.c.bf16 %v10310_v39, %v10309_v42 }
 0x205   : > { %v7733_v30 = vadd.f32 %v9126_v0, %v2413_v27  ;;  %v6787_v10 = vpop.f32.mrb[2].mxu1  ;;  %v10265_v0 = vand.u32 4294901760, %v9425_v17 }
 0x206   : > { %v9431_v6 = vadd.f32 %v7730_v40, %v9412_v45  ;;  %v7736_v28 = vadd.f32 %v9144_v56, %v6787_v10  ;;  %v2416_v47 = vpop.f32.mrb[3].mxu1  ;;  %10311 = vst [vmem:[#allocation16_spill] sm:$0xff] %v9439_v52  ;;  %v10312_v40 = vmov 0.0|0.0  }
 0x207   : > { %v9444_v60 = vadd.f32 %v7733_v30, %v9412_v45  ;;  %v7739_v27 = vadd.f32 %v9132_v2, %v2416_v47  ;;  %7386 = vmatprep.subr.bf16.mxu0 %v10312_v40  ;;  %7530 = vmatprep.subr.bf16.mxu1 %v10312_v40  ;;  %v9471_v47 = vpack.c.bf16 %v10265_v0, %v10266_v11 }
 0x208   : > { %v5835_v56 = vmul.f32 -1.442695, %v9431_v6  ;;  %v9451_v10 = vadd.f32 %v7736_v28, %v9412_v45  ;;  %7388 = vmatpush3.bf16.msra.mxu0 %v9439_v52  ;;  %7532 = vmatpush3.bf16.msra.mxu1 %v9439_v52 }
 0x209   : > { %v5833_v42 = vmul.f32 -1.442695, %v9444_v60  ;;  %v9461_v30 = vadd.f32 %v7739_v27, %v9412_v45  ;;  %10313 = vst [vmem:[#allocation17_spill] sm:$0xff] %v9471_v47  ;;  %7389 = vmatprep.subr.bf16.mxu0 %v10312_v40  ;;  %7533 = vmatprep.subr.bf16.mxu1 %v10312_v40 }
 0x20a   : > { %8042 = vpow2.f32 %v5835_v56  ;;  %v5912_v2 = vpack.c.bf16 %v9451_v10, %v9431_v6  ;;  %v5836_v39 = vmul.f32 -1.442695, %v9451_v10 }
 0x20b   : > { %8044 = vpow2.f32 %v5833_v42  ;;  %v5907_v28 = vpack.c.bf16 %v9461_v30, %v9444_v60  ;;  %v5834_v27 = vmul.f32 -1.442695, %v9461_v30  ;;  %v6790_v56 = vpop.f32.mrb[4].mxu1 }
 0x20c   : > { %5985 = vst [vmem:[%s9458_s12 + $0x8] sm:$0xff] %v5912_v2   ;;  %8046 = vpow2.f32 %v5836_v39  ;;  %v7742_v43 = vadd.f32 %v9162_v36, %v6790_v56  ;;  %v2429_v54 = vpop.f32.mrb[5].mxu1  ;;  %7391 = vmatpush3.bf16.msra.mxu0 %v9471_v47  ;;  %7535 = vmatpush3.bf16.msra.mxu1 %v9471_v47 }
 0x20d   : > { %5908 = vst [vmem:[%s9458_s12] sm:$0xff] %v5907_v28   ;;  %8048 = vpow2.f32 %v5834_v27  ;;  %v7745_v0 = vadd.f32 %v9150_v34, %v2429_v54  ;;  %v6791_v42 = vpop.f32.mrb[6].mxu1  ;;  %7392 = vmatprep.subr.bf16.mxu0 %v10312_v40  ;;  %7536 = vmatprep.subr.bf16.mxu1 %v10312_v40 }
 0x20e   : > { %v9484_v11 = vadd.f32 %v7742_v43, %v9412_v45  ;;  %v7748_v52 = vadd.f32 %v9168_v16, %v6791_v42  ;;  %v2432_v63 = vpop.f32.mrb[7].mxu1 }
 0x20f   : > { %v9490_v2 = vadd.f32 %v7745_v0, %v9412_v45  ;;  %v7751_v36 = vadd.f32 %v9156_v5, %v2432_v63 }
 0x210   : > { %v5839_v34 = vmul.f32 -1.442695, %v9484_v11  ;;  %v9497_v54 = vadd.f32 %v7748_v52, %v9412_v45 }
 0x211   : > { %v5837_v16 = vmul.f32 -1.442695, %v9490_v2  ;;  %v9501_v43 = vadd.f32 %v7751_v36, %v9412_v45 }
 0x212   : > { %8050 = vpow2.f32 %v5839_v34  ;;  %v5922_v0 = vpack.c.bf16 %v9497_v54, %v9484_v11  ;;  %v5840_v5 = vmul.f32 -1.442695, %v9497_v54 }
 0x213   : > { %8052 = vpow2.f32 %v5837_v16  ;;  %v5917_v63 = vpack.c.bf16 %v9501_v43, %v9490_v2  ;;  %v5838_v39 = vmul.f32 -1.442695, %v9501_v43  ;;  %v6794_v52 = vpop.f32.mrb[8].mxu1 }
 0x214   : > { %v8043_v28 = vpop.eup %8042  ;;  %5987 = vst [vmem:[%s9458_s12 + $0x18] sm:$0xff] %v5922_v0   ;;  %8054 = vpow2.f32 %v5840_v5  ;;  %v7754_v27 = vadd.f32 %v9210_v49, %v6794_v52  ;;  %v2445_v56 = vpop.f32.mrb[9].mxu1 }
 0x215   : > { %v8045_v42 = vpop.eup %8044  ;;  %v2868_v36 = vadd.f32 1.0, %v8043_v28  ;;  %5986 = vst [vmem:[%s9458_s12 + $0x10] sm:$0xff] %v5917_v63   ;;  %8056 = vpow2.f32 %v5838_v39  ;;  %v7757_v34 = vadd.f32 %v9188_v26, %v2445_v56  ;;  %v6795_v47 = vpop.f32.mrb[10].mxu1 }
 0x216   : > { %v8047_v16 = vpop.eup %8046  ;;  %v2866_v31 = vadd.f32 1.0, %v8045_v42  ;;  %v9514_v40 = vadd.f32 %v7754_v27, %v9412_v45  ;;  %v7760_v17 = vadd.f32 %v9216_v55, %v6795_v47  ;;  %v2448_v48 = vpop.f32.mrb[11].mxu1 }
 0x217   : > { %v8049_v0 = vpop.eup %8048  ;;  %8058 = vrcp.f32 %v2868_v36  ;;  %v2869_v5 = vadd.f32 1.0, %v8047_v16  ;;  %v9518_v49 = vadd.f32 %v7757_v34, %v9412_v45  ;;  %v7763_v63 = vadd.f32 %v9200_v32, %v2448_v48 }
 0x218   : > { %8060 = vrcp.f32 %v2866_v31  ;;  %v2867_v26 = vadd.f32 1.0, %v8049_v0  ;;  %v5843_v39 = vmul.f32 -1.442695, %v9514_v40  ;;  %v9523_v52 = vadd.f32 %v7760_v17, %v9412_v45 }
 0x219   : > { %8062 = vrcp.f32 %v2869_v5  ;;  %v5841_v55 = vmul.f32 -1.442695, %v9518_v49  ;;  %v9527_v47 = vadd.f32 %v7763_v63, %v9412_v45  ;;  %v10314_v36 = vand.u32 4294901760, %v9313_v41 }
 0x21a   : > { %8064 = vrcp.f32 %v2867_v26  ;;  %v5932_v28 = vpack.c.bf16 %v9523_v52, %v9514_v40  ;;  %v5844_v31 = vmul.f32 -1.442695, %v9523_v52 }
 0x21b   : > { %8066 = vpow2.f32 %v5843_v39  ;;  %v5927_v32 = vpack.c.bf16 %v9527_v47, %v9518_v49  ;;  %v5842_v17 = vmul.f32 -1.442695, %v9527_v47  ;;  %v6798_v48 = vpop.f32.mrb[12].mxu1  ;;  %v9540_v34 = vsub.f32 %v9313_v41, %v10314_v36 }
 0x21c   : > { %v8051_v27 = vpop.eup %8050  ;;  %8068 = vpow2.f32 %v5841_v55  ;;  %5989 = vst [vmem:[%s9458_s12 + $0x28] sm:$0xff] %v5932_v28   ;;  %v7766_v56 = vadd.f32 %v9256_v18, %v6798_v48  ;;  %v2461_v42 = vpop.f32.mrb[13].mxu1 }
 0x21d   : > { %v8053_v16 = vpop.eup %8052  ;;  %v2872_v0 = vadd.f32 1.0, %v8051_v27  ;;  %8070 = vpow2.f32 %v5844_v31  ;;  %5988 = vst [vmem:[%s9458_s12 + $0x20] sm:$0xff] %v5927_v32   ;;  %v7769_v5 = vadd.f32 %v9222_v50, %v2461_v42  ;;  %v6799_v63 = vpop.f32.mrb[14].mxu1 }
 0x21e   : > { %v8055_v26 = vpop.eup %8054  ;;  %v2870_v39 = vadd.f32 1.0, %v8053_v16  ;;  %8072 = vpow2.f32 %v5842_v17  ;;  %v9545_v55 = vadd.f32 %v7766_v56, %v9412_v45  ;;  %v7772_v18 = vadd.f32 %v9262_v29, %v6799_v63  ;;  %v2464_v28 = vpop.f32.mrb[15].mxu1 }
 0x21f   : > { %v8057_v48 = vpop.eup %8056  ;;  %8074 = vrcp.f32 %v2872_v0  ;;  %v2873_v41 = vadd.f32 1.0, %v8055_v26  ;;  %v9549_v36 = vadd.f32 %v7769_v5, %v9412_v45  ;;  %v7775_v31 = vadd.f32 %v9240_v51, %v2464_v28 }
 0x220   : > { %8076 = vrcp.f32 %v2870_v39  ;;  %v2871_v50 = vadd.f32 1.0, %v8057_v48  ;;  %v5847_v32 = vmul.f32 -1.442695, %v9545_v55  ;;  %v9554_v17 = vadd.f32 %v7772_v18, %v9412_v45 }
 0x221   : > { %v8059_v27 = vpop.eup %8058  ;;  %8078 = vrcp.f32 %v2873_v41  ;;  %v5845_v29 = vmul.f32 -1.442695, %v9549_v36  ;;  %v9558_v56 = vadd.f32 %v7775_v31, %v9412_v45 }
 0x222   : > { %v8061_v42 = vpop.eup %8060  ;;  %v2964_v16 = vmul.f32 %v8059_v27, %v9431_v6  ;;  %8080 = vrcp.f32 %v2871_v50  ;;  %v5942_v51 = vpack.c.bf16 %v9554_v17, %v9545_v55  ;;  %v5848_v0 = vmul.f32 -1.442695, %v9554_v17 }
 0x223   : > { %v8063_v5 = vpop.eup %8062  ;;  %v2962_v63 = vmul.f32 %v8061_v42, %v9444_v60  ;;  %8082 = vpow2.f32 %v5847_v32  ;;  %v5937_v26 = vpack.c.bf16 %v9558_v56, %v9549_v36  ;;  %v5846_v39 = vmul.f32 -1.442695, %v9558_v56  ;;  %v6802_v18 = vpop.f32.mrb[16].mxu1 }
 0x224   : > { %v8065_v28 = vpop.eup %8064  ;;  %v3033_v48 = vmul.f32 %v2964_v16, %v2964_v16  ;;  %v2965_v6 = vmul.f32 %v8063_v5, %v9451_v10  ;;  %8084 = vpow2.f32 %v5845_v29  ;;  %5991 = vst [vmem:[%s9458_s12 + $0x38] sm:$0xff] %v5942_v51   ;;  %v7778_v41 = vadd.f32 %v9289_v1, %v6802_v18  ;;  %v2477_v31 = vpop.f32.mrb[17].mxu1 }
 0x225   : > { %v8067_v50 = vpop.eup %8066  ;;  %v3031_v27 = vmul.f32 %v2962_v63, %v2962_v63  ;;  %v2963_v60 = vmul.f32 %v8065_v28, %v9461_v30  ;;  %8086 = vpow2.f32 %v5848_v0  ;;  %5990 = vst [vmem:[%s9458_s12 + $0x30] sm:$0xff] %v5937_v26   ;;  %v7781_v32 = vadd.f32 %v9265_v44, %v2477_v31  ;;  %v6803_v42 = vpop.f32.mrb[18].mxu1 }
 0x226   : > { %v8069_v3 = vpop.eup %8068  ;;  %v3034_v8 = vmul.f32 %v2965_v6, %v2965_v6  ;;  %v2876_v19 = vadd.f32 1.0, %v8067_v50  ;;  %8088 = vpow2.f32 %v5846_v39  ;;  %v9575_v10 = vadd.f32 %v7778_v41, %v9412_v45  ;;  %v2480_v29 = vpop.f32.mrb[19].mxu1 }
 0x227   : > { %v8071_v51 = vpop.eup %8070  ;;  %v2994_v1 = vadd.f32 %v2963_v60, %v2962_v63  ;;  %v3032_v5 = vmul.f32 %v2963_v60, %v2963_v60  ;;  %v2874_v18 = vadd.f32 1.0, %v8069_v3  ;;  %v9578_v23 = vadd.f32 %v7781_v32, %v9412_v45 }
 0x228   : > { %v8073_v30 = vpop.eup %8072  ;;  %8090 = vrcp.f32 %v2876_v19  ;;  %v2877_v0 = vadd.f32 1.0, %v8071_v51  ;;  %v5851_v44 = vmul.f32 -1.442695, %v9575_v10  ;;  %v7784_v26 = vadd.f32 %v9296_v4, %v6803_v42 }
 0x229   : > { %v8075_v28 = vpop.eup %8074  ;;  %v2995_v39 = vadd.f32 %v2994_v1, %v2964_v16  ;;  %v3063_v31 = vadd.f32 %v3032_v5, %v3031_v27  ;;  %8092 = vrcp.f32 %v2874_v18  ;;  %v2875_v41 = vadd.f32 1.0, %v8073_v30 }
 0x22a   : > { %v8077_v50 = vpop.eup %8076  ;;  %v2968_v63 = vmul.f32 %v8075_v28, %v9484_v11  ;;  %8094 = vrcp.f32 %v2877_v0  ;;  %v5849_v3 = vmul.f32 -1.442695, %v9578_v23  ;;  %v9585_v60 = vadd.f32 %v7784_v26, %v9412_v45 }
 0x22b   : > { %v8079_v19 = vpop.eup %8078  ;;  %v3064_v32 = vadd.f32 %v3063_v31, %v3033_v48  ;;  %v2966_v51 = vmul.f32 %v8077_v50, %v9490_v2  ;;  %v2996_v58 = vadd.f32 %v2995_v39, %v2965_v6  ;;  %8096 = vrcp.f32 %v2875_v41  ;;  %v6806_v4 = vpop.f32.mrb[20].mxu1 }
 0x22c   : > { %v8081_v16 = vpop.eup %8080  ;;  %v3037_v27 = vmul.f32 %v2968_v63, %v2968_v63  ;;  %v2969_v42 = vmul.f32 %v8079_v19, %v9497_v54  ;;  %8098 = vpow2.f32 %v5851_v44  ;;  %v5952_v11 = vpack.c.bf16 %v9585_v60, %v9575_v10  ;;  %v2493_v1 = vpop.f32.mrb[21].mxu1 }
 0x22d   : > { %v8083_v5 = vpop.eup %8082  ;;  %v2997_v18 = vadd.f32 %v2996_v58, %v2966_v51  ;;  %v3035_v30 = vmul.f32 %v2966_v51, %v2966_v51  ;;  %v3065_v0 = vadd.f32 %v3064_v32, %v3034_v8  ;;  %v2967_v48 = vmul.f32 %v8081_v16, %v9501_v43  ;;  %v6807_v2 = vpop.f32.mrb[22].mxu1 }
 0x22e   : > { %v8085_v6 = vpop.eup %8084  ;;  %v3038_v26 = vmul.f32 %v2969_v42, %v2969_v42  ;;  %v2880_v28 = vadd.f32 1.0, %v8083_v5  ;;  %8100 = vpow2.f32 %v5849_v3  ;;  %5993 = vst [vmem:[%s9458_s12 + $0x48] sm:$0xff] %v5952_v11   ;;  %v5852_v39 = vmul.f32 -1.442695, %v9585_v60  ;;  %v2496_v54 = vpop.f32.mrb[23].mxu1 }
 0x22f   : > { %v8087_v44 = vpop.eup %8086  ;;  %v3066_v31 = vadd.f32 %v3065_v0, %v3035_v30  ;;  %v2998_v41 = vadd.f32 %v2997_v18, %v2967_v48  ;;  %v3036_v50 = vmul.f32 %v2967_v48, %v2967_v48  ;;  %v2878_v19 = vadd.f32 1.0, %v8085_v6 }
 0x230   : > { %v8089_v38 = vpop.eup %8088  ;;  %8102 = vrcp.f32 %v2880_v28  ;;  %v2881_v58 = vadd.f32 1.0, %v8087_v44  ;;  %v7787_v8 = vadd.f32 %v9268_v15, %v2480_v29  ;;  %v7790_v43 = vadd.f32 %v9305_v33, %v6806_v4 }
 0x231   : > { %v2999_v32 = vadd.f32 %v2998_v41, %v2968_v63  ;;  %v3067_v51 = vadd.f32 %v3066_v31, %v3036_v50  ;;  %8104 = vrcp.f32 %v2878_v19  ;;  %v2879_v3 = vadd.f32 1.0, %v8089_v38 }
 0x232   : > { %v8091_v16 = vpop.eup %8090  ;;  %8106 = vrcp.f32 %v2881_v58  ;;  %v9597_v11 = vadd.f32 %v7787_v8, %v9412_v45  ;;  %v9600_v5 = vadd.f32 %v7790_v43, %v9412_v45  ;;  %v7793_v18 = vadd.f32 %v9299_v13, %v2493_v1 }
 0x233   : > { %v8093_v30 = vpop.eup %8092  ;;  %v3068_v0 = vadd.f32 %v3067_v51, %v3037_v27  ;;  %v2972_v15 = vmul.f32 %v8091_v16, %v9514_v40  ;;  %v3000_v29 = vadd.f32 %v2999_v32, %v2969_v42  ;;  %8108 = vrcp.f32 %v2879_v3  ;;  %v6810_v33 = vpop.f32.mrb[24].mxu1 }
 0x234   : > { %v8095_v63 = vpop.eup %8094  ;;  %v2970_v38 = vmul.f32 %v8093_v30, %v9518_v49  ;;  %8110 = vpow2.f32 %v5852_v39  ;;  %v5947_v4 = vpack.c.bf16 %v9597_v11, %v9578_v23  ;;  %v5850_v48 = vmul.f32 -1.442695, %v9597_v11  ;;  %v2509_v6 = vpop.f32.mrb[25].mxu1 }
 0x235   : > { %v8097_v28 = vpop.eup %8096  ;;  %v3069_v13 = vadd.f32 %v3068_v0, %v3038_v26  ;;  %v5855_v27 = vmul.f32 -1.442695, %v9600_v5  ;;  %v9609_v1 = vpop.f32.mrb[26].mxu1  ;;  %v3041_v39 = vmul.f32 %v2972_v15, %v2972_v15  ;;  %v2973_v41 = vmul.f32 %v8095_v63, %v9523_v52 }
 0x236   : > { %v8099_v40 = vpop.eup %8098  ;;  %v3001_v42 = vadd.f32 %v3000_v29, %v2970_v38  ;;  %v3039_v44 = vmul.f32 %v2970_v38, %v2970_v38  ;;  %v2971_v31 = vmul.f32 %v8097_v28, %v9527_v47  ;;  %5992 = vst [vmem:[%s9458_s12 + $0x40] sm:$0xff] %v5947_v4   ;;  %8112 = vpow2.f32 %v5850_v48  ;;  %v9613_v49 = vpop.f32.mrb[27].mxu1 }
 0x237   : > { %v2884_v50 = vadd.f32 1.0, %v8099_v40  ;;  %v9617_v19 = vadd.f32 %v7793_v18, %v9412_v45  ;;  %v7796_v32 = vadd.f32 %v9308_v53, %v6807_v2  ;;  %8114 = vpow2.f32 %v5855_v27 }
 0x238   : > { %v8101_v26 = vpop.eup %8100  ;;  %v3070_v58 = vadd.f32 %v3069_v13, %v3039_v44  ;;  %v3002_v8 = vadd.f32 %v3001_v42, %v2971_v31  ;;  %v3040_v43 = vmul.f32 %v2971_v31, %v2971_v31  ;;  %v7799_v3 = vadd.f32 %v9302_v59, %v2496_v54 }
 0x239   : > { %v2882_v51 = vadd.f32 1.0, %v8101_v26  ;;  %v5853_v47 = vmul.f32 -1.442695, %v9617_v19  ;;  %v9623_v52 = vadd.f32 %v7796_v32, %v9412_v45  ;;  %v7802_v18 = vadd.f32 %v9339_v61, %v6810_v33 }
 0x23a   : > { %v8103_v16 = vpop.eup %8102  ;;  %v3003_v30 = vadd.f32 %v3002_v8, %v2972_v15  ;;  %v3071_v0 = vadd.f32 %v3070_v58, %v3040_v43  ;;  %v3042_v63 = vmul.f32 %v2973_v41, %v2973_v41  ;;  %v9627_v38 = vadd.f32 %v7799_v3, %v9412_v45 }
 0x23b   : > { %v8105_v29 = vpop.eup %8104  ;;  %8116 = vrcp.f32 %v2882_v51  ;;  %v7805_v53 = vadd.f32 %v9323_v46, %v2509_v6  ;;  %v6814_v2 = vpop.f32.mrb[28].mxu1  ;;  %v2976_v61 = vmul.f32 %v8103_v16, %v9545_v55  ;;  %v5962_v33 = vpack.c.bf16 %v9623_v52, %v9600_v5 }
 0x23c   : > { %v8107_v4 = vpop.eup %8106  ;;  %v3072_v48 = vadd.f32 %v3071_v0, %v3041_v39  ;;  %v2974_v59 = vmul.f32 %v8105_v29, %v9549_v36  ;;  %v3004_v54 = vadd.f32 %v3003_v30, %v2973_v41  ;;  %8118 = vpow2.f32 %v5853_v47  ;;  %v2525_v15 = vpop.f32.mrb[29].mxu1 }
 0x23d   : > { %v8109_v28 = vpop.eup %8108  ;;  %8120 = vrcp.f32 %v2884_v50  ;;  %v5856_v13 = vmul.f32 -1.442695, %v9623_v52  ;;  %v6815_v27 = vpop.f32.mrb[30].mxu1  ;;  %v2977_v31 = vmul.f32 %v8107_v4, %v9554_v17  ;;  %5995 = vst [vmem:[%s9458_s12 + $0x58] sm:$0xff] %v5962_v33   ;;  %v5957_v55 = vpack.c.bf16 %v9627_v38, %v9617_v19 }
 0x23e   : > { %v8111_v46 = vpop.eup %8110  ;;  %v3005_v6 = vadd.f32 %v3004_v54, %v2974_v59  ;;  %v3043_v40 = vmul.f32 %v2974_v59, %v2974_v59  ;;  %v3073_v42 = vadd.f32 %v3072_v48, %v3042_v63  ;;  %v2975_v36 = vmul.f32 %v8109_v28, %v9558_v56  ;;  %v2528_v44 = vpop.f32.mrb[31].mxu1 }
 0x23f   : > { %v2885_v39 = vadd.f32 1.0, %v8111_v46  ;;  %8122 = vpow2.f32 %v5856_v13  ;;  %v5854_v8 = vmul.f32 -1.442695, %v9627_v38  ;;  %5994 = vst [vmem:[%s9458_s12 + $0x50] sm:$0xff] %v5957_v55   ;;  %v9643_v56 = vadd.f32 %v7802_v18, %v9412_v45 }
 0x240   : > { %v8113_v41 = vpop.eup %8112  ;;  %v3074_v50 = vadd.f32 %v3073_v42, %v3043_v40  ;;  %v3006_v26 = vadd.f32 %v3005_v6, %v2975_v36  ;;  %v3044_v58 = vmul.f32 %v2975_v36, %v2975_v36  ;;  %v9646_v17 = vadd.f32 %v7805_v53, %v9412_v45 }
 0x241   : > { %8124 = vrcp.f32 %v2885_v39  ;;  %v2883_v43 = vadd.f32 1.0, %v8113_v41  ;;  %v3045_v32 = vmul.f32 %v2976_v61, %v2976_v61  ;;  %v8115_v3 = vpop.eup %8114  ;;  %v5859_v16 = vmul.f32 -1.442695, %v9643_v56 }
 0x242   : > { %v3007_v51 = vadd.f32 %v3006_v26, %v2976_v61  ;;  %v3075_v47 = vadd.f32 %v3074_v50, %v3044_v58  ;;  %8126 = vpow2.f32 %v5854_v8  ;;  %v5857_v30 = vmul.f32 -1.442695, %v9646_v17 }
 0x243   : > { %8128 = vrcp.f32 %v2883_v43  ;;  %v7808_v0 = vadd.f32 %v9342_v25, %v9609_v1  ;;  %v3046_v29 = vmul.f32 %v2977_v31, %v2977_v31  ;;  %v7811_v48 = vadd.f32 %v9333_v37, %v9613_v49 }
 0x244   : > { %v3076_v63 = vadd.f32 %v3075_v47, %v3045_v32  ;;  %v3008_v18 = vadd.f32 %v3007_v51, %v2977_v31  ;;  %8130 = vpow2.f32 %v5859_v16  ;;  %v7814_v59 = vadd.f32 %v9363_v22, %v6814_v2 }
 0x245   : > { %v8117_v4 = vpop.eup %8116  ;;  %v9653_v53 = vadd.f32 %v7808_v0, %v9412_v45  ;;  %v2888_v33 = vadd.f32 1.0, %v8115_v3  ;;  %8132 = vpow2.f32 %v5857_v30  ;;  %v9663_v6 = vadd.f32 %v7811_v48, %v9412_v45 }
 0x246   : > { %v8119_v54 = vpop.eup %8118  ;;  %v2978_v28 = vmul.f32 %v8117_v4, %v9578_v23  ;;  %v3077_v61 = vadd.f32 %v3076_v63, %v3046_v29  ;;  %v9666_v49 = vadd.f32 %v7814_v59, %v9412_v45  ;;  %v7817_v23 = vadd.f32 %v9345_v20, %v2525_v15 }
 0x247   : > { %v8121_v25 = vpop.eup %8120  ;;  %v2886_v1 = vadd.f32 1.0, %v8119_v54  ;;  %v5972_v13 = vpack.c.bf16 %v9653_v53, %v9643_v56  ;;  %v5860_v46 = vmul.f32 -1.442695, %v9653_v53  ;;  %v5967_v40 = vpack.c.bf16 %v9663_v6, %v9646_v17 }
 0x248   : > { %v3009_v37 = vadd.f32 %v3008_v18, %v2978_v28  ;;  %v3047_v22 = vmul.f32 %v2978_v28, %v2978_v28  ;;  %v5858_v42 = vmul.f32 -1.442695, %v9663_v6  ;;  %v7820_v36 = vadd.f32 %v9387_v24, %v6815_v27 }
 0x249   : > { %v8123_v2 = vpop.eup %8122  ;;  %8134 = vrcp.f32 %v2886_v1  ;;  %5997 = vst [vmem:[%s9458_s12 + $0x68] sm:$0xff] %v5972_v13   ;;  %v5863_v55 = vmul.f32 -1.442695, %v9666_v49  ;;  %5996 = vst [vmem:[%s9458_s12 + $0x60] sm:$0xff] %v5967_v40   ;;  %v9677_v20 = vadd.f32 %v7817_v23, %v9412_v45  ;;  %v7823_v50 = vadd.f32 %v9348_v12, %v2528_v44 }
 0x24a   : > { %v3078_v31 = vadd.f32 %v3077_v61, %v3047_v22  ;;  %v2889_v39 = vadd.f32 1.0, %v8123_v2  ;;  %8136 = vpow2.f32 %v5860_v46  ;;  %v9680_v15 = vadd.f32 %v7820_v36, %v9412_v45 }
 0x24b   : > { %v8125_v41 = vpop.eup %8124  ;;  %8138 = vpow2.f32 %v5858_v42  ;;  %v2980_v24 = vmul.f32 %v8121_v25, %v9575_v10  ;;  %v5861_v8 = vmul.f32 -1.442695, %v9677_v20  ;;  %v9690_v12 = vadd.f32 %v7823_v50, %v9412_v45 }
 0x24c   : > { %v8127_v26 = vpop.eup %8126  ;;  %8140 = vrcp.f32 %v2888_v33  ;;  %v5982_v43 = vpack.c.bf16 %v9680_v15, %v9666_v49  ;;  %v5864_v51 = vmul.f32 -1.442695, %v9680_v15  ;;  %v2981_v10 = vmul.f32 %v8125_v41, %v9585_v60 }
 0x24d   : > { %v8129_v27 = vpop.eup %8128  ;;  %8142 = vrcp.f32 %v2889_v39  ;;  %v2887_v58 = vadd.f32 1.0, %v8127_v26  ;;  %v3049_v29 = vmul.f32 %v2980_v24, %v2980_v24  ;;  %v5862_v18 = vmul.f32 -1.442695, %v9690_v12 }
 0x24e   : > { %v2979_v32 = vmul.f32 %v8129_v27, %v9597_v11  ;;  %8144 = vpow2.f32 %v5863_v55  ;;  %v8131_v44 = vpop.eup %8130  ;;  %5999 = vst [vmem:[%s9458_s12 + $0x78] sm:$0xff] %v5982_v43   ;;  %v5977_v11 = vpack.c.bf16 %v9690_v12, %v9677_v20  ;;  %v3050_v60 = vmul.f32 %v2981_v10, %v2981_v10 }
 0x24f   : > { %8146 = vrcp.f32 %v2887_v58  ;;  %v8133_v47 = vpop.eup %8132  ;;  %v2892_v30 = vadd.f32 1.0, %v8131_v44 }
 0x250   : > { %v3010_v3 = vadd.f32 %v3009_v37, %v2979_v32  ;;  %v3048_v16 = vmul.f32 %v2979_v32, %v2979_v32  ;;  %8148 = vpow2.f32 %v5861_v8  ;;  %v2890_v0 = vadd.f32 1.0, %v8133_v47  ;;  %5998 = vst [vmem:[%s9458_s12 + $0x70] sm:$0xff] %v5977_v11  }
 0x251   : > { %8150 = vpow2.f32 %v5864_v51 }
 0x252   : > { %v3011_v63 = vadd.f32 %v3010_v3, %v2980_v24  ;;  %v3079_v45 = vadd.f32 %v3078_v31, %v3048_v16  ;;  %8152 = vrcp.f32 %v2890_v0 }
 0x253   : > { %v8135_v4 = vpop.eup %8134  ;;  %8154 = vpow2.f32 %v5862_v18 }
 0x254   : > { %v8137_v48 = vpop.eup %8136  ;;  %v3080_v59 = vadd.f32 %v3079_v45, %v3049_v29  ;;  %v2982_v54 = vmul.f32 %v8135_v4, %v9617_v19  ;;  %v3012_v28 = vadd.f32 %v3011_v63, %v2981_v10  ;;  %8156 = vrcp.f32 %v2892_v30 }
 0x255   : > { %v8139_v61 = vpop.eup %8138  ;;  %v2893_v33 = vadd.f32 1.0, %v8137_v48 }
 0x256   : > { %v8141_v25 = vpop.eup %8140  ;;  %v3013_v1 = vadd.f32 %v3012_v28, %v2982_v54  ;;  %v3051_v13 = vmul.f32 %v2982_v54, %v2982_v54  ;;  %v3081_v46 = vadd.f32 %v3080_v59, %v3050_v60  ;;  %v2891_v37 = vadd.f32 1.0, %v8139_v61 }
 0x257   : > { %v8143_v22 = vpop.eup %8142  ;;  %8158 = vrcp.f32 %v2893_v33  ;;  %v2984_v36 = vmul.f32 %v8141_v25, %v9600_v5 }
 0x258   : > { %v8145_v23 = vpop.eup %8144  ;;  %v3082_v2 = vadd.f32 %v3081_v46, %v3051_v13  ;;  %8160 = vrcp.f32 %v2891_v37  ;;  %v2985_v39 = vmul.f32 %v8143_v22, %v9623_v52 }
 0x259   : > { %v8147_v40 = vpop.eup %8146  ;;  %v2896_v55 = vadd.f32 1.0, %v8145_v23  ;;  %v3053_v8 = vmul.f32 %v2984_v36, %v2984_v36 }
 0x25a   : > { %v8149_v42 = vpop.eup %8148  ;;  %v2983_v19 = vmul.f32 %v8147_v40, %v9627_v38  ;;  %v3054_v5 = vmul.f32 %v2985_v39, %v2985_v39 }
 0x25b   : > { %v8151_v31 = vpop.eup %8150  ;;  %v2894_v41 = vadd.f32 1.0, %v8149_v42 }
 0x25c   : > { %v3014_v50 = vadd.f32 %v3013_v1, %v2983_v19  ;;  %v3052_v26 = vmul.f32 %v2983_v19, %v2983_v19  ;;  %v2897_v24 = vadd.f32 1.0, %v8151_v31  ;;  %v8153_v27 = vpop.eup %8152 }
 0x25d   : > { %8162 = vrcp.f32 %v2894_v41  ;;  %v8155_v58 = vpop.eup %8154  ;;  %v2986_v51 = vmul.f32 %v8153_v27, %v9646_v17 }
 0x25e   : > { %v3015_v43 = vadd.f32 %v3014_v50, %v2984_v36  ;;  %v3083_v32 = vadd.f32 %v3082_v2, %v3052_v26  ;;  %v8157_v44 = vpop.eup %8156  ;;  %8164 = vrcp.f32 %v2896_v55  ;;  %v2895_v38 = vadd.f32 1.0, %v8155_v58 }
 0x25f   : > { %v3055_v52 = vmul.f32 %v2986_v51, %v2986_v51  ;;  %8166 = vrcp.f32 %v2897_v24  ;;  %v2988_v11 = vmul.f32 %v8157_v44, %v9643_v56 }
 0x260   : > { %v3084_v10 = vadd.f32 %v3083_v32, %v3053_v8  ;;  %v3016_v47 = vadd.f32 %v3015_v43, %v2985_v39  ;;  %8168 = vrcp.f32 %v2895_v38  ;;  %v3272_v43 = vand.u32 4294901760, %v9540_v34 }
 0x261   : > { %v8159_v3 = vpop.eup %8158  ;;  %v3057_v60 = vmul.f32 %v2988_v11, %v2988_v11 }
 0x262   : > { %v8161_v16 = vpop.eup %8160  ;;  %v3017_v30 = vadd.f32 %v3016_v47, %v2986_v51  ;;  %v3085_v0 = vadd.f32 %v3084_v10, %v3054_v5  ;;  %v2989_v17 = vmul.f32 %v8159_v3, %v9653_v53  ;;  %v10316_v51 = vand.u32 4294901760, %v9353_v35  ;;  %v8173_v47 = vld [vmem:[%s10229_s7] sm:$0xff] }
 0x263   : > { %v2987_v29 = vmul.f32 %v8161_v16, %v9663_v6  ;;  %v10317_v5 = vand.u32 4294901760, %v9358_v9  ;;  %v10319_v3 = vand.u32 4294901760, %v9179_v62 }
 0x264   : > { %v3086_v63 = vadd.f32 %v3085_v0, %v3055_v52  ;;  %v3058_v61 = vmul.f32 %v2989_v17, %v2989_v17  ;;  %v9722_v44 = vsub.f32 %v9353_v35, %v10316_v51  ;;  %v10318_v35 = vand.u32 4294901760, %v9174_v21  ;;  %v10334_v51 = vld [vmem:[#allocation13_spill] sm:$0xff] }
 0x265   : > { %v3018_v45 = vadd.f32 %v3017_v30, %v2987_v29  ;;  %v3056_v18 = vmul.f32 %v2987_v29, %v2987_v29  ;;  %v10320_v29 = vand.u32 4294901760, %v9374_v57 }
 0x266   : > { %v9740_v52 = vsub.f32 %v8173_v47, %v10318_v35  ;;  %v3286_v21 = vand.u32 4294901760, %v9722_v44  ;;  %v10336_v47 = vld [vmem:[#allocation15_spill] sm:$0xff] }
 0x267   : > { %v8163_v4 = vpop.eup %8162  ;;  %v3019_v48 = vadd.f32 %v3018_v45, %v2988_v11  ;;  %v3087_v59 = vadd.f32 %v3086_v63, %v3056_v18  ;;  %v9766_v63 = vsub.f32 %v9374_v57, %v10320_v29  ;;  %v8175_v57 = vld [vmem:[%s10229_s7 + $0x10] sm:$0xff]  ;;  %v10337_v35 = vand.u32 4294901760, %v10336_v47 }
 0x268   : > { %v2990_v54 = vmul.f32 %v8163_v4, %v9677_v20  ;;  %v8165_v28 = vpop.eup %8164  ;;  %v3230_v4 = vand.u32 4294901760, %v9740_v52  ;;  %v10338_v47 = vmov 0.0  }
 0x269   : > { %v3088_v33 = vadd.f32 %v3087_v59, %v3057_v60  ;;  %v3020_v25 = vadd.f32 %v3019_v48, %v2989_v17  ;;  %v8167_v1 = vpop.eup %8166  ;;  %v2992_v37 = vmul.f32 %v8165_v28, %v9666_v49  ;;  %v8172_v49 = vld [vmem:[%s10229_s7 + $0x38] sm:$0xff]  ;;  %v10321_v17 = vand.u32 4294901760, %v9379_v14  ;;  %v10322_v59 = vld [vmem:[#allocation3_spill] sm:$0xff] }
 0x26a   : > { %v3059_v13 = vmul.f32 %v2990_v54, %v2990_v54  ;;  %v8169_v56 = vpop.eup %8168  ;;  %v2993_v23 = vmul.f32 %v8167_v1, %v9680_v15  ;;  %v8176_v28 = vld [vmem:[%s10229_s7 + $0x18] sm:$0xff]  ;;  %v3300_v1 = vand.u32 4294901760, %v9766_v63 }
 0x26b   : > { %v3021_v46 = vadd.f32 %v3020_v25, %v2990_v54  ;;  %v3089_v6 = vadd.f32 %v3088_v33, %v3058_v61  ;;  %v2991_v53 = vmul.f32 %v8169_v56, %v9690_v12  ;;  %v3061_v42 = vmul.f32 %v2992_v37, %v2992_v37  ;;  %v10324_v61 = vld [vmem:[#allocation4_spill] sm:$0xff]  ;;  %v8177_v56 = vld [vmem:[%s10229_s7 + $0x60] sm:$0xff] }
 0x26c   : > { %v3062_v19 = vmul.f32 %v2993_v23, %v2993_v23  ;;  %v10315_v12 = vand.u32 4294901760, %v9318_v7  ;;  %v9727_v7 = vsub.f32 %v9358_v9, %v10317_v5  ;;  %v8174_v9 = vld [vmem:[%s10229_s7 + $0x8] sm:$0xff]  ;;  %v9771_v45 = vsub.f32 %v9379_v14, %v10321_v17 }
 0x26d   : > { %v3090_v22 = vadd.f32 %v3089_v6, %v3059_v13  ;;  %v3022_v2 = vadd.f32 %v3021_v46, %v2991_v53  ;;  %v3060_v40 = vmul.f32 %v2991_v53, %v2991_v53  ;;  %v9747_v16 = vsub.f32 %v8174_v9, %v10319_v3  ;;  %v10326_v46 = vld [vmem:[#allocation11_spill] sm:$0xff] }
 0x26e   : > { %v9715_v15 = vsub.f32 %v8172_v49, %v10315_v12  ;;  %v3293_v62 = vand.u32 4294901760, %v9727_v7  ;;  %v10323_v14 = vand.u32 4294901760, %v10322_v59  ;;  %v10325_v33 = vand.u32 4294901760, %v10324_v61  ;;  %v8178_v53 = vld [vmem:[%s10229_s7 + $0x68] sm:$0xff] }
 0x26f   : > { %v3023_v20 = vadd.f32 %v3022_v2, %v2992_v37  ;;  %v3091_v36 = vadd.f32 %v3090_v22, %v3060_v40  ;;  %v3237_v60 = vand.u32 4294901760, %v9747_v16  ;;  %v3307_v13 = vand.u32 4294901760, %v9771_v45  ;;  %v10328_v22 = vld [vmem:[#allocation12_spill] sm:$0xff] }
 0x270   : > { %v3279_v32 = vand.u32 4294901760, %v9715_v15  ;;  %v9780_v48 = vpack.c.bf16 %v3293_v62, %v3286_v21  ;;  %v9788_v54 = vsub.f32 %v8175_v57, %v10323_v14  ;;  %v9795_v25 = vsub.f32 %v8176_v28, %v10325_v33 }
 0x271   : > { %v3024_v31 = vadd.f32 %v3023_v20, %v2993_v23  ;;  %v3092_v39 = vadd.f32 %v3091_v36, %v3061_v42  ;;  %v10327_v6 = vand.u32 4294901760, %v10326_v46  ;;  %v10329_v23 = vand.u32 4294901760, %v10328_v22 }
 0x272   : > { %v9753_v30 = vpack.c.bf16 %v3279_v32, %v3272_v43  ;;  %v3231_v40 = vsub.f32 %v9740_v52, %v3230_v4  ;;  %v3238_v42 = vsub.f32 %v9747_v16, %v3237_v60  ;;  %v9823_v20 = vpack.c.bf16 %v3307_v13, %v3300_v1 }
 0x273   : > { %v3025_v55 = vrot.slane %v3024_v31, 4  ;;  %v3093_v41 = vadd.f32 %v3092_v39, %v3062_v19  ;;  %v9804_v37 = vsub.f32 %v8177_v56, %v10327_v6  ;;  %v9811_v2 = vsub.f32 %v8178_v53, %v10329_v23  ;;  %v10330_v39 = vld [vmem:[#allocation6_spill] sm:$0xff] }
 0x274   : > { %v3244_v36 = vand.u32 4294901760, %v9788_v54  ;;  %v3251_v19 = vand.u32 4294901760, %v9795_v25  ;;  %v10335_v5 = vand.u32 4294901760, %v10334_v51 }
 0x275   : > { %v3026_v50 = vadd.f32 %v3025_v55, %v3024_v31  ;;  %v3094_v26 = vrot.slane %v3093_v41, 4  ;;  %v8179_v31 = vld [vmem:[%s10229_s7 + $0x20] sm:$0xff]  ;;  %v10331_v55 = vand.u32 4294901760, %v10330_v39 }
 0x276   : > { %v3245_v28 = vsub.f32 %v9788_v54, %v3244_v36  ;;  %v3252_v61 = vsub.f32 %v9795_v25, %v3251_v19 }
 0x277   : > { %v3027_v24 = vrot.slane %v3026_v50, 2  ;;  %v3095_v27 = vadd.f32 %v3094_v26, %v3093_v41  ;;  %v9832_v41 = vsub.f32 %v8179_v31, %v10331_v55  ;;  %v10332_v26 = vld [vmem:[#allocation7_spill] sm:$0xff] }
 0x278   : > { %v10333_v49 = vand.u32 4294901760, %v10332_v26  ;;  %v3246_v39 = vand.u32 4294901760, %v3245_v28  ;;  %v3253_v55 = vand.u32 4294901760, %v3252_v61  ;;  %v3301_v28 = vsub.f32 %v9766_v63, %v3300_v1 }
 0x279   : > { %v3028_v58 = vadd.f32 %v3027_v24, %v3026_v50  ;;  %v3096_v8 = vrot.slane %v3095_v27, 2  ;;  %v8180_v50 = vld [vmem:[%s10229_s7 + $0x28] sm:$0xff]  ;;  %v3258_v59 = vand.u32 4294901760, %v9832_v41  ;;  %v3308_v61 = vsub.f32 %v9771_v45, %v3307_v13 }
 0x27a   : > { %v9839_v12 = vsub.f32 %v8180_v50, %v10333_v49  ;;  %v7396_v51 = vpack.c.bf16 %v3253_v55, %v3246_v39 }
 0x27b   : > { %v3029_v38 = vrot.slane %v3028_v58, 1  ;;  %v3097_v10 = vadd.f32 %v3096_v8, %v3095_v27  ;;  %v3314_v27 = vand.u32 4294901760, %v9804_v37  ;;  %v8181_v8 = vld [vmem:[%s10229_s7 + $0x70] sm:$0xff] }
 0x27c   : > { %v3265_v14 = vand.u32 4294901760, %v9839_v12 }
 0x27d   : > { %v3030_v0 = vadd.f32 %v3029_v38, %v3028_v58  ;;  %v3098_v11 = vrot.slane %v3097_v10, 1  ;;  %v3321_v58 = vand.u32 4294901760, %v9811_v2  ;;  %v9849_v38 = vsub.f32 %v8181_v8, %v10335_v5 }
 0x27e   : > { %v3273_v5 = vsub.f32 %v9540_v34, %v3272_v43  ;;  %v3315_v1 = vsub.f32 %v9804_v37, %v3314_v27 }
 0x27f   : > { %v3099_v18 = vadd.f32 %v3098_v11, %v3097_v10  ;;  %3104 = vst [vmem:[%s9733_s15] sm:$0x1] %v3030_v0  ;;  %v8182_v10 = vld [vmem:[%s10229_s7 + $0x78] sm:$0xff]  ;;  %v3232_v0 = vand.u32 4294901760, %v3231_v40  ;;  %v3239_v11 = vand.u32 4294901760, %v3238_v42  ;;  %v9865_v17 = vpack.c.bf16 %v3321_v58, %v3314_v27 }
 0x280   : > { %v9856_v9 = vsub.f32 %v8182_v10, %v10337_v35  ;;  %v3328_v33 = vand.u32 4294901760, %v9849_v38  ;;  %v3259_v40 = vsub.f32 %v9832_v41, %v3258_v59  ;;  %v3266_v42 = vsub.f32 %v9839_v12, %v3265_v14 }
 0x281   : > { %3105 = vst [vmem:[%s9759_s28] sm:$0x1] %v3099_v18  ;;  %v7393_v31 = vpack.c.bf16 %v3239_v11, %v3232_v0  ;;  %v3280_v10 = vsub.f32 %v9715_v15, %v3279_v32  ;;  %v10339_v35 = vmov 0.0|0.0   ;;  %v3274_v11 = vand.u32 4294901760, %v3273_v5 }
 0x282   : > { %v3335_v56 = vand.u32 4294901760, %v9856_v9  ;;  %v3267_v8 = vand.u32 4294901760, %v3266_v42  ;;  %v3287_v32 = vsub.f32 %v9722_v44, %v3286_v21  ;;  %v3309_v42 = vand.u32 4294901760, %v3308_v61 }
 0x283   : > { %v3281_v43 = vand.u32 4294901760, %v3280_v10  ;;  %v3322_v13 = vsub.f32 %v9811_v2, %v3321_v58  ;;  %v3316_v55 = vand.u32 4294901760, %v3315_v1  ;;  %v7426_v5 = vpack.c.bf16 %v9715_v15, %v9540_v34 }
 0x284   : > { %v9886_v53 = vpack.c.bf16 %v3335_v56, %v3328_v33  ;;  %v3288_v21 = vand.u32 4294901760, %v3287_v32  ;;  %v7429_v10 = vpack.c.bf16 %v9727_v7, %v9722_v44  ;;  %v7435_v34 = vpack.c.bf16 %v9811_v2, %v9804_v37  ;;  %v10340_v44 = vld [vmem:[#allocation2_spill] sm:$0xff] }
 0x285   : > { %v7438_v15 = vpack.c.bf16 %v9856_v9, %v9849_v38  ;;  %v10344_v37 = vld [vmem:[#allocation10_spill] sm:$0xff] }
 0x286   : > { %v3118_v24 = vld [vmem:[%s9733_s15] sm:$0x1] }
 0x287   : > { %v9858_v3 = vand.u32 4294901760, %v3118_v24  ;;  %v10345_v2 = vld [vmem:[#allocation14_spill] sm:$0xff] }
 0x288   : > { %v3119_v29 = vld [vmem:[%s9759_s28] sm:$0x1] }
 0x289   : > { %v9868_v18 = vsub.f32 %v3118_v24, %v9858_v3  ;;  %v9870_v57 = vand.u32 4294901760, %v3119_v29  ;;  %v3260_v24 = vand.u32 4294901760, %v3259_v40 }
 0x28b   : > { %v3219_v46 = vand.u32 4294901760, %v9868_v18  ;;  %v9884_v6 = vsub.f32 %v3119_v29, %v9870_v57  ;;  %v7399_v0 = vpack.c.bf16 %v3267_v8, %v3260_v24  ;;  %v3294_v29 = vsub.f32 %v9727_v7, %v3293_v62  ;;  %v10341_v7 = vld [vmem:[#allocation5_spill] sm:$0xff] }
 0x28c   : > { %v3302_v62 = vand.u32 4294901760, %v3301_v28 }
 0x28d   : > { %v3220_v22 = vsub.f32 %v9868_v18, %v3219_v46  ;;  %v3860_v23 = vand.u32 4294901760, %v9884_v6  ;;  %v3295_v40 = vand.u32 4294901760, %v3294_v29 }
 0x28e   : > { %v7408_v39 = vpack.c.bf16 %v3309_v42, %v3302_v62 }
 0x28f   : > { %v3221_v50 = vand.u32 4294901760, %v3220_v22  ;;  %v3861_v26 = vsub.f32 %v9884_v6, %v3860_v23  ;;  %v7402_v22 = vpack.c.bf16 %v3281_v43, %v3274_v11  ;;  %v7465_v11 = vpack.c.bf16 %v3237_v60, %v3230_v4 }
 0x290   : > { %v7468_v43 = vpack.c.bf16 %v3251_v19, %v3244_v36 }
 0x291   : > { %6849 = vmatmul.mubr.f32.vlgmr.msra.gmra.mrb[128].mxu0 %v3221_v50  ;;  %v3862_v49 = vand.u32 4294901760, %v3861_v26  ;;  %v3323_v50 = vand.u32 4294901760, %v3322_v13  ;;  %v3329_v26 = vsub.f32 %v9849_v38, %v3328_v33  ;;  %v7417_v33 = vpack.c.bf16 %v9747_v16, %v9740_v52  ;;  %v10346_v38 = vld [vmem:[#allocation16_spill] sm:$0xff]  ;;  %v4425_v16 = vld [vmem:[%s10230_s8] sm:$0xff] }
 0x292   : > { %7394 = vmatpush3.bf16.msra.mxu0 %v7393_v31  ;;  %6883 = vmatprep.mubr.msk.f32.mxu0 %vm8208_vm6, %v10338_v47  ;;  %v7471_v52 = vpack.c.bf16 %v3265_v14, %v3258_v59  ;;  %v4434_v4 = vand.u32 4294901760, %v4425_v16 }
 0x293   : > { %7059 = vmatmul.mubr.f32.vlgmr.msra.gmra.mrb[96].mxu1 %v3862_v49  ;;  %7395 = vmatprep.subr.bf16.mxu0 %v10339_v35  ;;  %v3336_v49 = vsub.f32 %v9856_v9, %v3335_v56  ;;  %v7411_v27 = vpack.c.bf16 %v3323_v50, %v3316_v55  ;;  %v3330_v58 = vand.u32 4294901760, %v3329_v26  ;;  %v7420_v56 = vpack.c.bf16 %v9795_v25, %v9788_v54  ;;  %v10347_v9 = vld [vmem:[#allocation17_spill] sm:$0xff]  ;;  %v4427_v25 = vld [vmem:[%s10230_s8 + $0x10] sm:$0xff] }
 0x294   : > { %7538 = vmatpush3.bf16.msra.mxu1 %v7393_v31  ;;  %7093 = vmatprep.mubr.msk.f32.mxu1 %vm8208_vm6, %v10338_v47  ;;  %v7405_v31 = vpack.c.bf16 %v3295_v40, %v3288_v21  ;;  %v4440_v19 = vand.u32 4294901760, %v4427_v25 }
 0x295   : > { %7539 = vmatprep.subr.bf16.mxu1 %v10339_v35  ;;  %v3337_v24 = vand.u32 4294901760, %v3336_v49 }
 0x296   : > { %7397 = vmatpush3.bf16.msra.mxu0 %v7396_v51 }
 0x297   : > { %7398 = vmatprep.subr.bf16.mxu0 %v10339_v35  ;;  %v7414_v8 = vpack.c.bf16 %v3337_v24, %v3330_v58 }
 0x298   : > { %7541 = vmatpush3.bf16.msra.mxu1 %v7396_v51  ;;  %v7423_v51 = vpack.c.bf16 %v9839_v12, %v9832_v41  ;;  %v4528_v12 = vsub.f32 %v4427_v25, %v4440_v19 }
 0x299   : > { %7542 = vmatprep.subr.bf16.mxu1 %v10339_v35 }
 0x29a   : > { %7400 = vmatpush3.bf16.msra.mxu0 %v7399_v0  ;;  %v4529_v32 = vand.u32 4294901760, %v4528_v12 }
 0x29b   : > { %7401 = vmatprep.subr.bf16.mxu0 %v10339_v35 }
 0x29c   : > { %7544 = vmatpush3.bf16.msra.mxu1 %v7399_v0  ;;  %v7432_v0 = vpack.c.bf16 %v9771_v45, %v9766_v63  ;;  %v10342_v63 = vld [vmem:[#allocation8_spill] sm:$0xff]  ;;  %v10343_v45 = vld [vmem:[#allocation9_spill] sm:$0xff]  ;;  %v4530_v61 = vsub.f32 %v4528_v12, %v4529_v32 }
 0x29d   : > { %7545 = vmatprep.subr.bf16.mxu1 %v10339_v35 }
 0x29e   : > { %7403 = vmatpush3.bf16.msra.mxu0 %v7402_v22  ;;  %v4531_v40 = vand.u32 4294901760, %v4530_v61 }
 0x29f   : > { %7404 = vmatprep.subr.bf16.mxu0 %v10339_v35 }
 0x2a0   : > { %7547 = vmatpush3.bf16.msra.mxu1 %v7402_v22 }
 0x2a1   : > { %7548 = vmatprep.subr.bf16.mxu1 %v10339_v35 }
 0x2a2   : > { %7406 = vmatpush3.bf16.msra.mxu0 %v7405_v31 }
 0x2a3   : > { %7407 = vmatprep.subr.bf16.mxu0 %v10339_v35 }
 0x2a4   : > { %7550 = vmatpush3.bf16.msra.mxu1 %v7405_v31 }
 0x2a5   : > { %7551 = vmatprep.subr.bf16.mxu1 %v10339_v35 }
 0x2a6   : > { %7409 = vmatpush3.bf16.msra.mxu0 %v7408_v39 }
 0x2a7   : > { %7410 = vmatprep.subr.bf16.mxu0 %v10339_v35 }
 0x2a8   : > { %7553 = vmatpush3.bf16.msra.mxu1 %v7408_v39 }
 0x2a9   : > { %7554 = vmatprep.subr.bf16.mxu1 %v10339_v35 }
 0x2aa   : > { %7412 = vmatpush3.bf16.msra.mxu0 %v7411_v27 }
 0x2ab   : > { %7413 = vmatprep.subr.bf16.mxu0 %v10339_v35 }
 0x2ac   : > { %7556 = vmatpush3.bf16.msra.mxu1 %v7411_v27 }
 0x2ad   : > { %7557 = vmatprep.subr.bf16.mxu1 %v10339_v35 }
 0x2ae   : > { %7415 = vmatpush3.bf16.msra.mxu0 %v7414_v8 }
 0x2af   : > { %7416 = vmatprep.subr.bf16.mxu0 %v10339_v35 }
 0x2b0   : > { %7559 = vmatpush3.bf16.msra.mxu1 %v7414_v8 }
 0x2b1   : > { %6884 = vmatmul.mubr.f32.vlgmr.msra.gmra.mrb[128].mxu0 %v9858_v3  ;;  %7560 = vmatprep.subr.bf16.mxu1 %v10339_v35 }
 0x2b2   : > { %7418 = vmatpush3.bf16.msra.mxu0 %v7417_v33  ;;  %6918 = vmatprep.mubr.msk.f32.mxu0 %vm8208_vm6, %v10338_v47 }
 0x2b3   : > { %7094 = vmatmul.mubr.f32.vlgmr.msra.gmra.mrb[96].mxu1 %v9870_v57  ;;  %7419 = vmatprep.subr.bf16.mxu0 %v10339_v35 }
 0x2b4   : > { %7562 = vmatpush3.bf16.msra.mxu1 %v7417_v33  ;;  %7128 = vmatprep.mubr.msk.f32.mxu1 %vm8208_vm6, %v10338_v47 }
 0x2b5   : > { %7563 = vmatprep.subr.bf16.mxu1 %v10339_v35 }
 0x2b6   : > { %7421 = vmatpush3.bf16.msra.mxu0 %v7420_v56 }
 0x2b7   : > { %7422 = vmatprep.subr.bf16.mxu0 %v10339_v35 }
 0x2b8   : > { %7565 = vmatpush3.bf16.msra.mxu1 %v7420_v56 }
 0x2b9   : > { %7566 = vmatprep.subr.bf16.mxu1 %v10339_v35 }
 0x2ba   : > { %7424 = vmatpush3.bf16.msra.mxu0 %v7423_v51 }
 0x2bb   : > { %7425 = vmatprep.subr.bf16.mxu0 %v10339_v35 }
 0x2bc   : > { %7568 = vmatpush3.bf16.msra.mxu1 %v7423_v51 }
 0x2bd   : > { %7569 = vmatprep.subr.bf16.mxu1 %v10339_v35 }
 0x2be   : > { %7427 = vmatpush3.bf16.msra.mxu0 %v7426_v5 }
 0x2bf   : > { %7428 = vmatprep.subr.bf16.mxu0 %v10339_v35 }
 0x2c0   : > { %7571 = vmatpush3.bf16.msra.mxu1 %v7426_v5 }
 0x2c1   : > { %7572 = vmatprep.subr.bf16.mxu1 %v10339_v35 }
 0x2c2   : > { %7430 = vmatpush3.bf16.msra.mxu0 %v7429_v10 }
 0x2c3   : > { %7431 = vmatprep.subr.bf16.mxu0 %v10339_v35 }
 0x2c4   : > { %7574 = vmatpush3.bf16.msra.mxu1 %v7429_v10 }
 0x2c5   : > { %7575 = vmatprep.subr.bf16.mxu1 %v10339_v35 }
 0x2c6   : > { %7433 = vmatpush3.bf16.msra.mxu0 %v7432_v0 }
 0x2c7   : > { %7434 = vmatprep.subr.bf16.mxu0 %v10339_v35 }
 0x2c8   : > { %7577 = vmatpush3.bf16.msra.mxu1 %v7432_v0 }
 0x2c9   : > { %7578 = vmatprep.subr.bf16.mxu1 %v10339_v35 }
 0x2ca   : > { %7436 = vmatpush3.bf16.msra.mxu0 %v7435_v34 }
 0x2cb   : > { %7437 = vmatprep.subr.bf16.mxu0 %v10339_v35 }
 0x2cc   : > { %7580 = vmatpush3.bf16.msra.mxu1 %v7435_v34 }
 0x2cd   : > { %7581 = vmatprep.subr.bf16.mxu1 %v10339_v35 }
 0x2ce   : > { %7439 = vmatpush3.bf16.msra.mxu0 %v7438_v15 }
 0x2cf   : > { %7440 = vmatprep.subr.bf16.mxu0 %v10339_v35 }
 0x2d0   : > { %7583 = vmatpush3.bf16.msra.mxu1 %v7438_v15 }
 0x2d1   : > { %6919 = vmatmul.mubr.f32.vlgmr.msra.gmra.mrb[128].mxu0 %v9868_v18  ;;  %7584 = vmatprep.subr.bf16.mxu1 %v10339_v35 }
 0x2d2   : > { %7442 = vmatpush3.bf16.msra.mxu0 %v10340_v44  ;;  %6953 = vmatprep.mubr.msk.f32.mxu0 %vm8208_vm6, %v10338_v47 }
 0x2d3   : > { %7129 = vmatmul.mubr.f32.vlgmr.msra.gmra.mrb[96].mxu1 %v9884_v6  ;;  %7443 = vmatprep.subr.bf16.mxu0 %v10339_v35 }
 0x2d4   : > { %7586 = vmatpush3.bf16.msra.mxu1 %v10340_v44  ;;  %7163 = vmatprep.mubr.msk.f32.mxu1 %vm8208_vm6, %v10338_v47 }
 0x2d5   : > { %7587 = vmatprep.subr.bf16.mxu1 %v10339_v35 }
 0x2d6   : > { %7445 = vmatpush3.bf16.msra.mxu0 %v10341_v7 }
 0x2d7   : > { %7446 = vmatprep.subr.bf16.mxu0 %v10339_v35 }
 0x2d8   : > { %7589 = vmatpush3.bf16.msra.mxu1 %v10341_v7 }
 0x2d9   : > { %7590 = vmatprep.subr.bf16.mxu1 %v10339_v35 }
 0x2da   : > { %7448 = vmatpush3.bf16.msra.mxu0 %v10342_v63 }
 0x2db   : > { %7449 = vmatprep.subr.bf16.mxu0 %v10339_v35 }
 0x2dc   : > { %7592 = vmatpush3.bf16.msra.mxu1 %v10342_v63 }
 0x2dd   : > { %7593 = vmatprep.subr.bf16.mxu1 %v10339_v35 }
 0x2de   : > { %7451 = vmatpush3.bf16.msra.mxu0 %v10343_v45 }
 0x2df   : > { %7452 = vmatprep.subr.bf16.mxu0 %v10339_v35 }
 0x2e0   : > { %7595 = vmatpush3.bf16.msra.mxu1 %v10343_v45 }
 0x2e1   : > { %7596 = vmatprep.subr.bf16.mxu1 %v10339_v35 }
 0x2e2   : > { %7454 = vmatpush3.bf16.msra.mxu0 %v10344_v37 }
 0x2e3   : > { %7455 = vmatprep.subr.bf16.mxu0 %v10339_v35 }
 0x2e4   : > { %7598 = vmatpush3.bf16.msra.mxu1 %v10344_v37 }
 0x2e5   : > { %7599 = vmatprep.subr.bf16.mxu1 %v10339_v35 }
 0x2e6   : > { %7457 = vmatpush3.bf16.msra.mxu0 %v10345_v2 }
 0x2e7   : > { %7458 = vmatprep.subr.bf16.mxu0 %v10339_v35 }
 0x2e8   : > { %7601 = vmatpush3.bf16.msra.mxu1 %v10345_v2 }
 0x2e9   : > { %7602 = vmatprep.subr.bf16.mxu1 %v10339_v35 }
 0x2ea   : > { %7460 = vmatpush3.bf16.msra.mxu0 %v10346_v38 }
 0x2eb   : > { %7461 = vmatprep.subr.bf16.mxu0 %v10339_v35 }
 0x2ec   : > { %7604 = vmatpush3.bf16.msra.mxu1 %v10346_v38 }
 0x2ed   : > { %7605 = vmatprep.subr.bf16.mxu1 %v10339_v35 }
 0x2ee   : > { %7463 = vmatpush3.bf16.msra.mxu0 %v10347_v9 }
 0x2ef   : > { %7464 = vmatprep.subr.bf16.mxu0 %v10339_v35 }
 0x2f0   : > { %7607 = vmatpush3.bf16.msra.mxu1 %v10347_v9 }
 0x2f1   : > { %6954 = vmatmul.mubr.f32.vlgmr.msra.gmra.mrb[128].mxu0 %v3219_v46  ;;  %7608 = vmatprep.subr.bf16.mxu1 %v10339_v35 }
 0x2f2   : > { %7466 = vmatpush3.bf16.msra.mxu0 %v7465_v11  ;;  %6988 = vmatprep.mubr.msk.f32.mxu0 %vm8208_vm6, %v10338_v47 }
 0x2f3   : > { %7164 = vmatmul.mubr.f32.vlgmr.msra.gmra.mrb[96].mxu1 %v3860_v23  ;;  %7467 = vmatprep.subr.bf16.mxu0 %v10339_v35 }
 0x2f4   : > { %7610 = vmatpush3.bf16.msra.mxu1 %v7465_v11  ;;  %7198 = vmatprep.mubr.msk.f32.mxu1 %vm8208_vm6, %v10338_v47 }
 0x2f5   : > { %7611 = vmatprep.subr.bf16.mxu1 %v10339_v35 }
 0x2f6   : > { %7469 = vmatpush3.bf16.msra.mxu0 %v7468_v43 }
 0x2f7   : > { %7470 = vmatprep.subr.bf16.mxu0 %v10339_v35 }
 0x2f8   : > { %7613 = vmatpush3.bf16.msra.mxu1 %v7468_v43  ;;  %v5406_v43 = vld [vmem:[%s10227_s5] sm:$0x1] }
 0x2f9   : > { %7614 = vmatprep.subr.bf16.mxu1 %v10339_v35 }
 0x2fa   : > { %7472 = vmatpush3.bf16.msra.mxu0 %v7471_v52 }
 0x2fb   : > { %7473 = vmatprep.subr.bf16.mxu0 %v10339_v35 }
 0x2fc   : > { %7616 = vmatpush3.bf16.msra.mxu1 %v7471_v52 }
 0x2fd   : > { %7617 = vmatprep.subr.bf16.mxu1 %v10339_v35 }
 0x2fe   : > { %7475 = vmatpush3.bf16.msra.mxu0 %v9753_v30 }
 0x2ff   : > { %7476 = vmatprep.subr.bf16.mxu0 %v10339_v35 }
 0x300   : > { %7619 = vmatpush3.bf16.msra.mxu1 %v9753_v30  ;;  %v4426_v30 = vld [vmem:[%s10230_s8 + $0x8] sm:$0xff] }
 0x301   : > { %7620 = vmatprep.subr.bf16.mxu1 %v10339_v35  ;;  %v4437_v60 = vand.u32 4294901760, %v4426_v30 }
 0x302   : > { %7478 = vmatpush3.bf16.msra.mxu0 %v9780_v48 }
 0x303   : > { %7479 = vmatprep.subr.bf16.mxu0 %v10339_v35  ;;  %v4521_v54 = vsub.f32 %v4426_v30, %v4437_v60  ;;  %v10132_v18 = vpack.c.bf16 %v4437_v60, %v4434_v4 }
 0x304   : > { %7622 = vmatpush3.bf16.msra.mxu1 %v9780_v48  ;;  %v4514_v48 = vsub.f32 %v4425_v16, %v4434_v4 }
 0x305   : > { %7623 = vmatprep.subr.bf16.mxu1 %v10339_v35  ;;  %v4522_v59 = vand.u32 4294901760, %v4521_v54 }
 0x306   : > { %7481 = vmatpush3.bf16.msra.mxu0 %v9823_v20  ;;  %v10125_v36 = vpack.c.bf16 %v4521_v54, %v4514_v48 }
 0x307   : > { %7482 = vmatprep.subr.bf16.mxu0 %v10339_v35  ;;  %v4523_v6 = vsub.f32 %v4521_v54, %v4522_v59 }
 0x308   : > { %7625 = vmatpush3.bf16.msra.mxu1 %v9823_v20  ;;  %v4428_v20 = vld [vmem:[%s10230_s8 + $0x18] sm:$0xff] }
 0x309   : > { %7626 = vmatprep.subr.bf16.mxu1 %v10339_v35  ;;  %v4443_v41 = vand.u32 4294901760, %v4428_v20  ;;  %v4524_v23 = vand.u32 4294901760, %v4523_v6 }
 0x30a   : > { %7484 = vmatpush3.bf16.msra.mxu0 %v9865_v17 }
 0x30b   : > { %7485 = vmatprep.subr.bf16.mxu0 %v10339_v35  ;;  %v10137_v14 = vpack.c.bf16 %v4443_v41, %v4440_v19 }
 0x30c   : > { %7628 = vmatpush3.bf16.msra.mxu1 %v9865_v17 }
 0x30d   : > { %7629 = vmatprep.subr.bf16.mxu1 %v10339_v35 }
 0x30e   : > { %7487 = vmatpush3.bf16.msra.mxu0 %v9886_v53 }
 0x30f   : > { %7488 = vmatprep.subr.bf16.mxu0 %v10339_v35 }
 0x310   : > { %7631 = vmatpush3.bf16.msra.mxu1 %v9886_v53 }
 0x311   : > { %6989 = vmatmul.mubr.f32.vlgmr.msra.gmra.mrb[128].mxu0 %v9858_v3  ;;  %7632 = vmatprep.subr.bf16.mxu1 %v10339_v35 }
 0x312   : > { %7490 = vmatpush3.bf16.msra.mxu0 %v10340_v44  ;;  %7023 = vmatprep.mubr.msk.f32.mxu0 %vm8208_vm6, %v10338_v47 }
 0x313   : > { %7199 = vmatmul.mubr.f32.vlgmr.msra.gmra.mrb[96].mxu1 %v9870_v57  ;;  %7491 = vmatprep.subr.bf16.mxu0 %v10339_v35 }
 0x314   : > { %7634 = vmatpush3.bf16.msra.mxu1 %v10340_v44  ;;  %7233 = vmatprep.mubr.msk.f32.mxu1 %vm8208_vm6, %v10338_v47 }
 0x315   : > { %7635 = vmatprep.subr.bf16.mxu1 %v10339_v35 }
 0x316   : > { %7493 = vmatpush3.bf16.msra.mxu0 %v10341_v7 }
 0x317   : > { %7494 = vmatprep.subr.bf16.mxu0 %v10339_v35 }
 0x318   : > { %7637 = vmatpush3.bf16.msra.mxu1 %v10341_v7 }
 0x319   : > { %7638 = vmatprep.subr.bf16.mxu1 %v10339_v35 }
 0x31a   : > { %7496 = vmatpush3.bf16.msra.mxu0 %v10342_v63 }
 0x31b   : > { %7497 = vmatprep.subr.bf16.mxu0 %v10339_v35 }
 0x31c   : > { %7640 = vmatpush3.bf16.msra.mxu1 %v10342_v63 }
 0x31d   : > { %7641 = vmatprep.subr.bf16.mxu1 %v10339_v35 }
 0x31e   : > { %7499 = vmatpush3.bf16.msra.mxu0 %v10343_v45 }
 0x31f   : > { %7500 = vmatprep.subr.bf16.mxu0 %v10339_v35 }
 0x320   : > { %7643 = vmatpush3.bf16.msra.mxu1 %v10343_v45 }
 0x321   : > { %7644 = vmatprep.subr.bf16.mxu1 %v10339_v35 }
 0x322   : > { %7502 = vmatpush3.bf16.msra.mxu0 %v10344_v37 }
 0x323   : > { %7503 = vmatprep.subr.bf16.mxu0 %v10339_v35 }
 0x324   : > { %7646 = vmatpush3.bf16.msra.mxu1 %v10344_v37 }
 0x325   : > { %7647 = vmatprep.subr.bf16.mxu1 %v10339_v35 }
 0x326   : > { %7505 = vmatpush3.bf16.msra.mxu0 %v10345_v2 }
 0x327   : > { %7506 = vmatprep.subr.bf16.mxu0 %v10339_v35 }
 0x328   : > { %7649 = vmatpush3.bf16.msra.mxu1 %v10345_v2 }
 0x329   : > { %7650 = vmatprep.subr.bf16.mxu1 %v10339_v35 }
 0x32a   : > { %7508 = vmatpush3.bf16.msra.mxu0 %v10346_v38 }
 0x32b   : > { %7509 = vmatprep.subr.bf16.mxu0 %v10339_v35 }
 0x32c   : > { %7652 = vmatpush3.bf16.msra.mxu1 %v10346_v38 }
 0x32d   : > { %7653 = vmatprep.subr.bf16.mxu1 %v10339_v35 }
 0x32e   : > { %7511 = vmatpush3.bf16.msra.mxu0 %v10347_v9 }
 0x32f   : > { %7668 = vmatprep.subr.bf16.mxu0 %v10339_v35 }
 0x330   : > { %7655 = vmatpush3.bf16.msra.mxu1 %v10347_v9 }
 0x331   : > { %7024 = vmatmul.mubr.f32.vlgmr.msra.gmra.mrb[128].mxu0 %v9858_v3  ;;  %7656 = vmatprep.subr.bf16.mxu1 %v10339_v35  ;;  %v4535_v3 = vsub.f32 %v4428_v20, %v4443_v41 }
 0x332   : > { %7266 = vmatprep.mubr.msk.f32.mxu0 %vm8208_vm6, %v10338_v47  ;;  %7670 = vmatpush3.bf16.msra.mxu0 %v10125_v36 }
 0x333   : > { %7234 = vmatmul.mubr.f32.vlgmr.msra.gmra.mrb[96].mxu1 %v9870_v57  ;;  %7671 = vmatprep.subr.bf16.mxu0 %v10339_v35  ;;  %v10129_v17 = vpack.c.bf16 %v4535_v3, %v4528_v12  ;;  %v4515_v57 = vand.u32 4294901760, %v4514_v48  ;;  %v4536_v29 = vand.u32 4294901760, %v4535_v3 }
 0x334   : > { %7244 = vmatprep.mubr.msk.f32.mxu1 %vm8208_vm6, %v10338_v47  ;;  %7658 = vmatpush3.bf16.msra.mxu1 %v10132_v18 }
 0x335   : > { %7659 = vmatprep.subr.bf16.mxu1 %v10339_v35  ;;  %v4516_v46 = vsub.f32 %v4514_v48, %v4515_v57  ;;  %v4537_v22 = vsub.f32 %v4535_v3, %v4536_v29  ;;  %v10143_v21 = vpack.c.bf16 %v4522_v59, %v4515_v57  ;;  %v10145_v31 = vpack.c.bf16 %v4536_v29, %v4529_v32 }
 0x336   : > { %7673 = vmatpush3.bf16.msra.mxu0 %v10129_v17 }
 0x337   : > { %7674 = vmatprep.subr.bf16.mxu0 %v10339_v35  ;;  %v4517_v53 = vand.u32 4294901760, %v4516_v46  ;;  %v4538_v62 = vand.u32 4294901760, %v4537_v22 }
 0x338   : > { %7661 = vmatpush3.bf16.msra.mxu1 %v10137_v14 }
 0x339   : > { %7662 = vmatprep.subr.bf16.mxu1 %v10339_v35  ;;  %v10141_v28 = vpack.c.bf16 %v4524_v23, %v4517_v53  ;;  %v7666_v42 = vpack.c.bf16 %v4538_v62, %v4531_v40 }
 0x404   : > { %v3773_v1 = vpop.f32.mrb[128].mxu0 }
 0x405   : > { %v4418_v13 = vmul.f32 0.0009765625, %v3773_v1  ;;  %v7025_v39 = vpop.f32.mrb[129].mxu0 }
 0x406   : > { %v4414_v55 = vpop.f32.mrb[96].mxu1 }
 0x407   : > { %v4420_v50 = vmul.f32 %v4418_v13, %v4418_v13  ;;  %v4431_v26 = vsel %vm4429_vm7, %v4418_v13, 0  ;;  %v4419_v49 = vmul.f32 0.0009765625, %v4414_v55  ;;  %v7235_v27 = vpop.f32.mrb[97].mxu1 }
 0x408   : > { %v4502_v58 = vand.u32 4294901760, %v4431_v26 }
 0x409   : > { %v4421_v24 = vsub.f32 %v4419_v49, %v4420_v50 }
 0x40a   : > { %v4503_v8 = vsub.f32 %v4431_v26, %v4502_v58 }
 0x40b   : > { %v4422_v33 = vmax.f32 %v4421_v24, 0.0 }
 0x40c   : > { %v4504_v56 = vand.u32 4294901760, %v4503_v8  ;;  %7267 = vmatmul.mubr.f32.vlgmr.msra.gmra.mrb[130].mxu0 %v4503_v8 }
 0x40d   : > { %v4423_v51 = vadd.f32 1e-06, %v4422_v33  ;;  %7676 = vmatpush3.bf16.msra.mxu0 %v10132_v18  ;;  %7277 = vmatprep.mubr.msk.f32.mxu0 %vm8208_vm6, %v10338_v47 }
 0x40e   : > { %7677 = vmatprep.subr.bf16.mxu0 %v10339_v35  ;;  %v4505_v5 = vsub.f32 %v4503_v8, %v4504_v56 }
 0x40f   : > { %8170 = vrsqrt.f32 %v4423_v51 }
 0x410   : > { %v4506_v10 = vand.u32 4294901760, %v4505_v5 }
 0x411   : > { %7679 = vmatpush3.bf16.msra.mxu0 %v10137_v14 }
 0x412   : > { %7245 = vmatmul.mubr.f32.vlgmr.msra.gmra.mrb[98].mxu1 %v4506_v10  ;;  %7680 = vmatprep.subr.bf16.mxu0 %v10339_v35 }
 0x413   : > { %7664 = vmatpush3.bf16.msra.mxu1 %v10141_v28  ;;  %7255 = vmatprep.mubr.msk.f32.mxu1 %vm8208_vm6, %v10338_v47 }
 0x414   : > { %7278 = vmatmul.mubr.f32.vlgmr.msra.gmra.mrb[130].mxu0 %v4504_v56  ;;  %7665 = vmatprep.subr.bf16.mxu1 %v10339_v35 }
 0x415   : > { %7682 = vmatpush3.bf16.msra.mxu0 %v10143_v21  ;;  %7288 = vmatprep.mubr.msk.f32.mxu0 %vm8208_vm6, %v10338_v47 }
 0x416   : > { %7683 = vmatprep.subr.bf16.mxu0 %v10339_v35 }
 0x417   : > { %7667 = vmatpush3.bf16.msra.mxu1 %v7666_v42 }
 0x419   : > { %v8171_v0 = vpop.eup %8170  ;;  %7685 = vmatpush3.bf16.msra.mxu0 %v10145_v31 }
 0x41a   : > { %7256 = vmatmul.mubr.f32.vlgmr.msra.gmra.mrb[98].mxu1 %v4502_v58  ;;  %7686 = vmatprep.subr.bf16.mxu0 %v10339_v35  ;;  %v4919_v34 = vsel %vm4429_vm7, %v8171_v0, 0 }
 0x41b   : > { %v4990_v15 = vand.u32 4294901760, %v4919_v34 }
 0x41c   : > { %7289 = vmatmul.mubr.f32.vlgmr.msra.gmra.mrb[130].mxu0 %v4502_v58 }
 0x41d   : > { %7688 = vmatpush3.bf16.msra.mxu0 %v10132_v18  ;;  %7299 = vmatprep.mubr.msk.f32.mxu0 %vm8208_vm6, %v10338_v47  ;;  %v4991_v44 = vsub.f32 %v4919_v34, %v4990_v15 }
 0x41e   : > { %7689 = vmatprep.subr.bf16.mxu0 %v10339_v35 }
 0x41f   : > { %v4992_v7 = vand.u32 4294901760, %v4991_v44 }
 0x421   : > { %7691 = vmatpush3.bf16.msra.mxu0 %v10137_v14  ;;  %v4993_v63 = vsub.f32 %v4991_v44, %v4992_v7 }
 0x422   : > { %7692 = vmatprep.subr.bf16.mxu0 %v10339_v35 }
 0x423   : > { %v4994_v45 = vand.u32 4294901760, %v4993_v63 }
 0x424   : > { %7300 = vmatmul.mubr.f32.vlgmr.msra.gmra.mrb[130].mxu0 %v4502_v58 }
 0x425   : > { %7694 = vmatpush3.bf16.msra.mxu0 %v10132_v18  ;;  %7310 = vmatprep.mubr.msk.f32.mxu0 %vm8208_vm6, %v10338_v47 }
 0x426   : > { %7695 = vmatprep.subr.bf16.mxu0 %v10339_v35 }
 0x429   : > { %7697 = vmatpush3.bf16.msra.mxu0 %v10137_v14 }
 0x42a   : > { %7698 = vmatprep.subr.bf16.mxu0 %v10339_v35 }
 0x42c   : > { %7311 = vmatmul.mubr.f32.vlgmr.msra.gmra.mrb[132].mxu0 %v4994_v45 }
 0x42d   : > { %7700 = vmatpush3.bf16.msra.mxu0 %v10141_v28  ;;  %7321 = vmatprep.mubr.msk.f32.mxu0 %vm8208_vm6, %v10338_v47 }
 0x42e   : > { %7701 = vmatprep.subr.bf16.mxu0 %v10339_v35 }
 0x431   : > { %7703 = vmatpush3.bf16.msra.mxu0 %v7666_v42 }
 0x432   : > { %7704 = vmatprep.subr.bf16.mxu0 %v10339_v35 }
 0x434   : > { %7322 = vmatmul.mubr.f32.vlgmr.msra.gmra.mrb[132].mxu0 %v4990_v15 }
 0x435   : > { %7706 = vmatpush3.bf16.msra.mxu0 %v10125_v36  ;;  %7332 = vmatprep.mubr.msk.f32.mxu0 %vm8208_vm6, %v10338_v47 }
 0x436   : > { %7707 = vmatprep.subr.bf16.mxu0 %v10339_v35 }
 0x439   : > { %7709 = vmatpush3.bf16.msra.mxu0 %v10129_v17 }
 0x43a   : > { %7710 = vmatprep.subr.bf16.mxu0 %v10339_v35 }
 0x43c   : > { %7333 = vmatmul.mubr.f32.vlgmr.msra.gmra.mrb[132].mxu0 %v4991_v44 }
 0x43d   : > { %7712 = vmatpush3.bf16.msra.mxu0 %v10132_v18  ;;  %7343 = vmatprep.mubr.msk.f32.mxu0 %vm8208_vm6, %v10338_v47 }
 0x43e   : > { %7713 = vmatprep.subr.bf16.mxu0 %v10339_v35 }
 0x441   : > { %7715 = vmatpush3.bf16.msra.mxu0 %v10137_v14 }
 0x442   : > { %7716 = vmatprep.subr.bf16.mxu0 %v10339_v35 }
 0x444   : > { %7344 = vmatmul.mubr.f32.vlgmr.msra.gmra.mrb[132].mxu0 %v4992_v7 }
 0x445   : > { %7718 = vmatpush3.bf16.msra.mxu0 %v10143_v21  ;;  %7354 = vmatprep.mubr.msk.f32.mxu0 %vm8208_vm6, %v10338_v47 }
 0x446   : > { %7719 = vmatprep.subr.bf16.mxu0 %v10339_v35 }
 0x449   : > { %7721 = vmatpush3.bf16.msra.mxu0 %v10145_v31 }
 0x44a   : > { %7722 = vmatprep.subr.bf16.mxu0 %v10339_v35 }
 0x44c   : > { %7355 = vmatmul.mubr.f32.vlgmr.msra.gmra.mrb[132].mxu0 %v4990_v15 }
 0x44d   : > { %7724 = vmatpush3.bf16.msra.mxu0 %v10132_v18  ;;  %7365 = vmatprep.mubr.msk.f32.mxu0 %vm8208_vm6, %v10338_v47  ;;  %v5409_v47 = vld [vmem:[%s10228_s6] sm:$0x1] }
 0x44e   : > { %7725 = vmatprep.subr.bf16.mxu0 %v10339_v35 }
 0x451   : > { %7727 = vmatpush3.bf16.msra.mxu0 %v10137_v14 }
 0x454   : > { %7366 = vmatmul.mubr.f32.vlgmr.msra.gmra.mrb[132].mxu0 %v4990_v15 }
 0x4ed   : > { %v4599_v37 = vpop.f32.mrb[98].mxu1 }
 0x4ee   : > { %v7257_v2 = vpop.f32.mrb[99].mxu1 }
 0x4f7   : > { %v4914_v38 = vpop.f32.mrb[130].mxu0 }
 0x4f8   : > { %v7824_v9 = vadd.f32 %v4914_v38, %v4599_v37  ;;  %v7301_v11 = vpop.f32.mrb[131].mxu0 }
 0x527   : > { %v5402_v52 = vpop.f32.mrb[132].mxu0 }
 0x528   : > { %v5407_v16 = vmul.f32 %v5406_v43, %v5402_v52  ;;  %v7367_v30 = vpop.f32.mrb[133].mxu0 }
 0x52a   : > { %5408 = vst [vmem:[%s9733_s15] sm:$0x1] %v5407_v16  ;;  %v5410_v35 = vmul.f32 %v7824_v9, %v5407_v16 }
 0x52c   : > { %v5411_v4 = vsub.f32 %v5409_v47, %v5410_v35 }
 0x52e   : > { %5412 = vst [vmem:[%s9759_s28] sm:$0x1] %v5411_v4 }
 0x52f PF: > { %s22_s19 = sadd.s32 1, %s8205_s19   ;;  %s10348_s17 = smov %s8201_s18 }
 0x530   : > { %p19_p5 = scmp.ge.s32.totalorder %s22_s19, 4   ;;  %s10349_s18 = smov %s10351_s20 }
 0x532   :  { %21 = sbr.rel (!%p19_p5) target bundleno = 2 (0x2), region = 130 }

</bundles_post_ra>
